<compile_context>
chip_gen: v7x
topology: tpu7x:2x2x1
jax: 0.10.0
libtpu: 0.0.40
codegen_flags: <defaults>
</compile_context>

<pallas_src>
import math
import functools

import jax
import jax.numpy as jnp
from jax.experimental import pallas as pl
from jax.experimental.pallas import tpu as pltpu


def _divisors(n):
    return [d for d in range(1, n + 1) if n % d == 0]


def _vmem_estimate(gh, tj, nh, dh, seq, hid):
    """Coarse per-grid-step VMEM footprint (bytes) of the attention kernel."""
    rel = gh * seq * tj * dh
    est = 8 * rel                    # two bf16 graph_rels slabs, double-buffered
    est += 8 * rel                   # rel K|V projection (f32)
    est += 8 * rel                   # rel Q projection before/after the in-VMEM transpose (f32)
    est += 8 * rel                   # fused-score elementwise temporaries (f32)
    est += 16 * gh * seq * tj        # scores / probs / exp temporaries (f32)
    est += 8 * seq * tj              # graph-mask tile (double-buffered)
    est += 20 * seq * hid            # hidden states (dbl-buffered) + z scratch + output block
    est += 16 * gh * seq * dh        # q/k/v/acc scratch
    est += 8 * hid * 4 * gh * dh     # grouped QKV + output-dense weight blocks
    return est


def _choose_tiling(nh, dh, seq, hid, budget_bytes):
    """Pick (heads_per_group, kv_tile) so the per-step footprint fits the VMEM budget."""
    kv_opts = [t for t in _divisors(seq) if (t % 8 == 0 or t == seq)] or [seq]
    tj = kv_opts[0]
    for t in kv_opts:                       # ascending: take the largest tile that fits
        if _vmem_estimate(1, t, nh, dh, seq, hid) <= budget_bytes:
            tj = t
    gh = 1
    for g in _divisors(nh):
        if g * dh <= 512 and _vmem_estimate(g, tj, nh, dh, seq, hid) <= budget_bytes:
            gh = g
    return gh, tj


def _graph_attn_kernel(hs_ref, wqkv_ref, bqkv_ref, relc_ref, relr_ref,
                       wqr_ref, bqr_ref, wkvr_ref, bkvr_ref,
                       gmask_ref, amask_ref, wo_ref, bo_ref, gamma_ref, beta_ref,
                       out_ref,
                       q_sc, k_sc, v_sc, m_sc, l_sc, acc_sc, z_sc,
                       *, heads_per_group, head_dim, kv_tile, eps):
    Gh, dh, Tj = heads_per_group, head_dim, kv_tile
    S = hs_ref.shape[1]
    GhDh = Gh * dh

    g = pl.program_id(1)
    j = pl.program_id(2)
    ng = pl.num_programs(1)
    nj = pl.num_programs(2)

    def mm(a, b):
        return jax.lax.dot_general(a, b, (((1,), (0,)), ((), ())),
                                   preferred_element_type=jnp.float32)

    # ---- per-(batch, head-group) prologue: QKV once into persistent scratch + softmax state init
    @pl.when(j == 0)
    def _():
        x = hs_ref[0]                                        # (S, H)
        qkv = mm(x, wqkv_ref[0]) + bqkv_ref[0]               # (S, 3*Gh*dh); Q side pre-scaled 1/sqrt(dh)
        for h in range(Gh):                                  # Gh is a small static constant
            q_sc[h] = qkv[:, h * dh:(h + 1) * dh]
            k_sc[h] = qkv[:, GhDh + h * dh:GhDh + (h + 1) * dh]
            v_sc[h] = qkv[:, 2 * GhDh + h * dh:2 * GhDh + (h + 1) * dh]
        m_sc[...] = jnp.full(m_sc.shape, -1e30, jnp.float32)
        l_sc[...] = jnp.zeros(l_sc.shape, jnp.float32)
        acc_sc[...] = jnp.zeros(acc_sc.shape, jnp.float32)

    @pl.when(jnp.logical_and(g == 0, j == 0))
    def _():
        z_sc[...] = jnp.zeros(z_sc.shape, jnp.float32)

    # ---- this key/relation tile
    j0 = pl.multiple_of(j * Tj, Tj)
    q = q_sc[...]                                            # (Gh, S, dh)   (1/sqrt(dh) folded in)
    k = k_sc[...]                                            # (Gh, S, dh)
    kj = k_sc[:, pl.ds(j0, Tj), :]                           # (Gh, Tj, dh)
    vj = v_sc[:, pl.ds(j0, Tj), :]                           # (Gh, Tj, dh)

    # plain q.k^T term on the MXU
    a_term = jnp.einsum('gid,gjd->gij', q, kj,
                        preferred_element_type=jnp.float32)  # (Gh, S, Tj)

    # relation K|V projection from the [i, j-tile] slab (bf16 into the MXU, f32 accumulate)
    relc = relc_ref[0]                                       # (Gh, S, Tj, dh)  bf16
    relkv = (mm(relc.reshape(Gh * S * Tj, dh), wkvr_ref[...]) + bkvr_ref[...]
             ).reshape(Gh, S, Tj, 2 * dh)
    rel_k = relkv[..., :dh]
    rel_v = relkv[..., dh:]

    # relation Q projection from the [j-tile, i] slab; only the projected f32 output is transposed
    relr = relr_ref[0]                                       # (Gh, Tj, S, dh)  bf16
    relq_t = (mm(relr.reshape(Gh * Tj * S, dh), wqr_ref[...]) + bqr_ref[...]
              ).reshape(Gh, Tj, S, dh)                       # already 1/sqrt(dh)-scaled
    rel_q = jnp.swapaxes(relq_t, 1, 2)                       # (Gh, S, Tj, dh)

    # fused b + c + r score term ("c" couples rel_q with the key at the *query* index):
    #   b + c + r = sum_d [ q_i * rel_k + rel_q * (k_i + rel_k) ]
    qe = q[:, :, None, :]
    ke = k[:, :, None, :]
    fused = jnp.sum(qe * rel_k + rel_q * (ke + rel_k), axis=-1)   # (Gh, S, Tj)

    gm = jnp.swapaxes(gmask_ref[0], 0, 1)                    # (S, Tj) multiplicative graph mask
    am = amask_ref[0].reshape(1, Tj)                         # (1, Tj) additive attention mask
    scores = (a_term + fused) * gm + am                      # (Gh, S, Tj)

    # ---- online softmax across the key-tile grid axis
    m_prev = m_sc[...]
    m_new = jnp.maximum(m_prev, jnp.max(scores, axis=-1, keepdims=True))
    alpha = jnp.exp(m_prev - m_new)
    p = jnp.exp(scores - m_new)                              # (Gh, S, Tj)
    # TODO(synk): attention-probs dropout is eval-mode identity (no training-time dropout).
    l_sc[...] = alpha * l_sc[...] + jnp.sum(p, axis=-1, keepdims=True)
    pv = jnp.einsum('gij,gjd->gid', p, vj,
                    preferred_element_type=jnp.float32)      # (Gh, S, dh)
    prel = jnp.sum(p[..., None] * rel_v, axis=2)             # (Gh, S, dh)
    acc_sc[...] = alpha * acc_sc[...] + pv + prel
    m_sc[...] = m_new

    # ---- finalize this head group: exact normalize and fold into the output-dense accumulator
    last_j = j == nj - 1

    @pl.when(last_j)
    def _():
        ctx = acc_sc[...] / l_sc[...]                        # (Gh, S, dh)  exact, once per group
        ctx_flat = jnp.swapaxes(ctx, 0, 1).reshape(S, GhDh)  # (S, Gh*dh) head-major columns
        z_sc[...] += mm(ctx_flat, wo_ref[0])                 # accumulate dense over head groups

    # ---- final epilogue: bias + residual + LayerNorm, single lane-dense (S, H) store
    @pl.when(jnp.logical_and(last_j, g == ng - 1))
    def _():
        z = z_sc[...] + bo_ref[...] + hs_ref[0]
        # TODO(synk): hidden dropout is eval-mode identity (no training-time dropout).
        mu = jnp.mean(z, axis=-1, keepdims=True)
        zc = z - mu
        var = jnp.mean(zc * zc, axis=-1, keepdims=True)
        out_ref[0] = (zc * jax.lax.rsqrt(var + eps) * gamma_ref[...]
                      + beta_ref[...]).astype(out_ref.dtype)


def transformer_attention(hidden_states, params, graph_rels, graph_mask, attention_mask,
                          num_heads, head_dim, layer_norm_eps=1e-12,
                          heads_per_group=None, kv_tile=None,
                          vmem_budget_bytes=40 * 2 ** 20):
    B, S, H = hidden_states.shape
    nh, dh = num_heads, head_dim
    assert H == nh * dh
    assert graph_rels.shape == (B, nh, S, S, dh)
    assert graph_mask.shape == (B, 1, S, S)
    assert attention_mask.shape == (B, 1, 1, S)

    auto_gh, auto_tj = _choose_tiling(nh, dh, S, H, vmem_budget_bytes)
    Gh = heads_per_group if heads_per_group is not None else auto_gh
    Tj = kv_tile if kv_tile is not None else auto_tj
    assert nh % Gh == 0
    assert S % Tj == 0 and (Tj % 8 == 0 or Tj == S)
    ngroups = nh // Gh
    nj = S // Tj
    GhDh = Gh * dh
    inv = 1.0 / math.sqrt(dh)
    # TODO(synk): for very long S also tile the query axis (extra parallel grid dim) to keep the
    # resident (Gh, S, Tj, dh) slabs inside the budget without shrinking Tj below 128 lanes.

    # ---- host-side (XLA) parameter packing; 1/sqrt(dh) folded into the Q-side weights/biases ----
    def group_cols(w):            # (H, H) -> (ngroups, H, Gh*dh), heads stay column-major per group
        return jnp.transpose(w.reshape(H, ngroups, GhDh), (1, 0, 2))

    def group_bias(b):            # (H,)   -> (ngroups, 1, Gh*dh)
        return b.reshape(ngroups, 1, GhDh)

    wqkv = jnp.concatenate([group_cols(params["wq"] * inv),
                            group_cols(params["wk"]),
                            group_cols(params["wv"])], axis=-1)          # (ngroups, H, 3*Gh*dh)
    bqkv = jnp.concatenate([group_bias(params["bq"] * inv),
                            group_bias(params["bk"]),
                            group_bias(params["bv"])], axis=-1)          # (ngroups, 1, 3*Gh*dh)

    wq_rel = (params["wqr"] * inv).astype(jnp.bfloat16)                  # (dh, dh)
    bq_rel = (params["bqr"] * inv).reshape(1, dh).astype(jnp.float32)
    wkv_rel = jnp.concatenate([params["wkr"], params["wvr"]],
                              axis=-1).astype(jnp.bfloat16)              # (dh, 2*dh) fused K|V
    bkv_rel = jnp.concatenate([params["bkr"], params["bvr"]]).reshape(1, 2 * dh)

    wo_g = params["wo"].reshape(ngroups, GhDh, H)                        # per-group rows of output dense
    bo = params["bo"].reshape(1, H)
    gamma = params["gamma"].reshape(1, H)
    beta = params["beta"].reshape(1, H)

    # graph_rels is the dominant HBM stream: stream it as bf16 (f32 accumulation in-kernel).
    # TODO(synk): have the upstream producer emit bf16 graph_rels directly to skip this cast pass.
    rel_lp = graph_rels.astype(jnp.bfloat16)

    # masks re-laid so the key axis is the (sublane) tiling axis of their BlockSpecs
    gmask_kq = jnp.swapaxes(graph_mask, 2, 3)[:, 0]                      # (B, S_key, S_query)
    amask_k = attention_mask[:, 0, 0, :, None]                           # (B, S_key, 1)

    est = _vmem_estimate(Gh, Tj, nh, dh, S, H)
    vmem_limit = int(min(100 * 2 ** 20, max(32 * 2 ** 20, int(est * 1.25) + (2 << 20))))

    in_specs = [
        pl.BlockSpec((1, S, H), lambda b, g, j: (b, 0, 0)),              # hidden_states (also residual)
        pl.BlockSpec((1, H, 3 * GhDh), lambda b, g, j: (g, 0, 0)),       # packed QKV weights (group)
        pl.BlockSpec((1, 1, 3 * GhDh), lambda b, g, j: (g, 0, 0)),       # packed QKV bias
        pl.BlockSpec((1, Gh, S, Tj, dh), lambda b, g, j: (b, g, 0, j, 0)),  # graph_rels[:, :, :, j-tile]
        pl.BlockSpec((1, Gh, Tj, S, dh), lambda b, g, j: (b, g, j, 0, 0)),  # graph_rels[:, :, j-tile, :]
        pl.BlockSpec((dh, dh), lambda b, g, j: (0, 0)),                  # wq_rel (bf16, scaled)
        pl.BlockSpec((1, dh), lambda b, g, j: (0, 0)),                   # bq_rel
        pl.BlockSpec((dh, 2 * dh), lambda b, g, j: (0, 0)),              # wkv_rel (K|V fused, bf16)
        pl.BlockSpec((1, 2 * dh), lambda b, g, j: (0, 0)),               # bkv_rel
        pl.BlockSpec((1, Tj, S), lambda b, g, j: (b, j, 0)),             # graph mask (key axis tiled)
        pl.BlockSpec((1, Tj, 1), lambda b, g, j: (b, j, 0)),             # attention mask (additive)
        pl.BlockSpec((1, GhDh, H), lambda b, g, j: (g, 0, 0)),           # output-dense rows (group)
        pl.BlockSpec((1, H), lambda b, g, j: (0, 0)),                    # output-dense bias
        pl.BlockSpec((1, H), lambda b, g, j: (0, 0)),                    # LN gamma
        pl.BlockSpec((1, H), lambda b, g, j: (0, 0)),                    # LN beta
    ]

    out = pl.pallas_call(
        functools.partial(_graph_attn_kernel, heads_per_group=Gh, head_dim=dh,
                          kv_tile=Tj, eps=layer_norm_eps),
        out_shape=jax.ShapeDtypeStruct((B, S, H), jnp.float32),
        grid_spec=pltpu.PrefetchScalarGridSpec(
            num_scalar_prefetch=0,
            grid=(B, ngroups, nj),
            in_specs=in_specs,
            out_specs=pl.BlockSpec((1, S, H), lambda b, g, j: (b, 0, 0)),
            scratch_shapes=[
                pltpu.VMEM((Gh, S, dh), jnp.float32),   # q  (persistent across key tiles)
                pltpu.VMEM((Gh, S, dh), jnp.float32),   # k
                pltpu.VMEM((Gh, S, dh), jnp.float32),   # v
                pltpu.VMEM((Gh, S, 1), jnp.float32),    # online-softmax running max
                pltpu.VMEM((Gh, S, 1), jnp.float32),    # online-softmax running denom
                pltpu.VMEM((Gh, S, dh), jnp.float32),   # context accumulator
                pltpu.VMEM((S, H), jnp.float32),        # dense-output accumulator (over head groups)
            ]),
        compiler_params=pltpu.CompilerParams(
            dimension_semantics=("parallel", "arbitrary", "arbitrary"),
            vmem_limit_bytes=vmem_limit),
    )(hidden_states, wqkv, bqkv, rel_lp, rel_lp, wq_rel, bq_rel, wkv_rel, bkv_rel,
      gmask_kq, amask_k, wo_g, bo, gamma, beta)
    return out


def reference(hidden_states, params, graph_rels, graph_mask, attention_mask,
              num_heads, head_dim, layer_norm_eps=1e-12):
    """Pure-JAX replica of the PyTorch TransformerAttention forward (eval mode)."""
    B, S, H = hidden_states.shape
    nh, dh = num_heads, head_dim

    def t4(x):  # transpose_for_scores
        return jnp.transpose(x.reshape(B, S, nh, dh), (0, 2, 1, 3))

    q = t4(hidden_states @ params["wq"] + params["bq"])
    k = t4(hidden_states @ params["wk"] + params["bk"])
    v = t4(hidden_states @ params["wv"] + params["bv"])

    rel_q = jnp.swapaxes(graph_rels, -2, -3) @ params["wqr"] + params["bqr"]
    rel_k = graph_rels @ params["wkr"] + params["bkr"]
    rel_v = graph_rels @ params["wvr"] + params["bvr"]

    scores = jnp.einsum("bhid,bhjd->bhij", q, k)
    scores = scores + jnp.einsum("bhid,bhijd->bhij", q, rel_k)
    scores = scores + jnp.einsum("bhijd,bhid->bhij", rel_q, k)
    scores = scores + (rel_q * rel_k).sum(-1)
    scores = scores / math.sqrt(dh)
    scores = scores * graph_mask
    scores = scores + attention_mask

    probs = jax.nn.softmax(scores, axis=-1)
    ctx = jnp.einsum("bhij,bhjd->bhid", probs, v)
    ctx = ctx + jnp.einsum("bhij,bhijd->bhid", probs, rel_v)
    attn = jnp.transpose(ctx, (0, 2, 1, 3)).reshape(B, S, nh * dh)

    z = attn @ params["wo"] + params["bo"] + hidden_states
    mu = z.mean(-1, keepdims=True)
    var = ((z - mu) ** 2).mean(-1, keepdims=True)
    return (z - mu) / jnp.sqrt(var + layer_norm_eps) * params["gamma"] + params["beta"]


if __name__ == "__main__":
    # Small shapes that still exercise every grid axis: 2 batches, 2 head groups, 2 key tiles.
    B, S, nh, dh = 2, 32, 4, 8
    H = nh * dh

    key = jax.random.PRNGKey(0)
    keys = jax.random.split(key, 20)

    params = {
        "wq": 0.05 * jax.random.normal(keys[0], (H, H), jnp.float32),
        "bq": 0.05 * jax.random.normal(keys[1], (H,), jnp.float32),
        "wk": 0.05 * jax.random.normal(keys[2], (H, H), jnp.float32),
        "bk": 0.05 * jax.random.normal(keys[3], (H,), jnp.float32),
        "wv": 0.05 * jax.random.normal(keys[4], (H, H), jnp.float32),
        "bv": 0.05 * jax.random.normal(keys[5], (H,), jnp.float32),
        "wqr": 0.05 * jax.random.normal(keys[6], (dh, dh), jnp.float32),
        "bqr": 0.05 * jax.random.normal(keys[7], (dh,), jnp.float32),
        "wkr": 0.05 * jax.random.normal(keys[8], (dh, dh), jnp.float32),
        "bkr": 0.05 * jax.random.normal(keys[9], (dh,), jnp.float32),
        "wvr": 0.05 * jax.random.normal(keys[10], (dh, dh), jnp.float32),
        "bvr": 0.05 * jax.random.normal(keys[11], (dh,), jnp.float32),
        "wo": 0.05 * jax.random.normal(keys[16], (H, H), jnp.float32),
        "bo": 0.05 * jax.random.normal(keys[17], (H,), jnp.float32),
        "gamma": 1.0 + 0.1 * jax.random.normal(keys[18], (H,), jnp.float32),
        "beta": 0.1 * jax.random.normal(keys[19], (H,), jnp.float32),
    }

    hidden_states = jax.random.normal(keys[12], (B, S, H), jnp.float32)
    graph_rels = 0.1 * jax.random.normal(keys[13], (B, nh, S, S, dh), jnp.float32)
    graph_mask = (jax.random.uniform(keys[14], (B, 1, S, S)) > 0.3).astype(jnp.float32)
    attention_mask = jnp.where(
        jax.random.uniform(keys[15], (B, 1, 1, S)) > 0.2, 0.0, -10000.0
    ).astype(jnp.float32)

    run = jax.jit(functools.partial(transformer_attention,
                                    num_heads=nh, head_dim=dh,
                                    heads_per_group=2, kv_tile=16))
    out = run(hidden_states, params, graph_rels, graph_mask, attention_mask)
    out = jax.block_until_ready(out)

    ref = reference(hidden_states, params, graph_rels, graph_mask,
                    attention_mask, nh, dh)
    assert out.shape == (B, S, H)
    max_err = jnp.max(jnp.abs(out - ref))
    assert jnp.allclose(out, ref, rtol=2e-3, atol=2e-3), f"max abs diff {max_err}"

    print("KERNEL_OK")
</pallas_src>

<mosaic_0001>
module attributes {stable_mosaic.version = 11 : i64} {
  func.func @_graph_attn_kernel(%arg0: i32, %arg1: i32, %arg2: i32, %arg3: memref<1x32x32xf32, #tpu.memory_space<vmem>>, %arg4: memref<1x32x48xf32, #tpu.memory_space<vmem>>, %arg5: memref<1x1x48xf32, #tpu.memory_space<vmem>>, %arg6: memref<1x2x32x16x8xbf16, #tpu.memory_space<vmem>>, %arg7: memref<1x2x16x32x8xbf16, #tpu.memory_space<vmem>>, %arg8: memref<8x8xbf16, #tpu.memory_space<vmem>>, %arg9: memref<1x8xf32, #tpu.memory_space<vmem>>, %arg10: memref<8x16xbf16, #tpu.memory_space<vmem>>, %arg11: memref<1x16xf32, #tpu.memory_space<vmem>>, %arg12: memref<1x16x32xf32, #tpu.memory_space<vmem>>, %arg13: memref<1x16x1xf32, #tpu.memory_space<vmem>>, %arg14: memref<1x16x32xf32, #tpu.memory_space<vmem>>, %arg15: memref<1x32xf32, #tpu.memory_space<vmem>>, %arg16: memref<1x32xf32, #tpu.memory_space<vmem>>, %arg17: memref<1x32xf32, #tpu.memory_space<vmem>>, %arg18: memref<1x32x32xf32, #tpu.memory_space<vmem>>, %arg19: memref<2x32x8xf32, #tpu.memory_space<vmem>>, %arg20: memref<2x32x8xf32, #tpu.memory_space<vmem>>, %arg21: memref<2x32x8xf32, #tpu.memory_space<vmem>>, %arg22: memref<2x32x1xf32, #tpu.memory_space<vmem>>, %arg23: memref<2x32x1xf32, #tpu.memory_space<vmem>>, %arg24: memref<2x32x8xf32, #tpu.memory_space<vmem>>, %arg25: memref<32x32xf32, #tpu.memory_space<vmem>>) attributes {dimension_semantics = [#tpu.dimension_semantics<parallel>, #tpu.dimension_semantics<arbitrary>, #tpu.dimension_semantics<arbitrary>], iteration_bounds = array<i64: 2, 2, 2>, scalar_prefetch = 0 : i64, scratch_operands = 7 : i64, tpu.core_type = #tpu.core_type<tc>, window_params = [{transform_indices = @transform_0, window_bounds = array<i64: 1, 32, 32>}, {transform_indices = @transform_1, window_bounds = array<i64: 1, 32, 48>}, {transform_indices = @transform_2, window_bounds = array<i64: 1, 1, 48>}, {transform_indices = @transform_3, window_bounds = array<i64: 1, 2, 32, 16, 8>}, {transform_indices = @transform_4, window_bounds = array<i64: 1, 2, 16, 32, 8>}, {pipeline_mode = #tpu.pipeline_mode<synchronous>, transform_indices = @transform_5, window_bounds = array<i64: 8, 8>}, {pipeline_mode = #tpu.pipeline_mode<synchronous>, transform_indices = @transform_6, window_bounds = array<i64: 1, 8>}, {pipeline_mode = #tpu.pipeline_mode<synchronous>, transform_indices = @transform_7, window_bounds = array<i64: 8, 16>}, {pipeline_mode = #tpu.pipeline_mode<synchronous>, transform_indices = @transform_8, window_bounds = array<i64: 1, 16>}, {transform_indices = @transform_9, window_bounds = array<i64: 1, 16, 32>}, {transform_indices = @transform_10, window_bounds = array<i64: 1, 16, 1>}, {transform_indices = @transform_11, window_bounds = array<i64: 1, 16, 32>}, {pipeline_mode = #tpu.pipeline_mode<synchronous>, transform_indices = @transform_12, window_bounds = array<i64: 1, 32>}, {pipeline_mode = #tpu.pipeline_mode<synchronous>, transform_indices = @transform_13, window_bounds = array<i64: 1, 32>}, {pipeline_mode = #tpu.pipeline_mode<synchronous>, transform_indices = @transform_14, window_bounds = array<i64: 1, 32>}, {transform_indices = @transform_15, window_bounds = array<i64: 1, 32, 32>}]} {
    %c0_i32 = arith.constant 0 : i32
    %0 = arith.cmpi eq, %arg2, %c0_i32 : i32
    %1 = arith.extui %0 : i1 to i32
    %c0_i32_0 = arith.constant 0 : i32
    %2 = arith.cmpi ne, %1, %c0_i32_0 : i32
    scf.if %2 {
      %c0_65 = arith.constant 0 : index
      %c0_66 = arith.constant 0 : index
      %c0_67 = arith.constant 0 : index
      %94 = vector.load %arg3[%c0_65, %c0_66, %c0_67] : memref<1x32x32xf32, #tpu.memory_space<vmem>>, vector<1x32x32xf32>
      %95 = vector.shape_cast %94 : vector<1x32x32xf32> to vector<32x32xf32>
      %c0_68 = arith.constant 0 : index
      %c0_69 = arith.constant 0 : index
      %c0_70 = arith.constant 0 : index
      %96 = vector.load %arg4[%c0_68, %c0_69, %c0_70] : memref<1x32x48xf32, #tpu.memory_space<vmem>>, vector<1x32x48xf32>
      %97 = vector.shape_cast %96 : vector<1x32x48xf32> to vector<32x48xf32>
      %cst_71 = arith.constant dense<0.000000e+00> : vector<32x48xf32>
      %98 = tpu.matmul %95, %97, %cst_71 {dimension_numbers = #tpu.dot_dimension_numbers<[1], [0], [0], [1], [0, 0, 1, 1], [], []>} : vector<32x32xf32>, vector<32x48xf32>, vector<32x48xf32> -> vector<32x48xf32>
      %c0_72 = arith.constant 0 : index
      %c0_73 = arith.constant 0 : index
      %c0_74 = arith.constant 0 : index
      %99 = vector.load %arg5[%c0_72, %c0_73, %c0_74] : memref<1x1x48xf32, #tpu.memory_space<vmem>>, vector<1x1x48xf32>
      %100 = vector.shape_cast %99 : vector<1x1x48xf32> to vector<1x48xf32>
      %101 = vector.broadcast %100 : vector<1x48xf32> to vector<32x48xf32>
      %102 = arith.addf %98, %101 : vector<32x48xf32>
      %103 = vector.extract_strided_slice %102 {offsets = [0, 0], sizes = [32, 8], strides = [1, 1]} : vector<32x48xf32> to vector<32x8xf32>
      %c0_75 = arith.constant 0 : index
      %c0_76 = arith.constant 0 : index
      %c0_77 = arith.constant 0 : index
      %104 = vector.load %arg19[%c0_75, %c0_76, %c0_77] : memref<2x32x8xf32, #tpu.memory_space<vmem>>, vector<1x32x8xf32>
      %105 = vector.shape_cast %104 : vector<1x32x8xf32> to vector<32x8xf32>
      %106 = vector.shape_cast %103 : vector<32x8xf32> to vector<1x32x8xf32>
      tpu.vector_store %arg19[%c0_75, %c0_76, %c0_77], %106 {strides = array<i32>} : memref<2x32x8xf32, #tpu.memory_space<vmem>>, vector<1x32x8xf32>,
      %107 = vector.extract_strided_slice %102 {offsets = [0, 16], sizes = [32, 8], strides = [1, 1]} : vector<32x48xf32> to vector<32x8xf32>
      %c0_78 = arith.constant 0 : index
      %c0_79 = arith.constant 0 : index
      %c0_80 = arith.constant 0 : index
      %108 = vector.load %arg20[%c0_78, %c0_79, %c0_80] : memref<2x32x8xf32, #tpu.memory_space<vmem>>, vector<1x32x8xf32>
      %109 = vector.shape_cast %108 : vector<1x32x8xf32> to vector<32x8xf32>
      %110 = vector.shape_cast %107 : vector<32x8xf32> to vector<1x32x8xf32>
      tpu.vector_store %arg20[%c0_78, %c0_79, %c0_80], %110 {strides = array<i32>} : memref<2x32x8xf32, #tpu.memory_space<vmem>>, vector<1x32x8xf32>,
      %111 = vector.extract_strided_slice %102 {offsets = [0, 32], sizes = [32, 8], strides = [1, 1]} : vector<32x48xf32> to vector<32x8xf32>
      %c0_81 = arith.constant 0 : index
      %c0_82 = arith.constant 0 : index
      %c0_83 = arith.constant 0 : index
      %112 = vector.load %arg21[%c0_81, %c0_82, %c0_83] : memref<2x32x8xf32, #tpu.memory_space<vmem>>, vector<1x32x8xf32>
      %113 = vector.shape_cast %112 : vector<1x32x8xf32> to vector<32x8xf32>
      %114 = vector.shape_cast %111 : vector<32x8xf32> to vector<1x32x8xf32>
      tpu.vector_store %arg21[%c0_81, %c0_82, %c0_83], %114 {strides = array<i32>} : memref<2x32x8xf32, #tpu.memory_space<vmem>>, vector<1x32x8xf32>,
      %115 = vector.extract_strided_slice %102 {offsets = [0, 8], sizes = [32, 8], strides = [1, 1]} : vector<32x48xf32> to vector<32x8xf32>
      %c1 = arith.constant 1 : index
      %c0_84 = arith.constant 0 : index
      %c0_85 = arith.constant 0 : index
      %116 = vector.load %arg19[%c1, %c0_84, %c0_85] : memref<2x32x8xf32, #tpu.memory_space<vmem>>, vector<1x32x8xf32>
      %117 = vector.shape_cast %116 : vector<1x32x8xf32> to vector<32x8xf32>
      %118 = vector.shape_cast %115 : vector<32x8xf32> to vector<1x32x8xf32>
      tpu.vector_store %arg19[%c1, %c0_84, %c0_85], %118 {strides = array<i32>} : memref<2x32x8xf32, #tpu.memory_space<vmem>>, vector<1x32x8xf32>,
      %119 = vector.extract_strided_slice %102 {offsets = [0, 24], sizes = [32, 8], strides = [1, 1]} : vector<32x48xf32> to vector<32x8xf32>
      %c1_86 = arith.constant 1 : index
      %c0_87 = arith.constant 0 : index
      %c0_88 = arith.constant 0 : index
      %120 = vector.load %arg20[%c1_86, %c0_87, %c0_88] : memref<2x32x8xf32, #tpu.memory_space<vmem>>, vector<1x32x8xf32>
      %121 = vector.shape_cast %120 : vector<1x32x8xf32> to vector<32x8xf32>
      %122 = vector.shape_cast %119 : vector<32x8xf32> to vector<1x32x8xf32>
      tpu.vector_store %arg20[%c1_86, %c0_87, %c0_88], %122 {strides = array<i32>} : memref<2x32x8xf32, #tpu.memory_space<vmem>>, vector<1x32x8xf32>,
      %123 = vector.extract_strided_slice %102 {offsets = [0, 40], sizes = [32, 8], strides = [1, 1]} : vector<32x48xf32> to vector<32x8xf32>
      %c1_89 = arith.constant 1 : index
      %c0_90 = arith.constant 0 : index
      %c0_91 = arith.constant 0 : index
      %124 = vector.load %arg21[%c1_89, %c0_90, %c0_91] : memref<2x32x8xf32, #tpu.memory_space<vmem>>, vector<1x32x8xf32>
      %125 = vector.shape_cast %124 : vector<1x32x8xf32> to vector<32x8xf32>
      %126 = vector.shape_cast %123 : vector<32x8xf32> to vector<1x32x8xf32>
      tpu.vector_store %arg21[%c1_89, %c0_90, %c0_91], %126 {strides = array<i32>} : memref<2x32x8xf32, #tpu.memory_space<vmem>>, vector<1x32x8xf32>,
      %cst_92 = arith.constant -1.000000e+30 : f32
      %127 = vector.broadcast %cst_92 : f32 to vector<2x32x1xf32>
      %c0_93 = arith.constant 0 : index
      %c0_94 = arith.constant 0 : index
      %c0_95 = arith.constant 0 : index
      %128 = vector.load %arg22[%c0_93, %c0_94, %c0_95] : memref<2x32x1xf32, #tpu.memory_space<vmem>>, vector<2x32x1xf32>
      tpu.vector_store %arg22[%c0_93, %c0_94, %c0_95], %127 {strides = array<i32>} : memref<2x32x1xf32, #tpu.memory_space<vmem>>, vector<2x32x1xf32>,
      %cst_96 = arith.constant 0.000000e+00 : f32
      %129 = vector.broadcast %cst_96 : f32 to vector<2x32x1xf32>
      %c0_97 = arith.constant 0 : index
      %c0_98 = arith.constant 0 : index
      %c0_99 = arith.constant 0 : index
      %130 = vector.load %arg23[%c0_97, %c0_98, %c0_99] : memref<2x32x1xf32, #tpu.memory_space<vmem>>, vector<2x32x1xf32>
      tpu.vector_store %arg23[%c0_97, %c0_98, %c0_99], %129 {strides = array<i32>} : memref<2x32x1xf32, #tpu.memory_space<vmem>>, vector<2x32x1xf32>,
      %cst_100 = arith.constant 0.000000e+00 : f32
      %131 = vector.broadcast %cst_100 : f32 to vector<2x32x8xf32>
      %c0_101 = arith.constant 0 : index
      %c0_102 = arith.constant 0 : index
      %c0_103 = arith.constant 0 : index
      %132 = vector.load %arg24[%c0_101, %c0_102, %c0_103] : memref<2x32x8xf32, #tpu.memory_space<vmem>>, vector<2x32x8xf32>
      tpu.vector_store %arg24[%c0_101, %c0_102, %c0_103], %131 {strides = array<i32>} : memref<2x32x8xf32, #tpu.memory_space<vmem>>, vector<2x32x8xf32>,
    } else {
    }
    %c0_i32_1 = arith.constant 0 : i32
    %3 = arith.cmpi eq, %arg1, %c0_i32_1 : i32
    %c0_i32_2 = arith.constant 0 : i32
    %4 = arith.cmpi eq, %arg2, %c0_i32_2 : i32
    %5 = arith.andi %3, %4 : i1
    %6 = arith.extui %5 : i1 to i32
    %c0_i32_3 = arith.constant 0 : i32
    %7 = arith.cmpi ne, %6, %c0_i32_3 : i32
    scf.if %7 {
      %cst_65 = arith.constant 0.000000e+00 : f32
      %94 = vector.broadcast %cst_65 : f32 to vector<32x32xf32>
      %c0_66 = arith.constant 0 : index
      %c0_67 = arith.constant 0 : index
      %95 = vector.load %arg25[%c0_66, %c0_67] : memref<32x32xf32, #tpu.memory_space<vmem>>, vector<32x32xf32>
      tpu.vector_store %arg25[%c0_66, %c0_67], %94 {strides = array<i32>} : memref<32x32xf32, #tpu.memory_space<vmem>>, vector<32x32xf32>,
    } else {
    }
    %c16_i32 = arith.constant 16 : i32
    %8 = arith.muli %arg2, %c16_i32 : i32
    %9 = tpu.assume_multiple %8, 16 : i32
    %c0 = arith.constant 0 : index
    %c0_4 = arith.constant 0 : index
    %c0_5 = arith.constant 0 : index
    %10 = vector.load %arg19[%c0, %c0_4, %c0_5] : memref<2x32x8xf32, #tpu.memory_space<vmem>>, vector<2x32x8xf32>
    %c0_6 = arith.constant 0 : index
    %c0_7 = arith.constant 0 : index
    %c0_8 = arith.constant 0 : index
    %11 = vector.load %arg20[%c0_6, %c0_7, %c0_8] : memref<2x32x8xf32, #tpu.memory_space<vmem>>, vector<2x32x8xf32>
    %c0_9 = arith.constant 0 : index
    %12 = arith.index_cast %9 : i32 to index
    %c0_10 = arith.constant 0 : index
    %13 = vector.load %arg20[%c0_9, %12, %c0_10] : memref<2x32x8xf32, #tpu.memory_space<vmem>>, vector<2x16x8xf32>
    %c0_11 = arith.constant 0 : index
    %14 = arith.index_cast %9 : i32 to index
    %c0_12 = arith.constant 0 : index
    %15 = vector.load %arg21[%c0_11, %14, %c0_12] : memref<2x32x8xf32, #tpu.memory_space<vmem>>, vector<2x16x8xf32>
    "tpu.trace_start"() <{level = 10 : i32, message = "gid,gjd->gij"}> : () -> ()
    %cst = arith.constant dense<0.000000e+00> : vector<2x32x16xf32>
    %16 = tpu.matmul %10, %13, %cst {dimension_numbers = #tpu.dot_dimension_numbers<[2], [2], [1], [1], [0, 0, 0, 1, 1, 1], [0], [0]>} : vector<2x32x8xf32>, vector<2x16x8xf32>, vector<2x32x16xf32> -> vector<2x32x16xf32>
    "tpu.trace_stop"() : () -> ()
    %c0_13 = arith.constant 0 : index
    %c0_14 = arith.constant 0 : index
    %c0_15 = arith.constant 0 : index
    %c0_16 = arith.constant 0 : index
    %c0_17 = arith.constant 0 : index
    %17 = vector.load %arg6[%c0_13, %c0_14, %c0_15, %c0_16, %c0_17] : memref<1x2x32x16x8xbf16, #tpu.memory_space<vmem>>, vector<1x2x32x16x8xbf16>
    %18 = vector.shape_cast %17 : vector<1x2x32x16x8xbf16> to vector<2x32x16x8xbf16>
    %19 = vector.shape_cast %18 : vector<2x32x16x8xbf16> to vector<1024x8xbf16>
    %c0_18 = arith.constant 0 : index
    %c0_19 = arith.constant 0 : index
    %20 = vector.load %arg10[%c0_18, %c0_19] : memref<8x16xbf16, #tpu.memory_space<vmem>>, vector<8x16xbf16>
    %cst_20 = arith.constant dense<0.000000e+00> : vector<1024x16xf32>
    %21 = tpu.matmul %19, %20, %cst_20 {dimension_numbers = #tpu.dot_dimension_numbers<[1], [0], [0], [1], [0, 0, 1, 1], [], []>} : vector<1024x8xbf16>, vector<8x16xbf16>, vector<1024x16xf32> -> vector<1024x16xf32>
    %c0_21 = arith.constant 0 : index
    %c0_22 = arith.constant 0 : index
    %22 = vector.load %arg11[%c0_21, %c0_22] : memref<1x16xf32, #tpu.memory_space<vmem>>, vector<1x16xf32>
    %23 = vector.broadcast %22 : vector<1x16xf32> to vector<1024x16xf32>
    %24 = arith.addf %21, %23 : vector<1024x16xf32>
    %25 = vector.shape_cast %24 : vector<1024x16xf32> to vector<2x32x16x16xf32>
    %26 = vector.extract_strided_slice %25 {offsets = [0, 0, 0, 0], sizes = [2, 32, 16, 8], strides = [1, 1, 1, 1]} : vector<2x32x16x16xf32> to vector<2x32x16x8xf32>
    %27 = vector.extract_strided_slice %25 {offsets = [0, 0, 0, 8], sizes = [2, 32, 16, 8], strides = [1, 1, 1, 1]} : vector<2x32x16x16xf32> to vector<2x32x16x8xf32>
    %c0_23 = arith.constant 0 : index
    %c0_24 = arith.constant 0 : index
    %c0_25 = arith.constant 0 : index
    %c0_26 = arith.constant 0 : index
    %c0_27 = arith.constant 0 : index
    %28 = vector.load %arg7[%c0_23, %c0_24, %c0_25, %c0_26, %c0_27] : memref<1x2x16x32x8xbf16, #tpu.memory_space<vmem>>, vector<1x2x16x32x8xbf16>
    %29 = vector.shape_cast %28 : vector<1x2x16x32x8xbf16> to vector<2x16x32x8xbf16>
    %30 = vector.shape_cast %29 : vector<2x16x32x8xbf16> to vector<1024x8xbf16>
    %c0_28 = arith.constant 0 : index
    %c0_29 = arith.constant 0 : index
    %31 = vector.load %arg8[%c0_28, %c0_29] : memref<8x8xbf16, #tpu.memory_space<vmem>>, vector<8x8xbf16>
    %cst_30 = arith.constant dense<0.000000e+00> : vector<1024x8xf32>
    %32 = tpu.matmul %30, %31, %cst_30 {dimension_numbers = #tpu.dot_dimension_numbers<[1], [0], [0], [1], [0, 0, 1, 1], [], []>} : vector<1024x8xbf16>, vector<8x8xbf16>, vector<1024x8xf32> -> vector<1024x8xf32>
    %c0_31 = arith.constant 0 : index
    %c0_32 = arith.constant 0 : index
    %33 = vector.load %arg9[%c0_31, %c0_32] : memref<1x8xf32, #tpu.memory_space<vmem>>, vector<1x8xf32>
    %34 = vector.broadcast %33 : vector<1x8xf32> to vector<1024x8xf32>
    %35 = arith.addf %32, %34 : vector<1024x8xf32>
    %36 = vector.shape_cast %35 : vector<1024x8xf32> to vector<2x16x32x8xf32>
    %37 = tpu.transpose %36, [0, 2, 1, 3] : vector<2x16x32x8xf32> -> vector<2x32x16x8xf32>
    %38 = vector.shape_cast %10 : vector<2x32x8xf32> to vector<2x32x1x8xf32>
    %39 = vector.shape_cast %11 : vector<2x32x8xf32> to vector<2x32x1x8xf32>
    %40 = vector.broadcast %38 : vector<2x32x1x8xf32> to vector<2x32x16x8xf32>
    %41 = arith.mulf %40, %26 : vector<2x32x16x8xf32>
    %42 = vector.broadcast %39 : vector<2x32x1x8xf32> to vector<2x32x16x8xf32>
    %43 = arith.addf %42, %26 : vector<2x32x16x8xf32>
    %44 = arith.mulf %37, %43 : vector<2x32x16x8xf32>
    %45 = arith.addf %41, %44 : vector<2x32x16x8xf32>
    %cst_33 = arith.constant dense<0.000000e+00> : vector<2x32x16xf32>
    %46 = vector.multi_reduction <add>, %45, %cst_33 [3] : vector<2x32x16x8xf32> to vector<2x32x16xf32>
    %c0_34 = arith.constant 0 : index
    %c0_35 = arith.constant 0 : index
    %c0_36 = arith.constant 0 : index
    %47 = vector.load %arg12[%c0_34, %c0_35, %c0_36] : memref<1x16x32xf32, #tpu.memory_space<vmem>>, vector<1x16x32xf32>
    %48 = vector.shape_cast %47 : vector<1x16x32xf32> to vector<16x32xf32>
    %49 = tpu.transpose %48, [1, 0] : vector<16x32xf32> -> vector<32x16xf32>
    %c0_37 = arith.constant 0 : index
    %c0_38 = arith.constant 0 : index
    %c0_39 = arith.constant 0 : index
    %50 = vector.load %arg13[%c0_37, %c0_38, %c0_39] : memref<1x16x1xf32, #tpu.memory_space<vmem>>, vector<1x16x1xf32>
    %51 = vector.shape_cast %50 : vector<1x16x1xf32> to vector<16x1xf32>
    %52 = vector.shape_cast %51 : vector<16x1xf32> to vector<1x16xf32>
    %53 = arith.addf %16, %46 : vector<2x32x16xf32>
    %54 = vector.shape_cast %49 : vector<32x16xf32> to vector<1x32x16xf32>
    %55 = vector.broadcast %54 : vector<1x32x16xf32> to vector<2x32x16xf32>
    %56 = arith.mulf %53, %55 : vector<2x32x16xf32>
    %57 = vector.shape_cast %52 : vector<1x16xf32> to vector<1x1x16xf32>
    %58 = vector.broadcast %57 : vector<1x1x16xf32> to vector<2x32x16xf32>
    %59 = arith.addf %56, %58 : vector<2x32x16xf32>
    %c0_40 = arith.constant 0 : index
    %c0_41 = arith.constant 0 : index
    %c0_42 = arith.constant 0 : index
    %60 = vector.load %arg22[%c0_40, %c0_41, %c0_42] : memref<2x32x1xf32, #tpu.memory_space<vmem>>, vector<2x32x1xf32>
    %cst_43 = arith.constant dense<0xFF800000> : vector<2x32xf32>
    %61 = vector.multi_reduction <maximumf>, %59, %cst_43 [2] : vector<2x32x16xf32> to vector<2x32xf32>
    %62 = vector.shape_cast %61 : vector<2x32xf32> to vector<2x32x1xf32>
    %63 = arith.maximumf %60, %62 : vector<2x32x1xf32>
    %64 = arith.subf %60, %63 : vector<2x32x1xf32>
    %65 = math.exp %64 : vector<2x32x1xf32>
    %66 = vector.broadcast %63 : vector<2x32x1xf32> to vector<2x32x16xf32>
    %67 = arith.subf %59, %66 : vector<2x32x16xf32>
    %68 = math.exp %67 : vector<2x32x16xf32>
    %c0_44 = arith.constant 0 : index
    %c0_45 = arith.constant 0 : index
    %c0_46 = arith.constant 0 : index
    %69 = vector.load %arg23[%c0_44, %c0_45, %c0_46] : memref<2x32x1xf32, #tpu.memory_space<vmem>>, vector<2x32x1xf32>
    %70 = arith.mulf %65, %69 : vector<2x32x1xf32>
    %cst_47 = arith.constant dense<0.000000e+00> : vector<2x32xf32>
    %71 = vector.multi_reduction <add>, %68, %cst_47 [2] : vector<2x32x16xf32> to vector<2x32xf32>
    %72 = vector.shape_cast %71 : vector<2x32xf32> to vector<2x32x1xf32>
    %73 = arith.addf %70, %72 : vector<2x32x1xf32>
    %c0_48 = arith.constant 0 : index
    %c0_49 = arith.constant 0 : index
    %c0_50 = arith.constant 0 : index
    %74 = vector.load %arg23[%c0_48, %c0_49, %c0_50] : memref<2x32x1xf32, #tpu.memory_space<vmem>>, vector<2x32x1xf32>
    tpu.vector_store %arg23[%c0_48, %c0_49, %c0_50], %73 {strides = array<i32>} : memref<2x32x1xf32, #tpu.memory_space<vmem>>, vector<2x32x1xf32>,
    "tpu.trace_start"() <{level = 10 : i32, message = "gij,gjd->gid"}> : () -> ()
    %cst_51 = arith.constant dense<0.000000e+00> : vector<2x32x8xf32>
    %75 = tpu.matmul %68, %15, %cst_51 {dimension_numbers = #tpu.dot_dimension_numbers<[2], [1], [1], [2], [0, 0, 0, 1, 1, 2], [0], [0]>} : vector<2x32x16xf32>, vector<2x16x8xf32>, vector<2x32x8xf32> -> vector<2x32x8xf32>
    "tpu.trace_stop"() : () -> ()
    %76 = vector.shape_cast %68 : vector<2x32x16xf32> to vector<2x32x16x1xf32>
    %77 = vector.broadcast %76 : vector<2x32x16x1xf32> to vector<2x32x16x8xf32>
    %78 = arith.mulf %77, %27 : vector<2x32x16x8xf32>
    %cst_52 = arith.constant dense<0.000000e+00> : vector<2x32x8xf32>
    %79 = vector.multi_reduction <add>, %78, %cst_52 [2] : vector<2x32x16x8xf32> to vector<2x32x8xf32>
    %c0_53 = arith.constant 0 : index
    %c0_54 = arith.constant 0 : index
    %c0_55 = arith.constant 0 : index
    %80 = vector.load %arg24[%c0_53, %c0_54, %c0_55] : memref<2x32x8xf32, #tpu.memory_space<vmem>>, vector<2x32x8xf32>
    %81 = vector.broadcast %65 : vector<2x32x1xf32> to vector<2x32x8xf32>
    %82 = arith.mulf %81, %80 : vector<2x32x8xf32>
    %83 = arith.addf %82, %75 : vector<2x32x8xf32>
    %84 = arith.addf %83, %79 : vector<2x32x8xf32>
    %c0_56 = arith.constant 0 : index
    %c0_57 = arith.constant 0 : index
    %c0_58 = arith.constant 0 : index
    %85 = vector.load %arg24[%c0_56, %c0_57, %c0_58] : memref<2x32x8xf32, #tpu.memory_space<vmem>>, vector<2x32x8xf32>
    tpu.vector_store %arg24[%c0_56, %c0_57, %c0_58], %84 {strides = array<i32>} : memref<2x32x8xf32, #tpu.memory_space<vmem>>, vector<2x32x8xf32>,
    %c0_59 = arith.constant 0 : index
    %c0_60 = arith.constant 0 : index
    %c0_61 = arith.constant 0 : index
    %86 = vector.load %arg22[%c0_59, %c0_60, %c0_61] : memref<2x32x1xf32, #tpu.memory_space<vmem>>, vector<2x32x1xf32>
    tpu.vector_store %arg22[%c0_59, %c0_60, %c0_61], %63 {strides = array<i32>} : memref<2x32x1xf32, #tpu.memory_space<vmem>>, vector<2x32x1xf32>,
    %c1_i32 = arith.constant 1 : i32
    %87 = arith.cmpi eq, %arg2, %c1_i32 : i32
    %88 = arith.extui %87 : i1 to i32
    %c0_i32_62 = arith.constant 0 : i32
    %89 = arith.cmpi ne, %88, %c0_i32_62 : i32
    scf.if %89 {
      %c0_65 = arith.constant 0 : index
      %c0_66 = arith.constant 0 : index
      %c0_67 = arith.constant 0 : index
      %94 = vector.load %arg24[%c0_65, %c0_66, %c0_67] : memref<2x32x8xf32, #tpu.memory_space<vmem>>, vector<2x32x8xf32>
      %c0_68 = arith.constant 0 : index
      %c0_69 = arith.constant 0 : index
      %c0_70 = arith.constant 0 : index
      %95 = vector.load %arg23[%c0_68, %c0_69, %c0_70] : memref<2x32x1xf32, #tpu.memory_space<vmem>>, vector<2x32x1xf32>
      %96 = vector.broadcast %95 : vector<2x32x1xf32> to vector<2x32x8xf32>
      %97 = arith.divf %94, %96 : vector<2x32x8xf32>
      %98 = tpu.transpose %97, [1, 0, 2] : vector<2x32x8xf32> -> vector<32x2x8xf32>
      %99 = vector.shape_cast %98 : vector<32x2x8xf32> to vector<32x16xf32>
      %c0_71 = arith.constant 0 : index
      %c0_72 = arith.constant 0 : index
      %100 = vector.load %arg25[%c0_71, %c0_72] : memref<32x32xf32, #tpu.memory_space<vmem>>, vector<32x32xf32>
      %c0_73 = arith.constant 0 : index
      %c0_74 = arith.constant 0 : index
      %c0_75 = arith.constant 0 : index
      %101 = vector.load %arg14[%c0_73, %c0_74, %c0_75] : memref<1x16x32xf32, #tpu.memory_space<vmem>>, vector<1x16x32xf32>
      %102 = vector.shape_cast %101 : vector<1x16x32xf32> to vector<16x32xf32>
      %cst_76 = arith.constant dense<0.000000e+00> : vector<32x32xf32>
      %103 = tpu.matmul %99, %102, %cst_76 {dimension_numbers = #tpu.dot_dimension_numbers<[1], [0], [0], [1], [0, 0, 1, 1], [], []>} : vector<32x16xf32>, vector<16x32xf32>, vector<32x32xf32> -> vector<32x32xf32>
      %104 = arith.addf %100, %103 : vector<32x32xf32>
      %c0_77 = arith.constant 0 : index
      %c0_78 = arith.constant 0 : index
      %105 = vector.load %arg25[%c0_77, %c0_78] : memref<32x32xf32, #tpu.memory_space<vmem>>, vector<32x32xf32>
      tpu.vector_store %arg25[%c0_77, %c0_78], %104 {strides = array<i32>} : memref<32x32xf32, #tpu.memory_space<vmem>>, vector<32x32xf32>,
    } else {
    }
    %c1_i32_63 = arith.constant 1 : i32
    %90 = arith.cmpi eq, %arg1, %c1_i32_63 : i32
    %91 = arith.andi %87, %90 : i1
    %92 = arith.extui %91 : i1 to i32
    %c0_i32_64 = arith.constant 0 : i32
    %93 = arith.cmpi ne, %92, %c0_i32_64 : i32
    scf.if %93 {
      %c0_65 = arith.constant 0 : index
      %c0_66 = arith.constant 0 : index
      %94 = vector.load %arg25[%c0_65, %c0_66] : memref<32x32xf32, #tpu.memory_space<vmem>>, vector<32x32xf32>
      %c0_67 = arith.constant 0 : index
      %c0_68 = arith.constant 0 : index
      %95 = vector.load %arg15[%c0_67, %c0_68] : memref<1x32xf32, #tpu.memory_space<vmem>>, vector<1x32xf32>
      %96 = vector.broadcast %95 : vector<1x32xf32> to vector<32x32xf32>
      %97 = arith.addf %94, %96 : vector<32x32xf32>
      %c0_69 = arith.constant 0 : index
      %c0_70 = arith.constant 0 : index
      %c0_71 = arith.constant 0 : index
      %98 = vector.load %arg3[%c0_69, %c0_70, %c0_71] : memref<1x32x32xf32, #tpu.memory_space<vmem>>, vector<1x32x32xf32>
      %99 = vector.shape_cast %98 : vector<1x32x32xf32> to vector<32x32xf32>
      %100 = arith.addf %97, %99 : vector<32x32xf32>
      %cst_72 = arith.constant dense<0.000000e+00> : vector<32xf32>
      %101 = vector.multi_reduction <add>, %100, %cst_72 [1] : vector<32x32xf32> to vector<32xf32>
      %102 = vector.shape_cast %101 : vector<32xf32> to vector<32x1xf32>
      %cst_73 = arith.constant 3.200000e+01 : f32
      %103 = vector.broadcast %cst_73 : f32 to vector<32x1xf32>
      %104 = arith.divf %102, %103 : vector<32x1xf32>
      %105 = vector.broadcast %104 : vector<32x1xf32> to vector<32x32xf32>
      %106 = arith.subf %100, %105 : vector<32x32xf32>
      %107 = arith.mulf %106, %106 : vector<32x32xf32>
      %cst_74 = arith.constant dense<0.000000e+00> : vector<32xf32>
      %108 = vector.multi_reduction <add>, %107, %cst_74 [1] : vector<32x32xf32> to vector<32xf32>
      %109 = vector.shape_cast %108 : vector<32xf32> to vector<32x1xf32>
      %cst_75 = arith.constant 3.200000e+01 : f32
      %110 = vector.broadcast %cst_75 : f32 to vector<32x1xf32>
      %111 = arith.divf %109, %110 : vector<32x1xf32>
      %cst_76 = arith.constant 9.99999996E-13 : f32
      %112 = vector.broadcast %cst_76 : f32 to vector<32x1xf32>
      %113 = arith.addf %111, %112 : vector<32x1xf32>
      %114 = math.rsqrt %113 : vector<32x1xf32>
      %115 = vector.broadcast %114 : vector<32x1xf32> to vector<32x32xf32>
      %116 = arith.mulf %106, %115 : vector<32x32xf32>
      %c0_77 = arith.constant 0 : index
      %c0_78 = arith.constant 0 : index
      %117 = vector.load %arg16[%c0_77, %c0_78] : memref<1x32xf32, #tpu.memory_space<vmem>>, vector<1x32xf32>
      %118 = vector.broadcast %117 : vector<1x32xf32> to vector<32x32xf32>
      %119 = arith.mulf %116, %118 : vector<32x32xf32>
      %c0_79 = arith.constant 0 : index
      %c0_80 = arith.constant 0 : index
      %120 = vector.load %arg17[%c0_79, %c0_80] : memref<1x32xf32, #tpu.memory_space<vmem>>, vector<1x32xf32>
      %121 = vector.broadcast %120 : vector<1x32xf32> to vector<32x32xf32>
      %122 = arith.addf %119, %121 : vector<32x32xf32>
      %c0_81 = arith.constant 0 : index
      %c0_82 = arith.constant 0 : index
      %c0_83 = arith.constant 0 : index
      %123 = vector.load %arg18[%c0_81, %c0_82, %c0_83] : memref<1x32x32xf32, #tpu.memory_space<vmem>>, vector<1x32x32xf32>
      %124 = vector.shape_cast %123 : vector<1x32x32xf32> to vector<32x32xf32>
      %125 = vector.shape_cast %122 : vector<32x32xf32> to vector<1x32x32xf32>
      tpu.vector_store %arg18[%c0_81, %c0_82, %c0_83], %125 {strides = array<i32>} : memref<1x32x32xf32, #tpu.memory_space<vmem>>, vector<1x32x32xf32>,
    } else {
    }
    return
  }
  func.func @transform_0(%arg0: i32, %arg1: i32, %arg2: i32) -> (i32, i32, i32) {
    %c0_i32 = arith.constant 0 : i32
    %c0_i32_0 = arith.constant 0 : i32
    %c0_i32_1 = arith.constant 0 : i32
    return %arg0, %c0_i32, %c0_i32_0 : i32, i32, i32
  }
  func.func @transform_1(%arg0: i32, %arg1: i32, %arg2: i32) -> (i32, i32, i32) {
    %c0_i32 = arith.constant 0 : i32
    %c0_i32_0 = arith.constant 0 : i32
    %c0_i32_1 = arith.constant 0 : i32
    return %arg1, %c0_i32, %c0_i32_0 : i32, i32, i32
  }
  func.func @transform_2(%arg0: i32, %arg1: i32, %arg2: i32) -> (i32, i32, i32) {
    %c0_i32 = arith.constant 0 : i32
    %c0_i32_0 = arith.constant 0 : i32
    %c0_i32_1 = arith.constant 0 : i32
    return %arg1, %c0_i32, %c0_i32_0 : i32, i32, i32
  }
  func.func @transform_3(%arg0: i32, %arg1: i32, %arg2: i32) -> (i32, i32, i32, i32, i32) {
    %c0_i32 = arith.constant 0 : i32
    %c0_i32_0 = arith.constant 0 : i32
    %c0_i32_1 = arith.constant 0 : i32
    return %arg0, %arg1, %c0_i32, %arg2, %c0_i32_0 : i32, i32, i32, i32, i32
  }
  func.func @transform_4(%arg0: i32, %arg1: i32, %arg2: i32) -> (i32, i32, i32, i32, i32) {
    %c0_i32 = arith.constant 0 : i32
    %c0_i32_0 = arith.constant 0 : i32
    %c0_i32_1 = arith.constant 0 : i32
    return %arg0, %arg1, %arg2, %c0_i32, %c0_i32_0 : i32, i32, i32, i32, i32
  }
  func.func @transform_5(%arg0: i32, %arg1: i32, %arg2: i32) -> (i32, i32) {
    %c0_i32 = arith.constant 0 : i32
    %c0_i32_0 = arith.constant 0 : i32
    %c0_i32_1 = arith.constant 0 : i32
    return %c0_i32, %c0_i32_0 : i32, i32
  }
  func.func @transform_6(%arg0: i32, %arg1: i32, %arg2: i32) -> (i32, i32) {
    %c0_i32 = arith.constant 0 : i32
    %c0_i32_0 = arith.constant 0 : i32
    %c0_i32_1 = arith.constant 0 : i32
    return %c0_i32, %c0_i32_0 : i32, i32
  }
  func.func @transform_7(%arg0: i32, %arg1: i32, %arg2: i32) -> (i32, i32) {
    %c0_i32 = arith.constant 0 : i32
    %c0_i32_0 = arith.constant 0 : i32
    %c0_i32_1 = arith.constant 0 : i32
    return %c0_i32, %c0_i32_0 : i32, i32
  }
  func.func @transform_8(%arg0: i32, %arg1: i32, %arg2: i32) -> (i32, i32) {
    %c0_i32 = arith.constant 0 : i32
    %c0_i32_0 = arith.constant 0 : i32
    %c0_i32_1 = arith.constant 0 : i32
    return %c0_i32, %c0_i32_0 : i32, i32
  }
  func.func @transform_9(%arg0: i32, %arg1: i32, %arg2: i32) -> (i32, i32, i32) {
    %c0_i32 = arith.constant 0 : i32
    %c0_i32_0 = arith.constant 0 : i32
    return %arg0, %arg2, %c0_i32 : i32, i32, i32
  }
  func.func @transform_10(%arg0: i32, %arg1: i32, %arg2: i32) -> (i32, i32, i32) {
    %c0_i32 = arith.constant 0 : i32
    %c0_i32_0 = arith.constant 0 : i32
    return %arg0, %arg2, %c0_i32 : i32, i32, i32
  }
  func.func @transform_11(%arg0: i32, %arg1: i32, %arg2: i32) -> (i32, i32, i32) {
    %c0_i32 = arith.constant 0 : i32
    %c0_i32_0 = arith.constant 0 : i32
    %c0_i32_1 = arith.constant 0 : i32
    return %arg1, %c0_i32, %c0_i32_0 : i32, i32, i32
  }
  func.func @transform_12(%arg0: i32, %arg1: i32, %arg2: i32) -> (i32, i32) {
    %c0_i32 = arith.constant 0 : i32
    %c0_i32_0 = arith.constant 0 : i32
    %c0_i32_1 = arith.constant 0 : i32
    return %c0_i32, %c0_i32_0 : i32, i32
  }
  func.func @transform_13(%arg0: i32, %arg1: i32, %arg2: i32) -> (i32, i32) {
    %c0_i32 = arith.constant 0 : i32
    %c0_i32_0 = arith.constant 0 : i32
    %c0_i32_1 = arith.constant 0 : i32
    return %c0_i32, %c0_i32_0 : i32, i32
  }
  func.func @transform_14(%arg0: i32, %arg1: i32, %arg2: i32) -> (i32, i32) {
    %c0_i32 = arith.constant 0 : i32
    %c0_i32_0 = arith.constant 0 : i32
    %c0_i32_1 = arith.constant 0 : i32
    return %c0_i32, %c0_i32_0 : i32, i32
  }
  func.func @transform_15(%arg0: i32, %arg1: i32, %arg2: i32) -> (i32, i32, i32) {
    %c0_i32 = arith.constant 0 : i32
    %c0_i32_0 = arith.constant 0 : i32
    %c0_i32_1 = arith.constant 0 : i32
    return %arg0, %c0_i32, %c0_i32_0 : i32, i32, i32
  }
}

</mosaic_0001>

<bundles_post_ra>
// kernel: transformer_attention.1
= control target key start
LH: loop header
LB: loop body
LE: loop exit
PB: predicated region body
PF: predicated region fallthrough
CT: control target
= control target key end

     0   :  { %s22065_s0 = inlined_call_operand.vmem [shape: f32[2,32,32], index: 0, kind: input, shape index: {}]   ;;  %s22066_s1 = inlined_call_operand.vmem [shape: f32[2,32,48], index: 1, kind: input, shape index: {}]   ;;  %s22067_s2 = inlined_call_operand.vmem [shape: f32[2,1,48], index: 2, kind: input, shape index: {}]   ;;  %s22068_s3 = inlined_call_operand.vmem [shape: bf16[2,4,32,32,8], index: 3, kind: input, shape index: {}, may-alias: {3,4}]   ;;  %s22069_s4 = inlined_call_operand.vmem [shape: bf16[2,4,32,32,8], index: 4, kind: input, shape index: {}, may-alias: {3,4}]   ;;  %s22070_s5 = inlined_call_operand.vmem [shape: bf16[8,8], index: 5, kind: input, shape index: {}]   ;;  %s22071_s6 = inlined_call_operand.vmem [shape: f32[1,8], index: 6, kind: input, shape index: {}]   ;;  %s22072_s7 = inlined_call_operand.vmem [shape: bf16[8,16], index: 7, kind: input, shape index: {}]   ;;  %s22073_s8 = inlined_call_operand.vmem [shape: f32[1,16], index: 8, kind: input, shape index: {}]   ;;  %s22074_s9 = inlined_call_operand.vmem [shape: f32[2,32,32], index: 9, kind: input, shape index: {}]   ;;  %s22075_s10 = inlined_call_operand.vmem [shape: f32[2,32,1], index: 10, kind: input, shape index: {}]   ;;  %s22076_s11 = inlined_call_operand.vmem [shape: f32[2,16,32], index: 11, kind: input, shape index: {}]   ;;  %s22077_s12 = inlined_call_operand.vmem [shape: f32[1,32], index: 12, kind: input, shape index: {}]   ;;  %s22078_s13 = inlined_call_operand.vmem [shape: f32[1,32], index: 13, kind: input, shape index: {}]   ;;  %s22079_s14 = inlined_call_operand.vmem [shape: f32[1,32], index: 14, kind: input, shape index: {}]   ;;  %s22080_s15 = inlined_call_operand.hbm [shape: f32[2,32,32], index: 15, kind: output, shape index: {}]  }
   0x1   :  { %22595 = sst [smem:[#allocation299_spill]] %s22065_s0 }
   0x2   :  { %22596 = sst [smem:[#allocation300_spill]] %s22068_s3 }
   0x3   :  { %22597 = sst [smem:[#allocation301_spill]] %s22069_s4 }
   0x4   :  { %22598 = sst [smem:[#allocation302_spill]] %s22070_s5 }
   0x5   :  { %22599 = sst [smem:[#allocation303_spill]] %s22071_s6 }
   0x6   :  { %22600 = sst [smem:[#allocation304_spill]] %s22072_s7 }
   0x7   :  { %22601 = sst [smem:[#allocation305_spill]] %s22073_s8 }
   0x8   :  { %22602 = sst [smem:[#allocation306_spill]] %s22074_s9 }
   0x9   :  { %22603 = sst [smem:[#allocation307_spill]] %s22075_s10 }
   0xa   :  { %22604 = sst [smem:[#allocation308_spill]] %s22076_s11 }
   0xb   :  { %22605 = sst [smem:[#allocation309_spill]] %s22077_s12 }
   0xc   :  { %22606 = sst [smem:[#allocation310_spill]] %s22078_s13 }
   0xd   :  { %22607 = sst [smem:[#allocation311_spill]] %s22079_s14 }
   0xe   :  { %22608 = sst [smem:[#allocation312_spill]] %s22080_s15 }
   0xf   :  { %20 = vsyncpa [#allocation12], 0 }
  0x10   :  { %22 = vsyncpa [#allocation12 + $0x1], 0  ;;  %s14485_s18 = smov 0   ;;  %s14487_s19 = smov 0  }
  0x11   :  { %s14489_s20 = smov 0   ;;  %s14491_s21 = smov 0  }
  0x12   :  { %s14493_s22 = smov 0   ;;  %s14495_s23 = smov 0  }
  0x13   :  { %s14497_s24 = smov 0   ;;  %s14499_s25 = smov 0  }
  0x14   :  { %s14501_s26 = smov 0   ;;  %s14503_s27 = smov 0  }
  0x15   :  { %s14505_s28 = smov 0   ;;  %s14507_s29 = smov 0  }
  0x16 LB: > { %22609 = sst [smem:[#allocation14_spill]] %s14340_s18  ;;  %s40_s30 = sadd.s32 1, %s14372_s26  ;;  %s14384_s29 = sphi %s14507_s29, %s28_s29   ;;  %s14380_s28 = sphi %s14505_s28, %s24237_s28   ;;  %s14376_s27 = sphi %s14503_s27, %s24236_s27   ;;  %s14372_s26 = sphi %s14501_s26, %s24235_s26   ;;  %s14368_s25 = sphi %s14499_s25, %s24234_s25   ;;  %s14364_s24 = sphi %s14497_s24, %s24233_s24   ;;  %s14360_s23 = sphi %s14495_s23, %s24232_s23   ;;  %s14356_s22 = sphi %s14493_s22, %s24241_s22   ;;  %s14352_s21 = sphi %s14491_s21, %s24230_s21   ;;  %s14348_s20 = sphi %s14489_s20, %s24240_s20   ;;  %s14344_s19 = sphi %s14487_s19, %s24239_s19   ;;  %s14340_s18 = sphi %s14485_s18, %s24238_s18  }
  0x17   : > { %22610 = sst [smem:[#allocation15_spill]] %s14348_s20  ;;  %p41_p0 = scmp.ge.s32.totalorder %s40_s30, 2 }
  0x18   : > { %22611 = sst [smem:[#allocation16_spill]] %s14356_s22  ;;  %s43_s16 = sadd.s32 1, %s14376_s27 }
  0x19   : > { %22612 = sst [smem:[#allocation17_spill]] %s14372_s26  ;;  %s13044_s17 = sadd.s32 4294967295, %s14384_s29  }
  0x1a   : > { %22613 = sst [smem:[#allocation18_spill]] %s14376_s27  ;;  %p143_p1 = scmp.ne.s32.totalorder %s14356_s22, %s14352_s21 }
  0x1b   : > { %22614 = sst [smem:[#allocation19_spill]] %s14380_s28  ;;  %s24243_s30 = smov (%p41_p0, %s40_s30), 0 }
  0x1c   : > { %22615 = sst [smem:[#allocation20_spill]] %s14384_s29  ;;  %s24245_s16 = smov (!%p41_p0, %s43_s16), %s14376_s27 }
  0x1d   : > { %22616 = sst [smem:[#allocation21_spill]] %s24243_s30  ;;  %s13045_s15 = sadd.s32 4294967294, %s14384_s29  }
  0x1e   : > { %p144_p2 = scmp.eq.s32.totalorder %s14384_s29, 0  ;;  %p45_p3 = scmp.ge.s32.totalorder %s24245_s16, 2 }
  0x1f   : > { %s47_s14 = sadd.s32 1, %s14380_s28  ;;  %p431_p5 = scmp.ne.s32.totalorder %s14348_s20, %s14344_s19 }
  0x20   : > { %p14556_p4 = por %p144_p2, %p143_p1  ;;  %s24247_s16 = smov (%p45_p3, %s24245_s16), 0 }
  0x21   : > { %22618 = sst [smem:[#allocation22_spill]] %s24247_s16  ;;  %s24249_s14 = smov (!%p45_p3, %s47_s14), %s14380_s28 }
  0x22   : > { %s130_s12 = ssub.s32 %s14376_s27, %s24247_s16  ;;  %p432_p6 = scmp.eq.s32.totalorder %s13044_s17, 7 }
  0x23   : > { %p49_p7 = scmp.ge.s32.totalorder %s24249_s14, 2  ;;  %p437_p8 = scmp.ne.s32.totalorder %s14344_s19, %s14340_s18 }
  0x24   : > { %p14569_p9 = por %p432_p6, %p431_p5  ;;  %p438_p10 = scmp.eq.s32.totalorder %s13045_s15, 7 }
  0x25   : > { %s24251_s14 = smov (%p49_p7, %s24249_s14), 0  ;;  %s132_s6 = ssub.s32 %s14372_s26, %s24243_s30 }
  0x26   : > { %22620 = sst [smem:[#allocation23_spill]] %s24251_s14  ;;  %p14577_p11 = por %p438_p10, %p437_p8 }
  0x27   : > { %s129_s7 = ssub.s32 %s14380_s28, %s24251_s14  ;;  %s421_s16 = sadd.s32 1, %s14348_s20 }
  0x28   : > { %s22621_s5 = scalar_select %p14577_p11, 1, 0 }
  0x29   : > { %s131_s10 = sor.u32 %s130_s12, %s129_s7  ;;  %p419_p12 = scmp.eq.s32.totalorder %s129_s7, 0 }
  0x2a   : > { %22622 = sst [smem:[#allocation24_spill]] %s22621_s5  ;;  %s133_s17 = sor.u32 %s132_s6, %s131_s10 }
  0x2b   : > { %s136_s9 = sadd.s32 1, %s14356_s22  ;;  %p134_p13 = scmp.eq.s32.totalorder %s133_s17, 0 }
  0x2c   : > { %s14586_s18 = scalar_select %p419_p12, %s14348_s20, %s421_s16  }
  0x2d   : > { %s14589_s11 = scalar_select %p134_p13, %s14356_s22, %s136_s9  }
  0x2e   : > { %22623 = sst [smem:[#allocation25_spill]] %s14586_s18  ;;  %p13047_p0 = scmp.ge.s32.totalorder %s14384_s29, 8 }
  0x2f   : > { %22624 = sst [smem:[#allocation26_spill]] %s14589_s11 }
  0x30   : > { %475 = sbr.rel (%p13047_p0) target bundleno = 141 (0x8d), region = 44 }
  0x37   : > { %500 = sbr.rel (!%p14556_p4) target bundleno = 98 (0x62), region = 60  ;;  %s502_s15 = sand.u32 (%p14556_p4), 1, %s14356_s22  }
  0x38   : > { %s13050_s12 = sshll.u32 (%p14556_p4), %s14372_s26, 1  ;;  %s13383_s7 = sshll.u32 (%p14556_p4), %s14376_s27, 8 }
  0x39   : > { %s13048_s6 = sshll.u32 (%p14556_p4), %s502_s15, 9  ;;  %s508_s10 = sadd.s32 (%p14556_p4), %s13383_s7, %s13050_s12 }
  0x3a   : > { %s13052_s17 = sshll.u32 (%p14556_p4), %s14380_s28, 9  ;;  %s22625_s3 = sld [smem:[#allocation300_spill]] (%p14556_p4) }
  0x3b   : > { %s510_s16 = sadd.s32 (%p14556_p4), %s13052_s17, %s508_s10  ;;  %s14606_s15 = scalar_lea.vmem (%p14556_p4), [#allocation9], %s13048_s6 }
  0x3c   : > { %s13053_s14 = sshll.u32 (%p14556_p4), %s510_s16, 2 }
  0x40   : > { %s14601_s11 = scalar_lea.vmem %s22625_s3, %s13053_s14 }
  0x41   : > { %v528_v0 = vld [vmem:[%s14601_s11] sm:$0xff]   ;;  %v532_v1 = vld [vmem:[%s14601_s11 + $0x10] sm:$0xff]  }
  0x42   : > { %v536_v2 = vld [vmem:[%s14601_s11 + $0x20] sm:$0xff]   ;;  %529 = vst [vmem:[%s14606_s15] sm:$0xff] %v528_v0   ;;  %533 = vst [vmem:[%s14606_s15 + $0x8] sm:$0xff] %v532_v1   ;;  %v540_v3 = vld [vmem:[%s14601_s11 + $0x30] sm:$0xff]  }
  0x43   : > { %537 = vst [vmem:[%s14606_s15 + $0x10] sm:$0xff] %v536_v2   ;;  %v544_v4 = vld [vmem:[%s14601_s11 + $0x40] sm:$0xff]   ;;  %v548_v5 = vld [vmem:[%s14601_s11 + $0x50] sm:$0xff]   ;;  %541 = vst [vmem:[%s14606_s15 + $0x18] sm:$0xff] %v540_v3  }
  0x44   : > { %545 = vst [vmem:[%s14606_s15 + $0x20] sm:$0xff] %v544_v4   ;;  %549 = vst [vmem:[%s14606_s15 + $0x28] sm:$0xff] %v548_v5   ;;  %v552_v6 = vld [vmem:[%s14601_s11 + $0x60] sm:$0xff]   ;;  %v556_v7 = vld [vmem:[%s14601_s11 + $0x70] sm:$0xff]  }
  0x45   : > { %v560_v8 = vld [vmem:[%s14601_s11 + $0x80] sm:$0xff]   ;;  %553 = vst [vmem:[%s14606_s15 + $0x30] sm:$0xff] %v552_v6   ;;  %557 = vst [vmem:[%s14606_s15 + $0x38] sm:$0xff] %v556_v7   ;;  %v564_v9 = vld [vmem:[%s14601_s11 + $0x90] sm:$0xff]  }
  0x46   : > { %561 = vst [vmem:[%s14606_s15 + $0x40] sm:$0xff] %v560_v8   ;;  %v568_v10 = vld [vmem:[%s14601_s11 + $0xa0] sm:$0xff]   ;;  %v572_v11 = vld [vmem:[%s14601_s11 + $0xb0] sm:$0xff]   ;;  %565 = vst [vmem:[%s14606_s15 + $0x48] sm:$0xff] %v564_v9  }
  0x47   : > { %569 = vst [vmem:[%s14606_s15 + $0x50] sm:$0xff] %v568_v10   ;;  %573 = vst [vmem:[%s14606_s15 + $0x58] sm:$0xff] %v572_v11   ;;  %v576_v12 = vld [vmem:[%s14601_s11 + $0xc0] sm:$0xff]   ;;  %v580_v13 = vld [vmem:[%s14601_s11 + $0xd0] sm:$0xff]  }
  0x48   : > { %v584_v14 = vld [vmem:[%s14601_s11 + $0xe0] sm:$0xff]   ;;  %577 = vst [vmem:[%s14606_s15 + $0x60] sm:$0xff] %v576_v12   ;;  %581 = vst [vmem:[%s14606_s15 + $0x68] sm:$0xff] %v580_v13   ;;  %v588_v15 = vld [vmem:[%s14601_s11 + $0xf0] sm:$0xff]  }
  0x49   : > { %585 = vst [vmem:[%s14606_s15 + $0x70] sm:$0xff] %v584_v14   ;;  %v592_v16 = vld [vmem:[%s14601_s11 + $0x100] sm:$0xff]   ;;  %v596_v17 = vld [vmem:[%s14601_s11 + $0x110] sm:$0xff]   ;;  %589 = vst [vmem:[%s14606_s15 + $0x78] sm:$0xff] %v588_v15  }
  0x4a   : > { %593 = vst [vmem:[%s14606_s15 + $0x80] sm:$0xff] %v592_v16   ;;  %597 = vst [vmem:[%s14606_s15 + $0x88] sm:$0xff] %v596_v17   ;;  %v600_v18 = vld [vmem:[%s14601_s11 + $0x120] sm:$0xff]   ;;  %v604_v19 = vld [vmem:[%s14601_s11 + $0x130] sm:$0xff]  }
  0x4b   : > { %v608_v20 = vld [vmem:[%s14601_s11 + $0x140] sm:$0xff]   ;;  %601 = vst [vmem:[%s14606_s15 + $0x90] sm:$0xff] %v600_v18   ;;  %605 = vst [vmem:[%s14606_s15 + $0x98] sm:$0xff] %v604_v19   ;;  %v612_v21 = vld [vmem:[%s14601_s11 + $0x150] sm:$0xff]  }
  0x4c   : > { %609 = vst [vmem:[%s14606_s15 + $0xa0] sm:$0xff] %v608_v20   ;;  %v616_v22 = vld [vmem:[%s14601_s11 + $0x160] sm:$0xff]   ;;  %v620_v23 = vld [vmem:[%s14601_s11 + $0x170] sm:$0xff]   ;;  %613 = vst [vmem:[%s14606_s15 + $0xa8] sm:$0xff] %v612_v21  }
  0x4d   : > { %617 = vst [vmem:[%s14606_s15 + $0xb0] sm:$0xff] %v616_v22   ;;  %621 = vst [vmem:[%s14606_s15 + $0xb8] sm:$0xff] %v620_v23   ;;  %v624_v24 = vld [vmem:[%s14601_s11 + $0x180] sm:$0xff]   ;;  %v628_v25 = vld [vmem:[%s14601_s11 + $0x190] sm:$0xff]  }
  0x4e   : > { %v632_v26 = vld [vmem:[%s14601_s11 + $0x1a0] sm:$0xff]   ;;  %625 = vst [vmem:[%s14606_s15 + $0xc0] sm:$0xff] %v624_v24   ;;  %629 = vst [vmem:[%s14606_s15 + $0xc8] sm:$0xff] %v628_v25   ;;  %v636_v27 = vld [vmem:[%s14601_s11 + $0x1b0] sm:$0xff]  }
  0x4f   : > { %633 = vst [vmem:[%s14606_s15 + $0xd0] sm:$0xff] %v632_v26   ;;  %v640_v28 = vld [vmem:[%s14601_s11 + $0x1c0] sm:$0xff]   ;;  %v644_v29 = vld [vmem:[%s14601_s11 + $0x1d0] sm:$0xff]   ;;  %637 = vst [vmem:[%s14606_s15 + $0xd8] sm:$0xff] %v636_v27  }
  0x50   : > { %641 = vst [vmem:[%s14606_s15 + $0xe0] sm:$0xff] %v640_v28   ;;  %645 = vst [vmem:[%s14606_s15 + $0xe8] sm:$0xff] %v644_v29   ;;  %v648_v30 = vld [vmem:[%s14601_s11 + $0x1e0] sm:$0xff]   ;;  %v652_v31 = vld [vmem:[%s14601_s11 + $0x1f0] sm:$0xff]  }
  0x51   : > { %v656_v32 = vld [vmem:[%s14601_s11 + $0x200] sm:$0xff]   ;;  %649 = vst [vmem:[%s14606_s15 + $0xf0] sm:$0xff] %v648_v30   ;;  %653 = vst [vmem:[%s14606_s15 + $0xf8] sm:$0xff] %v652_v31   ;;  %v660_v33 = vld [vmem:[%s14601_s11 + $0x210] sm:$0xff]  }
  0x52   : > { %657 = vst [vmem:[%s14606_s15 + $0x100] sm:$0xff] %v656_v32   ;;  %v664_v34 = vld [vmem:[%s14601_s11 + $0x220] sm:$0xff]   ;;  %v668_v35 = vld [vmem:[%s14601_s11 + $0x230] sm:$0xff]   ;;  %661 = vst [vmem:[%s14606_s15 + $0x108] sm:$0xff] %v660_v33  }
  0x53   : > { %665 = vst [vmem:[%s14606_s15 + $0x110] sm:$0xff] %v664_v34   ;;  %669 = vst [vmem:[%s14606_s15 + $0x118] sm:$0xff] %v668_v35   ;;  %v672_v36 = vld [vmem:[%s14601_s11 + $0x240] sm:$0xff]   ;;  %v676_v37 = vld [vmem:[%s14601_s11 + $0x250] sm:$0xff]  }
  0x54   : > { %v680_v38 = vld [vmem:[%s14601_s11 + $0x260] sm:$0xff]   ;;  %673 = vst [vmem:[%s14606_s15 + $0x120] sm:$0xff] %v672_v36   ;;  %677 = vst [vmem:[%s14606_s15 + $0x128] sm:$0xff] %v676_v37   ;;  %v684_v39 = vld [vmem:[%s14601_s11 + $0x270] sm:$0xff]  }
  0x55   : > { %681 = vst [vmem:[%s14606_s15 + $0x130] sm:$0xff] %v680_v38   ;;  %v688_v40 = vld [vmem:[%s14601_s11 + $0x280] sm:$0xff]   ;;  %v692_v41 = vld [vmem:[%s14601_s11 + $0x290] sm:$0xff]   ;;  %685 = vst [vmem:[%s14606_s15 + $0x138] sm:$0xff] %v684_v39  }
  0x56   : > { %689 = vst [vmem:[%s14606_s15 + $0x140] sm:$0xff] %v688_v40   ;;  %693 = vst [vmem:[%s14606_s15 + $0x148] sm:$0xff] %v692_v41   ;;  %v696_v42 = vld [vmem:[%s14601_s11 + $0x2a0] sm:$0xff]   ;;  %v700_v43 = vld [vmem:[%s14601_s11 + $0x2b0] sm:$0xff]  }
  0x57   : > { %v704_v44 = vld [vmem:[%s14601_s11 + $0x2c0] sm:$0xff]   ;;  %697 = vst [vmem:[%s14606_s15 + $0x150] sm:$0xff] %v696_v42   ;;  %701 = vst [vmem:[%s14606_s15 + $0x158] sm:$0xff] %v700_v43   ;;  %v708_v45 = vld [vmem:[%s14601_s11 + $0x2d0] sm:$0xff]  }
  0x58   : > { %705 = vst [vmem:[%s14606_s15 + $0x160] sm:$0xff] %v704_v44   ;;  %v712_v46 = vld [vmem:[%s14601_s11 + $0x2e0] sm:$0xff]   ;;  %v716_v47 = vld [vmem:[%s14601_s11 + $0x2f0] sm:$0xff]   ;;  %709 = vst [vmem:[%s14606_s15 + $0x168] sm:$0xff] %v708_v45  }
  0x59   : > { %713 = vst [vmem:[%s14606_s15 + $0x170] sm:$0xff] %v712_v46   ;;  %717 = vst [vmem:[%s14606_s15 + $0x178] sm:$0xff] %v716_v47   ;;  %v720_v48 = vld [vmem:[%s14601_s11 + $0x300] sm:$0xff]   ;;  %v724_v49 = vld [vmem:[%s14601_s11 + $0x310] sm:$0xff]  }
  0x5a   : > { %v728_v50 = vld [vmem:[%s14601_s11 + $0x320] sm:$0xff]   ;;  %721 = vst [vmem:[%s14606_s15 + $0x180] sm:$0xff] %v720_v48   ;;  %725 = vst [vmem:[%s14606_s15 + $0x188] sm:$0xff] %v724_v49   ;;  %v732_v51 = vld [vmem:[%s14601_s11 + $0x330] sm:$0xff]  }
  0x5b   : > { %729 = vst [vmem:[%s14606_s15 + $0x190] sm:$0xff] %v728_v50   ;;  %v736_v52 = vld [vmem:[%s14601_s11 + $0x340] sm:$0xff]   ;;  %v740_v53 = vld [vmem:[%s14601_s11 + $0x350] sm:$0xff]   ;;  %733 = vst [vmem:[%s14606_s15 + $0x198] sm:$0xff] %v732_v51  }
  0x5c   : > { %737 = vst [vmem:[%s14606_s15 + $0x1a0] sm:$0xff] %v736_v52   ;;  %741 = vst [vmem:[%s14606_s15 + $0x1a8] sm:$0xff] %v740_v53   ;;  %v744_v54 = vld [vmem:[%s14601_s11 + $0x360] sm:$0xff]   ;;  %v748_v55 = vld [vmem:[%s14601_s11 + $0x370] sm:$0xff]  }
  0x5d   : > { %v752_v56 = vld [vmem:[%s14601_s11 + $0x380] sm:$0xff]   ;;  %745 = vst [vmem:[%s14606_s15 + $0x1b0] sm:$0xff] %v744_v54   ;;  %749 = vst [vmem:[%s14606_s15 + $0x1b8] sm:$0xff] %v748_v55   ;;  %v756_v57 = vld [vmem:[%s14601_s11 + $0x390] sm:$0xff]  }
  0x5e   : > { %753 = vst [vmem:[%s14606_s15 + $0x1c0] sm:$0xff] %v752_v56   ;;  %v760_v58 = vld [vmem:[%s14601_s11 + $0x3a0] sm:$0xff]   ;;  %v764_v59 = vld [vmem:[%s14601_s11 + $0x3b0] sm:$0xff]   ;;  %757 = vst [vmem:[%s14606_s15 + $0x1c8] sm:$0xff] %v756_v57  }
  0x5f   : > { %761 = vst [vmem:[%s14606_s15 + $0x1d0] sm:$0xff] %v760_v58   ;;  %765 = vst [vmem:[%s14606_s15 + $0x1d8] sm:$0xff] %v764_v59   ;;  %v768_v60 = vld [vmem:[%s14601_s11 + $0x3c0] sm:$0xff]   ;;  %v772_v61 = vld [vmem:[%s14601_s11 + $0x3d0] sm:$0xff]  }
  0x60   : > { %v776_v62 = vld [vmem:[%s14601_s11 + $0x3e0] sm:$0xff]   ;;  %769 = vst [vmem:[%s14606_s15 + $0x1e0] sm:$0xff] %v768_v60   ;;  %773 = vst [vmem:[%s14606_s15 + $0x1e8] sm:$0xff] %v772_v61   ;;  %v780_v63 = vld [vmem:[%s14601_s11 + $0x3f0] sm:$0xff]  }
  0x61   : > { %777 = vst [vmem:[%s14606_s15 + $0x1f0] sm:$0xff] %v776_v62   ;;  %781 = vst [vmem:[%s14606_s15 + $0x1f8] sm:$0xff] %v780_v63  }
  0x62 PF: > { %1062 = sbr.rel (!%p14556_p4) target bundleno = 141 (0x8d), region = 101  ;;  %s1064_s14 = sand.u32 (%p14556_p4), 1, %s14356_s22  }
  0x63   : > { %s13384_s30 = sshll.u32 (%p14556_p4), %s14372_s26, 6  ;;  %s13385_s12 = sshll.u32 (%p14556_p4), %s14376_s27, 8 }
  0x64   : > { %s13054_s7 = sshll.u32 (%p14556_p4), %s1064_s14, 9  ;;  %s1071_s6 = sadd.s32 (%p14556_p4), %s13385_s12, %s13384_s30 }
  0x65   : > { %s13059_s10 = sshll.u32 (%p14556_p4), %s14380_s28, 9  ;;  %s22626_s4 = sld [smem:[#allocation301_spill]] (%p14556_p4) }
  0x66   : > { %s1073_s17 = sadd.s32 (%p14556_p4), %s13059_s10, %s1071_s6  ;;  %s14747_s13 = scalar_lea.vmem (%p14556_p4), [#allocation10], %s13054_s7 }
  0x67   : > { %s13060_s16 = sshll.u32 (%p14556_p4), %s1073_s17, 2 }
  0x6b   : > { %s14742_s11 = scalar_lea.vmem %s22626_s4, %s13060_s16 }
  0x6c   : > { %v1091_v0 = vld [vmem:[%s14742_s11] sm:$0xff]   ;;  %v1095_v1 = vld [vmem:[%s14742_s11 + $0x8] sm:$0xff]   ;;  %v1099_v2 = vld [vmem:[%s14742_s11 + $0x10] sm:$0xff]  }
  0x6d   : > { %1092 = vst [vmem:[%s14747_s13] sm:$0xff] %v1091_v0   ;;  %1096 = vst [vmem:[%s14747_s13 + $0x8] sm:$0xff] %v1095_v1   ;;  %v1103_v3 = vld [vmem:[%s14742_s11 + $0x18] sm:$0xff]   ;;  %v1107_v4 = vld [vmem:[%s14742_s11 + $0x20] sm:$0xff]  }
  0x6e   : > { %1100 = vst [vmem:[%s14747_s13 + $0x10] sm:$0xff] %v1099_v2   ;;  %v1111_v5 = vld [vmem:[%s14742_s11 + $0x28] sm:$0xff]   ;;  %1104 = vst [vmem:[%s14747_s13 + $0x18] sm:$0xff] %v1103_v3   ;;  %v1115_v6 = vld [vmem:[%s14742_s11 + $0x30] sm:$0xff]  }
  0x6f   : > { %1108 = vst [vmem:[%s14747_s13 + $0x20] sm:$0xff] %v1107_v4   ;;  %1112 = vst [vmem:[%s14747_s13 + $0x28] sm:$0xff] %v1111_v5   ;;  %v1119_v7 = vld [vmem:[%s14742_s11 + $0x38] sm:$0xff]   ;;  %v1123_v8 = vld [vmem:[%s14742_s11 + $0x40] sm:$0xff]  }
  0x70   : > { %1116 = vst [vmem:[%s14747_s13 + $0x30] sm:$0xff] %v1115_v6   ;;  %1120 = vst [vmem:[%s14747_s13 + $0x38] sm:$0xff] %v1119_v7   ;;  %v1127_v9 = vld [vmem:[%s14742_s11 + $0x48] sm:$0xff]   ;;  %v1131_v10 = vld [vmem:[%s14742_s11 + $0x50] sm:$0xff]  }
  0x71   : > { %1124 = vst [vmem:[%s14747_s13 + $0x40] sm:$0xff] %v1123_v8   ;;  %v1135_v11 = vld [vmem:[%s14742_s11 + $0x58] sm:$0xff]   ;;  %1128 = vst [vmem:[%s14747_s13 + $0x48] sm:$0xff] %v1127_v9   ;;  %v1139_v12 = vld [vmem:[%s14742_s11 + $0x60] sm:$0xff]  }
  0x72   : > { %1132 = vst [vmem:[%s14747_s13 + $0x50] sm:$0xff] %v1131_v10   ;;  %1136 = vst [vmem:[%s14747_s13 + $0x58] sm:$0xff] %v1135_v11   ;;  %v1143_v13 = vld [vmem:[%s14742_s11 + $0x68] sm:$0xff]   ;;  %v1147_v14 = vld [vmem:[%s14742_s11 + $0x70] sm:$0xff]  }
  0x73   : > { %1140 = vst [vmem:[%s14747_s13 + $0x60] sm:$0xff] %v1139_v12   ;;  %1144 = vst [vmem:[%s14747_s13 + $0x68] sm:$0xff] %v1143_v13   ;;  %v1151_v15 = vld [vmem:[%s14742_s11 + $0x78] sm:$0xff]   ;;  %v1155_v16 = vld [vmem:[%s14742_s11 + $0x80] sm:$0xff]  }
  0x74   : > { %1148 = vst [vmem:[%s14747_s13 + $0x70] sm:$0xff] %v1147_v14   ;;  %v1159_v17 = vld [vmem:[%s14742_s11 + $0x88] sm:$0xff]   ;;  %1152 = vst [vmem:[%s14747_s13 + $0x78] sm:$0xff] %v1151_v15   ;;  %v1163_v18 = vld [vmem:[%s14742_s11 + $0x90] sm:$0xff]  }
  0x75   : > { %1156 = vst [vmem:[%s14747_s13 + $0x80] sm:$0xff] %v1155_v16   ;;  %1160 = vst [vmem:[%s14747_s13 + $0x88] sm:$0xff] %v1159_v17   ;;  %v1167_v19 = vld [vmem:[%s14742_s11 + $0x98] sm:$0xff]   ;;  %v1171_v20 = vld [vmem:[%s14742_s11 + $0xa0] sm:$0xff]  }
  0x76   : > { %1164 = vst [vmem:[%s14747_s13 + $0x90] sm:$0xff] %v1163_v18   ;;  %1168 = vst [vmem:[%s14747_s13 + $0x98] sm:$0xff] %v1167_v19   ;;  %v1175_v21 = vld [vmem:[%s14742_s11 + $0xa8] sm:$0xff]   ;;  %v1179_v22 = vld [vmem:[%s14742_s11 + $0xb0] sm:$0xff]  }
  0x77   : > { %1172 = vst [vmem:[%s14747_s13 + $0xa0] sm:$0xff] %v1171_v20   ;;  %v1183_v23 = vld [vmem:[%s14742_s11 + $0xb8] sm:$0xff]   ;;  %1176 = vst [vmem:[%s14747_s13 + $0xa8] sm:$0xff] %v1175_v21   ;;  %v1187_v24 = vld [vmem:[%s14742_s11 + $0xc0] sm:$0xff]  }
  0x78   : > { %1180 = vst [vmem:[%s14747_s13 + $0xb0] sm:$0xff] %v1179_v22   ;;  %1184 = vst [vmem:[%s14747_s13 + $0xb8] sm:$0xff] %v1183_v23   ;;  %v1191_v25 = vld [vmem:[%s14742_s11 + $0xc8] sm:$0xff]   ;;  %v1195_v26 = vld [vmem:[%s14742_s11 + $0xd0] sm:$0xff]  }
  0x79   : > { %1188 = vst [vmem:[%s14747_s13 + $0xc0] sm:$0xff] %v1187_v24   ;;  %1192 = vst [vmem:[%s14747_s13 + $0xc8] sm:$0xff] %v1191_v25   ;;  %v1199_v27 = vld [vmem:[%s14742_s11 + $0xd8] sm:$0xff]   ;;  %v1203_v28 = vld [vmem:[%s14742_s11 + $0xe0] sm:$0xff]  }
  0x7a   : > { %1196 = vst [vmem:[%s14747_s13 + $0xd0] sm:$0xff] %v1195_v26   ;;  %v1207_v29 = vld [vmem:[%s14742_s11 + $0xe8] sm:$0xff]   ;;  %1200 = vst [vmem:[%s14747_s13 + $0xd8] sm:$0xff] %v1199_v27   ;;  %v1211_v30 = vld [vmem:[%s14742_s11 + $0xf0] sm:$0xff]  }
  0x7b   : > { %1204 = vst [vmem:[%s14747_s13 + $0xe0] sm:$0xff] %v1203_v28   ;;  %1208 = vst [vmem:[%s14747_s13 + $0xe8] sm:$0xff] %v1207_v29   ;;  %v1215_v31 = vld [vmem:[%s14742_s11 + $0xf8] sm:$0xff]   ;;  %v1219_v32 = vld [vmem:[%s14742_s11 + $0x200] sm:$0xff]  }
  0x7c   : > { %1212 = vst [vmem:[%s14747_s13 + $0xf0] sm:$0xff] %v1211_v30   ;;  %1216 = vst [vmem:[%s14747_s13 + $0xf8] sm:$0xff] %v1215_v31   ;;  %v1223_v33 = vld [vmem:[%s14742_s11 + $0x208] sm:$0xff]   ;;  %v1227_v34 = vld [vmem:[%s14742_s11 + $0x210] sm:$0xff]  }
  0x7d   : > { %1220 = vst [vmem:[%s14747_s13 + $0x100] sm:$0xff] %v1219_v32   ;;  %v1231_v35 = vld [vmem:[%s14742_s11 + $0x218] sm:$0xff]   ;;  %1224 = vst [vmem:[%s14747_s13 + $0x108] sm:$0xff] %v1223_v33   ;;  %v1235_v36 = vld [vmem:[%s14742_s11 + $0x220] sm:$0xff]  }
  0x7e   : > { %1228 = vst [vmem:[%s14747_s13 + $0x110] sm:$0xff] %v1227_v34   ;;  %1232 = vst [vmem:[%s14747_s13 + $0x118] sm:$0xff] %v1231_v35   ;;  %v1239_v37 = vld [vmem:[%s14742_s11 + $0x228] sm:$0xff]   ;;  %v1243_v38 = vld [vmem:[%s14742_s11 + $0x230] sm:$0xff]  }
  0x7f   : > { %1236 = vst [vmem:[%s14747_s13 + $0x120] sm:$0xff] %v1235_v36   ;;  %1240 = vst [vmem:[%s14747_s13 + $0x128] sm:$0xff] %v1239_v37   ;;  %v1247_v39 = vld [vmem:[%s14742_s11 + $0x238] sm:$0xff]   ;;  %v1251_v40 = vld [vmem:[%s14742_s11 + $0x240] sm:$0xff]  }
  0x80   : > { %1244 = vst [vmem:[%s14747_s13 + $0x130] sm:$0xff] %v1243_v38   ;;  %v1255_v41 = vld [vmem:[%s14742_s11 + $0x248] sm:$0xff]   ;;  %1248 = vst [vmem:[%s14747_s13 + $0x138] sm:$0xff] %v1247_v39   ;;  %v1259_v42 = vld [vmem:[%s14742_s11 + $0x250] sm:$0xff]  }
  0x81   : > { %1252 = vst [vmem:[%s14747_s13 + $0x140] sm:$0xff] %v1251_v40   ;;  %1256 = vst [vmem:[%s14747_s13 + $0x148] sm:$0xff] %v1255_v41   ;;  %v1263_v43 = vld [vmem:[%s14742_s11 + $0x258] sm:$0xff]   ;;  %v1267_v44 = vld [vmem:[%s14742_s11 + $0x260] sm:$0xff]  }
  0x82   : > { %1260 = vst [vmem:[%s14747_s13 + $0x150] sm:$0xff] %v1259_v42   ;;  %1264 = vst [vmem:[%s14747_s13 + $0x158] sm:$0xff] %v1263_v43   ;;  %v1271_v45 = vld [vmem:[%s14742_s11 + $0x268] sm:$0xff]   ;;  %v1275_v46 = vld [vmem:[%s14742_s11 + $0x270] sm:$0xff]  }
  0x83   : > { %1268 = vst [vmem:[%s14747_s13 + $0x160] sm:$0xff] %v1267_v44   ;;  %v1279_v47 = vld [vmem:[%s14742_s11 + $0x278] sm:$0xff]   ;;  %1272 = vst [vmem:[%s14747_s13 + $0x168] sm:$0xff] %v1271_v45   ;;  %v1283_v48 = vld [vmem:[%s14742_s11 + $0x280] sm:$0xff]  }
  0x84   : > { %1276 = vst [vmem:[%s14747_s13 + $0x170] sm:$0xff] %v1275_v46   ;;  %1280 = vst [vmem:[%s14747_s13 + $0x178] sm:$0xff] %v1279_v47   ;;  %v1287_v49 = vld [vmem:[%s14742_s11 + $0x288] sm:$0xff]   ;;  %v1291_v50 = vld [vmem:[%s14742_s11 + $0x290] sm:$0xff]  }
  0x85   : > { %1284 = vst [vmem:[%s14747_s13 + $0x180] sm:$0xff] %v1283_v48   ;;  %1288 = vst [vmem:[%s14747_s13 + $0x188] sm:$0xff] %v1287_v49   ;;  %v1295_v51 = vld [vmem:[%s14742_s11 + $0x298] sm:$0xff]   ;;  %v1299_v52 = vld [vmem:[%s14742_s11 + $0x2a0] sm:$0xff]  }
  0x86   : > { %1292 = vst [vmem:[%s14747_s13 + $0x190] sm:$0xff] %v1291_v50   ;;  %v1303_v53 = vld [vmem:[%s14742_s11 + $0x2a8] sm:$0xff]   ;;  %1296 = vst [vmem:[%s14747_s13 + $0x198] sm:$0xff] %v1295_v51   ;;  %v1307_v54 = vld [vmem:[%s14742_s11 + $0x2b0] sm:$0xff]  }
  0x87   : > { %1300 = vst [vmem:[%s14747_s13 + $0x1a0] sm:$0xff] %v1299_v52   ;;  %1304 = vst [vmem:[%s14747_s13 + $0x1a8] sm:$0xff] %v1303_v53   ;;  %v1311_v55 = vld [vmem:[%s14742_s11 + $0x2b8] sm:$0xff]   ;;  %v1315_v56 = vld [vmem:[%s14742_s11 + $0x2c0] sm:$0xff]  }
  0x88   : > { %1308 = vst [vmem:[%s14747_s13 + $0x1b0] sm:$0xff] %v1307_v54   ;;  %1312 = vst [vmem:[%s14747_s13 + $0x1b8] sm:$0xff] %v1311_v55   ;;  %v1319_v57 = vld [vmem:[%s14742_s11 + $0x2c8] sm:$0xff]   ;;  %v1323_v58 = vld [vmem:[%s14742_s11 + $0x2d0] sm:$0xff]  }
  0x89   : > { %1316 = vst [vmem:[%s14747_s13 + $0x1c0] sm:$0xff] %v1315_v56   ;;  %v1327_v59 = vld [vmem:[%s14742_s11 + $0x2d8] sm:$0xff]   ;;  %1320 = vst [vmem:[%s14747_s13 + $0x1c8] sm:$0xff] %v1319_v57   ;;  %v1331_v60 = vld [vmem:[%s14742_s11 + $0x2e0] sm:$0xff]  }
  0x8a   : > { %1324 = vst [vmem:[%s14747_s13 + $0x1d0] sm:$0xff] %v1323_v58   ;;  %1328 = vst [vmem:[%s14747_s13 + $0x1d8] sm:$0xff] %v1327_v59   ;;  %v1335_v61 = vld [vmem:[%s14742_s11 + $0x2e8] sm:$0xff]   ;;  %v1339_v62 = vld [vmem:[%s14742_s11 + $0x2f0] sm:$0xff]  }
  0x8b   : > { %1332 = vst [vmem:[%s14747_s13 + $0x1e0] sm:$0xff] %v1331_v60   ;;  %1336 = vst [vmem:[%s14747_s13 + $0x1e8] sm:$0xff] %v1335_v61   ;;  %v1343_v63 = vld [vmem:[%s14742_s11 + $0x2f8] sm:$0xff]  }
  0x8c   : > { %1340 = vst [vmem:[%s14747_s13 + $0x1f0] sm:$0xff] %v1339_v62   ;;  %1344 = vst [vmem:[%s14747_s13 + $0x1f8] sm:$0xff] %v1343_v63  }
  0x8d PF: > { %p13061_p1 = scmp.ge.s32.totalorder %s14384_s29, 1  ;;  %p1658_p2 = scmp.lt.s32.totalorder %s14384_s29, 9 }
  0x8f   : > { %p1659_p3 = pnand %p13061_p1, %p1658_p2 }
  0x91   : > { %1662 = sbr.rel (%p1659_p3) target bundleno = 3147 (0xc4b), region = 154 }
  0x98   : > { %s1665_s3 = sand.u32 1, %s14352_s21   ;;  %s22088_s15 = sand.u32 1, %s14344_s19  }
  0x99   : > { %s13062_s14 = sshll.u32 %s1665_s3, 9  ;;  %s13064_s30 = sshll.u32 %s22088_s15, 5 }
  0x9a   : > { %p1759_p4 = scmp.lt.s32.totalorder %s14368_s25, 1  ;;  %p1764_p5 = scmp.lt.s32.totalorder %s14364_s24, 1 }
  0x9b   : > { %s13069_s12 = sshll.u32 %s14360_s23, 1  ;;  %s22627_s0 = sld [smem:[#allocation299_spill]] }
  0x9c   : > { %s1760_s7 = scalar_select %p1759_p4, %s14368_s25, 1 }
  0x9d   : > { %s14885_s6 = scalar_select %p1764_p5, %s14364_s24, 1 }
  0x9e   : > { %s13386_s10 = sshll.u32 %s1760_s7, 5  ;;  %p1779_p6 = scmp.lt.s32.totalorder %s13069_s12, 3 }
  0x9f   : > { %s13387_s9 = sshll.u32 %s14885_s6, 5  ;;  %s1771_s28 = scalar_lea.vmem %s22067_s2, %s14885_s6 }
  0xa0   : > { %s1768_s3 = scalar_lea.vmem %s22066_s1, %s13387_s9  ;;  %s24253_s12 = smov (!%p1779_p6, %s13069_s12), 3 }
  0xa1   : > { %s14890_s21 = scalar_lea.vmem %s22627_s0, %s13386_s10  ;;  %s13070_s27 = sshll.u32 %s1760_s7, 2 }
  0xa2   : > { %s13388_s26 = sshll.u32 %s14885_s6, 4  ;;  %s1782_s22 = sadd.s32 %s13070_s27, %s24253_s12 }
  0xa3   : > { %s22628_s5 = sld [smem:[#allocation308_spill]]  ;;  %s13071_s10 = sshll.u32 %s1782_s22, 3 }
  0xa4   : > { %p1802_p7 = scmp.eq.s32.totalorder %s14360_s23, 0  ;;  %s22629_s0 = sld [smem:[#allocation306_spill]] }
  0xa5   : > { %s22630_s4 = sld [smem:[#allocation307_spill]]  ;;  %s14917_s7 = scalar_lea.vmem [#allocation9], %s13062_s14 }
  0xa6   : > { %s14919_s27 = scalar_lea.vmem [#allocation10], %s13062_s14  ;;  %s14921_s12 = scalar_lea.vmem [#allocation11], %s13064_s30 }
  0xa7   : > { %p13077_p8 = scmp.ne.s32.totalorder %s14360_s23, 0 }
  0xa8   : > { %v1810_v0 = vld [vmem:[%s1768_s3] sm:$0xff] (!%p13077_p8)  ;;  %v1811_v1 = vld [vmem:[%s1768_s3 + $0x8] sm:$0xff] (!%p13077_p8)  ;;  %v1812_v2 = vld [vmem:[%s1768_s3 + $0x10] sm:$0xff] (!%p13077_p8)  ;;  %vm1821_vm0 = vcmask (!%p13077_p8), 261120   ;;  %vm1919_vm1 = vcmask (!%p13077_p8), 64512   ;;  %vm2011_vm2 = vcmask (!%p13077_p8), 7168  }
  0xa9   : > { %s14904_s29 = scalar_lea.vmem %s22628_s5, %s13388_s26  ;;  %1805 = sbr.rel (%p13077_p8) target bundleno = 545 (0x221), region = 166  ;;  %v13882_v3 = vpack.c.bf16 (!%p13077_p8), %v1811_v1, %v1810_v0  ;;  %v1813_v4 = vld [vmem:[%s1768_s3 + $0x18] sm:$0xff] (!%p13077_p8)  ;;  %v1806_v5 = vld [vmem:[%s14890_s21] sm:$0xff] (!%p13077_p8)  ;;  %v1808_v6 = vld [vmem:[%s14890_s21 + $0x10] sm:$0xff] (!%p13077_p8)  ;;  %v14386_v10 = vmov (!%p13077_p8), -1e+30  }
  0xaa   : > { %s14910_s11 = scalar_lea.vmem %s22629_s0, %s13071_s10  ;;  %v13886_v7 = vpack.c.bf16 (!%p13077_p8), %v1813_v4, %v1812_v2  ;;  %13566 = vmatprep.mubr.msk.f32.mxu0 (!%p13077_p8), %vm1821_vm0, %v1806_v5  ;;  %13569 = vmatprep.mubr.msk.f32.mxu1 (!%p13077_p8), %vm1821_vm0, %v1808_v6  ;;  %v1807_v8 = vld [vmem:[%s14890_s21 + $0x8] sm:$0xff] (!%p13077_p8)  ;;  %v1809_v9 = vld [vmem:[%s14890_s21 + $0x18] sm:$0xff] (!%p13077_p8)  ;;  %2012 = vst.msk [vmem:[#allocation5] sm:$0xff] (!%p13077_p8), %vm2011_vm2, %v14386_v10  ;;  %2013 = vst.msk [vmem:[#allocation5 + $0x8] sm:$0xff] (!%p13077_p8), %vm2011_vm2, %v14386_v10  ;;  %v14387_v11 = vmov (!%p13077_p8), 0.0   ;;  %s14388_s18 = smov (!%p13077_p8), 112  }
  0xab   : > { %s14915_s15 = scalar_lea.vmem %s22630_s4, %s13071_s10  ;;  %13883 = vmatprep.subr.bf16.mxu0 (!%p13077_p8), %v13882_v3  ;;  %13914 = vmatprep.subr.bf16.mxu1 (!%p13077_p8), %v13882_v3  ;;  %2014 = vst.msk [vmem:[#allocation5 + $0x10] sm:$0xff] (!%p13077_p8), %vm2011_vm2, %v14386_v10  ;;  %2015 = vst.msk [vmem:[#allocation5 + $0x18] sm:$0xff] (!%p13077_p8), %vm2011_vm2, %v14386_v10  ;;  %v13078_v12 = vld [vmem:[%s1771_s28] ss:$0 sm:$0xff] (!%p13077_p8)  ;;  %s14389_s20 = smov (!%p13077_p8), 96  }
  0xac   : > { %13885 = vmatpush3.bf16.msra.mxu0 (!%p13077_p8), %v13882_v3  ;;  %13916 = vmatpush3.bf16.msra.mxu1 (!%p13077_p8), %v13882_v3  ;;  %2016 = vst.msk [vmem:[#allocation5 + $0x20] sm:$0xff] (!%p13077_p8), %vm2011_vm2, %v14386_v10  ;;  %2017 = vst.msk [vmem:[#allocation5 + $0x28] sm:$0xff] (!%p13077_p8), %vm2011_vm2, %v14386_v10  ;;  %s14390_s22 = smov (!%p13077_p8), 120   ;;  %s14391_s26 = smov (!%p13077_p8), 104  }
  0xad   : > { %13887 = vmatprep.subr.bf16.mxu0 (!%p13077_p8), %v13886_v7  ;;  %13915 = vmatprep.subr.bf16.mxu1 (!%p13077_p8), %v13886_v7  ;;  %2018 = vst.msk [vmem:[#allocation5 + $0x30] sm:$0xff] (!%p13077_p8), %vm2011_vm2, %v14386_v10  ;;  %2019 = vst.msk [vmem:[#allocation5 + $0x38] sm:$0xff] (!%p13077_p8), %vm2011_vm2, %v14386_v10  ;;  %s14392_s28 = smov (!%p13077_p8), 88  }
  0xae   : > { %2020 = vst.msk [vmem:[#allocation6] sm:$0xff] (!%p13077_p8), %vm2011_vm2, %v14387_v11  ;;  %2021 = vst.msk [vmem:[#allocation6 + $0x8] sm:$0xff] (!%p13077_p8), %vm2011_vm2, %v14387_v11 }
  0xaf   : > { %2022 = vst.msk [vmem:[#allocation6 + $0x10] sm:$0xff] (!%p13077_p8), %vm2011_vm2, %v14387_v11  ;;  %2023 = vst.msk [vmem:[#allocation6 + $0x18] sm:$0xff] (!%p13077_p8), %vm2011_vm2, %v14387_v11 }
  0xb0   : > { %13889 = vmatpush3.bf16.msra.mxu0 %v13886_v7  ;;  %13917 = vmatpush3.bf16.msra.mxu1 %v13886_v7  ;;  %2024 = vst.msk [vmem:[#allocation6 + $0x20] sm:$0xff] %vm2011_vm2, %v14387_v11  ;;  %2025 = vst.msk [vmem:[#allocation6 + $0x28] sm:$0xff] %vm2011_vm2, %v14387_v11 }
  0xb1   : > { %2026 = vst.msk [vmem:[#allocation6 + $0x30] sm:$0xff] %vm2011_vm2, %v14387_v11  ;;  %2027 = vst.msk [vmem:[#allocation6 + $0x38] sm:$0xff] %vm2011_vm2, %v14387_v11 }
  0xb2   : > { %2028 = vst.msk [vmem:[#allocation7] sm:$0xff] %vm1919_vm1, %v14387_v11  ;;  %2029 = vst.msk [vmem:[#allocation7 + $0x8] sm:$0xff] %vm1919_vm1, %v14387_v11 }
  0xb3   : > { %13567 = vmatmul.mubr.msk.f32.vlgmr.msra.gmra.mrb[0].mxu0 %vm1821_vm0, %v1807_v8  ;;  %13570 = vmatmul.mubr.msk.f32.vlgmr.msra.gmra.mrb[0].mxu1 %vm1821_vm0, %v1809_v9  ;;  %2030 = vst.msk [vmem:[#allocation7 + $0x10] sm:$0xff] %vm1919_vm1, %v14387_v11  ;;  %2031 = vst.msk [vmem:[#allocation7 + $0x18] sm:$0xff] %vm1919_vm1, %v14387_v11 }
  0xb4   : > { %2032 = vst.msk [vmem:[#allocation7 + $0x20] sm:$0xff] %vm1919_vm1, %v14387_v11  ;;  %2033 = vst.msk [vmem:[#allocation7 + $0x28] sm:$0xff] %vm1919_vm1, %v14387_v11 }
  0xb5   : > { %2034 = vst.msk [vmem:[#allocation7 + $0x30] sm:$0xff] %vm1919_vm1, %v14387_v11  ;;  %2035 = vst.msk [vmem:[#allocation7 + $0x38] sm:$0xff] %vm1919_vm1, %v14387_v11 }
 0x186   : > { %v13568_v13 = vpop.f32.mrb[0].mxu0  ;;  %v13571_v14 = vpop.f32.mrb[0].mxu1 }
 0x187   : > { %v1906_v15 = vadd.f32 %v13568_v13, %v13078_v12  ;;  %v1916_v16 = vadd.f32 %v13571_v14, %v13078_v12  ;;  %v1900_v17 = vpop.f32.mrb[1].mxu0  ;;  %v1910_v18 = vpop.f32.mrb[1].mxu1 }
 0x188   : > { %v1901_v19 = vadd.f32 %v13078_v12, %v1900_v17  ;;  %v1911_v20 = vadd.f32 %v13078_v12, %v1910_v18 }
 0x189   : > { %1921 = vst.msk [vmem:[#allocation2 + $0x8] sm:$0xff] %vm1919_vm1, %v1906_v15  ;;  %1923 = vst.msk [vmem:[#allocation2 + $0x18] sm:$0xff] %vm1919_vm1, %v1916_v16  ;;  %1934 = vrot.lane.b32.xlu1 %v1916_v16, %s14388_s18  ;;  %1930 = vrot.lane.b32.xlu0 %v1906_v15, %s14388_s18 }
 0x18a   : > { %1920 = vst.msk [vmem:[#allocation2] sm:$0xff] %vm1919_vm1, %v1901_v19  ;;  %1922 = vst.msk [vmem:[#allocation2 + $0x10] sm:$0xff] %vm1919_vm1, %v1911_v20 }
 0x18d   : > { %1946 = vrot.lane.b32.xlu1 %v1906_v15, %s14389_s20  ;;  %1928 = vrot.lane.b32.xlu0 %v1901_v19, %s14388_s18 }
 0x191   : > { %1950 = vrot.lane.b32.xlu1 %v1916_v16, %s14389_s20  ;;  %1944 = vrot.lane.b32.xlu0 %v1901_v19, %s14389_s20 }
 0x195   : > { %1962 = vrot.lane.b32.xlu1 %v1906_v15, %s14390_s22  ;;  %1948 = vrot.lane.b32.xlu0 %v1911_v20, %s14389_s20 }
 0x199   : > { %1966 = vrot.lane.b32.xlu1 %v1916_v16, %s14390_s22  ;;  %1960 = vrot.lane.b32.xlu0 %v1901_v19, %s14390_s22 }
 0x19d   : > { %1979 = vrot.lane.b32.xlu1 %v1906_v15, %s14391_s26  ;;  %1964 = vrot.lane.b32.xlu0 %v1911_v20, %s14390_s22 }
 0x1a1   : > { %1983 = vrot.lane.b32.xlu1 %v1916_v16, %s14391_s26  ;;  %1977 = vrot.lane.b32.xlu0 %v1901_v19, %s14391_s26 }
 0x1a5   : > { %1996 = vrot.lane.b32.xlu1 %v1906_v15, %s14392_s28  ;;  %1981 = vrot.lane.b32.xlu0 %v1911_v20, %s14391_s26 }
 0x1a9   : > { %1932 = vrot.lane.b32.xlu1 %v1911_v20, %s14388_s18  ;;  %1994 = vrot.lane.b32.xlu0 %v1901_v19, %s14392_s28 }
 0x1ad   : > { %2000 = vrot.lane.b32.xlu1 %v1916_v16, %s14392_s28  ;;  %1998 = vrot.lane.b32.xlu0 %v1911_v20, %s14392_s28 }
 0x1fb   : > { %v1935_v21 = vpop.permute.xlu1 %1934  ;;  %v1931_v22 = vpop.permute.xlu0 %1930 }
 0x1fc   : > { %1943 = vst.msk [vmem:[#allocation3 + $0x18] sm:$0xff] %vm1919_vm1, %v1935_v21  ;;  %1941 = vst.msk [vmem:[#allocation3 + $0x8] sm:$0xff] %vm1919_vm1, %v1931_v22 }
 0x1ff   : > { %v1947_v23 = vpop.permute.xlu1 %1946  ;;  %v1929_v24 = vpop.permute.xlu0 %1928 }
 0x200   : > { %1957 = vst.msk [vmem:[#allocation4 + $0x8] sm:$0xff] %vm1919_vm1, %v1947_v23  ;;  %1940 = vst.msk [vmem:[#allocation3] sm:$0xff] %vm1919_vm1, %v1929_v24 }
 0x203   : > { %v1951_v25 = vpop.permute.xlu1 %1950  ;;  %v1945_v26 = vpop.permute.xlu0 %1944 }
 0x204   : > { %1959 = vst.msk [vmem:[#allocation4 + $0x18] sm:$0xff] %vm1919_vm1, %v1951_v25  ;;  %1956 = vst.msk [vmem:[#allocation4] sm:$0xff] %vm1919_vm1, %v1945_v26 }
 0x207   : > { %v1963_v27 = vpop.permute.xlu1 %1962  ;;  %v1949_v28 = vpop.permute.xlu0 %1948 }
 0x208   : > { %1974 = vst.msk [vmem:[#allocation2 + $0x28] sm:$0xff] %vm1919_vm1, %v1963_v27  ;;  %1958 = vst.msk [vmem:[#allocation4 + $0x10] sm:$0xff] %vm1919_vm1, %v1949_v28 }
 0x20b   : > { %v1967_v29 = vpop.permute.xlu1 %1966  ;;  %v1961_v30 = vpop.permute.xlu0 %1960 }
 0x20c   : > { %1976 = vst.msk [vmem:[#allocation2 + $0x38] sm:$0xff] %vm1919_vm1, %v1967_v29  ;;  %1973 = vst.msk [vmem:[#allocation2 + $0x20] sm:$0xff] %vm1919_vm1, %v1961_v30 }
 0x20f   : > { %v1980_v31 = vpop.permute.xlu1 %1979  ;;  %v1965_v32 = vpop.permute.xlu0 %1964 }
 0x210   : > { %1991 = vst.msk [vmem:[#allocation3 + $0x28] sm:$0xff] %vm1919_vm1, %v1980_v31  ;;  %1975 = vst.msk [vmem:[#allocation2 + $0x30] sm:$0xff] %vm1919_vm1, %v1965_v32 }
 0x213   : > { %v1984_v33 = vpop.permute.xlu1 %1983  ;;  %v1978_v34 = vpop.permute.xlu0 %1977 }
 0x214   : > { %1993 = vst.msk [vmem:[#allocation3 + $0x38] sm:$0xff] %vm1919_vm1, %v1984_v33  ;;  %1990 = vst.msk [vmem:[#allocation3 + $0x20] sm:$0xff] %vm1919_vm1, %v1978_v34 }
 0x217   : > { %v1997_v35 = vpop.permute.xlu1 %1996  ;;  %v1982_v36 = vpop.permute.xlu0 %1981 }
 0x218   : > { %2008 = vst.msk [vmem:[#allocation4 + $0x28] sm:$0xff] %vm1919_vm1, %v1997_v35  ;;  %1992 = vst.msk [vmem:[#allocation3 + $0x30] sm:$0xff] %vm1919_vm1, %v1982_v36 }
 0x21b   : > { %v1933_v37 = vpop.permute.xlu1 %1932  ;;  %v1995_v38 = vpop.permute.xlu0 %1994 }
 0x21c   : > { %1942 = vst.msk [vmem:[#allocation3 + $0x10] sm:$0xff] %vm1919_vm1, %v1933_v37  ;;  %2007 = vst.msk [vmem:[#allocation4 + $0x20] sm:$0xff] %vm1919_vm1, %v1995_v38 }
 0x21f   : > { %v2001_v39 = vpop.permute.xlu1 %2000  ;;  %v1999_v40 = vpop.permute.xlu0 %1998 }
 0x220   : > { %2010 = vst.msk [vmem:[#allocation4 + $0x38] sm:$0xff] %vm1919_vm1, %v2001_v39  ;;  %2009 = vst.msk [vmem:[#allocation4 + $0x30] sm:$0xff] %vm1919_vm1, %v1999_v40 }
 0x221 PF: > { %p2036_p10 = scmp.eq.s32.totalorder %s14364_s24, 0 }
 0x223   : > { %p2037_p12 = pnand %p2036_p10, %p1802_p7 }
 0x224   : > { %vm2041_vm3 = vcmask (!%p2037_p12), 261120   ;;  %v14393_v41 = vmov (!%p2037_p12), 0.0  }
 0x225   : > { %2040 = sbr.rel (%p2037_p12) target bundleno = 556 (0x22c), region = 170  ;;  %2042 = vst.msk [vmem:[#allocation8] sm:$0xff] (!%p2037_p12), %vm2041_vm3, %v14393_v41  ;;  %2043 = vst.msk [vmem:[#allocation8 + $0x8] sm:$0xff] (!%p2037_p12), %vm2041_vm3, %v14393_v41 }
 0x226   : > { %2044 = vst.msk [vmem:[#allocation8 + $0x10] sm:$0xff] (!%p2037_p12), %vm2041_vm3, %v14393_v41  ;;  %2045 = vst.msk [vmem:[#allocation8 + $0x18] sm:$0xff] (!%p2037_p12), %vm2041_vm3, %v14393_v41 }
 0x22c PF: > { %s22631_s6 = sld [smem:[#allocation304_spill]]  ;;  %vm2722_vm4 = vcmask 1043456   ;;  %s22632_s17 = sld [smem:[#allocation302_spill]]  ;;  %v14046_v44 = vld [vmem:[%s14917_s7] sm:$0xff]   ;;  %vm2529_vm5 = vcmask 64512   ;;  %v14048_v48 = vld [vmem:[%s14917_s7 + $0x8] sm:$0xff]  }
 0x22d   : > { %v14047_v47 = vld [vmem:[%s14919_s27] sm:$0xff]   ;;  %13574 = vmatprep.mubr.msk.bf16.mxu0 %vm2529_vm5, %v14046_v44  ;;  %v14049_v49 = vld [vmem:[%s14919_s27 + $0x8] sm:$0xff]   ;;  %v14050_v50 = vld [vmem:[%s14917_s7 + $0x10] sm:$0xff]   ;;  %s13083_s16 = sshll.u32 %s14360_s23, 4  ;;  %s22657_s4 = sld [smem:[#allocation303_spill]]  ;;  %vm9090_vm7 = vcmask 130112  }
 0x22e   : > { %13704 = vmatprep.mubr.msk.bf16.mxu1 %vm2529_vm5, %v14047_v47  ;;  %v14051_v51 = vld [vmem:[%s14919_s27 + $0x10] sm:$0xff]   ;;  %v14052_v52 = vld [vmem:[%s14917_s7 + $0x18] sm:$0xff]   ;;  %v14054_v54 = vld [vmem:[%s14917_s7 + $0x20] sm:$0xff]   ;;  %s15086_s9 = scalar_lea.vmem [#allocation3], %s13083_s16  ;;  %vm9371_vm8 = vcmask 1041409   ;;  %vm9373_vm9 = vcmask 1042434  }
 0x22f   : > { %v14053_v53 = vld [vmem:[%s14919_s27 + $0x18] sm:$0xff]   ;;  %v14055_v55 = vld [vmem:[%s14919_s27 + $0x20] sm:$0xff]   ;;  %v14056_v56 = vld [vmem:[%s14917_s7 + $0x28] sm:$0xff]   ;;  %vm9375_vm10 = vcmask 1043459   ;;  %vm9377_vm11 = vcmask 1044484   ;;  %vm9379_vm12 = vcmask 1045509  }
 0x230   : > { %v14057_v57 = vld [vmem:[%s14919_s27 + $0x28] sm:$0xff]   ;;  %v14058_v58 = vld [vmem:[%s14917_s7 + $0x30] sm:$0xff]   ;;  %v14060_v60 = vld [vmem:[%s14917_s7 + $0x38] sm:$0xff]   ;;  %vm9381_vm13 = vcmask 1046534   ;;  %vm9383_vm14 = vcmask 1047559   ;;  %vm10040_vm15 = vcmask 130048  }
 0x231   : > { %v14059_v59 = vld [vmem:[%s14919_s27 + $0x30] sm:$0xff]   ;;  %v14061_v61 = vld [vmem:[%s14919_s27 + $0x38] sm:$0xff]   ;;  %v14062_v62 = vld [vmem:[%s14917_s7 + $0x40] sm:$0xff]   ;;  %vm10209_vm0 = vcmask 7168   ;;  %p12052_p13 = scmp.eq.s32.totalorder %s14360_s23, 1  ;;  %p13362_p0 = scmp.ne.s32.totalorder %s14360_s23, 1 }
 0x232   : > { %v2201_v42 = vld [vmem:[%s22631_s6] sm:$0xf]  ;;  %v14064_v0 = vld [vmem:[%s14917_s7 + $0x48] sm:$0xff]   ;;  %v14066_v2 = vld [vmem:[%s14917_s7 + $0x50] sm:$0xff]   ;;  %vm12719_vm1 = vcmask (!%p13362_p0), 261120  }
 0x233   : > { %v3399_v43 = vld [vmem:[%s22632_s17] sm:$0xf]  ;;  %13920 = vmatprep.subr.msk.bf16.mxu0 %vm2722_vm4, %v2201_v42  ;;  %v2724_v45 = vsel %vm2722_vm4, %v2201_v42, 0  ;;  %v14065_v1 = vld [vmem:[%s14919_s27 + $0x48] sm:$0xff]   ;;  %v14067_v3 = vld [vmem:[%s14919_s27 + $0x50] sm:$0xff]  }
 0x234   : > { %13921 = vmatprep.subr.msk.bf16.mxu1 %vm2722_vm4, %v3399_v43  ;;  %v3920_v46 = vsel %vm2722_vm4, %v3399_v43, 0  ;;  %13573 = vmatpush3.bf16.msra.mxu0 %v2724_v45  ;;  %v14063_v63 = vld [vmem:[%s14919_s27 + $0x40] sm:$0xff]   ;;  %v14068_v4 = vld [vmem:[%s14917_s7 + $0x58] sm:$0xff]   ;;  %v14072_v8 = vld [vmem:[%s14917_s7 + $0x68] sm:$0xff]  }
 0x235   : > { %13703 = vmatpush3.bf16.msra.mxu1 %v3920_v46  ;;  %v14069_v5 = vld [vmem:[%s14919_s27 + $0x58] sm:$0xff]   ;;  %v14070_v6 = vld [vmem:[%s14917_s7 + $0x60] sm:$0xff]   ;;  %v14073_v9 = vld [vmem:[%s14919_s27 + $0x68] sm:$0xff]  }
 0x236   : > { %v14071_v7 = vld [vmem:[%s14919_s27 + $0x60] sm:$0xff]   ;;  %v14074_v10 = vld [vmem:[%s14917_s7 + $0x70] sm:$0xff]   ;;  %v14076_v12 = vld [vmem:[%s14917_s7 + $0x78] sm:$0xff]  }
 0x237   : > { %13575 = vmatmul.mubr.msk.bf16.vlgmr.msra.gmra.mrb[0].mxu0 %vm2529_vm5, %v14048_v48  ;;  %v14075_v11 = vld [vmem:[%s14919_s27 + $0x70] sm:$0xff]   ;;  %v14077_v13 = vld [vmem:[%s14919_s27 + $0x78] sm:$0xff]   ;;  %v14078_v14 = vld [vmem:[%s14917_s7 + $0x80] sm:$0xff]  }
 0x238   : > { %13705 = vmatmul.mubr.msk.bf16.vlgmr.msra.gmra.mrb[0].mxu1 %vm2529_vm5, %v14049_v49  ;;  %13578 = vmatprep.mubr.msk.bf16.mxu0 %vm2529_vm5, %v14050_v50  ;;  %v14079_v15 = vld [vmem:[%s14919_s27 + $0x80] sm:$0xff]   ;;  %v14080_v16 = vld [vmem:[%s14917_s7 + $0x88] sm:$0xff]   ;;  %v14082_v18 = vld [vmem:[%s14917_s7 + $0x90] sm:$0xff]  }
 0x239   : > { %13708 = vmatprep.mubr.msk.bf16.mxu1 %vm2529_vm5, %v14051_v51  ;;  %v14081_v17 = vld [vmem:[%s14919_s27 + $0x88] sm:$0xff]   ;;  %v14083_v19 = vld [vmem:[%s14919_s27 + $0x90] sm:$0xff]   ;;  %v14084_v20 = vld [vmem:[%s14917_s7 + $0x98] sm:$0xff]  }
 0x23a   : > { %v14085_v21 = vld [vmem:[%s14919_s27 + $0x98] sm:$0xff]   ;;  %v14086_v22 = vld [vmem:[%s14917_s7 + $0xa0] sm:$0xff]   ;;  %v14088_v24 = vld [vmem:[%s14917_s7 + $0xa8] sm:$0xff]  }
 0x23b   : > { %v14087_v23 = vld [vmem:[%s14919_s27 + $0xa0] sm:$0xff]   ;;  %v14089_v25 = vld [vmem:[%s14919_s27 + $0xa8] sm:$0xff]   ;;  %v14090_v26 = vld [vmem:[%s14917_s7 + $0xb0] sm:$0xff]  }
 0x23c   : > { %v14091_v27 = vld [vmem:[%s14919_s27 + $0xb0] sm:$0xff]   ;;  %v2064_v28 = vld [vmem:[%s15086_s9] sm:$0xff]  ;;  %v2065_v29 = vld [vmem:[%s15086_s9 + $0x8] sm:$0xff] }
 0x23d   : > { %vm15092_vm6 = vmpackc.low %vm2529_vm5, %vm2529_vm5  ;;  %v13890_v31 = vpack.c.bf16 %v2065_v29, %v2064_v28  ;;  %v14092_v32 = vld [vmem:[%s14917_s7 + $0xb8] sm:$0xff]   ;;  %v14094_v34 = vld [vmem:[%s14917_s7 + $0xc0] sm:$0xff]  }
 0x23e   : > { %v14093_v33 = vld [vmem:[%s14919_s27 + $0xb8] sm:$0xff]   ;;  %v14095_v35 = vld [vmem:[%s14919_s27 + $0xc0] sm:$0xff]   ;;  %v14096_v36 = vld [vmem:[%s14917_s7 + $0xc8] sm:$0xff]  }
 0x23f   : > { %13579 = vmatmul.mubr.msk.bf16.gmra.mrb[4].mxu0 %vm2529_vm5, %v14052_v52  ;;  %13892 = vmatprep.subr.msk.bf16.mxu0 %vm15092_vm6, %v13890_v31  ;;  %v14097_v37 = vld [vmem:[%s14919_s27 + $0xc8] sm:$0xff]   ;;  %v14098_v38 = vld [vmem:[%s14917_s7 + $0xd0] sm:$0xff]   ;;  %v14100_v40 = vld [vmem:[%s14917_s7 + $0xd8] sm:$0xff]  }
 0x240   : > { %13709 = vmatmul.mubr.msk.bf16.gmra.mrb[4].mxu1 %vm2529_vm5, %v14053_v53  ;;  %13582 = vmatprep.mubr.msk.bf16.mxu0 %vm2529_vm5, %v14054_v54  ;;  %v14099_v39 = vld [vmem:[%s14919_s27 + $0xd0] sm:$0xff]   ;;  %v14101_v41 = vld [vmem:[%s14919_s27 + $0xd8] sm:$0xff]   ;;  %v14102_v42 = vld [vmem:[%s14917_s7 + $0xe0] sm:$0xff]   ;;  %v14394_v54 = vmov 0  }
 0x241   : > { %13712 = vmatprep.mubr.msk.bf16.mxu1 %vm2529_vm5, %v14055_v55  ;;  %13895 = vmatpush3.bf16.xpose.msk.msra.mxu0 %vm15092_vm6, %v13890_v31  ;;  %v14103_v43 = vld [vmem:[%s14919_s27 + $0xe0] sm:$0xff]   ;;  %v14104_v44 = vld [vmem:[%s14917_s7 + $0xe8] sm:$0xff]   ;;  %v14106_v46 = vld [vmem:[%s14917_s7 + $0xf0] sm:$0xff]  }
 0x242   : > { %v14105_v45 = vld [vmem:[%s14919_s27 + $0xe8] sm:$0xff]   ;;  %v14107_v47 = vld [vmem:[%s14919_s27 + $0xf0] sm:$0xff]   ;;  %v8979_v48 = vld [vmem:[%s14910_s11] sm:$0xff]  ;;  %14044 = vset.pattern.permute.xlu1 %v14394_v54 }
 0x243   : > { %8981 = vxpose.xlu0.b32.start [1/2] (short) (narrow) %v8979_v48, 32  ;;  %v14108_v49 = vld [vmem:[%s14917_s7 + $0xf8] sm:$0xff]   ;;  %v8980_v50 = vld [vmem:[%s14910_s11 + $0x8] sm:$0xff]  ;;  %v14110_v52 = vld [vmem:[%s14917_s7 + $0x100] sm:$0xff]   ;;  %s14401_s11 = smov (!%p13362_p0), 8  }
 0x244   : > { %v14109_v51 = vld [vmem:[%s14919_s27 + $0xf8] sm:$0xff]   ;;  %v14111_v53 = vld [vmem:[%s14919_s27 + $0x100] sm:$0xff]   ;;  %v14144_v28 = vld [vmem:[%s14917_s7 + $0x188] sm:$0xff]  }
 0x245   : > { %v9013_v55 = vld [vmem:[%s14915_s15] sm:$0xff]  ;;  %v14145_v29 = vld [vmem:[%s14919_s27 + $0x188] sm:$0xff]   ;;  %v14146_v30 = vld [vmem:[%s14917_s7 + $0x190] sm:$0xff]  }
 0x246   : > { %10003 = vperm.xlu1 %14044, %v9013_v55   ;;  %v14147_v31 = vld [vmem:[%s14919_s27 + $0x190] sm:$0xff]   ;;  %v14397_v55 = vmov 1934713408  }
 0x247   : > { %13583 = vmatmul.mubr.msk.bf16.gmra.mrb[8].mxu0 %vm2529_vm5, %v14056_v56  ;;  %8982 = vxpose.xlu0.b32.end [2/2] (short) (narrow) %v8980_v50, 32  ;;  %v14112_v56 = vld [vmem:[%s14917_s7 + $0x108] sm:$0xff]  }
 0x248   : > { %13713 = vmatmul.mubr.msk.bf16.gmra.mrb[8].mxu1 %vm2529_vm5, %v14057_v57  ;;  %13586 = vmatprep.mubr.msk.bf16.mxu0 %vm2529_vm5, %v14058_v58  ;;  %v14113_v57 = vld [vmem:[%s14919_s27 + $0x108] sm:$0xff]   ;;  %v14114_v58 = vld [vmem:[%s14917_s7 + $0x110] sm:$0xff]  }
 0x249   : > { %13716 = vmatprep.mubr.msk.bf16.mxu1 %vm2529_vm5, %v14059_v59  ;;  %v14115_v59 = vld [vmem:[%s14919_s27 + $0x110] sm:$0xff]  }
 0x24f   : > { %13587 = vmatmul.mubr.msk.bf16.gmra.mrb[12].mxu0 %vm2529_vm5, %v14060_v60  ;;  %v9014_v60 = vld [vmem:[%s14915_s15 + $0x8] sm:$0xff] }
 0x250   : > { %13717 = vmatmul.mubr.msk.bf16.gmra.mrb[12].mxu1 %vm2529_vm5, %v14061_v61  ;;  %13590 = vmatprep.mubr.msk.bf16.mxu0 %vm2529_vm5, %v14062_v62  ;;  %v14116_v61 = vld [vmem:[%s14917_s7 + $0x118] sm:$0xff]  }
 0x251   : > { %13720 = vmatprep.mubr.msk.bf16.mxu1 %vm2529_vm5, %v14063_v63  ;;  %10006 = vperm.xlu1 %14044, %v9014_v60   ;;  %v14117_v62 = vld [vmem:[%s14919_s27 + $0x118] sm:$0xff]   ;;  %v14118_v63 = vld [vmem:[%s14917_s7 + $0x120] sm:$0xff]  }
 0x257   : > { %13591 = vmatmul.mubr.msk.bf16.gmra.mrb[16].mxu0 %vm2529_vm5, %v14064_v0  ;;  %v14119_v0 = vld [vmem:[%s14919_s27 + $0x120] sm:$0xff]  }
 0x258   : > { %13721 = vmatmul.mubr.msk.bf16.gmra.mrb[16].mxu1 %vm2529_vm5, %v14065_v1  ;;  %13594 = vmatprep.mubr.msk.bf16.mxu0 %vm2529_vm5, %v14066_v2  ;;  %v2066_v1 = vld [vmem:[%s15086_s9 + $0x20] sm:$0xff]  ;;  %v2067_v2 = vld [vmem:[%s15086_s9 + $0x28] sm:$0xff]  ;;  %s20692_s9 = scalar_lea.vmem [#allocation4], %s13083_s16  ;;  %s14398_s16 = smov 120  }
 0x259   : > { %13724 = vmatprep.mubr.msk.bf16.mxu1 %vm2529_vm5, %v14067_v3  ;;  %v14120_v3 = vld [vmem:[%s14917_s7 + $0x128] sm:$0xff]  }
 0x25f   : > { %13595 = vmatmul.mubr.msk.bf16.gmra.mrb[20].mxu0 %vm2529_vm5, %v14068_v4  ;;  %v13896_v4 = vpack.c.bf16 %v2067_v2, %v2066_v1 }
 0x260   : > { %13725 = vmatmul.mubr.msk.bf16.gmra.mrb[20].mxu1 %vm2529_vm5, %v14069_v5  ;;  %13598 = vmatprep.mubr.msk.bf16.mxu0 %vm2529_vm5, %v14070_v6  ;;  %v14121_v5 = vld [vmem:[%s14919_s27 + $0x128] sm:$0xff]   ;;  %v14122_v6 = vld [vmem:[%s14917_s7 + $0x130] sm:$0xff]  }
 0x261   : > { %13728 = vmatprep.mubr.msk.bf16.mxu1 %vm2529_vm5, %v14071_v7  ;;  %v14123_v7 = vld [vmem:[%s14919_s27 + $0x130] sm:$0xff]   ;;  %13898 = vmatprep.subr.msk.bf16.mxu1 %vm15092_vm6, %v13896_v4 }
 0x262   : > { %13901 = vmatpush3.bf16.xpose.msk.msra.mxu1 %vm15092_vm6, %v13896_v4 }
 0x267   : > { %13599 = vmatmul.mubr.msk.bf16.gmra.mrb[24].mxu0 %vm2529_vm5, %v14072_v8  ;;  %v14124_v8 = vld [vmem:[%s14917_s7 + $0x138] sm:$0xff]  }
 0x268   : > { %13729 = vmatmul.mubr.msk.bf16.gmra.mrb[24].mxu1 %vm2529_vm5, %v14073_v9  ;;  %13602 = vmatprep.mubr.msk.bf16.mxu0 %vm2529_vm5, %v14074_v10  ;;  %v14125_v9 = vld [vmem:[%s14919_s27 + $0x138] sm:$0xff]   ;;  %v14126_v10 = vld [vmem:[%s14917_s7 + $0x140] sm:$0xff]  }
 0x269   : > { %13732 = vmatprep.mubr.msk.bf16.mxu1 %vm2529_vm5, %v14075_v11  ;;  %v14127_v11 = vld [vmem:[%s14919_s27 + $0x140] sm:$0xff]  }
 0x26f   : > { %13603 = vmatmul.mubr.msk.bf16.gmra.mrb[28].mxu0 %vm2529_vm5, %v14076_v12  ;;  %v14128_v12 = vld [vmem:[%s14917_s7 + $0x148] sm:$0xff]  }
 0x270   : > { %13733 = vmatmul.mubr.msk.bf16.gmra.mrb[28].mxu1 %vm2529_vm5, %v14077_v13  ;;  %13606 = vmatprep.mubr.msk.bf16.mxu0 %vm2529_vm5, %v14078_v14  ;;  %v14129_v13 = vld [vmem:[%s14919_s27 + $0x148] sm:$0xff]   ;;  %v14130_v14 = vld [vmem:[%s14917_s7 + $0x150] sm:$0xff]  }
 0x271   : > { %13736 = vmatprep.mubr.msk.bf16.mxu1 %vm2529_vm5, %v14079_v15  ;;  %v14131_v15 = vld [vmem:[%s14919_s27 + $0x150] sm:$0xff]   ;;  %14045 = vset.pattern.permute.xlu0 %v14394_v54 }
 0x277   : > { %13607 = vmatmul.mubr.msk.bf16.gmra.mrb[32].mxu0 %vm2529_vm5, %v14080_v16  ;;  %v14132_v16 = vld [vmem:[%s14917_s7 + $0x158] sm:$0xff]  }
 0x278   : > { %13737 = vmatmul.mubr.msk.bf16.gmra.mrb[32].mxu1 %vm2529_vm5, %v14081_v17  ;;  %13610 = vmatprep.mubr.msk.bf16.mxu0 %vm2529_vm5, %v14082_v18  ;;  %v14133_v17 = vld [vmem:[%s14919_s27 + $0x158] sm:$0xff]   ;;  %v14134_v18 = vld [vmem:[%s14917_s7 + $0x160] sm:$0xff]  }
 0x279   : > { %13740 = vmatprep.mubr.msk.bf16.mxu1 %vm2529_vm5, %v14083_v19  ;;  %v14135_v19 = vld [vmem:[%s14919_s27 + $0x160] sm:$0xff]  }
 0x27f   : > { %13611 = vmatmul.mubr.msk.bf16.gmra.mrb[36].mxu0 %vm2529_vm5, %v14084_v20  ;;  %v14136_v20 = vld [vmem:[%s14917_s7 + $0x168] sm:$0xff]  }
 0x280   : > { %13741 = vmatmul.mubr.msk.bf16.gmra.mrb[36].mxu1 %vm2529_vm5, %v14085_v21  ;;  %13614 = vmatprep.mubr.msk.bf16.mxu0 %vm2529_vm5, %v14086_v22  ;;  %v14137_v21 = vld [vmem:[%s14919_s27 + $0x168] sm:$0xff]   ;;  %v14138_v22 = vld [vmem:[%s14917_s7 + $0x170] sm:$0xff]  }
 0x281   : > { %13744 = vmatprep.mubr.msk.bf16.mxu1 %vm2529_vm5, %v14087_v23  ;;  %v14139_v23 = vld [vmem:[%s14919_s27 + $0x170] sm:$0xff]  }
 0x287   : > { %13615 = vmatmul.mubr.msk.bf16.gmra.mrb[40].mxu0 %vm2529_vm5, %v14088_v24  ;;  %v14140_v24 = vld [vmem:[%s14917_s7 + $0x178] sm:$0xff]  }
 0x288   : > { %13745 = vmatmul.mubr.msk.bf16.gmra.mrb[40].mxu1 %vm2529_vm5, %v14089_v25  ;;  %13618 = vmatprep.mubr.msk.bf16.mxu0 %vm2529_vm5, %v14090_v26  ;;  %v14141_v25 = vld [vmem:[%s14919_s27 + $0x178] sm:$0xff]   ;;  %v14142_v26 = vld [vmem:[%s14917_s7 + $0x180] sm:$0xff]  }
 0x289   : > { %13748 = vmatprep.mubr.msk.bf16.mxu1 %vm2529_vm5, %v14091_v27  ;;  %v14143_v27 = vld [vmem:[%s14919_s27 + $0x180] sm:$0xff]  }
 0x28f   : > { %13619 = vmatmul.mubr.msk.bf16.gmra.mrb[44].mxu0 %vm2529_vm5, %v14092_v32  ;;  %v14395_v32 = vmov 1966171168  }
 0x290   : > { %13749 = vmatmul.mubr.msk.bf16.gmra.mrb[44].mxu1 %vm2529_vm5, %v14093_v33  ;;  %13622 = vmatprep.mubr.msk.bf16.mxu0 %vm2529_vm5, %v14094_v34  ;;  %v6653_v33 = vunpack.c.l.s4 %v14395_v32  ;;  %v14148_v34 = vld [vmem:[%s14917_s7 + $0x198] sm:$0xff]  }
 0x291   : > { %13752 = vmatprep.mubr.msk.bf16.mxu1 %vm2529_vm5, %v14095_v35  ;;  %v22097_v35 = vlaneseq }
 0x297   : > { %13623 = vmatmul.mubr.msk.bf16.gmra.mrb[48].mxu0 %vm2529_vm5, %v14096_v36  ;;  %v14149_v36 = vld [vmem:[%s14919_s27 + $0x198] sm:$0xff]  }
 0x298   : > { %13753 = vmatmul.mubr.msk.bf16.gmra.mrb[48].mxu1 %vm2529_vm5, %v14097_v37  ;;  %13626 = vmatprep.mubr.msk.bf16.mxu0 %vm2529_vm5, %v14098_v38  ;;  %v14150_v37 = vld [vmem:[%s14917_s7 + $0x1a0] sm:$0xff]  }
 0x299   : > { %13756 = vmatprep.mubr.msk.bf16.mxu1 %vm2529_vm5, %v14099_v39  ;;  %v14151_v38 = vld [vmem:[%s14919_s27 + $0x1a0] sm:$0xff]   ;;  %v6654_v39 = vunpack.c.0.s8 %v6653_v33 }
 0x29f   : > { %13627 = vmatmul.mubr.msk.bf16.gmra.mrb[52].mxu0 %vm2529_vm5, %v14100_v40  ;;  %v15231_v40 = vshrl.u32 %v22097_v35, 7  ;;  %v14165_v35 = vld [vmem:[%s14919_s27 + $0x1d8] sm:$0xff]  }
 0x2a0   : > { %13757 = vmatmul.mubr.msk.bf16.gmra.mrb[52].mxu1 %vm2529_vm5, %v14101_v41  ;;  %13630 = vmatprep.mubr.msk.bf16.mxu0 %vm2529_vm5, %v14102_v42  ;;  %v2055_v41 = vld [vmem:[#allocation3] sm:$0xff] }
 0x2a1   : > { %13760 = vmatprep.mubr.msk.bf16.mxu1 %vm2529_vm5, %v14103_v43  ;;  %22635 = vst [vmem:[#allocation27_spill] sm:$0xff] %v15231_v40  ;;  %v7051_v42 = vcombine.high %v2055_v41, %v2055_v41  ;;  %v15237_v43 = vsub.s32 %v6654_v39, %v15231_v40  ;;  %v15261_v4 = vsub.s32 0, %v15231_v40 }
 0x2a3   : > { %22636 = vst [vmem:[#allocation28_spill] sm:$0xff] %v15237_v43  ;;  %v7065_v48 = vrot.slane %v7051_v42, %v15237_v43  ;;  %v7058_v50 = vrot.slane %v2055_v41, %v15237_v43  ;;  %22637 = vst [vmem:[#allocation29_spill] sm:$0xff] %v15261_v4 }
 0x2a7   : > { %13631 = vmatmul.mubr.msk.bf16.gmra.mrb[56].mxu0 %vm2529_vm5, %v14104_v44  ;;  %v14152_v44 = vld [vmem:[%s14917_s7 + $0x1a8] sm:$0xff]  }
 0x2a8   : > { %13761 = vmatmul.mubr.msk.bf16.gmra.mrb[56].mxu1 %vm2529_vm5, %v14105_v45  ;;  %13634 = vmatprep.mubr.msk.bf16.mxu0 %vm2529_vm5, %v14106_v46  ;;  %v2056_v45 = vld [vmem:[#allocation3 + $0x8] sm:$0xff] }
 0x2a9   : > { %13764 = vmatprep.mubr.msk.bf16.mxu1 %vm2529_vm5, %v14107_v47  ;;  %v14153_v46 = vld [vmem:[%s14919_s27 + $0x1a8] sm:$0xff]   ;;  %v14154_v47 = vld [vmem:[%s14917_s7 + $0x1b0] sm:$0xff]   ;;  %v7100_v54 = vcombine.high %v2056_v45, %v2056_v45 }
 0x2af   : > { %13635 = vmatmul.mubr.msk.bf16.gmra.mrb[60].mxu0 %vm2529_vm5, %v14108_v49  ;;  %v14155_v49 = vld [vmem:[%s14919_s27 + $0x1b0] sm:$0xff]  }
 0x2b0   : > { %13765 = vmatmul.mubr.msk.bf16.gmra.mrb[60].mxu1 %vm2529_vm5, %v14109_v51  ;;  %13638 = vmatprep.mubr.msk.bf16.mxu0 %vm2529_vm5, %v14110_v52  ;;  %v14396_v51 = vmov 1983009808  }
 0x2b1   : > { %13768 = vmatprep.mubr.msk.bf16.mxu1 %vm2529_vm5, %v14111_v53  ;;  %v4470_v52 = vunpack.c.l.s4 %v14396_v51  ;;  %v7107_v53 = vrot.slane %v2056_v45, %v15237_v43 }
 0x2b3   : > { %v4471_v60 = vunpack.c.0.s8 %v4470_v52 }
 0x2b7   : > { %13639 = vmatmul.mubr.msk.bf16.gmra.mrb[64].mxu0 %vm2529_vm5, %v14112_v56  ;;  %v4534_v56 = vunpack.c.l.s4 %v14397_v55 }
 0x2b8   : > { %13769 = vmatmul.mubr.msk.bf16.gmra.mrb[64].mxu1 %vm2529_vm5, %v14113_v57  ;;  %13642 = vmatprep.mubr.msk.bf16.mxu0 %vm2529_vm5, %v14114_v58  ;;  %v7067_v57 = vcombine.high %v7065_v48, %v7065_v48  ;;  %v7066_v58 = vcombine.high %v7058_v50, %v7058_v50 }
 0x2b9   : > { %13772 = vmatprep.mubr.msk.bf16.mxu1 %vm2529_vm5, %v14115_v59  ;;  %v15250_v59 = vld [vmem:[#allocation2] sm:$0xff]  ;;  %v4535_v1 = vunpack.c.0.s8 %v4534_v56 }
 0x2bf   : > { %13643 = vmatmul.mubr.msk.bf16.gmra.mrb[68].mxu0 %vm2529_vm5, %v14116_v61 }
 0x2c0   : > { %13773 = vmatmul.mubr.msk.bf16.gmra.mrb[68].mxu1 %vm2529_vm5, %v14117_v62  ;;  %13646 = vmatprep.mubr.msk.bf16.mxu0 %vm2529_vm5, %v14118_v63  ;;  %v7115_v62 = vcombine.high %v7107_v53, %v7107_v53  ;;  %v7114_v63 = vrot.slane %v7100_v54, %v15237_v43  ;;  %v14162_v54 = vld [vmem:[%s14917_s7 + $0x1d0] sm:$0xff]  }
 0x2c1   : > { %13776 = vmatprep.mubr.msk.bf16.mxu1 %vm2529_vm5, %v14119_v0  ;;  %v15255_v0 = vld [vmem:[#allocation3 + $0x10] sm:$0xff] }
 0x2c7   : > { %13647 = vmatmul.mubr.msk.bf16.gmra.mrb[72].mxu0 %vm2529_vm5, %v14120_v3  ;;  %v14156_v3 = vld [vmem:[%s14917_s7 + $0x1b8] sm:$0xff]  }
 0x2c8   : > { %13777 = vmatmul.mubr.msk.bf16.gmra.mrb[72].mxu1 %vm2529_vm5, %v14121_v5  ;;  %13650 = vmatprep.mubr.msk.bf16.mxu0 %vm2529_vm5, %v14122_v6  ;;  %v7074_v6 = vrot.slane %v7058_v50, %v15237_v43 }
 0x2c9   : > { %13780 = vmatprep.mubr.msk.bf16.mxu1 %vm2529_vm5, %v14123_v7  ;;  %v7081_v7 = vrot.slane %v7065_v48, %v15237_v43 }
 0x2cf   : > { %13651 = vmatmul.mubr.msk.bf16.gmra.mrb[76].mxu0 %vm2529_vm5, %v14124_v8 }
 0x2d0   : > { %13781 = vmatmul.mubr.msk.bf16.gmra.mrb[76].mxu1 %vm2529_vm5, %v14125_v9  ;;  %13654 = vmatprep.mubr.msk.bf16.mxu0 %vm2529_vm5, %v14126_v10  ;;  %v14157_v9 = vld [vmem:[%s14919_s27 + $0x1b8] sm:$0xff]   ;;  %v14158_v10 = vld [vmem:[%s14917_s7 + $0x1c0] sm:$0xff]  }
 0x2d1   : > { %13784 = vmatprep.mubr.msk.bf16.mxu1 %vm2529_vm5, %v14127_v11 }
 0x2d7   : > { %13655 = vmatmul.mubr.msk.bf16.gmra.mrb[80].mxu0 %vm2529_vm5, %v14128_v12  ;;  %v7095_v12 = vrot.slane %v7067_v57, %v15237_v43 }
 0x2d8   : > { %13785 = vmatmul.mubr.msk.bf16.gmra.mrb[80].mxu1 %vm2529_vm5, %v14129_v13  ;;  %13658 = vmatprep.mubr.msk.bf16.mxu0 %vm2529_vm5, %v14130_v14  ;;  %v15274_v13 = vld [vmem:[#allocation2 + $0x10] sm:$0xff]  ;;  %v6658_v14 = vrot.slane %v15250_v59, %v15237_v43 }
 0x2d9   : > { %13788 = vmatprep.mubr.msk.bf16.mxu1 %vm2529_vm5, %v14131_v15  ;;  %v15319_v39 = vrot.slane %v7095_v12, %v15261_v4 }
 0x2da   : > { %v6666_v32 = vcombine.high %v6658_v14, %v6658_v14 }
 0x2db   : > { %22646 = vst [vmem:[#allocation38_spill] sm:$0xff] %v15319_v39 }
 0x2df   : > { %13659 = vmatmul.mubr.msk.bf16.gmra.mrb[84].mxu0 %vm2529_vm5, %v14132_v16  ;;  %v14159_v16 = vld [vmem:[%s14919_s27 + $0x1c0] sm:$0xff]  }
 0x2e0   : > { %13789 = vmatmul.mubr.msk.bf16.gmra.mrb[84].mxu1 %vm2529_vm5, %v14133_v17  ;;  %13662 = vmatprep.mubr.msk.bf16.mxu0 %vm2529_vm5, %v14134_v18  ;;  %v7088_v17 = vrot.slane %v7066_v58, %v15237_v43  ;;  %v15349_v58 = vrot.slane %v6666_v32, %v15237_v43 }
 0x2e1   : > { %13792 = vmatprep.mubr.msk.bf16.mxu1 %vm2529_vm5, %v14135_v19  ;;  %v7096_v19 = vcombine.high %v7074_v6, %v7074_v6 }
 0x2e2   : > { %v15308_v33 = vrot.slane %v7088_v17, %v15261_v4  ;;  %v15395_v32 = vrot.slane %v15349_v58, %v15261_v4 }
 0x2e4   : > { %22643 = vst [vmem:[#allocation35_spill] sm:$0xff] %v15308_v33  ;;  %22659 = vst [vmem:[#allocation50_spill] sm:$0xff] %v15395_v32 }
 0x2e7   : > { %13663 = vmatmul.mubr.msk.bf16.gmra.mrb[88].mxu0 %vm2529_vm5, %v14136_v20  ;;  %v7156_v20 = vrot.slane %v15255_v0, %v15237_v43 }
 0x2e8   : > { %13793 = vmatmul.mubr.msk.bf16.gmra.mrb[88].mxu1 %vm2529_vm5, %v14137_v21  ;;  %13666 = vmatprep.mubr.msk.bf16.mxu0 %vm2529_vm5, %v14138_v22  ;;  %v15289_v22 = vsub.s32 %v4471_v60, %v15231_v40  ;;  %v7149_v60 = vcombine.high %v15255_v0, %v15255_v0 }
 0x2e9   : > { %13796 = vmatprep.mubr.msk.bf16.mxu1 %vm2529_vm5, %v14139_v23  ;;  %v7137_v23 = vrot.slane %v7115_v62, %v15237_v43 }
 0x2ea   : > { %22640 = vst [vmem:[#allocation32_spill] sm:$0xff] %v15289_v22 }
 0x2eb   : > { %v7147_v41 = vcombine.high %v7137_v23, %v7137_v23 }
 0x2ed   : > { %v15369_v0 = vrot.slane %v7147_v41, %v15261_v4 }
 0x2ef   : > { %13667 = vmatmul.mubr.msk.bf16.gmra.mrb[92].mxu0 %vm2529_vm5, %v14140_v24  ;;  %v7116_v24 = vcombine.high %v7114_v63, %v7114_v63  ;;  %22654 = vst [vmem:[#allocation46_spill] sm:$0xff] %v15369_v0 }
 0x2f0   : > { %13797 = vmatmul.mubr.msk.bf16.gmra.mrb[92].mxu1 %vm2529_vm5, %v14141_v25  ;;  %13670 = vmatprep.mubr.msk.bf16.mxu0 %vm2529_vm5, %v14142_v26  ;;  %v15293_v25 = vsub.s32 %v4535_v1, %v15231_v40  ;;  %v15297_v26 = vrot.slane %v7074_v6, %v15261_v4  ;;  %v7172_v6 = vrot.slane %v7156_v20, %v15237_v43 }
 0x2f1   : > { %13800 = vmatprep.mubr.msk.bf16.mxu1 %vm2529_vm5, %v14143_v27  ;;  %v7097_v27 = vcombine.high %v7081_v7, %v7081_v7  ;;  %v7144_v42 = vrot.slane %v7116_v24, %v15237_v43 }
 0x2f2   : > { %22641 = vst [vmem:[#allocation33_spill] sm:$0xff] %v15293_v25  ;;  %22642 = vst [vmem:[#allocation34_spill] sm:$0xff] %v15297_v26 }
 0x2f3   : > { %v15329_v48 = vrot.slane %v7097_v27, %v15261_v4  ;;  %v15381_v24 = vrot.slane %v7144_v42, %v15261_v4  ;;  %v7163_v27 = vrot.slane %v7149_v60, %v15237_v43 }
 0x2f5   : > { %22647 = vst [vmem:[#allocation39_spill] sm:$0xff] %v15329_v48  ;;  %22656 = vst [vmem:[#allocation48_spill] sm:$0xff] %v15381_v24 }
 0x2f7   : > { %13671 = vmatmul.mubr.msk.bf16.gmra.mrb[96].mxu0 %vm2529_vm5, %v14144_v28  ;;  %v7123_v28 = vrot.slane %v7107_v53, %v15237_v43  ;;  %v14161_v53 = vld [vmem:[%s14919_s27 + $0x1c8] sm:$0xff]  }
 0x2f8   : > { %13801 = vmatmul.mubr.msk.bf16.gmra.mrb[96].mxu1 %vm2529_vm5, %v14145_v29  ;;  %13674 = vmatprep.mubr.msk.bf16.mxu0 %vm2529_vm5, %v14146_v30  ;;  %v15302_v29 = vrot.slane %v15274_v13, %v15237_v43  ;;  %v7098_v30 = vcombine.high %v7088_v17, %v7088_v17 }
 0x2f9   : > { %13804 = vmatprep.mubr.msk.bf16.mxu1 %vm2529_vm5, %v14147_v31  ;;  %v7099_v31 = vcombine.high %v7095_v12, %v7095_v12  ;;  %v7145_v50 = vcombine.high %v7123_v28, %v7123_v28  ;;  %v15366_v12 = vrot.slane %v7123_v28, %v15261_v4 }
 0x2fa   : > { %v6764_v51 = vcombine.high %v15302_v29, %v15302_v29  ;;  %v15341_v55 = vrot.slane %v7098_v30, %v15261_v4  ;;  %v15387_v30 = vld [vmem:[%s22657_s4] ss:$0 sm:$0xff] }
 0x2fb   : > { %v15346_v57 = vrot.slane %v7099_v31, %v15261_v4  ;;  %22653 = vst [vmem:[#allocation45_spill] sm:$0xff] %v15366_v12 }
 0x2fc   : > { %22649 = vst [vmem:[#allocation41_spill] sm:$0xff] %v15341_v55 }
 0x2fd   : > { %22651 = vst [vmem:[#allocation43_spill] sm:$0xff] %v15346_v57 }
 0x2ff   : > { %13675 = vmatmul.mubr.msk.bf16.gmra.mrb[100].mxu0 %vm2529_vm5, %v14148_v34  ;;  %v15311_v34 = vrot.slane %v7096_v19, %v15261_v4  ;;  %v15373_v19 = vrot.slane %v7145_v50, %v15261_v4 }
 0x300   : > { %13805 = vmatmul.mubr.msk.bf16.gmra.mrb[100].mxu1 %vm2529_vm5, %v14149_v36  ;;  %13678 = vmatprep.mubr.msk.bf16.mxu0 %vm2529_vm5, %v14150_v37  ;;  %v15314_v36 = vrot.slane %v7081_v7, %v15261_v4  ;;  %v7164_v37 = vcombine.high %v7156_v20, %v7156_v20  ;;  %v6674_v7 = vrot.slane %v6658_v14, %v15237_v43 }
 0x301   : > { %13808 = vmatprep.mubr.msk.bf16.mxu1 %vm2529_vm5, %v14151_v38  ;;  %22644 = vst [vmem:[#allocation36_spill] sm:$0xff] %v15311_v34  ;;  %22655 = vst [vmem:[#allocation47_spill] sm:$0xff] %v15373_v19  ;;  %v7194_v14 = vcombine.high %v7172_v6, %v7172_v6 }
 0x302   : > { %22645 = vst [vmem:[#allocation37_spill] sm:$0xff] %v15314_v36  ;;  %v6696_v28 = vcombine.high %v6674_v7, %v6674_v7 }
 0x307   : > { %13679 = vmatmul.mubr.msk.bf16.gmra.mrb[104].mxu0 %vm2529_vm5, %v14152_v44  ;;  %v7130_v44 = vrot.slane %v7114_v63, %v15237_v43  ;;  %v14163_v63 = vld [vmem:[%s14919_s27 + $0x1d0] sm:$0xff]  }
 0x308   : > { %13809 = vmatmul.mubr.msk.bf16.gmra.mrb[104].mxu1 %vm2529_vm5, %v14153_v46  ;;  %13682 = vmatprep.mubr.msk.bf16.mxu0 %vm2529_vm5, %v14154_v47  ;;  %v14160_v46 = vld [vmem:[%s14917_s7 + $0x1c8] sm:$0xff]  }
 0x309   : > { %13812 = vmatprep.mubr.msk.bf16.mxu1 %vm2529_vm5, %v14155_v49  ;;  %v15332_v49 = vrot.slane %v7137_v23, %v15261_v4  ;;  %v7146_v17 = vcombine.high %v7130_v44, %v7130_v44  ;;  %v15376_v23 = vrot.slane %v6764_v51, %v15237_v43  ;;  %v15391_v31 = vrot.slane %v7130_v44, %v15261_v4 }
 0x30a   : > { %v15252_v61 = vpop.f32.mrb[0].mxu0  ;;  %v15413_v51 = vrot.slane %v7172_v6, %v15261_v4 }
 0x30b   : > { %v15257_v2 = vpop.f32.mrb[0].mxu1  ;;  %v15263_v5 = vpop.f32.mrb[1].mxu0  ;;  %22648 = vst [vmem:[#allocation40_spill] sm:$0xff] %v15332_v49  ;;  %22658 = vst [vmem:[#allocation49_spill] sm:$0xff] %v15391_v31  ;;  %v15407_v50 = vrot.slane %v7146_v17, %v15261_v4  ;;  %v14171_v49 = vld [vmem:[%s14919_s27 + $0x1f0] sm:$0xff]  }
 0x30c   : > { %v15267_v8 = vpop.f32.mrb[1].mxu1  ;;  %v15271_v11 = vpop.f32.mrb[2].mxu0  ;;  %22664 = vst [vmem:[#allocation55_spill] sm:$0xff] %v15413_v51  ;;  %v3965_v6 = vadd.f32 %v15257_v2, %v15387_v30  ;;  %v14166_v2 = vld [vmem:[%s14917_s7 + $0x1e0] sm:$0xff]  }
 0x30d   : > { %22638 = vst [vmem:[#allocation30_spill] sm:$0xff] %v15271_v11  ;;  %v15278_v15 = vpop.f32.mrb[2].mxu1  ;;  %v15282_v18 = vpop.f32.mrb[3].mxu0  ;;  %22662 = vst [vmem:[#allocation53_spill] sm:$0xff] %v15407_v50 }
 0x30e   : > { %22639 = vst [vmem:[#allocation31_spill] sm:$0xff] %v15282_v18  ;;  %v15286_v21 = vpop.f32.mrb[3].mxu1 }
 0x30f   : > { %13683 = vmatmul.mubr.msk.bf16.gmra.mrb[108].mxu0 %vm2529_vm5, %v14156_v3  ;;  %v7186_v3 = vrot.slane %v7164_v37, %v15237_v43  ;;  %v15398_v37 = vrot.slane %v6674_v7, %v15261_v4  ;;  %v15422_v7 = vrot.slane %v7194_v14, %v15261_v4  ;;  %v15437_v14 = vrot.slane %v6696_v28, %v15261_v4 }
 0x310   : > { %13813 = vmatmul.mubr.msk.bf16.gmra.mrb[108].mxu1 %vm2529_vm5, %v14157_v9  ;;  %13686 = vmatprep.mubr.msk.bf16.mxu0 %vm2529_vm5, %v14158_v10  ;;  %v6651_v9 = vcombine.high %v15250_v59, %v15250_v59  ;;  %v3968_v28 = vadd.f32 %v15278_v15, %v15387_v30 }
 0x311   : > { %13816 = vmatprep.mubr.msk.bf16.mxu1 %vm2529_vm5, %v14159_v16  ;;  %v7148_v16 = vcombine.high %v7144_v42, %v7144_v42  ;;  %v7196_v20 = vcombine.high %v7186_v3, %v7186_v3  ;;  %22660 = vst [vmem:[#allocation51_spill] sm:$0xff] %v15398_v37  ;;  %v15410_v44 = vrot.slane %v7186_v3, %v15261_v4  ;;  %22666 = vst [vmem:[#allocation57_spill] sm:$0xff] %v15422_v7 }
 0x312   : > { %v15316_v38 = vpop.f32.mrb[4].mxu0  ;;  %v6665_v41 = vrot.slane %v6651_v9, %v15237_v43  ;;  %v15426_v9 = vrot.slane %v15376_v23, %v15261_v4  ;;  %v6698_v3 = vcombine.high %v15349_v58, %v15349_v58  ;;  %22669 = vst [vmem:[#allocation60_spill] sm:$0xff] %v15437_v14 }
 0x313   : > { %v15323_v45 = vpop.f32.mrb[4].mxu1  ;;  %v15326_v47 = vpop.f32.mrb[5].mxu0  ;;  %22663 = vst [vmem:[#allocation54_spill] sm:$0xff] %v15410_v44 }
 0x314   : > { %v15336_v52 = vpop.f32.mrb[5].mxu1  ;;  %v15343_v56 = vpop.f32.mrb[6].mxu0  ;;  %22667 = vst [vmem:[#allocation58_spill] sm:$0xff] %v15426_v9  ;;  %v14170_v9 = vld [vmem:[%s14917_s7 + $0x1f0] sm:$0xff]  }
 0x315   : > { %22650 = vst [vmem:[#allocation42_spill] sm:$0xff] %v15343_v56  ;;  %v15353_v62 = vpop.f32.mrb[6].mxu1  ;;  %v15356_v1 = vpop.f32.mrb[7].mxu0  ;;  %v3957_v56 = vadd.f32 %v15387_v30, %v15267_v8  ;;  %v14167_v8 = vld [vmem:[%s14919_s27 + $0x1e0] sm:$0xff]  }
 0x316   : > { %22652 = vst [vmem:[#allocation44_spill] sm:$0xff] %v15356_v1  ;;  %v15363_v10 = vpop.f32.mrb[7].mxu1  ;;  %v15439_v1 = vld [vmem:[#allocation2 + $0x8] sm:$0xff] }
 0x317   : > { %13687 = vmatmul.mubr.msk.bf16.gmra.mrb[112].mxu0 %vm2529_vm5, %v14160_v46  ;;  %v15404_v46 = vrot.slane %v7148_v16, %v15261_v4 }
 0x318   : > { %13817 = vmatmul.mubr.msk.bf16.gmra.mrb[112].mxu1 %vm2529_vm5, %v14161_v53  ;;  %13690 = vmatprep.mubr.msk.bf16.mxu0 %vm2529_vm5, %v14162_v54  ;;  %v14164_v54 = vld [vmem:[%s14917_s7 + $0x1d8] sm:$0xff]  }
 0x319   : > { %13820 = vmatprep.mubr.msk.bf16.mxu1 %vm2529_vm5, %v14163_v63  ;;  %22661 = vst [vmem:[#allocation52_spill] sm:$0xff] %v15404_v46  ;;  %v15419_v63 = vrot.slane %v7196_v20, %v15261_v4  ;;  %v7165_v20 = vcombine.high %v7163_v27, %v7163_v27 }
 0x31a   : > { %v15401_v42 = vpop.f32.mrb[8].mxu0 }
 0x31b   : > { %v13714_v53 = vpop.f32.mrb[8].mxu1  ;;  %v15416_v60 = vpop.f32.mrb[9].mxu0  ;;  %22665 = vst [vmem:[#allocation56_spill] sm:$0xff] %v15419_v63  ;;  %v15465_v15 = vrot.slane %v7165_v20, %v15237_v43  ;;  %v3973_v20 = vadd.f32 %v15387_v30, %v15336_v52 }
 0x31c   : > { %v3997_v16 = vadd.f32 %v13714_v53, %v15387_v30  ;;  %v3988_v17 = vpop.f32.mrb[9].mxu1  ;;  %v15434_v40 = vpop.f32.mrb[10].mxu0  ;;  %v6667_v53 = vcombine.high %v6665_v41, %v6665_v41 }
 0x31d   : > { %22668 = vst [vmem:[#allocation59_spill] sm:$0xff] %v15434_v40  ;;  %v3989_v58 = vadd.f32 %v15387_v30, %v3988_v17  ;;  %v13715_v18 = vpop.f32.mrb[10].mxu1  ;;  %v15445_v11 = vpop.f32.mrb[11].mxu0  ;;  %v15449_v40 = vrot.slane %v15439_v1, %v15237_v43  ;;  %v15457_v17 = vadd.f32 %v15387_v30, %v15286_v21  ;;  %v15470_v21 = vld [vmem:[#allocation3 + $0x18] sm:$0xff] }
 0x31e   : > { %22670 = vst [vmem:[#allocation61_spill] sm:$0xff] %v15445_v11  ;;  %v5011_v7 = vcombine.low %v3965_v6, %v3997_v16  ;;  %v5012_v63 = vcombine.high %v3965_v6, %v3997_v16  ;;  %v4000_v50 = vadd.f32 %v13715_v18, %v15387_v30  ;;  %v3991_v46 = vpop.f32.mrb[11].mxu1  ;;  %v15468_v18 = vrot.slane %v7163_v27, %v15237_v43 }
 0x31f   : > { %v4467_v51 = vcombine.low %v3957_v56, %v3989_v58  ;;  %v4468_v11 = vcombine.high %v3957_v56, %v3989_v58  ;;  %v15460_v31 = vadd.f32 %v15387_v30, %v3991_v46  ;;  %13691 = vmatmul.mubr.msk.bf16.gmra.mrb[116].mxu0 %vm2529_vm5, %v14164_v54  ;;  %v15491_v16 = vrot.slane %v6667_v53, %v15237_v43  ;;  %v14169_v46 = vld [vmem:[%s14919_s27 + $0x1e8] sm:$0xff]  }
 0x320   : > { %v5283_v24 = vcombine.low %v3968_v28, %v4000_v50  ;;  %v5284_v19 = vcombine.high %v3968_v28, %v4000_v50  ;;  %13821 = vmatmul.mubr.msk.bf16.gmra.mrb[116].mxu1 %vm2529_vm5, %v14165_v35  ;;  %13694 = vmatprep.mubr.msk.bf16.mxu0 %vm2529_vm5, %v14166_v2  ;;  %v15478_v50 = vrot.slane %v6698_v3, %v15261_v4  ;;  %v14168_v2 = vld [vmem:[%s14917_s7 + $0x1e8] sm:$0xff]  }
 0x321   : > { %v15481_v35 = vrot.slane %v6665_v41, %v15237_v43  ;;  %13824 = vmatprep.mubr.msk.bf16.mxu1 %vm2529_vm5, %v14167_v8  ;;  %v3981_v41 = vadd.f32 %v15323_v45, %v15387_v30  ;;  %v15504_v8 = vrot.slane %v15470_v21, %v15237_v43  ;;  %v3984_v6 = vadd.f32 %v15353_v62, %v15387_v30 }
 0x322   : > { %22671 = vst [vmem:[#allocation62_spill] sm:$0xff] %v15478_v50  ;;  %v15484_v27 = vpop.f32.mrb[12].mxu0  ;;  %v3976_v45 = vadd.f32 %v15387_v30, %v15363_v10  ;;  %v15513_v52 = vrot.slane %v5011_v7, %v15289_v22  ;;  %v15520_v0 = vrot.slane %v5012_v63, %v15289_v22  ;;  %v15523_v53 = vrot.slane %v4467_v51, %v15289_v22 }
 0x323   : > { %v13718_v58 = vpop.f32.mrb[12].mxu1  ;;  %v15500_v28 = vpop.f32.mrb[13].mxu0  ;;  %v15526_v62 = vrot.slane %v4468_v11, %v15289_v22  ;;  %v15538_v51 = vrot.slane %v5284_v19, %v15289_v22 }
 0x324   : > { %v4013_v54 = vadd.f32 %v13718_v58, %v15387_v30  ;;  %v4004_v3 = vpop.f32.mrb[13].mxu1  ;;  %v15517_v56 = vpop.f32.mrb[14].mxu0  ;;  %22673 = vst [vmem:[#allocation64_spill] sm:$0xff] %v15520_v0  ;;  %v15533_v58 = vrot.slane %v5283_v24, %v15289_v22 }
 0x325   : > { %22672 = vst [vmem:[#allocation63_spill] sm:$0xff] %v15517_v56  ;;  %22674 = vst [vmem:[#allocation65_spill] sm:$0xff] %v15526_v62  ;;  %v4005_v10 = vadd.f32 %v15387_v30, %v4004_v3  ;;  %v13719_v7 = vpop.f32.mrb[14].mxu1  ;;  %v15530_v12 = vpop.f32.mrb[15].mxu0 }
 0x326   : > { %22675 = vst [vmem:[#allocation66_spill] sm:$0xff] %v15530_v12  ;;  %22676 = vst [vmem:[#allocation67_spill] sm:$0xff] %v15533_v58  ;;  %v5027_v44 = vcombine.low %v3981_v41, %v4013_v54  ;;  %v5028_v56 = vcombine.high %v3981_v41, %v4013_v54  ;;  %v4016_v63 = vadd.f32 %v13719_v7, %v15387_v30  ;;  %v4007_v25 = vpop.f32.mrb[15].mxu1 }
 0x327   : > { %22677 = vst [vmem:[#allocation68_spill] sm:$0xff] %v15538_v51  ;;  %v4483_v11 = vcombine.low %v3973_v20, %v4005_v10  ;;  %v4484_v48 = vcombine.high %v3973_v20, %v4005_v10  ;;  %v4008_v3 = vadd.f32 %v15387_v30, %v4007_v25  ;;  %13695 = vmatmul.mubr.msk.bf16.gmra.mrb[120].mxu0 %vm2529_vm5, %v14168_v2  ;;  %v14173_v10 = vld [vmem:[%s14919_s27 + $0x1f8] sm:$0xff]   ;;  %s22695_s27 = sld [smem:[#allocation305_spill]] }
 0x328   : > { %v15543_v12 = vrot.slane %v5027_v44, %v15289_v22  ;;  %v15546_v24 = vrot.slane %v5028_v56, %v15289_v22  ;;  %v5299_v54 = vcombine.low %v3984_v6, %v4016_v63  ;;  %v5300_v41 = vcombine.high %v3984_v6, %v4016_v63  ;;  %13825 = vmatmul.mubr.msk.bf16.gmra.mrb[120].mxu1 %vm2529_vm5, %v14169_v46 }
 0x329   : > { %v15550_v7 = vrot.slane %v4483_v11, %v15289_v22  ;;  %v15553_v19 = vrot.slane %v4484_v48, %v15289_v22  ;;  %v4755_v25 = vcombine.low %v3976_v45, %v4008_v3  ;;  %v4756_v20 = vcombine.high %v3976_v45, %v4008_v3  ;;  %13698 = vmatprep.mubr.msk.bf16.mxu0 %vm2529_vm5, %v14170_v9  ;;  %v14172_v11 = vld [vmem:[%s14917_s7 + $0x1f8] sm:$0xff]  }
 0x32a   : > { %22678 = vst [vmem:[#allocation69_spill] sm:$0xff] %v15546_v24  ;;  %13828 = vmatprep.mubr.msk.bf16.mxu1 %vm2529_vm5, %v14171_v49  ;;  %v15565_v48 = vpop.f32.mrb[16].mxu0  ;;  %v15581_v49 = vrot.slane %v5299_v54, %v15289_v22  ;;  %v15584_v6 = vrot.slane %v5300_v41, %v15289_v22  ;;  %v22685_v9 = vcombine.low %v15457_v17, %v15460_v31 }
 0x32b   : > { %22679 = vst [vmem:[#allocation70_spill] sm:$0xff] %v15553_v19  ;;  %v15575_v63 = vpop.f32.mrb[16].mxu1  ;;  %v15578_v3 = vpop.f32.mrb[17].mxu0  ;;  %v15587_v46 = vrot.slane %v4755_v25, %v15289_v22  ;;  %v15590_v56 = vrot.slane %v4756_v20, %v15289_v22  ;;  %v22687_v41 = vcombine.high %v15457_v17, %v15460_v31  ;;  %v6697_v24 = vcombine.high %v15481_v35, %v15481_v35 }
 0x32c   : > { %22680 = vst [vmem:[#allocation71_spill] sm:$0xff] %v15581_v49  ;;  %22681 = vst [vmem:[#allocation72_spill] sm:$0xff] %v15584_v6  ;;  %v15592_v45 = vpop.f32.mrb[17].mxu1  ;;  %v15595_v2 = vpop.f32.mrb[18].mxu0  ;;  %v15601_v54 = vrot.slane %v22685_v9, %v15289_v22  ;;  %v6699_v17 = vcombine.high %v15491_v16, %v15491_v16  ;;  %v22692_v9 = vcombine.high %v15449_v40, %v15449_v40 }
 0x32d   : > { %22682 = vst [vmem:[#allocation73_spill] sm:$0xff] %v15587_v46  ;;  %22683 = vst [vmem:[#allocation74_spill] sm:$0xff] %v15590_v56  ;;  %v15607_v25 = vrot.slane %v22687_v41, %v15289_v22  ;;  %v15609_v44 = vpop.f32.mrb[18].mxu1  ;;  %v15611_v20 = vpop.f32.mrb[19].mxu0  ;;  %v15641_v41 = vrot.slane %v15481_v35, %v15261_v4  ;;  %v15659_v35 = vrot.slane %v15491_v16, %v15261_v4  ;;  %s22696_s0 = smov %s22695_s27  ;;  %v2050_v56 = vld [vmem:[#allocation2 + $0x18] sm:$0xff] }
 0x32e   : > { %22684 = vst [vmem:[#allocation75_spill] sm:$0xff] %v15595_v2  ;;  %22686 = vst [vmem:[#allocation76_spill] sm:$0xff] %v15601_v54  ;;  %v22690_v2 = vcombine.high %v15439_v1, %v15439_v1  ;;  %v6737_v19 = vrot.slane %v22692_v9, %v15237_v43  ;;  %v7198_v31 = vcombine.high %v15470_v21, %v15470_v21 }
 0x32f   : > { %22688 = vst [vmem:[#allocation77_spill] sm:$0xff] %v15607_v25  ;;  %22689 = vst [vmem:[#allocation78_spill] sm:$0xff] %v15611_v20  ;;  %v15627_v20 = vpop.f32.mrb[19].mxu1  ;;  %13699 = vmatmul.mubr.msk.bf16.gmra.mrb[124].mxu0 %vm2529_vm5, %v14172_v11  ;;  %v15653_v11 = vrot.slane %v15465_v15, %v15261_v4  ;;  %v7213_v16 = vcombine.high %v15504_v8, %v15504_v8  ;;  %v22700_v49 = vcombine.high %v15465_v15, %v15465_v15 }
 0x330   : > { %v6714_v0 = vrot.slane %v22690_v2, %v15237_v43  ;;  %13829 = vmatmul.mubr.msk.bf16.gmra.mrb[124].mxu1 %vm2529_vm5, %v14173_v10  ;;  %22691 = vst [vmem:[#allocation79_spill] sm:$0xff] %v15641_v41  ;;  %v6723_v2 = vrot.slane %v15449_v40, %v15237_v43  ;;  %13836 = vmatprep.mubr.msk.f32.mxu0 %vm2529_vm5, %v15250_v59  ;;  %22694 = vst [vmem:[#allocation81_spill] sm:$0xff] %v15659_v35  ;;  %v15670_v40 = vld [vmem:[%s22695_s27] ss:$0 sm:$0xff] }
 0x331   : > { %22693 = vst [vmem:[#allocation80_spill] sm:$0xff] %v15653_v11  ;;  %v15663_v10 = vrot.slane %v15302_v29, %v15237_v43  ;;  %v15676_v59 = vrot.slane %v15468_v18, %v15261_v4  ;;  %v15682_v29 = vrot.slane %v15504_v8, %v15237_v43  ;;  %v15693_v58 = vrot.slane %v22700_v49, %v15261_v4 }
 0x332   : > { %v15672_v9 = vpop.f32.mrb[20].mxu0  ;;  %v6730_v21 = vrot.slane %v6714_v0, %v15237_v43  ;;  %v15702_v8 = vrot.slane %v6697_v24, %v15261_v4  ;;  %v6716_v25 = vcombine.high %v6714_v0, %v6714_v0  ;;  %v15709_v15 = vrot.slane %v6699_v17, %v15261_v4 }
 0x333   : > { %22697 = vst [vmem:[#allocation82_spill] sm:$0xff] %v15676_v59  ;;  %22698 = vst [vmem:[#allocation83_spill] sm:$0xff] %v15682_v29  ;;  %v15685_v6 = vpop.f32.mrb[20].mxu1  ;;  %v15687_v51 = vpop.f32.mrb[21].mxu0  ;;  %v22702_v59 = vcombine.high %v15468_v18, %v15468_v18  ;;  %v6745_v49 = vcombine.high %v6723_v2, %v6723_v2  ;;  %v15713_v18 = vadd.f32 %v15252_v61, %v15670_v40 }
 0x334   : > { %22699 = vst [vmem:[#allocation84_spill] sm:$0xff] %v15687_v51  ;;  %22701 = vst [vmem:[#allocation85_spill] sm:$0xff] %v15693_v58  ;;  %v15704_v46 = vpop.f32.mrb[21].mxu1  ;;  %v15706_v54 = vpop.f32.mrb[22].mxu0  ;;  %v6798_v51 = vcombine.high %v2050_v56, %v2050_v56  ;;  %v6747_v58 = vcombine.high %v6737_v19, %v6737_v19  ;;  %v15717_v24 = vadd.f32 %v15670_v40, %v15263_v5 }
 0x335   : > { %v15699_v11 = vrot.slane %v22702_v59, %v15261_v4  ;;  %22704 = vst [vmem:[#allocation87_spill] sm:$0xff] %v15702_v8  ;;  %22705 = vst [vmem:[#allocation88_spill] sm:$0xff] %v15706_v54  ;;  %v15719_v59 = vpop.f32.mrb[22].mxu1  ;;  %v15721_v0 = vpop.f32.mrb[23].mxu0  ;;  %v15725_v54 = vrot.slane %v15663_v10, %v15261_v4  ;;  %v15728_v17 = vrot.slane %v7198_v31, %v15237_v43 }
 0x336   : > { %22706 = vst [vmem:[#allocation89_spill] sm:$0xff] %v15709_v15  ;;  %22707 = vst [vmem:[#allocation90_spill] sm:$0xff] %v15713_v18  ;;  %v15733_v61 = vrot.slane %v7213_v16, %v15237_v43  ;;  %v15737_v5 = vrot.slane %v15682_v29, %v15261_v4  ;;  %v15740_v8 = vrot.slane %v6723_v2, %v15261_v4 }
 0x337   : > { %22703 = vst [vmem:[#allocation86_spill] sm:$0xff] %v15699_v11  ;;  %22708 = vst [vmem:[#allocation91_spill] sm:$0xff] %v15717_v24  ;;  %v15730_v11 = vpop.f32.mrb[23].mxu1  ;;  %v15744_v62 = vadd.f32 %v15316_v38, %v15670_v40  ;;  %v15748_v31 = vadd.f32 %v15670_v40, %v15326_v47  ;;  %13837 = vmatmul.mubr.msk.f32.vlgmr.msra.gmra.mrb[128].mxu0 %vm2529_vm5, %v15439_v1  ;;  %v15753_v16 = vrot.slane %v6737_v19, %v15261_v4 }
 0x338   : > { %22709 = vst [vmem:[#allocation92_spill] sm:$0xff] %v15721_v0  ;;  %22710 = vst [vmem:[#allocation93_spill] sm:$0xff] %v15725_v54  ;;  %v6746_v0 = vcombine.high %v6730_v21, %v6730_v21  ;;  %13839 = vmatprep.mubr.msk.f32.mxu0 %vm2529_vm5, %v15274_v13  ;;  %v15759_v2 = vrot.slane %v2050_v56, %v15237_v43  ;;  %v15762_v38 = vrot.slane %v6798_v51, %v15237_v43 }
 0x339   : > { %22711 = vst [vmem:[#allocation94_spill] sm:$0xff] %v15728_v17  ;;  %22712 = vst [vmem:[#allocation95_spill] sm:$0xff] %v15733_v61  ;;  %v15765_v47 = vrot.slane %v6745_v49, %v15261_v4  ;;  %v15768_v29 = vrot.slane %v6747_v58, %v15261_v4  ;;  %v15772_v1 = vadd.f32 %v15308_v33, %v15713_v18 }
 0x33a   : > { %22713 = vst [vmem:[#allocation96_spill] sm:$0xff] %v15737_v5  ;;  %22714 = vst [vmem:[#allocation97_spill] sm:$0xff] %v15740_v8  ;;  %v6744_v5 = vrot.slane %v6716_v25, %v15237_v43  ;;  %v15776_v19 = vadd.f32 %v15297_v26, %v15717_v24  ;;  %v15780_v25 = vmul.f32 %v15395_v32, %v15713_v18  ;;  %v15784_v49 = vpop.f32.mrb[24].mxu0 }
 0x33b   : > { %22715 = vst [vmem:[#allocation98_spill] sm:$0xff] %v15744_v62  ;;  %22716 = vst [vmem:[#allocation99_spill] sm:$0xff] %v15748_v31  ;;  %v15788_v58 = vmul.f32 %v15398_v37, %v15717_v24  ;;  %v15791_v33 = vrot.slane %v6730_v21, %v15261_v4  ;;  %v15797_v26 = vrot.slane %v6746_v0, %v15261_v4  ;;  %v13730_v32 = vpop.f32.mrb[24].mxu1  ;;  %v15807_v24 = vpop.f32.mrb[25].mxu0  ;;  %13840 = vmatmul.mubr.msk.f32.gmra.mrb[130].mxu0 %vm2529_vm5, %v2050_v56 }
 0x33c   : > { %22717 = vst [vmem:[#allocation100_spill] sm:$0xff] %v15753_v16  ;;  %22718 = vst [vmem:[#allocation101_spill] sm:$0xff] %v15759_v2  ;;  %v15801_v18 = vadd.f32 %v15341_v55, %v15744_v62  ;;  %v15805_v51 = vadd.f32 %v15311_v34, %v15748_v31  ;;  %v15811_v21 = vmul.f32 %v15478_v50, %v15744_v62  ;;  %v4052_v17 = vpop.f32.mrb[25].mxu1  ;;  %v15821_v2 = vpop.f32.mrb[26].mxu0 }
 0x33d   : > { %22719 = vst [vmem:[#allocation102_spill] sm:$0xff] %v15762_v38  ;;  %22720 = vst [vmem:[#allocation103_spill] sm:$0xff] %v15765_v47  ;;  %v15794_v38 = vrot.slane %v6744_v5, %v15261_v4  ;;  %v6748_v37 = vcombine.high %v6744_v5, %v6744_v5  ;;  %v4029_v0 = vadd.f32 %v15575_v63, %v15387_v30  ;;  %v13731_v63 = vpop.f32.mrb[26].mxu1  ;;  %v15838_v62 = vpop.f32.mrb[27].mxu0 }
 0x33e   : > { %22721 = vst [vmem:[#allocation104_spill] sm:$0xff] %v15768_v29  ;;  %22722 = vst [vmem:[#allocation105_spill] sm:$0xff] %v15791_v33  ;;  %v15818_v55 = vadd.f32 %v15401_v42, %v15670_v40  ;;  %v4061_v34 = vadd.f32 %v13730_v32, %v15387_v30  ;;  %v15825_v61 = vmul.f32 %v15437_v14, %v15748_v31 }
 0x33f   : > { %22723 = vst [vmem:[#allocation106_spill] sm:$0xff] %v15794_v38  ;;  %22724 = vst [vmem:[#allocation107_spill] sm:$0xff] %v15797_v26  ;;  %v4021_v56 = vadd.f32 %v15387_v30, %v15592_v45  ;;  %v15831_v5 = vadd.f32 %v15670_v40, %v15416_v60  ;;  %v15835_v42 = vadd.f32 %v15484_v27, %v15670_v40 }
 0x340   : > { %22725 = vst [vmem:[#allocation108_spill] sm:$0xff] %v15818_v55  ;;  %22726 = vst [vmem:[#allocation109_spill] sm:$0xff] %v15821_v2  ;;  %v4053_v32 = vadd.f32 %v15387_v30, %v4052_v17  ;;  %v4032_v31 = vadd.f32 %v15609_v44, %v15387_v30  ;;  %v5043_v50 = vcombine.low %v4029_v0, %v4061_v34  ;;  %v4055_v2 = vpop.f32.mrb[27].mxu1 }
 0x341   : > { %22727 = vst [vmem:[#allocation110_spill] sm:$0xff] %v15831_v5  ;;  %22728 = vst [vmem:[#allocation111_spill] sm:$0xff] %v15835_v42  ;;  %v5044_v14 = vcombine.high %v4029_v0, %v4061_v34  ;;  %v4064_v45 = vadd.f32 %v13731_v63, %v15387_v30  ;;  %v15845_v60 = vadd.f32 %v15387_v30, %v15627_v20 }
 0x342   : > { %22729 = vst [vmem:[#allocation112_spill] sm:$0xff] %v15838_v62  ;;  %v4499_v26 = vcombine.low %v4021_v56, %v4053_v32  ;;  %v4500_v27 = vcombine.high %v4021_v56, %v4053_v32  ;;  %v15848_v54 = vadd.f32 %v15387_v30, %v4055_v2  ;;  %v15852_v17 = vadd.f32 %v15319_v39, %v15818_v55 }
 0x343   : > { %v5315_v62 = vcombine.low %v4032_v31, %v4064_v45  ;;  %v5316_v44 = vcombine.high %v4032_v31, %v4064_v45  ;;  %v15855_v34 = vrot.slane %v6748_v37, %v15261_v4  ;;  %v15859_v0 = vadd.f32 %v15314_v36, %v15831_v5  ;;  %v15873_v37 = vpop.f32.mrb[28].mxu0 }
 0x344   : > { %v4771_v20 = vcombine.low %v15845_v60, %v15848_v54  ;;  %v4772_v2 = vcombine.high %v15845_v60, %v15848_v54  ;;  %v15867_v56 = vmul.f32 %v15659_v35, %v15818_v55  ;;  %v15871_v31 = vadd.f32 %v15670_v40, %v15500_v28  ;;  %22732 = vst [vmem:[#allocation115_spill] sm:$0xff] %v15873_v37  ;;  %v15895_v35 = vpop.f32.mrb[29].mxu0 }
 0x345   : > { %22730 = vst [vmem:[#allocation113_spill] sm:$0xff] %v15855_v34  ;;  %v15877_v32 = vmul.f32 %v15641_v41, %v15831_v5  ;;  %v4045_v45 = vadd.f32 %v15685_v6, %v15387_v30  ;;  %v4037_v60 = vadd.f32 %v15387_v30, %v15704_v46  ;;  %v15889_v28 = vadd.f32 %v15346_v57, %v15835_v42  ;;  %v13734_v5 = vpop.f32.mrb[28].mxu1  ;;  %v15905_v57 = vpop.f32.mrb[30].mxu0 }
 0x346   : > { %22731 = vst [vmem:[#allocation114_spill] sm:$0xff] %v15871_v31  ;;  %v15893_v55 = vadd.f32 %v15565_v48, %v15670_v40  ;;  %22735 = vst [vmem:[#allocation118_spill] sm:$0xff] %v15895_v35  ;;  %v4048_v54 = vadd.f32 %v15719_v59, %v15387_v30  ;;  %v4040_v6 = vadd.f32 %v15387_v30, %v15730_v11  ;;  %v4068_v41 = vpop.f32.mrb[29].mxu1  ;;  %v15917_v34 = vpop.f32.mrb[31].mxu0 }
 0x347   : > { %22733 = vst [vmem:[#allocation116_spill] sm:$0xff] %v15889_v28  ;;  %v15902_v63 = vrot.slane %v5043_v50, %v15289_v22  ;;  %v4077_v46 = vadd.f32 %v13734_v5, %v15387_v30  ;;  %22737 = vst [vmem:[#allocation120_spill] sm:$0xff] %v15905_v57  ;;  %v15908_v48 = vrot.slane %v5044_v14, %v15289_v22  ;;  %v13735_v11 = vpop.f32.mrb[30].mxu1 }
 0x348   : > { %22734 = vst [vmem:[#allocation117_spill] sm:$0xff] %v15893_v55  ;;  %v15911_v36 = vrot.slane %v4499_v26, %v15289_v22  ;;  %v15914_v39 = vrot.slane %v4500_v27, %v15289_v22  ;;  %v4069_v59 = vadd.f32 %v15387_v30, %v4068_v41  ;;  %22740 = vst [vmem:[#allocation123_spill] sm:$0xff] %v15917_v34  ;;  %v4071_v14 = vpop.f32.mrb[31].mxu1 }
 0x349   : > { %22736 = vst [vmem:[#allocation119_spill] sm:$0xff] %v15902_v63  ;;  %22738 = vst [vmem:[#allocation121_spill] sm:$0xff] %v15908_v48  ;;  %v15920_v50 = vrot.slane %v5315_v62, %v15289_v22  ;;  %v5059_v5 = vcombine.low %v4045_v45, %v4077_v46  ;;  %v5060_v28 = vcombine.high %v4045_v45, %v4077_v46 }
 0x34a   : > { %22739 = vst [vmem:[#allocation122_spill] sm:$0xff] %v15914_v39  ;;  %v4080_v57 = vadd.f32 %v13735_v11, %v15387_v30  ;;  %v15924_v33 = vrot.slane %v5316_v44, %v15289_v22  ;;  %v4515_v26 = vcombine.low %v4037_v60, %v4069_v59  ;;  %v4516_v35 = vcombine.high %v4037_v60, %v4069_v59 }
 0x34b   : > { %22741 = vst [vmem:[#allocation124_spill] sm:$0xff] %v15920_v50  ;;  %v4072_v27 = vadd.f32 %v15387_v30, %v4071_v14  ;;  %v15928_v41 = vrot.slane %v5059_v5, %v15289_v22  ;;  %v15931_v34 = vrot.slane %v5060_v28, %v15289_v22  ;;  %v15977_v14 = vadd.f32 %v15670_v40, %v15578_v3 }
 0x34c   : > { %22742 = vst [vmem:[#allocation125_spill] sm:$0xff] %v15924_v33  ;;  %v5331_v62 = vcombine.low %v4048_v54, %v4080_v57  ;;  %v5332_v38 = vcombine.high %v4048_v54, %v4080_v57  ;;  %v15934_v45 = vrot.slane %v4515_v26, %v15289_v22  ;;  %v15937_v46 = vrot.slane %v4516_v35, %v15289_v22  ;;  %v13608_v54 = vpop.f32.mrb[32].mxu0  ;;  %v15955_v26 = vpop.f32.mrb[32].mxu1  ;;  %v22760_v33 = vld [vmem:[#allocation33_spill] sm:$0xff] }
 0x34d   : > { %22743 = vst [vmem:[#allocation126_spill] sm:$0xff] %v15928_v41  ;;  %22744 = vst [vmem:[#allocation127_spill] sm:$0xff] %v15931_v34  ;;  %v4787_v44 = vcombine.low %v4040_v6, %v4072_v27  ;;  %v4788_v11 = vcombine.high %v4040_v6, %v4072_v27  ;;  %v5107_v60 = vcombine.low %v15902_v63, %v15928_v41  ;;  %v15957_v27 = vpop.f32.mrb[33].mxu0 }
 0x34e   : > { %22745 = vst [vmem:[#allocation128_spill] sm:$0xff] %v15937_v46  ;;  %v4563_v5 = vcombine.low %v15911_v36, %v15934_v45  ;;  %v4564_v35 = vcombine.high %v15911_v36, %v15934_v45  ;;  %v4579_v6 = vcombine.low %v15914_v39, %v15937_v46  ;;  %v15960_v28 = vrot.slane %v5331_v62, %v15289_v22  ;;  %v15971_v45 = vpop.f32.mrb[33].mxu1  ;;  %v15973_v34 = vpop.f32.mrb[34].mxu0  ;;  %v22782_v46 = vld [vmem:[#allocation73_spill] sm:$0xff] }
 0x34f   : > { %v15963_v57 = vrot.slane %v5332_v38, %v15289_v22  ;;  %v15966_v59 = vrot.slane %v4787_v44, %v15289_v22  ;;  %v15969_v36 = vrot.slane %v4788_v11, %v15289_v22  ;;  %22750 = vst [vmem:[#allocation133_spill] sm:$0xff] %v15973_v34  ;;  %22751 = vst [vmem:[#allocation134_spill] sm:$0xff] %v15977_v14  ;;  %v15988_v48 = vpop.f32.mrb[34].mxu1  ;;  %v15990_v11 = vpop.f32.mrb[35].mxu0 }
 0x350   : > { %22746 = vst [vmem:[#allocation129_spill] sm:$0xff] %v15960_v28  ;;  %v15980_v62 = vrot.slane %v4771_v20, %v15289_v22  ;;  %v15983_v38 = vrot.slane %v4772_v2, %v15289_v22  ;;  %v15986_v44 = vadd.f32 %v13608_v54, %v15670_v40  ;;  %22755 = vst [vmem:[#allocation138_spill] sm:$0xff] %v15990_v11  ;;  %v16000_v63 = vpop.f32.mrb[35].mxu1  ;;  %v22756_v28 = vld [vmem:[#allocation39_spill] sm:$0xff]  ;;  %v22758_v2 = vld [vmem:[#allocation40_spill] sm:$0xff] }
 0x351   : > { %22747 = vst [vmem:[#allocation130_spill] sm:$0xff] %v15963_v57  ;;  %22748 = vst [vmem:[#allocation131_spill] sm:$0xff] %v15966_v59  ;;  %v16012_v20 = vadd.f32 %v22756_v28, %v15871_v31  ;;  %v16016_v57 = vadd.f32 %v22758_v2, %v15893_v55  ;;  %v22761_v54 = vcombine.low %v15513_v52, %v15543_v12 }
 0x352   : > { %22749 = vst [vmem:[#allocation132_spill] sm:$0xff] %v15969_v36  ;;  %22752 = vst [vmem:[#allocation135_spill] sm:$0xff] %v15980_v62  ;;  %v16026_v41 = vmul.f32 %v15709_v15, %v15835_v42  ;;  %v16030_v3 = vadd.f32 %v15672_v9, %v15670_v40  ;;  %v22765_v11 = vcombine.low %v15523_v53, %v15550_v7 }
 0x353   : > { %22753 = vst [vmem:[#allocation136_spill] sm:$0xff] %v15983_v38  ;;  %22754 = vst [vmem:[#allocation137_spill] sm:$0xff] %v15986_v44  ;;  %v16022_v50 = vrot.slane %v22761_v54, %v22760_v33  ;;  %v22766_v28 = vcombine.high %v15523_v53, %v15550_v7  ;;  %v22767_v54 = vld [vmem:[#allocation65_spill] sm:$0xff]  ;;  %v22768_v38 = vld [vmem:[#allocation70_spill] sm:$0xff]  ;;  %v16057_v62 = vrot.slane %v5107_v60, %v22760_v33 }
 0x354   : > { %22757 = vst [vmem:[#allocation139_spill] sm:$0xff] %v16012_v20  ;;  %22759 = vst [vmem:[#allocation140_spill] sm:$0xff] %v16016_v57  ;;  %v4539_v2 = vrot.slane %v22765_v11, %v22760_v33  ;;  %v22769_v42 = vcombine.low %v22767_v54, %v22768_v38  ;;  %v22770_v57 = vld [vmem:[#allocation84_spill] sm:$0xff]  ;;  %v16054_v11 = vpop.f32.mrb[36].mxu0  ;;  %v4571_v53 = vrot.slane %v4563_v5, %v22760_v33  ;;  %v2051_v7 = vld [vmem:[#allocation2 + $0x20] sm:$0xff] }
 0x355   : > { %22762 = vst [vmem:[#allocation141_spill] sm:$0xff] %v16022_v50  ;;  %22763 = vst [vmem:[#allocation142_spill] sm:$0xff] %v16026_v41  ;;  %v16040_v36 = vrot.slane %v22766_v28, %v22760_v33  ;;  %v16050_v9 = vadd.f32 %v15670_v40, %v22770_v57  ;;  %v22772_v41 = vld [vmem:[#allocation54_spill] sm:$0xff]  ;;  %v22774_v28 = vld [vmem:[#allocation45_spill] sm:$0xff]  ;;  %v16066_v34 = vpop.f32.mrb[37].mxu0  ;;  %v22777_v57 = vcombine.high %v22767_v54, %v22768_v38  ;;  %13846 = vmatprep.mubr.msk.f32.mxu1 %vm2529_vm5, %v2051_v7 }
 0x356   : > { %22764 = vst [vmem:[#allocation143_spill] sm:$0xff] %v16030_v3  ;;  %v16046_v15 = vrot.slane %v22769_v42, %v22760_v33  ;;  %v8245_v59 = vadd.f32 %v22772_v41, %v15986_v44  ;;  %22773 = vst [vmem:[#allocation70_spill] sm:$0xff] %v16054_v11  ;;  %v16062_v20 = vadd.f32 %v22774_v28, %v15977_v14  ;;  %v16064_v42 = vpop.f32.mrb[36].mxu1  ;;  %v22779_v60 = vld [vmem:[#allocation87_spill] sm:$0xff]  ;;  %v22781_v5 = vld [vmem:[#allocation76_spill] sm:$0xff] }
 0x357   : > { %22771 = vst [vmem:[#allocation65_spill] sm:$0xff] %v16050_v9  ;;  %22776 = vst [vmem:[#allocation144_spill] sm:$0xff] %v16066_v34  ;;  %v16072_v41 = vrot.slane %v22777_v57, %v22760_v33  ;;  %v16076_v11 = vmul.f32 %v22779_v60, %v15871_v31  ;;  %v22783_v39 = vcombine.low %v22781_v5, %v22782_v46  ;;  %v22785_v38 = vld [vmem:[#allocation58_spill] sm:$0xff] }
 0x358   : > { %22775 = vst [vmem:[#allocation84_spill] sm:$0xff] %v16062_v20  ;;  %v16085_v20 = vpop.f32.mrb[37].mxu1  ;;  %v5140_v34 = vcombine.high %v16022_v50, %v16057_v62  ;;  %v7797_v54 = vmul.f32 %v22785_v38, %v15986_v44  ;;  %v4596_v57 = vcombine.high %v4539_v2, %v4571_v53  ;;  %v4578_v31 = vrot.slane %v4564_v35, %v22760_v33  ;;  %v22787_v60 = vld [vmem:[#allocation46_spill] sm:$0xff]  ;;  %v22788_v38 = vld [vmem:[#allocation47_spill] sm:$0xff] }
 0x359   : > { %22778 = vst [vmem:[#allocation145_spill] sm:$0xff] %v16072_v41  ;;  %22780 = vst [vmem:[#allocation146_spill] sm:$0xff] %v16076_v11  ;;  %v16082_v28 = vrot.slane %v22783_v39, %v22760_v33  ;;  %v16091_v41 = vpop.f32.mrb[38].mxu0  ;;  %v16096_v11 = vadd.f32 %v22787_v60, %v16030_v3  ;;  %v16098_v39 = vpop.f32.mrb[38].mxu1  ;;  %v4595_v7 = vcombine.low %v4539_v2, %v4571_v53 }
 0x35a   : > { %22786 = vst [vmem:[#allocation73_spill] sm:$0xff] %v16091_v41  ;;  %v16103_v37 = vrot.slane %v4579_v6, %v22760_v33  ;;  %v16107_v44 = vmul.f32 %v15740_v8, %v15977_v14  ;;  %v16111_v41 = vadd.f32 %v22788_v38, %v16050_v9  ;;  %v8373_v35 = vmul.f32 %v8245_v59, %v5140_v34  ;;  %v16113_v50 = vpop.f32.mrb[39].mxu1 }
 0x35b   : > { %22784 = vst [vmem:[#allocation76_spill] sm:$0xff] %v16082_v28  ;;  %v16100_v28 = vpop.f32.mrb[39].mxu0  ;;  %v8341_v60 = vmul.f32 %v15772_v1, %v4596_v57  ;;  %v16118_v2 = vmul.f32 %v15753_v16, %v15893_v55  ;;  %v8339_v6 = vmul.f32 %v15776_v19, %v4595_v7  ;;  %v22789_v53 = vcombine.high %v22781_v5, %v22782_v46 }
 0x35c   : > { %v16129_v8 = vmul.f32 %v15765_v47, %v16050_v9  ;;  %v16133_v34 = vmul.f32 %v15768_v29, %v16030_v3  ;;  %v8501_v1 = vadd.f32 %v8373_v35, %v7797_v54  ;;  %v4597_v57 = vcombine.low %v16040_v36, %v4578_v31  ;;  %v22791_v9 = vld [vmem:[#allocation74_spill] sm:$0xff]  ;;  %v16151_v54 = vpop.f32.mrb[40].mxu0 }
 0x35d   : > { %v16125_v14 = vrot.slane %v22789_v53, %v22760_v33  ;;  %v8469_v59 = vadd.f32 %v8341_v60, %v15780_v25  ;;  %v4598_v19 = vcombine.high %v16040_v36, %v4578_v31  ;;  %v8467_v7 = vadd.f32 %v8339_v6, %v15788_v58  ;;  %v22790_v53 = vld [vmem:[#allocation77_spill] sm:$0xff] }
 0x35e   : > { %v4599_v46 = vcombine.low %v16046_v15, %v16103_v37  ;;  %v4600_v5 = vcombine.high %v16046_v15, %v16103_v37  ;;  %v22792_v3 = vcombine.low %v22790_v53, %v22791_v9  ;;  %v8697_v25 = vsel %vm2529_vm5, %v8501_v1, 0.0  ;;  %v13746_v15 = vpop.f32.mrb[40].mxu1  ;;  %v16160_v37 = vpop.f32.mrb[41].mxu0 }
 0x35f   : > { %v8601_v60 = vsel %vm2529_vm5, %v8469_v59, 0.0  ;;  %v8343_v58 = vmul.f32 %v15805_v51, %v4597_v57  ;;  %v22793_v31 = vcombine.high %v22790_v53, %v22791_v9  ;;  %8698 = vadd.xlane.f32.xlu0 %v8697_v25  ;;  %v22796_v51 = vcombine.high %v15376_v23, %v15376_v23  ;;  %v4116_v23 = vpop.f32.mrb[41].mxu1  ;;  %v16187_v53 = vpop.f32.mrb[42].mxu0  ;;  %v2052_v25 = vld [vmem:[#allocation2 + $0x28] sm:$0xff] }
 0x360   : > { %v16147_v55 = vrot.slane %v22792_v3, %v22760_v33  ;;  %8602 = vadd.xlane.f32.xlu1 %v8601_v60  ;;  %v22794_v3 = vcombine.high %v15513_v52, %v15543_v12  ;;  %v22798_v9 = vcombine.high %v15663_v10, %v15663_v10  ;;  %v4093_v59 = vadd.f32 %v15955_v26, %v15387_v30  ;;  %v16192_v26 = vpop.f32.mrb[43].mxu0 }
 0x361   : > { %v16158_v36 = vrot.slane %v22793_v31, %v22760_v33  ;;  %v16172_v6 = vrot.slane %v22796_v51, %v15261_v4  ;;  %v4085_v12 = vadd.f32 %v15387_v30, %v15971_v45  ;;  %v4096_v52 = vadd.f32 %v15988_v48, %v15387_v30  ;;  %v13747_v31 = vpop.f32.mrb[42].mxu1  ;;  %13847 = vmatmul.mubr.msk.f32.vlgmr.msra.gmra.mrb[128].mxu1 %vm2529_vm5, %v2052_v25  ;;  %v22800_v25 = vld [vmem:[#allocation64_spill] sm:$0xff] }
 0x362   : > { %v16166_v35 = vrot.slane %v22794_v3, %v22760_v33  ;;  %v16178_v1 = vrot.slane %v22798_v9, %v15261_v4  ;;  %v4125_v57 = vadd.f32 %v13746_v15, %v15387_v30  ;;  %v8595_v60 = vsel %vm2529_vm5, %v8467_v7, 0.0  ;;  %v4119_v29 = vpop.f32.mrb[43].mxu1  ;;  %v22874_v4 = vld [vmem:[#allocation135_spill] sm:$0xff] }
 0x363   : > { %22797 = vst [vmem:[#allocation74_spill] sm:$0xff] %v16172_v6  ;;  %v4117_v10 = vadd.f32 %v15387_v30, %v4116_v23  ;;  %v8345_v3 = vmul.f32 %v15801_v18, %v4598_v19  ;;  %v8347_v45 = vmul.f32 %v15859_v0, %v4599_v46  ;;  %v4128_v15 = vadd.f32 %v13747_v31, %v15387_v30 }
 0x364   : > { %22795 = vst [vmem:[#allocation77_spill] sm:$0xff] %v16166_v35  ;;  %22799 = vst [vmem:[#allocation147_spill] sm:$0xff] %v16178_v1  ;;  %v5147_v48 = vcombine.low %v4093_v59, %v4125_v57  ;;  %v5148_v51 = vcombine.high %v4093_v59, %v4125_v57  ;;  %v8471_v9 = vadd.f32 %v8343_v58, %v15825_v61  ;;  %8596 = vadd.xlane.f32.xlu0 %v8595_v60  ;;  %v22801_v59 = vld [vmem:[#allocation69_spill] sm:$0xff]  ;;  %v22882_v35 = vld [vmem:[#allocation76_spill] sm:$0xff] }
 0x365   : > { %v16200_v7 = vadd.f32 %v15387_v30, %v16000_v63  ;;  %v4603_v23 = vcombine.low %v4085_v12, %v4117_v10  ;;  %v4604_v18 = vcombine.high %v4085_v12, %v4117_v10  ;;  %v16203_v19 = vadd.f32 %v15387_v30, %v4119_v29 }
 0x366   : > { %v5419_v0 = vcombine.low %v4096_v52, %v4128_v15  ;;  %v5420_v46 = vcombine.high %v4096_v52, %v4128_v15  ;;  %v22802_v57 = vcombine.low %v22800_v25, %v22801_v59  ;;  %v16215_v63 = vadd.f32 %v15784_v49, %v15670_v40  ;;  %v16227_v15 = vpop.f32.mrb[44].mxu0 }
 0x367   : > { %v8473_v12 = vadd.f32 %v8345_v3, %v15811_v21  ;;  %v4109_v52 = vadd.f32 %v16064_v42, %v15387_v30  ;;  %v4101_v60 = vadd.f32 %v15387_v30, %v16085_v20  ;;  %v8607_v10 = vsel %vm2529_vm5, %v8471_v9, 0.0  ;;  %v13750_v42 = vpop.f32.mrb[44].mxu1  ;;  %v16237_v3 = vpop.f32.mrb[45].mxu0 }
 0x368   : > { %v16209_v31 = vrot.slane %v22802_v57, %v22760_v33  ;;  %22804 = vst [vmem:[#allocation69_spill] sm:$0xff] %v16215_v63  ;;  %v8475_v49 = vadd.f32 %v8347_v45, %v15877_v32  ;;  %v4112_v57 = vadd.f32 %v16098_v39, %v15387_v30  ;;  %v4104_v61 = vadd.f32 %v15387_v30, %v16113_v50  ;;  %v4132_v45 = vpop.f32.mrb[45].mxu1 }
 0x369   : > { %v16235_v21 = vrot.slane %v5147_v48, %v15289_v22  ;;  %8608 = vadd.xlane.f32.xlu0 %v8607_v10  ;;  %22805 = vst [vmem:[#allocation148_spill] sm:$0xff] %v16237_v3  ;;  %v8349_v20 = vmul.f32 %v15852_v17, %v4600_v5  ;;  %v16241_v9 = vrot.slane %v5148_v51, %v15289_v22  ;;  %v16250_v48 = vpop.f32.mrb[46].mxu0  ;;  %v8613_v17 = vsel %vm2529_vm5, %v8473_v12, 0.0  ;;  %v13751_v51 = vpop.f32.mrb[46].mxu1 }
 0x36a   : > { %22803 = vst [vmem:[#allocation64_spill] sm:$0xff] %v16209_v31  ;;  %v16244_v32 = vrot.slane %v4603_v23, %v15289_v22  ;;  %v16247_v39 = vrot.slane %v4604_v18, %v15289_v22  ;;  %v4141_v50 = vadd.f32 %v13750_v42, %v15387_v30  ;;  %22809 = vst [vmem:[#allocation152_spill] sm:$0xff] %v16250_v48  ;;  %v16260_v23 = vpop.f32.mrb[47].mxu0  ;;  %v8619_v47 = vsel %vm2529_vm5, %v8475_v49, 0.0  ;;  %v4135_v16 = vpop.f32.mrb[47].mxu1 }
 0x36b   : > { %22806 = vst [vmem:[#allocation149_spill] sm:$0xff] %v16241_v9  ;;  %v16253_v10 = vrot.slane %v5419_v0, %v15289_v22  ;;  %v16256_v29 = vrot.slane %v5420_v46, %v15289_v22  ;;  %v4133_v5 = vadd.f32 %v15387_v30, %v4132_v45  ;;  %22812 = vst [vmem:[#allocation155_spill] sm:$0xff] %v16260_v23 }
 0x36c   : > { %22807 = vst [vmem:[#allocation150_spill] sm:$0xff] %v16244_v32  ;;  %22808 = vst [vmem:[#allocation151_spill] sm:$0xff] %v16247_v39  ;;  %v5163_v18 = vcombine.low %v4109_v52, %v4141_v50  ;;  %v5164_v58 = vcombine.high %v4109_v52, %v4141_v50  ;;  %v4144_v42 = vadd.f32 %v13751_v51, %v15387_v30  ;;  %v16296_v51 = vpop.f32.mrb[48].mxu1  ;;  %v22853_v39 = vld [vmem:[#allocation145_spill] sm:$0xff]  ;;  %v22862_v32 = vld [vmem:[#allocation116_spill] sm:$0xff] }
 0x36d   : > { %22810 = vst [vmem:[#allocation153_spill] sm:$0xff] %v16253_v10  ;;  %22811 = vst [vmem:[#allocation154_spill] sm:$0xff] %v16256_v29  ;;  %8614 = vadd.xlane.f32.xlu0 %v8613_v17  ;;  %v4619_v0 = vcombine.low %v4101_v60, %v4133_v5  ;;  %v4620_v38 = vcombine.high %v4101_v60, %v4133_v5  ;;  %v4136_v46 = vadd.f32 %v15387_v30, %v4135_v16 }
 0x36e   : > { %v8477_v48 = vadd.f32 %v8349_v20, %v15867_v56  ;;  %v16267_v12 = vrot.slane %v5163_v18, %v15289_v22  ;;  %v16270_v45 = vrot.slane %v5164_v58, %v15289_v22  ;;  %v5435_v23 = vcombine.low %v4112_v57, %v4144_v42  ;;  %v16312_v20 = vpop.f32.mrb[49].mxu1 }
 0x36f   : > { %v5436_v52 = vcombine.high %v4112_v57, %v4144_v42  ;;  %v16273_v50 = vrot.slane %v4619_v0, %v15289_v22  ;;  %v16276_v49 = vrot.slane %v4620_v38, %v15289_v22  ;;  %v4891_v17 = vcombine.low %v4104_v61, %v4136_v46  ;;  %v16286_v57 = vpop.f32.mrb[48].mxu0  ;;  %v16333_v58 = vpop.f32.mrb[50].mxu1 }
 0x370   : > { %22813 = vst [vmem:[#allocation156_spill] sm:$0xff] %v16270_v45  ;;  %v4892_v60 = vcombine.high %v4104_v61, %v4136_v46  ;;  %22816 = vst [vmem:[#allocation159_spill] sm:$0xff] %v16286_v57  ;;  %v16298_v18 = vpop.f32.mrb[49].mxu0  ;;  %v16301_v42 = vrot.slane %v5435_v23, %v15289_v22  ;;  %v22824_v23 = vcombine.low %v16200_v7, %v16203_v19  ;;  %v8625_v38 = vsel %vm2529_vm5, %v8477_v48, 0.0  ;;  %v22875_v45 = vld [vmem:[#allocation131_spill] sm:$0xff] }
 0x371   : > { %22814 = vst [vmem:[#allocation157_spill] sm:$0xff] %v16273_v50  ;;  %22815 = vst [vmem:[#allocation158_spill] sm:$0xff] %v16276_v49  ;;  %8620 = vadd.xlane.f32.xlu0 %v8619_v47  ;;  %v16304_v0 = vrot.slane %v5436_v52, %v15289_v22  ;;  %v16307_v46 = vrot.slane %v4891_v17, %v15289_v22  ;;  %v16314_v5 = vpop.f32.mrb[50].mxu0  ;;  %v16318_v47 = vadd.f32 %v15670_v40, %v15807_v24 }
 0x372   : > { %22817 = vst [vmem:[#allocation160_spill] sm:$0xff] %v16298_v18  ;;  %22818 = vst [vmem:[#allocation161_spill] sm:$0xff] %v16301_v42  ;;  %v16310_v61 = vrot.slane %v4892_v60, %v15289_v22  ;;  %v16324_v52 = vrot.slane %v22824_v23, %v15289_v22  ;;  %v22826_v17 = vcombine.high %v16200_v7, %v16203_v19  ;;  %v16335_v56 = vpop.f32.mrb[51].mxu0  ;;  %v16345_v19 = vpop.f32.mrb[51].mxu1  ;;  %v22829_v23 = vld [vmem:[#allocation48_spill] sm:$0xff] }
 0x373   : > { %22819 = vst [vmem:[#allocation162_spill] sm:$0xff] %v16304_v0  ;;  %22820 = vst [vmem:[#allocation163_spill] sm:$0xff] %v16307_v46  ;;  %v16357_v30 = vadd.f32 %v22829_v23, %v16215_v63  ;;  %v16361_v7 = vadd.f32 %v15670_v40, %v15957_v27  ;;  %v22831_v48 = vcombine.high %v15274_v13, %v15274_v13  ;;  %v22838_v46 = vld [vmem:[#allocation122_spill] sm:$0xff]  ;;  %v16399_v10 = vpop.f32.mrb[52].mxu0  ;;  %v16417_v23 = vpop.f32.mrb[52].mxu1 }
 0x374   : > { %22821 = vst [vmem:[#allocation164_spill] sm:$0xff] %v16310_v61  ;;  %22822 = vst [vmem:[#allocation165_spill] sm:$0xff] %v16314_v5  ;;  %v16330_v60 = vrot.slane %v22826_v17, %v15289_v22  ;;  %v22833_v24 = vcombine.high %v22800_v25, %v22801_v59  ;;  %v22841_v0 = vld [vmem:[#allocation106_spill] sm:$0xff] }
 0x375   : > { %22823 = vst [vmem:[#allocation166_spill] sm:$0xff] %v16318_v47  ;;  %22825 = vst [vmem:[#allocation167_spill] sm:$0xff] %v16324_v52  ;;  %8626 = vadd.xlane.f32.xlu0 %v8625_v38  ;;  %v16367_v17 = vrot.slane %v22831_v48, %v15237_v43  ;;  %v22835_v38 = vld [vmem:[#allocation49_spill] sm:$0xff]  ;;  %v22839_v52 = vld [vmem:[#allocation128_spill] sm:$0xff]  ;;  %v16389_v29 = vmul.f32 %v22841_v0, %v16215_v63 }
 0x376   : > { %22827 = vst [vmem:[#allocation168_spill] sm:$0xff] %v16330_v60  ;;  %22828 = vst [vmem:[#allocation169_spill] sm:$0xff] %v16335_v56  ;;  %v16373_v16 = vrot.slane %v22833_v24, %v22760_v33  ;;  %v16377_v61 = vadd.f32 %v22835_v38, %v16318_v47  ;;  %v22836_v60 = vld [vmem:[#allocation115_spill] sm:$0xff]  ;;  %v22840_v13 = vcombine.high %v22838_v46, %v22839_v52  ;;  %v22842_v25 = vld [vmem:[#allocation118_spill] sm:$0xff]  ;;  %v16419_v56 = vpop.f32.mrb[53].mxu0 }
 0x377   : > { %22830 = vst [vmem:[#allocation170_spill] sm:$0xff] %v16361_v7  ;;  %22832 = vst [vmem:[#allocation171_spill] sm:$0xff] %v16367_v17  ;;  %v16381_v27 = vadd.f32 %v22836_v60, %v15670_v40  ;;  %v16393_v59 = vadd.f32 %v15670_v40, %v22842_v25  ;;  %v22844_v24 = vld [vmem:[#allocation133_spill] sm:$0xff]  ;;  %v22851_v25 = vld [vmem:[#allocation70_spill] sm:$0xff]  ;;  %v16429_v5 = vpop.f32.mrb[54].mxu0 }
 0x378   : > { %22834 = vst [vmem:[#allocation172_spill] sm:$0xff] %v16373_v16  ;;  %v4594_v48 = vrot.slane %v22840_v13, %v22760_v33  ;;  %v16397_v42 = vadd.f32 %v22844_v24, %v15670_v40  ;;  %22846 = vst [vmem:[#allocation118_spill] sm:$0xff] %v16399_v10  ;;  %v22847_v60 = vld [vmem:[#allocation141_spill] sm:$0xff]  ;;  %v22849_v13 = vld [vmem:[#allocation138_spill] sm:$0xff]  ;;  %v16413_v0 = vadd.f32 %v22851_v25, %v15670_v40  ;;  %v16445_v57 = vpop.f32.mrb[55].mxu0 }
 0x379   : > { %22837 = vst [vmem:[#allocation115_spill] sm:$0xff] %v16381_v27  ;;  %22843 = vst [vmem:[#allocation122_spill] sm:$0xff] %v16393_v59  ;;  %v5139_v49 = vcombine.low %v22847_v60, %v16057_v62  ;;  %v22848_v46 = vld [vmem:[#allocation105_spill] sm:$0xff]  ;;  %v16409_v63 = vadd.f32 %v15670_v40, %v22849_v13  ;;  %v22855_v62 = vld [vmem:[#allocation55_spill] sm:$0xff]  ;;  %v16427_v13 = vpop.f32.mrb[53].mxu1 }
 0x37a   : > { %22845 = vst [vmem:[#allocation128_spill] sm:$0xff] %v16397_v42  ;;  %v16405_v52 = vmul.f32 %v22848_v46, %v16318_v47  ;;  %22852 = vst [vmem:[#allocation141_spill] sm:$0xff] %v16413_v0  ;;  %v4601_v24 = vcombine.low %v22853_v39, %v4594_v48  ;;  %v4602_v38 = vcombine.high %v22853_v39, %v4594_v48  ;;  %v22856_v47 = vld [vmem:[#allocation144_spill] sm:$0xff]  ;;  %v22861_v10 = vld [vmem:[#allocation139_spill] sm:$0xff]  ;;  %v16443_v18 = vpop.f32.mrb[54].mxu1 }
 0x37b   : > { %22850 = vst [vmem:[#allocation133_spill] sm:$0xff] %v16409_v63  ;;  %22854 = vst [vmem:[#allocation138_spill] sm:$0xff] %v16419_v56  ;;  %v8243_v60 = vadd.f32 %v22855_v62, %v16361_v7  ;;  %v16425_v46 = vadd.f32 %v15670_v40, %v22856_v47  ;;  %v16435_v39 = vrot.slane %v16367_v17, %v15237_v43  ;;  %v22860_v48 = vld [vmem:[#allocation52_spill] sm:$0xff]  ;;  %v22866_v25 = vld [vmem:[#allocation53_spill] sm:$0xff] }
 0x37c   : > { %22858 = vst [vmem:[#allocation145_spill] sm:$0xff] %v16429_v5  ;;  %v16439_v56 = vadd.f32 %v22860_v48, %v16381_v27  ;;  %v8351_v50 = vmul.f32 %v22861_v10, %v4601_v24  ;;  %v8353_v47 = vmul.f32 %v22862_v32, %v4602_v38  ;;  %22863 = vst [vmem:[#allocation144_spill] sm:$0xff] %v16445_v57  ;;  %v22864_v5 = vld [vmem:[#allocation113_spill] sm:$0xff]  ;;  %v4167_v38 = vpop.f32.mrb[55].mxu1 }
 0x37d   : > { %22857 = vst [vmem:[#allocation70_spill] sm:$0xff] %v16425_v46  ;;  %22859 = vst [vmem:[#allocation55_spill] sm:$0xff] %v16435_v39  ;;  %v16449_v16 = vmul.f32 %v22864_v5, %v16381_v27  ;;  %v16453_v3 = vadd.f32 %v22866_v25, %v16393_v59  ;;  %v22867_v39 = vld [vmem:[#allocation54_spill] sm:$0xff]  ;;  %v22868_v10 = vld [vmem:[#allocation73_spill] sm:$0xff]  ;;  %v16465_v32 = vadd.f32 %v15670_v40, %v16100_v28 }
 0x37e   : > { %v16457_v48 = vadd.f32 %v22867_v39, %v16397_v42  ;;  %v16461_v24 = vadd.f32 %v22868_v10, %v15670_v40  ;;  %v16469_v27 = vadd.f32 %v22855_v62, %v16409_v63  ;;  %v22871_v5 = vld [vmem:[#allocation56_spill] sm:$0xff]  ;;  %v22873_v25 = vld [vmem:[#allocation146_spill] sm:$0xff]  ;;  %v22876_v10 = vcombine.low %v22874_v4, %v22875_v45  ;;  %v22877_v17 = vld [vmem:[#allocation57_spill] sm:$0xff] }
 0x37f   : > { %22865 = vst [vmem:[#allocation139_spill] sm:$0xff] %v16449_v16  ;;  %22870 = vst [vmem:[#allocation54_spill] sm:$0xff] %v16465_v32  ;;  %v16473_v57 = vadd.f32 %v22871_v5, %v16413_v0  ;;  %v8479_v39 = vadd.f32 %v8351_v50, %v22873_v25  ;;  %v16482_v28 = vadd.f32 %v22877_v17, %v16425_v46  ;;  %v22879_v43 = vld [vmem:[#allocation93_spill] sm:$0xff]  ;;  %v22881_v25 = vld [vmem:[#allocation142_spill] sm:$0xff] }
 0x380   : > { %22869 = vst [vmem:[#allocation116_spill] sm:$0xff] %v16461_v24  ;;  %v4843_v9 = vrot.slane %v22876_v10, %v22760_v33  ;;  %v7795_v31 = vmul.f32 %v22879_v43, %v16361_v7  ;;  %v8371_v62 = vmul.f32 %v8243_v60, %v5139_v49  ;;  %v22880_v16 = vcombine.high %v22874_v4, %v22875_v45  ;;  %v16502_v60 = vpop.f32.mrb[56].mxu0 }
 0x381   : > { %22872 = vst [vmem:[#allocation73_spill] sm:$0xff] %v16473_v57  ;;  %22878 = vst [vmem:[#allocation56_spill] sm:$0xff] %v16482_v28  ;;  %v8631_v50 = vsel %vm2529_vm5, %v8479_v39, 0.0  ;;  %v8481_v57 = vadd.f32 %v8353_v47, %v22881_v25  ;;  %v16496_v28 = vadd.f32 %v22871_v5, %v16461_v24  ;;  %v16500_v49 = vadd.f32 %v22877_v17, %v16465_v32  ;;  %v22888_v5 = vld [vmem:[#allocation84_spill] sm:$0xff]  ;;  %v13762_v47 = vpop.f32.mrb[56].mxu1  ;;  %v16519_v39 = vpop.f32.mrb[57].mxu0 }
 0x382   : > { %v4850_v1 = vrot.slane %v22880_v16, %v22760_v33  ;;  %v4867_v6 = vcombine.low %v22882_v35, %v4843_v9  ;;  %v4868_v10 = vcombine.high %v22882_v35, %v4843_v9  ;;  %8632 = vadd.xlane.f32.xlu0 %v8631_v50  ;;  %22884 = vst [vmem:[#allocation135_spill] sm:$0xff] %v16502_v60  ;;  %22889 = vst [vmem:[#allocation142_spill] sm:$0xff] %v16519_v39  ;;  %v22891_v50 = vld [vmem:[#allocation140_spill] sm:$0xff]  ;;  %v16534_v25 = vpop.f32.mrb[58].mxu0 }
 0x383   : > { %22883 = vst [vmem:[#allocation146_spill] sm:$0xff] %v16496_v28  ;;  %v16508_v16 = vadd.f32 %v16151_v54, %v15670_v40  ;;  %v16512_v35 = vadd.f32 %v15670_v40, %v16160_v37  ;;  %v16516_v9 = vadd.f32 %v16187_v53, %v15670_v40  ;;  %v16528_v54 = vld [vmem:[%s22657_s4] ss:$0 sm:$0xff]  ;;  %v4180_v53 = vpop.f32.mrb[57].mxu1  ;;  %22892 = vst [vmem:[#allocation84_spill] sm:$0xff] %v16534_v25  ;;  %v16540_v28 = vpop.f32.mrb[59].mxu0 }
 0x384   : > { %v4869_v4 = vcombine.low %v16125_v14, %v4850_v1  ;;  %v4870_v45 = vcombine.high %v16125_v14, %v4850_v1  ;;  %v8355_v17 = vmul.f32 %v22888_v5, %v4867_v6  ;;  %v16523_v14 = vadd.f32 %v15670_v40, %v16192_v26  ;;  %v13763_v60 = vpop.f32.mrb[58].mxu1  ;;  %22893 = vst [vmem:[#allocation140_spill] sm:$0xff] %v16540_v28 }
 0x385   : > { %22885 = vst [vmem:[#allocation131_spill] sm:$0xff] %v16508_v16  ;;  %22886 = vst [vmem:[#allocation57_spill] sm:$0xff] %v16512_v35  ;;  %v4157_v37 = vadd.f32 %v16528_v54, %v16296_v51  ;;  %v4189_v1 = vadd.f32 %v16528_v54, %v13762_v47  ;;  %v8357_v6 = vmul.f32 %v22891_v50, %v4868_v10  ;;  %v8637_v26 = vsel %vm2529_vm5, %v8481_v57, 0.0  ;;  %v4183_v50 = vpop.f32.mrb[59].mxu1 }
 0x386   : > { %22887 = vst [vmem:[#allocation93_spill] sm:$0xff] %v16516_v9  ;;  %22890 = vst [vmem:[#allocation76_spill] sm:$0xff] %v16523_v14  ;;  %v4149_v5 = vadd.f32 %v16528_v54, %v16312_v20  ;;  %v8499_v7 = vadd.f32 %v8371_v62, %v7795_v31  ;;  %v4181_v39 = vadd.f32 %v16528_v54, %v4180_v53  ;;  %8638 = vadd.xlane.f32.xlu0 %v8637_v26 }
 0x387   : > { %v4160_v51 = vadd.f32 %v16528_v54, %v16333_v58  ;;  %v5179_v47 = vcombine.low %v4157_v37, %v4189_v1  ;;  %v5180_v24 = vcombine.high %v4157_v37, %v4189_v1  ;;  %v4192_v10 = vadd.f32 %v16528_v54, %v13763_v60 }
 0x388   : > { %v16547_v20 = vadd.f32 %v16528_v54, %v16345_v19  ;;  %v8483_v31 = vadd.f32 %v8355_v17, %v16107_v44  ;;  %v4635_v57 = vcombine.low %v4149_v5, %v4181_v39  ;;  %v4636_v62 = vcombine.high %v4149_v5, %v4181_v39  ;;  %v16565_v17 = vpop.f32.mrb[60].mxu0  ;;  %v22895_v39 = vld [vmem:[#allocation132_spill] sm:$0xff]  ;;  %v13766_v5 = vpop.f32.mrb[60].mxu1 }
 0x389   : > { %v4173_v53 = vadd.f32 %v16528_v54, %v16417_v23  ;;  %v5451_v28 = vcombine.low %v4160_v51, %v4192_v10  ;;  %v5452_v25 = vcombine.high %v4160_v51, %v4192_v10  ;;  %v8485_v58 = vadd.f32 %v8357_v6, %v16118_v2  ;;  %v22894_v2 = vld [vmem:[#allocation136_spill] sm:$0xff]  ;;  %v16584_v26 = vpop.f32.mrb[61].mxu0 }
 0x38a   : > { %v4165_v37 = vadd.f32 %v16528_v54, %v16427_v13  ;;  %v8691_v60 = vsel %vm2529_vm5, %v8499_v7, 0.0  ;;  %v16557_v1 = vadd.f32 %v16528_v54, %v4183_v50  ;;  %v8359_v19 = vmul.f32 %v16111_v41, %v4869_v4  ;;  %22898 = vst [vmem:[#allocation136_spill] sm:$0xff] %v16584_v26 }
 0x38b   : > { %v4176_v44 = vadd.f32 %v16528_v54, %v16443_v18  ;;  %8692 = vadd.xlane.f32.xlu0 %v8691_v60  ;;  %v16563_v23 = vadd.f32 %v16528_v54, %v4167_v38  ;;  %v22896_v13 = vcombine.low %v22894_v2, %v22895_v39  ;;  %v22897_v7 = vcombine.high %v22894_v2, %v22895_v39  ;;  %v4196_v2 = vpop.f32.mrb[61].mxu1  ;;  %v16595_v39 = vpop.f32.mrb[62].mxu0 }
 0x38c   : > { %v8643_v18 = vsel %vm2529_vm5, %v8483_v31, 0.0  ;;  %v4907_v38 = vcombine.low %v16547_v20, %v16557_v1  ;;  %v4908_v4 = vcombine.high %v16547_v20, %v16557_v1  ;;  %v8361_v51 = vmul.f32 %v16096_v11, %v4870_v45  ;;  %22899 = vst [vmem:[#allocation132_spill] sm:$0xff] %v16595_v39 }
 0x38d   : > { %v16571_v6 = vrot.slane %v22896_v13, %v22760_v33  ;;  %v16577_v41 = vrot.slane %v22897_v7, %v22760_v33  ;;  %v16588_v10 = vrot.slane %v5179_v47, %v15289_v22  ;;  %v16591_v50 = vrot.slane %v5180_v24, %v15289_v22  ;;  %v13767_v47 = vpop.f32.mrb[62].mxu1  ;;  %v16605_v24 = vpop.f32.mrb[63].mxu0 }
 0x38e   : > { %v8649_v60 = vsel %vm2529_vm5, %v8485_v58, 0.0  ;;  %v4205_v31 = vadd.f32 %v16528_v54, %v13766_v5  ;;  %v16598_v20 = vrot.slane %v4635_v57, %v15289_v22  ;;  %v16601_v1 = vrot.slane %v4636_v62, %v15289_v22  ;;  %v4199_v57 = vpop.f32.mrb[63].mxu1 }
 0x38f   : > { %v8487_v11 = vadd.f32 %v8359_v19, %v16129_v8  ;;  %v4197_v45 = vadd.f32 %v16528_v54, %v4196_v2  ;;  %8644 = vadd.xlane.f32.xlu0 %v8643_v18  ;;  %v16608_v58 = vrot.slane %v5451_v28, %v15289_v22  ;;  %v4208_v5 = vadd.f32 %v16528_v54, %v13767_v47 }
 0x390   : > { %22900 = vst [vmem:[#allocation173_spill] sm:$0xff] %v16601_v1  ;;  %v5195_v13 = vcombine.low %v4173_v53, %v4205_v31  ;;  %v5196_v7 = vcombine.high %v4173_v53, %v4205_v31  ;;  %v16612_v39 = vrot.slane %v5452_v25, %v15289_v22  ;;  %v4200_v8 = vadd.f32 %v16528_v54, %v4199_v57  ;;  %v13770_v57 = vpop.f32.mrb[64].mxu1 }
 0x391   : > { %22901 = vst [vmem:[#allocation174_spill] sm:$0xff] %v16608_v58  ;;  %v4651_v62 = vcombine.low %v4165_v37, %v4197_v45  ;;  %v4652_v26 = vcombine.high %v4165_v37, %v4197_v45  ;;  %v5467_v28 = vcombine.low %v4176_v44, %v4208_v5  ;;  %v5468_v2 = vcombine.high %v4176_v44, %v4208_v5 }
 0x392   : > { %22902 = vst [vmem:[#allocation175_spill] sm:$0xff] %v16612_v39  ;;  %v16616_v19 = vrot.slane %v5195_v13, %v15289_v22  ;;  %v16619_v18 = vrot.slane %v5196_v7, %v15289_v22  ;;  %v8655_v53 = vsel %vm2529_vm5, %v8487_v11, 0.0  ;;  %v4923_v37 = vcombine.low %v16563_v23, %v4200_v8  ;;  %v16637_v13 = vpop.f32.mrb[64].mxu0 }
 0x393   : > { %v16623_v31 = vrot.slane %v4651_v62, %v15289_v22  ;;  %v16626_v25 = vrot.slane %v4652_v26, %v15289_v22  ;;  %8650 = vadd.xlane.f32.xlu0 %v8649_v60  ;;  %22904 = vst [vmem:[#allocation177_spill] sm:$0xff] %v16637_v13  ;;  %v16647_v62 = vpop.f32.mrb[65].mxu0  ;;  %v16650_v44 = vrot.slane %v5467_v28, %v15289_v22  ;;  %v4212_v60 = vpop.f32.mrb[65].mxu1 }
 0x394   : > { %v5243_v45 = vcombine.low %v16588_v10, %v16616_v19  ;;  %22905 = vst [vmem:[#allocation178_spill] sm:$0xff] %v16647_v62  ;;  %v16653_v11 = vrot.slane %v5468_v2, %v15289_v22  ;;  %v4924_v26 = vcombine.high %v16563_v23, %v4200_v8  ;;  %v16657_v47 = vrot.slane %v4923_v37, %v15289_v22  ;;  %v16659_v13 = vpop.f32.mrb[66].mxu0  ;;  %v22914_v8 = vld [vmem:[#allocation80_spill] sm:$0xff] }
 0x395   : > { %22903 = vst [vmem:[#allocation176_spill] sm:$0xff] %v16626_v25  ;;  %22906 = vst [vmem:[#allocation179_spill] sm:$0xff] %v16650_v44  ;;  %v16662_v7 = vrot.slane %v4907_v38, %v15289_v22  ;;  %v16665_v5 = vrot.slane %v4908_v4, %v15289_v22  ;;  %v8489_v28 = vadd.f32 %v8361_v51, %v16133_v34  ;;  %v13771_v25 = vpop.f32.mrb[66].mxu1  ;;  %v16670_v1 = vpop.f32.mrb[67].mxu0  ;;  %v22915_v38 = vld [vmem:[#allocation82_spill] sm:$0xff] }
 0x396   : > { %22907 = vst [vmem:[#allocation180_spill] sm:$0xff] %v16653_v11  ;;  %22908 = vst [vmem:[#allocation181_spill] sm:$0xff] %v16657_v47  ;;  %v4871_v2 = vcombine.low %v16147_v55, %v16571_v6  ;;  %v4215_v34 = vpop.f32.mrb[67].mxu1  ;;  %v16681_v51 = vrot.slane %v4924_v26, %v15289_v22  ;;  %v16690_v44 = vadd.f32 %v22914_v8, %v16508_v16 }
 0x397   : > { %22909 = vst [vmem:[#allocation182_spill] sm:$0xff] %v16659_v13  ;;  %22910 = vst [vmem:[#allocation183_spill] sm:$0xff] %v16662_v7  ;;  %8656 = vadd.xlane.f32.xlu0 %v8655_v53  ;;  %v16694_v58 = vadd.f32 %v22915_v38, %v16512_v35  ;;  %v16698_v26 = vadd.f32 %v22914_v8, %v16516_v9  ;;  %v4872_v37 = vcombine.high %v16147_v55, %v16571_v6  ;;  %v22917_v6 = vld [vmem:[#allocation107_spill] sm:$0xff]  ;;  %v16717_v7 = vpop.f32.mrb[68].mxu0 }
 0x398   : > { %22911 = vst [vmem:[#allocation184_spill] sm:$0xff] %v16665_v5  ;;  %22912 = vst [vmem:[#allocation185_spill] sm:$0xff] %v16670_v1  ;;  %v8363_v23 = vmul.f32 %v16377_v61, %v4871_v2  ;;  %v8661_v4 = vsel %vm2529_vm5, %v8489_v28, 0.0  ;;  %v16710_v47 = vadd.f32 %v16227_v15, %v15670_v40  ;;  %v4873_v55 = vcombine.low %v16158_v36, %v16577_v41  ;;  %v13774_v40 = vpop.f32.mrb[68].mxu1 }
 0x399   : > { %22913 = vst [vmem:[#allocation186_spill] sm:$0xff] %v16681_v51  ;;  %v8365_v8 = vmul.f32 %v16357_v30, %v4872_v37  ;;  %v7791_v28 = vmul.f32 %v22917_v6, %v16393_v59  ;;  %22918 = vst [vmem:[#allocation82_spill] sm:$0xff] %v16717_v7  ;;  %v16721_v2 = vadd.f32 %v22915_v38, %v16523_v14  ;;  %v4228_v59 = vpop.f32.mrb[69].mxu1 }
 0x39a   : > { %v8491_v53 = vadd.f32 %v8363_v23, %v16405_v52  ;;  %22916 = vst [vmem:[#allocation80_spill] sm:$0xff] %v16710_v47  ;;  %v16724_v52 = vadd.f32 %v16528_v54, %v13770_v57  ;;  %v22919_v15 = vcombine.low %v16235_v21, %v16267_v12  ;;  %v5251_v23 = vrot.slane %v5243_v45, %v22760_v33  ;;  %v13775_v45 = vpop.f32.mrb[70].mxu1 }
 0x39b   : > { %8662 = vadd.xlane.f32.xlu0 %v8661_v4  ;;  %v16731_v4 = vpop.f32.mrb[69].mxu0  ;;  %v16734_v37 = vadd.f32 %v16528_v54, %v4212_v60  ;;  %v8493_v61 = vadd.f32 %v8365_v8, %v16389_v29  ;;  %v8367_v38 = vmul.f32 %v16453_v3, %v4873_v55  ;;  %v4874_v57 = vcombine.high %v16158_v36, %v16577_v41  ;;  %v16756_v41 = vpop.f32.mrb[71].mxu1 }
 0x39c   : > { %v5219_v30 = vrot.slane %v22919_v15, %v22760_v33  ;;  %22920 = vst [vmem:[#allocation187_spill] sm:$0xff] %v16731_v4  ;;  %v16740_v6 = vpop.f32.mrb[70].mxu0  ;;  %v8667_v51 = vsel %vm2529_vm5, %v8491_v53, 0.0  ;;  %v16744_v15 = vadd.f32 %v16528_v54, %v13771_v25  ;;  %v16749_v29 = vadd.f32 %v16528_v54, %v4215_v34  ;;  %v22924_v34 = vld [vmem:[#allocation126_spill] sm:$0xff] }
 0x39d   : > { %22921 = vst [vmem:[#allocation188_spill] sm:$0xff] %v16740_v6  ;;  %v16746_v60 = vpop.f32.mrb[71].mxu0  ;;  %v8495_v3 = vadd.f32 %v8367_v38, %v7791_v28  ;;  %v16752_v8 = vadd.f32 %v16528_v54, %v13774_v40  ;;  %v7796_v36 = vmul.f32 %v22879_v43, %v16409_v63  ;;  %v16759_v25 = vadd.f32 %v16528_v54, %v4228_v59  ;;  %v22926_v43 = vld [vmem:[#allocation58_spill] sm:$0xff] }
 0x39e   : > { %v5275_v5 = vcombine.low %v5219_v30, %v5251_v23  ;;  %v5276_v11 = vcombine.high %v5219_v30, %v5251_v23  ;;  %22922 = vst [vmem:[#allocation189_spill] sm:$0xff] %v16746_v60  ;;  %v8673_v40 = vsel %vm2529_vm5, %v8493_v61, 0.0  ;;  %v8369_v23 = vmul.f32 %v16439_v56, %v4874_v57  ;;  %v22927_v63 = vld [vmem:[#allocation74_spill] sm:$0xff]  ;;  %v22928_v60 = vld [vmem:[#allocation77_spill] sm:$0xff] }
 0x39f   : > { %8668 = vadd.xlane.f32.xlu0 %v8667_v51  ;;  %v22923_v51 = vld [vmem:[#allocation119_spill] sm:$0xff]  ;;  %v7798_v38 = vmul.f32 %v22926_v43, %v16397_v42  ;;  %v7801_v59 = vmul.f32 %v22927_v63, %v16413_v0  ;;  %v8679_v56 = vsel %vm2529_vm5, %v8495_v3, 0.0  ;;  %v16784_v57 = vadd.f32 %v16528_v54, %v13775_v45  ;;  %v13778_v43 = vpop.f32.mrb[72].mxu1 }
 0x3a0   : > { %v8372_v53 = vmul.f32 %v16469_v27, %v5275_v5  ;;  %v8374_v55 = vmul.f32 %v16457_v48, %v5276_v11  ;;  %v22925_v30 = vcombine.high %v22923_v51, %v22924_v34  ;;  %v22929_v48 = vcombine.high %v16235_v21, %v16267_v12  ;;  %v2053_v34 = vld [vmem:[#allocation2 + $0x30] sm:$0xff]  ;;  %v22935_v45 = vld [vmem:[#allocation139_spill] sm:$0xff] }
 0x3a1   : > { %v22930_v5 = vcombine.high %v16588_v10, %v16616_v19  ;;  %v22932_v12 = vld [vmem:[#allocation73_spill] sm:$0xff]  ;;  %v22933_v10 = vld [vmem:[#allocation147_spill] sm:$0xff]  ;;  %13849 = vmatprep.mubr.msk.f32.mxu1 %vm2529_vm5, %v2053_v34  ;;  %v8497_v3 = vadd.f32 %v8369_v23, %v22935_v45 }
 0x3a2   : > { %v5122_v28 = vrot.slane %v22925_v30, %v22760_v33  ;;  %v8500_v39 = vadd.f32 %v8372_v53, %v7796_v36  ;;  %v5226_v11 = vrot.slane %v22929_v48, %v22760_v33  ;;  %v8502_v51 = vadd.f32 %v8374_v55, %v7798_v38  ;;  %v16787_v53 = vpop.f32.mrb[72].mxu0  ;;  %v4244_v55 = vpop.f32.mrb[73].mxu1 }
 0x3a3   : > { %v5258_v61 = vrot.slane %v22930_v5, %v22760_v33  ;;  %8674 = vadd.xlane.f32.xlu0 %v8673_v40  ;;  %22931 = vst [vmem:[#allocation119_spill] sm:$0xff] %v16787_v53  ;;  %v7800_v19 = vmul.f32 %v22933_v10, %v16465_v32  ;;  %v16793_v40 = vpop.f32.mrb[73].mxu0  ;;  %v4245_v5 = vadd.f32 %v16528_v54, %v4244_v55  ;;  %v22937_v32 = vld [vmem:[#allocation56_spill] sm:$0xff] }
 0x3a4   : > { %v5142_v27 = vcombine.high %v22928_v60, %v5122_v28  ;;  %v5141_v36 = vcombine.low %v22928_v60, %v5122_v28  ;;  %v8694_v21 = vsel %vm2529_vm5, %v8500_v39, 0.0  ;;  %22934 = vst [vmem:[#allocation126_spill] sm:$0xff] %v16793_v40  ;;  %v4253_v60 = vadd.f32 %v16528_v54, %v13778_v43  ;;  %v16800_v38 = vpop.f32.mrb[74].mxu0 }
 0x3a5   : > { %v5277_v48 = vcombine.low %v5226_v11, %v5258_v61  ;;  %8695 = vadd.xlane.f32.xlu1 %v8694_v21  ;;  %v7799_v39 = vmul.f32 %v22933_v10, %v16425_v46  ;;  %v5278_v28 = vcombine.high %v5226_v11, %v5258_v61  ;;  %22936 = vst [vmem:[#allocation58_spill] sm:$0xff] %v16800_v38  ;;  %v16805_v21 = vpop.f32.mrb[75].mxu0  ;;  %v8700_v23 = vsel %vm2529_vm5, %v8502_v51, 0.0  ;;  %v22957_v38 = vld [vmem:[#allocation29_spill] sm:$0xff] }
 0x3a6   : > { %v8377_v30 = vmul.f32 %v22932_v12, %v5142_v27  ;;  %v13779_v12 = vpop.f32.mrb[74].mxu1  ;;  %v8375_v34 = vmul.f32 %v22937_v32, %v5141_v36  ;;  %22938 = vst [vmem:[#allocation74_spill] sm:$0xff] %v16805_v21  ;;  %v6099_v43 = vcombine.low %v16724_v52, %v4253_v60  ;;  %v6100_v10 = vcombine.high %v16724_v52, %v4253_v60  ;;  %v22939_v32 = vld [vmem:[#allocation121_spill] sm:$0xff]  ;;  %v22940_v36 = vld [vmem:[#allocation127_spill] sm:$0xff]  ;;  %v22942_v60 = vld [vmem:[#allocation116_spill] sm:$0xff]  ;;  %v16843_v45 = vpop.f32.mrb[76].mxu0 }
 0x3a7   : > { %v8376_v0 = vmul.f32 %v16500_v49, %v5277_v48  ;;  %8680 = vadd.xlane.f32.xlu0 %v8679_v56  ;;  %v16811_v11 = vadd.f32 %v16528_v54, %v13779_v12  ;;  %v5555_v61 = vcombine.low %v16734_v37, %v4245_v5  ;;  %v22941_v48 = vcombine.low %v22939_v32, %v22940_v36  ;;  %v22948_v52 = vld [vmem:[#allocation28_spill] sm:$0xff]  ;;  %v16865_v46 = vpop.f32.mrb[77].mxu0 }
 0x3a8   : > { %v8505_v27 = vadd.f32 %v8377_v30, %v7801_v59  ;;  %v4247_v59 = vpop.f32.mrb[75].mxu1  ;;  %v5556_v30 = vcombine.high %v16734_v37, %v4245_v5  ;;  %v8685_v51 = vsel %vm2529_vm5, %v8497_v3, 0.0  ;;  %v7802_v55 = vmul.f32 %v22927_v63, %v22942_v60  ;;  %22946 = vst [vmem:[#allocation147_spill] sm:$0xff] %v16843_v45  ;;  %22955 = vst [vmem:[#allocation139_spill] sm:$0xff] %v16865_v46  ;;  %v16872_v21 = vpop.f32.mrb[78].mxu0 }
 0x3a9   : > { %v8504_v49 = vadd.f32 %v8376_v0, %v7800_v19  ;;  %v16819_v56 = vrot.slane %v22941_v48, %v22760_v33  ;;  %8701 = vadd.xlane.f32.xlu1 %v8700_v23  ;;  %v16830_v37 = vrot.slane %v6099_v43, %v15289_v22  ;;  %v16833_v19 = vrot.slane %v6100_v10, %v15289_v22  ;;  %v22945_v48 = vld [vmem:[#allocation146_spill] sm:$0xff]  ;;  %v22949_v10 = vld [vmem:[#allocation171_spill] sm:$0xff]  ;;  %v16882_v53 = vpop.f32.mrb[79].mxu0 }
 0x3aa   : > { %v8709_v0 = vsel %vm2529_vm5, %v8505_v27, 0.0  ;;  %v8503_v5 = vadd.f32 %v8375_v34, %v7799_v39  ;;  %v16836_v3 = vrot.slane %v5555_v61, %v15289_v22  ;;  %v16840_v23 = vadd.f32 %v16528_v54, %v4247_v59  ;;  %v22947_v27 = vld [vmem:[#allocation64_spill] sm:$0xff]  ;;  %v13782_v61 = vpop.f32.mrb[76].mxu1  ;;  %22956 = vst [vmem:[#allocation56_spill] sm:$0xff] %v16872_v21  ;;  %22958 = vst [vmem:[#allocation121_spill] sm:$0xff] %v16882_v53 }
 0x3ab   : > { %22943 = vst [vmem:[#allocation77_spill] sm:$0xff] %v16830_v37  ;;  %8686 = vadd.xlane.f32.xlu0 %v8685_v51  ;;  %v8706_v12 = vsel %vm2529_vm5, %v8504_v49, 0.0  ;;  %v8378_v63 = vmul.f32 %v22945_v48, %v5278_v28  ;;  %v5144_v43 = vcombine.high %v22947_v27, %v16819_v56  ;;  %v22950_v39 = vcombine.high %v22949_v10, %v22949_v10  ;;  %v22951_v51 = vld [vmem:[#allocation149_spill] sm:$0xff]  ;;  %v22952_v49 = vld [vmem:[#allocation156_spill] sm:$0xff] }
 0x3ac   : > { %22944 = vst [vmem:[#allocation73_spill] sm:$0xff] %v16836_v3  ;;  %v22953_v60 = vcombine.low %v22951_v51, %v22952_v49  ;;  %v22954_v28 = vcombine.low %v16591_v50, %v16619_v18  ;;  %v4269_v45 = vadd.f32 %v16528_v54, %v13782_v61 }
 0x3ad   : > { %v16851_v34 = vrot.slane %v22950_v39, %v22948_v52  ;;  %8707 = vadd.xlane.f32.xlu1 %v8706_v12  ;;  %v8506_v42 = vadd.f32 %v8378_v63, %v7802_v55  ;;  %v16885_v55 = vrot.slane %v5556_v30, %v15289_v22  ;;  %v8703_v63 = vsel %vm2529_vm5, %v8503_v5, 0.0 }
 0x3ae   : > { %v16857_v59 = vrot.slane %v22953_v60, %v22760_v33  ;;  %v16863_v48 = vrot.slane %v22954_v28, %v22760_v33  ;;  %v4260_v60 = vpop.f32.mrb[77].mxu1  ;;  %v8381_v28 = vmul.f32 %v16690_v44, %v5144_v43  ;;  %v6115_v39 = vcombine.low %v16752_v8, %v4269_v45 }
 0x3af   : > { %v16876_v40 = vrot.slane %v16851_v34, %v22957_v38  ;;  %v4261_v12 = vadd.f32 %v16528_v54, %v4260_v60  ;;  %v13783_v46 = vpop.f32.mrb[78].mxu1  ;;  %8710 = vadd.xlane.f32.xlu0 %v8709_v0  ;;  %22959 = vst [vmem:[#allocation127_spill] sm:$0xff] %v16885_v55  ;;  %v8712_v61 = vsel %vm2529_vm5, %v8506_v42, 0.0  ;;  %v6116_v43 = vcombine.high %v16752_v8, %v4269_v45  ;;  %v22961_v42 = vld [vmem:[#allocation55_spill] sm:$0xff] }
 0x3b0   : > { %v5279_v10 = vcombine.low %v16857_v59, %v16863_v48  ;;  %v4263_v21 = vpop.f32.mrb[79].mxu1  ;;  %v16896_v30 = vrot.slane %v6115_v39, %v15289_v22  ;;  %v4272_v0 = vadd.f32 %v16528_v54, %v13783_v46  ;;  %v7526_v5 = vrot.slane %v22961_v42, %v22957_v38 }
 0x3b1   : > { %v7805_v44 = vmul.f32 %v16876_v40, %v16508_v16  ;;  %v5571_v60 = vcombine.low %v16759_v25, %v4261_v12  ;;  %v5572_v53 = vcombine.high %v16759_v25, %v4261_v12  ;;  %8713 = vadd.xlane.f32.xlu1 %v8712_v61  ;;  %v16903_v16 = vrot.slane %v6116_v43, %v15289_v22  ;;  %v16927_v61 = vpop.f32.mrb[80].mxu1 }
 0x3b2   : > { %22960 = vst [vmem:[#allocation146_spill] sm:$0xff] %v16896_v30  ;;  %v8380_v6 = vmul.f32 %v16721_v2, %v5279_v10  ;;  %v6387_v39 = vcombine.low %v16784_v57, %v4272_v0  ;;  %v6388_v2 = vcombine.high %v16784_v57, %v4272_v0  ;;  %v16917_v10 = vpop.f32.mrb[80].mxu0  ;;  %v22966_v57 = vcombine.low %v16744_v15, %v16811_v11 }
 0x3b3   : > { %v8509_v4 = vadd.f32 %v8381_v28, %v7805_v44  ;;  %v16906_v8 = vrot.slane %v5571_v60, %v15289_v22  ;;  %v16909_v25 = vrot.slane %v5572_v53, %v15289_v22  ;;  %8704 = vadd.xlane.f32.xlu0 %v8703_v63  ;;  %22964 = vst [vmem:[#allocation171_spill] sm:$0xff] %v16917_v10  ;;  %v16929_v44 = vpop.f32.mrb[81].mxu0  ;;  %v16943_v63 = vpop.f32.mrb[81].mxu1 }
 0x3b4   : > { %v4232_v28 = vadd.f32 %v16528_v54, %v16756_v41  ;;  %22965 = vst [vmem:[#allocation149_spill] sm:$0xff] %v16929_v44  ;;  %v16935_v43 = vrot.slane %v22966_v57, %v15289_v22  ;;  %v16945_v45 = vpop.f32.mrb[82].mxu0  ;;  %v22969_v12 = vcombine.high %v16744_v15, %v16811_v11  ;;  %v16955_v41 = vrot.slane %v6387_v39, %v15289_v22  ;;  %v16960_v46 = vpop.f32.mrb[82].mxu1  ;;  %v16985_v39 = vld [vmem:[%s22696_s0] ss:$0 sm:$0xff] }
 0x3b5   : > { %22962 = vst [vmem:[#allocation64_spill] sm:$0xff] %v16906_v8  ;;  %22963 = vst [vmem:[#allocation28_spill] sm:$0xff] %v16909_v25  ;;  %v8721_v57 = vsel %vm2529_vm5, %v8509_v4, 0.0  ;;  %v16958_v60 = vrot.slane %v6388_v2, %v15289_v22  ;;  %v16962_v0 = vpop.f32.mrb[83].mxu0  ;;  %v7804_v25 = vmul.f32 %v7526_v5, %v16523_v14  ;;  %v5143_v15 = vcombine.low %v22947_v27, %v16819_v56  ;;  %v22975_v2 = vld [vmem:[#allocation148_spill] sm:$0xff] }
 0x3b6   : > { %22967 = vst [vmem:[#allocation156_spill] sm:$0xff] %v16935_v43  ;;  %22968 = vst [vmem:[#allocation29_spill] sm:$0xff] %v16945_v45  ;;  %v16951_v53 = vrot.slane %v22969_v12, %v15289_v22  ;;  %v7803_v11 = vmul.f32 %v7526_v5, %v16512_v35  ;;  %v4264_v4 = vadd.f32 %v16528_v54, %v4263_v21  ;;  %v16969_v12 = vpop.f32.mrb[83].mxu1  ;;  %v22974_v21 = vld [vmem:[#allocation85_spill] sm:$0xff]  ;;  %v22999_v45 = vld [vmem:[#allocation94_spill] sm:$0xff] }
 0x3b7   : > { %22971 = vst [vmem:[#allocation190_spill] sm:$0xff] %v16955_v41  ;;  %22972 = vst [vmem:[#allocation191_spill] sm:$0xff] %v16958_v60  ;;  %8722 = vadd.xlane.f32.xlu0 %v8721_v57  ;;  %v8508_v55 = vadd.f32 %v8380_v6, %v7804_v25  ;;  %v8379_v56 = vmul.f32 %v16694_v58, %v5143_v15  ;;  %v8257_v35 = vadd.f32 %v22974_v21, %v16710_v47  ;;  %v17010_v57 = vpop.f32.mrb[84].mxu0 }
 0x3b8   : > { %22970 = vst [vmem:[#allocation55_spill] sm:$0xff] %v16951_v53  ;;  %22973 = vst [vmem:[#allocation192_spill] sm:$0xff] %v16962_v0  ;;  %v5843_v27 = vcombine.low %v4232_v28, %v4264_v4  ;;  %v5844_v5 = vcombine.high %v4232_v28, %v4264_v4  ;;  %v16989_v8 = vadd.f32 %v16985_v39, %v22975_v2 }
 0x3b9   : > { %v22977_v6 = vcombine.low %v16749_v29, %v16840_v23  ;;  %v22979_v58 = vcombine.high %v16749_v29, %v16840_v23  ;;  %v8718_v15 = vsel %vm2529_vm5, %v8508_v55, 0.0  ;;  %v8507_v4 = vadd.f32 %v8379_v56, %v7803_v11  ;;  %22983 = vst [vmem:[#allocation196_spill] sm:$0xff] %v17010_v57  ;;  %v17022_v56 = vpop.f32.mrb[84].mxu1  ;;  %v22998_v57 = vld [vmem:[#allocation83_spill] sm:$0xff] }
 0x3ba   : > { %22976 = vst [vmem:[#allocation85_spill] sm:$0xff] %v16989_v8  ;;  %v17005_v14 = vrot.slane %v5843_v27, %v15289_v22  ;;  %v17008_v2 = vrot.slane %v5844_v5, %v15289_v22  ;;  %8719 = vadd.xlane.f32.xlu1 %v8718_v15  ;;  %v7806_v29 = vmul.f32 %v16876_v40, %v16516_v9  ;;  %22985 = vst [vmem:[#allocation197_spill] sm:$0xff] %v17022_v56  ;;  %v17024_v27 = vpop.f32.mrb[85].mxu0  ;;  %v22989_v15 = vld [vmem:[#allocation172_spill] sm:$0xff]  ;;  %v22992_v9 = vld [vmem:[#allocation155_spill] sm:$0xff] }
 0x3bb   : > { %v16995_v25 = vrot.slane %v22977_v6, %v15289_v22  ;;  %v17001_v28 = vrot.slane %v22979_v58, %v15289_v22  ;;  %v5280_v6 = vcombine.high %v16857_v59, %v16863_v48  ;;  %v22984_v23 = vcombine.high %v22939_v32, %v22940_v36  ;;  %22986 = vst [vmem:[#allocation198_spill] sm:$0xff] %v17024_v27  ;;  %v17033_v32 = vpop.f32.mrb[85].mxu1  ;;  %v17035_v36 = vpop.f32.mrb[86].mxu0  ;;  %v23004_v27 = vld [vmem:[#allocation152_spill] sm:$0xff]  ;;  %v23017_v56 = vld [vmem:[#allocation42_spill] sm:$0xff] }
 0x3bc   : > { %22981 = vst [vmem:[#allocation194_spill] sm:$0xff] %v17005_v14  ;;  %22982 = vst [vmem:[#allocation195_spill] sm:$0xff] %v17008_v2  ;;  %v6797_v11 = vcombine.high %v16851_v34, %v16851_v34  ;;  %v8715_v5 = vsel %vm2529_vm5, %v8507_v4, 0.0  ;;  %v17042_v59 = vpop.f32.mrb[86].mxu1  ;;  %v17044_v40 = vpop.f32.mrb[87].mxu0  ;;  %v17048_v48 = vadd.f32 %v16985_v39, %v22992_v9  ;;  %v22994_v14 = vld [vmem:[#allocation95_spill] sm:$0xff]  ;;  %v7243_v0 = vcombine.high %v22998_v57, %v22998_v57 }
 0x3bd   : > { %22978 = vst [vmem:[#allocation148_spill] sm:$0xff] %v16995_v25  ;;  %22980 = vst [vmem:[#allocation193_spill] sm:$0xff] %v17001_v28  ;;  %v5138_v55 = vrot.slane %v22984_v23, %v22760_v33  ;;  %8716 = vadd.xlane.f32.xlu0 %v8715_v5  ;;  %v8382_v58 = vmul.f32 %v16698_v26, %v5280_v6  ;;  %v17052_v5 = vrot.slane %v22994_v14, %v22957_v38  ;;  %v22995_v25 = vld [vmem:[#allocation101_spill] sm:$0xff]  ;;  %v17060_v6 = vpop.f32.mrb[87].mxu1 }
 0x3be   : > { %22987 = vst [vmem:[#allocation199_spill] sm:$0xff] %v17033_v32  ;;  %22988 = vst [vmem:[#allocation200_spill] sm:$0xff] %v17035_v36  ;;  %v7538_v23 = vrot.slane %v6797_v11, %v22957_v38  ;;  %v6813_v34 = vcombine.high %v22995_v25, %v22995_v25  ;;  %v17058_v26 = vrot.slane %v22995_v25, %v22948_v52 }
 0x3bf   : > { %v5146_v4 = vcombine.high %v22989_v15, %v5138_v55  ;;  %22990 = vst [vmem:[#allocation172_spill] sm:$0xff] %v17042_v59  ;;  %22991 = vst [vmem:[#allocation201_spill] sm:$0xff] %v17044_v40  ;;  %v7245_v11 = vcombine.high %v22994_v14, %v22994_v14  ;;  %v8510_v40 = vadd.f32 %v8382_v58, %v7806_v29  ;;  %v23001_v14 = vld [vmem:[#allocation30_spill] sm:$0xff] }
 0x3c0   : > { %22993 = vst [vmem:[#allocation155_spill] sm:$0xff] %v17048_v48  ;;  %22996 = vst [vmem:[#allocation95_spill] sm:$0xff] %v17060_v6  ;;  %v7809_v9 = vmul.f32 %v7538_v23, %v16710_v47  ;;  %v23000_v25 = vcombine.high %v22999_v45, %v22999_v45  ;;  %v17077_v10 = vrot.slane %v22999_v45, %v22948_v52 }
 0x3c1   : > { %v8385_v3 = vmul.f32 %v8257_v35, %v5146_v4  ;;  %v17081_v29 = vadd.f32 %v16985_v39, %v23001_v14  ;;  %v23003_v35 = vld [vmem:[#allocation86_spill] sm:$0xff]  ;;  %v8724_v4 = vsel %vm2529_vm5, %v8510_v40, 0.0  ;;  %v17088_v47 = vadd.f32 %v16985_v39, %v23004_v27  ;;  %v17100_v40 = vpop.f32.mrb[88].mxu0 }
 0x3c2   : > { %v17073_v44 = vrot.slane %v23000_v25, %v22948_v52  ;;  %v8255_v58 = vadd.f32 %v23003_v35, %v16989_v8  ;;  %v8256_v25 = vadd.f32 %v23003_v35, %v17048_v48  ;;  %8725 = vadd.xlane.f32.xlu1 %v8724_v4  ;;  %v23006_v45 = vcombine.high %v22951_v51, %v22952_v49  ;;  %v17109_v4 = vpop.f32.mrb[88].mxu1  ;;  %v17111_v51 = vpop.f32.mrb[89].mxu0  ;;  %v23010_v49 = vld [vmem:[#allocation31_spill] sm:$0xff] }
 0x3c3   : > { %23002 = vst [vmem:[#allocation101_spill] sm:$0xff] %v17081_v29  ;;  %v8513_v57 = vadd.f32 %v8385_v3, %v7809_v9  ;;  %23005 = vst [vmem:[#allocation83_spill] sm:$0xff] %v17088_v47  ;;  %v23007_v6 = vcombine.high %v16591_v50, %v16619_v18  ;;  %v17103_v3 = vrot.slane %v7245_v11, %v22957_v38 }
 0x3c4   : > { %v5242_v14 = vrot.slane %v23006_v45, %v22760_v33  ;;  %23008 = vst [vmem:[#allocation94_spill] sm:$0xff] %v17100_v40  ;;  %v6795_v9 = vcombine.high %v22961_v42, %v22961_v42  ;;  %v5145_v35 = vcombine.low %v22989_v15, %v5138_v55  ;;  %23009 = vst [vmem:[#allocation30_spill] sm:$0xff] %v17111_v51  ;;  %v17124_v42 = vpop.f32.mrb[89].mxu1  ;;  %v17126_v55 = vpop.f32.mrb[90].mxu0  ;;  %v23013_v15 = vld [vmem:[#allocation35_spill] sm:$0xff] }
 0x3c5   : > { %v5274_v59 = vrot.slane %v23007_v6, %v22760_v33  ;;  %v8733_v27 = vsel %vm2529_vm5, %v8513_v57, 0.0  ;;  %v17115_v50 = vadd.f32 %v16985_v39, %v23010_v49  ;;  %v17118_v18 = vrot.slane %v7243_v0, %v22957_v38  ;;  %23012 = vst [vmem:[#allocation152_spill] sm:$0xff] %v17126_v55  ;;  %v23014_v45 = vld [vmem:[#allocation159_spill] sm:$0xff]  ;;  %v17137_v51 = vpop.f32.mrb[90].mxu1  ;;  %v17139_v32 = vpop.f32.mrb[91].mxu0 }
 0x3c6   : > { %v17122_v6 = vrot.slane %v17077_v10, %v22957_v38  ;;  %8734 = vadd.xlane.f32.xlu0 %v8733_v27  ;;  %v17130_v57 = vadd.f32 %v23013_v15, %v17081_v29  ;;  %v17134_v49 = vadd.f32 %v16985_v39, %v23014_v45  ;;  %v7534_v0 = vrot.slane %v6795_v9, %v22957_v38  ;;  %v17149_v45 = vpop.f32.mrb[91].mxu1  ;;  %v17185_v53 = vpop.f32.mrb[92].mxu0 }
 0x3c7   : > { %23011 = vst [vmem:[#allocation86_spill] sm:$0xff] %v17115_v50  ;;  %v5281_v11 = vcombine.low %v5242_v14, %v5274_v59  ;;  %v8383_v40 = vmul.f32 %v8255_v58, %v5145_v35  ;;  %23016 = vst [vmem:[#allocation35_spill] sm:$0xff] %v17139_v32  ;;  %v8258_v27 = vadd.f32 %v22974_v21, %v17088_v47  ;;  %v23019_v32 = vld [vmem:[#allocation44_spill] sm:$0xff]  ;;  %v17195_v1 = vpop.f32.mrb[93].mxu0 }
 0x3c8   : > { %23015 = vst [vmem:[#allocation31_spill] sm:$0xff] %v17134_v49  ;;  %v17145_v55 = vrot.slane %v17073_v44, %v22957_v38  ;;  %v7246_v15 = vcombine.high %v17073_v44, %v17073_v44  ;;  %v17153_v58 = vadd.f32 %v16985_v39, %v23017_v56  ;;  %v7244_v9 = vcombine.high %v17077_v10, %v17077_v10 }
 0x3c9   : > { %v8384_v22 = vmul.f32 %v8256_v25, %v5281_v11  ;;  %v7808_v35 = vmul.f32 %v7534_v0, %v17048_v48  ;;  %v7807_v21 = vmul.f32 %v7534_v0, %v16989_v8  ;;  %v17161_v36 = vadd.f32 %v16985_v39, %v23019_v32  ;;  %v23021_v25 = vld [vmem:[#allocation67_spill] sm:$0xff]  ;;  %v23024_v48 = vld [vmem:[#allocation124_spill] sm:$0xff]  ;;  %v23025_v0 = vld [vmem:[#allocation129_spill] sm:$0xff] }
 0x3ca   : > { %23018 = vst [vmem:[#allocation159_spill] sm:$0xff] %v17153_v58  ;;  %v5282_v7 = vcombine.high %v5242_v14, %v5274_v59  ;;  %v7810_v44 = vmul.f32 %v7538_v23, %v17088_v47  ;;  %v23022_v11 = vld [vmem:[#allocation71_spill] sm:$0xff]  ;;  %v8261_v2 = vadd.f32 %v17052_v5, %v17134_v49  ;;  %v23026_v8 = vcombine.low %v23024_v48, %v23025_v0  ;;  %v23029_v23 = vld [vmem:[#allocation160_spill] sm:$0xff] }
 0x3cb   : > { %23020 = vst [vmem:[#allocation42_spill] sm:$0xff] %v17161_v36  ;;  %v23023_v13 = vcombine.low %v23021_v25, %v23022_v11  ;;  %v8512_v10 = vadd.f32 %v8384_v22, %v7808_v35  ;;  %v8511_v28 = vadd.f32 %v8383_v40, %v7807_v21  ;;  %v23027_v32 = vld [vmem:[#allocation59_spill] sm:$0xff]  ;;  %v17180_v14 = vadd.f32 %v16985_v39, %v23029_v23  ;;  %v23032_v22 = vld [vmem:[#allocation61_spill] sm:$0xff] }
 0x3cc   : > { %v5387_v60 = vrot.slane %v23026_v8, %v22760_v33  ;;  %v17176_v59 = vadd.f32 %v16985_v39, %v23027_v32  ;;  %v8386_v47 = vmul.f32 %v8258_v27, %v5282_v7  ;;  %23031 = vst [vmem:[#allocation71_spill] sm:$0xff] %v17185_v53  ;;  %v17189_v40 = vadd.f32 %v16985_v39, %v23032_v22  ;;  %v17193_v32 = vpop.f32.mrb[92].mxu1  ;;  %v23036_v7 = vld [vmem:[#allocation34_spill] sm:$0xff] }
 0x3cd   : > { %v5355_v56 = vrot.slane %v23023_v13, %v22760_v33  ;;  %23030 = vst [vmem:[#allocation67_spill] sm:$0xff] %v17180_v14  ;;  %v17183_v13 = vrot.slane %v6813_v34, %v22948_v52  ;;  %v8730_v8 = vsel %vm2529_vm5, %v8512_v10, 0.0  ;;  %v8727_v35 = vsel %vm2529_vm5, %v8511_v28, 0.0  ;;  %23034 = vst [vmem:[#allocation129_spill] sm:$0xff] %v17193_v32  ;;  %v17205_v22 = vpop.f32.mrb[93].mxu1  ;;  %v17207_v10 = vpop.f32.mrb[94].mxu0 }
 0x3ce   : > { %23028 = vst [vmem:[#allocation44_spill] sm:$0xff] %v17176_v59  ;;  %23033 = vst [vmem:[#allocation124_spill] sm:$0xff] %v17189_v40  ;;  %v17199_v27 = vadd.f32 %v23036_v7, %v17115_v50  ;;  %8731 = vadd.xlane.f32.xlu1 %v8730_v8  ;;  %8728 = vadd.xlane.f32.xlu0 %v8727_v35  ;;  %v8514_v34 = vadd.f32 %v8386_v47, %v7810_v44  ;;  %v23041_v28 = vld [vmem:[#allocation63_spill] sm:$0xff]  ;;  %v17219_v47 = vpop.f32.mrb[94].mxu1  ;;  %v17221_v44 = vpop.f32.mrb[95].mxu0  ;;  %v23045_v35 = vld [vmem:[#allocation41_spill] sm:$0xff] }
 0x3cf   : > { %v5412_v21 = vcombine.high %v5355_v56, %v5387_v60  ;;  %23035 = vst [vmem:[#allocation59_spill] sm:$0xff] %v17195_v1  ;;  %v17203_v23 = vrot.slane %v17183_v13, %v22957_v38  ;;  %23039 = vst [vmem:[#allocation34_spill] sm:$0xff] %v17205_v22  ;;  %v17211_v53 = vadd.f32 %v16985_v39, %v23041_v28  ;;  %v23048_v28 = vld [vmem:[#allocation96_spill] sm:$0xff]  ;;  %v17235_v22 = vpop.f32.mrb[95].mxu1 }
 0x3d0   : > { %23037 = vst [vmem:[#allocation160_spill] sm:$0xff] %v17199_v27  ;;  %23040 = vst [vmem:[#allocation202_spill] sm:$0xff] %v17207_v10  ;;  %v17214_v1 = vrot.slane %v7246_v15, %v22957_v38  ;;  %v17217_v7 = vrot.slane %v7244_v9, %v22957_v38  ;;  %v17225_v27 = vadd.f32 %v23045_v35, %v17153_v58  ;;  %v23046_v10 = vld [vmem:[#allocation66_spill] sm:$0xff]  ;;  %v8736_v32 = vsel %vm2529_vm5, %v8514_v34, 0.0  ;;  %v23063_v34 = vld [vmem:[#allocation75_spill] sm:$0xff] }
 0x3d1   : > { %23038 = vst [vmem:[#allocation61_spill] sm:$0xff] %v17203_v23  ;;  %23042 = vst [vmem:[#allocation63_spill] sm:$0xff] %v17211_v53  ;;  %v8389_v8 = vmul.f32 %v8261_v2, %v5412_v21  ;;  %v17229_v50 = vadd.f32 %v16985_v39, %v23046_v10  ;;  %v8259_v15 = vadd.f32 %v23048_v28, %v17180_v14  ;;  %v23050_v2 = vld [vmem:[#allocation36_spill] sm:$0xff] }
 0x3d2   : > { %23043 = vst [vmem:[#allocation203_spill] sm:$0xff] %v17219_v47  ;;  %23044 = vst [vmem:[#allocation204_spill] sm:$0xff] %v17221_v44  ;;  %v7813_v9 = vmul.f32 %v17203_v23, %v17134_v49  ;;  %v17239_v21 = vadd.f32 %v23050_v2, %v17161_v36  ;;  %v23051_v44 = vld [vmem:[#allocation38_spill] sm:$0xff]  ;;  %v23053_v47 = vld [vmem:[#allocation37_spill] sm:$0xff]  ;;  %8737 = vadd.xlane.f32.xlu1 %v8736_v32  ;;  %v23059_v2 = vcombine.low %v16598_v20, %v16623_v31 }
 0x3d3   : > { %23047 = vst [vmem:[#allocation41_spill] sm:$0xff] %v17229_v50  ;;  %23049 = vst [vmem:[#allocation66_spill] sm:$0xff] %v17235_v22  ;;  %v17243_v35 = vadd.f32 %v23051_v44, %v17176_v59  ;;  %v17247_v10 = vadd.f32 %v23053_v47, %v17189_v40  ;;  %v23055_v49 = vld [vmem:[#allocation150_spill] sm:$0xff]  ;;  %v23056_v23 = vld [vmem:[#allocation157_spill] sm:$0xff]  ;;  %v17268_v32 = vadd.f32 %v16985_v39, %v23063_v34  ;;  %v17285_v34 = vpop.f32.mrb[96].mxu0 }
 0x3d4   : > { %v8517_v62 = vadd.f32 %v8389_v8, %v7813_v9  ;;  %v23057_v22 = vcombine.low %v23055_v49, %v23056_v23  ;;  %v17260_v44 = vrot.slane %v23059_v2, %v22760_v33  ;;  %v23061_v47 = vld [vmem:[#allocation43_spill] sm:$0xff]  ;;  %v23065_v8 = vld [vmem:[#allocation78_spill] sm:$0xff] }
 0x3d5   : > { %23052 = vst [vmem:[#allocation96_spill] sm:$0xff] %v17243_v35  ;;  %23054 = vst [vmem:[#allocation36_spill] sm:$0xff] %v17247_v10  ;;  %v5411_v35 = vcombine.low %v5355_v56, %v5387_v60  ;;  %v17264_v59 = vadd.f32 %v23061_v47, %v17211_v53  ;;  %v17272_v9 = vadd.f32 %v16985_v39, %v23065_v8  ;;  %v23068_v2 = vld [vmem:[#allocation39_spill] sm:$0xff]  ;;  %v23073_v53 = vld [vmem:[#allocation92_spill] sm:$0xff] }
 0x3d6   : > { %v17254_v41 = vrot.slane %v23057_v22, %v22760_v33  ;;  %23060 = vst [vmem:[#allocation37_spill] sm:$0xff] %v17260_v44  ;;  %23064 = vst [vmem:[#allocation157_spill] sm:$0xff] %v17268_v32  ;;  %v17276_v22 = vrot.slane %v17058_v26, %v22957_v38  ;;  %v17280_v10 = vadd.f32 %v23068_v2, %v17229_v50  ;;  %v8745_v60 = vsel %vm2529_vm5, %v8517_v62, 0.0  ;;  %v23075_v2 = vld [vmem:[#allocation50_spill] sm:$0xff]  ;;  %v17299_v50 = vpop.f32.mrb[96].mxu1 }
 0x3d7   : > { %23062 = vst [vmem:[#allocation150_spill] sm:$0xff] %v17264_v59  ;;  %23066 = vst [vmem:[#allocation43_spill] sm:$0xff] %v17272_v9  ;;  %v8387_v47 = vmul.f32 %v8259_v15, %v5411_v35  ;;  %v23071_v59 = vld [vmem:[#allocation88_spill] sm:$0xff]  ;;  %v17293_v40 = vadd.f32 %v16985_v39, %v23073_v53  ;;  %8746 = vadd.xlane.f32.xlu0 %v8745_v60  ;;  %v17301_v15 = vpop.f32.mrb[97].mxu0  ;;  %v23078_v35 = vld [vmem:[#allocation109_spill] sm:$0xff] }
 0x3d8   : > { %23058 = vst [vmem:[#allocation38_spill] sm:$0xff] %v17254_v41  ;;  %23067 = vst [vmem:[#allocation75_spill] sm:$0xff] %v17276_v22  ;;  %v4732_v56 = vcombine.high %v17254_v41, %v17260_v44  ;;  %v17289_v8 = vadd.f32 %v16985_v39, %v23071_v59  ;;  %v7811_v62 = vmul.f32 %v17276_v22, %v17180_v14  ;;  %v23080_v59 = vld [vmem:[#allocation112_spill] sm:$0xff]  ;;  %v23082_v53 = vld [vmem:[#allocation118_spill] sm:$0xff]  ;;  %v17318_v14 = vpop.f32.mrb[98].mxu0 }
 0x3d9   : > { %23069 = vst [vmem:[#allocation78_spill] sm:$0xff] %v17280_v10  ;;  %23070 = vst [vmem:[#allocation39_spill] sm:$0xff] %v17285_v34  ;;  %v7766_v10 = vmul.f32 %v23075_v2, %v17081_v29  ;;  %v17305_v34 = vadd.f32 %v16985_v39, %v23078_v35  ;;  %v17309_v41 = vadd.f32 %v16985_v39, %v23080_v59  ;;  %v17316_v29 = vpop.f32.mrb[97].mxu1  ;;  %v23088_v35 = vld [vmem:[#allocation45_spill] sm:$0xff]  ;;  %v23090_v59 = vld [vmem:[#allocation120_spill] sm:$0xff] }
 0x3da   : > { %23072 = vst [vmem:[#allocation88_spill] sm:$0xff] %v17289_v8  ;;  %23074 = vst [vmem:[#allocation92_spill] sm:$0xff] %v17293_v40  ;;  %v17313_v60 = vadd.f32 %v16985_v39, %v23082_v53  ;;  %v8342_v2 = vmul.f32 %v17130_v57, %v4732_v56  ;;  %v17326_v22 = vadd.f32 %v23088_v35, %v17272_v9  ;;  %v17332_v43 = vpop.f32.mrb[98].mxu1  ;;  %v17334_v57 = vpop.f32.mrb[99].mxu0  ;;  %v23094_v56 = vld [vmem:[#allocation123_spill] sm:$0xff] }
 0x3db   : > { %23076 = vst [vmem:[#allocation50_spill] sm:$0xff] %v17299_v50  ;;  %23077 = vst [vmem:[#allocation205_spill] sm:$0xff] %v17301_v15  ;;  %v23086_v15 = vld [vmem:[#allocation40_spill] sm:$0xff]  ;;  %v17330_v44 = vadd.f32 %v16985_v39, %v23090_v59  ;;  %v8515_v53 = vadd.f32 %v8387_v47, %v7811_v62  ;;  %v17348_v59 = vpop.f32.mrb[99].mxu1  ;;  %v23101_v47 = vld [vmem:[#allocation46_spill] sm:$0xff] }
 0x3dc   : > { %23079 = vst [vmem:[#allocation109_spill] sm:$0xff] %v17305_v34  ;;  %23081 = vst [vmem:[#allocation112_spill] sm:$0xff] %v17309_v41  ;;  %v17322_v50 = vadd.f32 %v23086_v15, %v17268_v32  ;;  %v8470_v32 = vadd.f32 %v8342_v2, %v7766_v10  ;;  %v17352_v62 = vadd.f32 %v23101_v47, %v17289_v8  ;;  %v23108_v2 = vld [vmem:[#allocation49_spill] sm:$0xff]  ;;  %v23134_v8 = vld [vmem:[#allocation135_spill] sm:$0xff] }
 0x3dd   : > { %23083 = vst [vmem:[#allocation118_spill] sm:$0xff] %v17313_v60  ;;  %23084 = vst [vmem:[#allocation206_spill] sm:$0xff] %v17316_v29  ;;  %v23096_v29 = vld [vmem:[#allocation165_spill] sm:$0xff]  ;;  %v17371_v47 = vadd.f32 %v23108_v2, %v17309_v41 }
 0x3de   : > { %23085 = vst [vmem:[#allocation207_spill] sm:$0xff] %v17318_v14  ;;  %23087 = vst [vmem:[#allocation40_spill] sm:$0xff] %v17322_v50  ;;  %v17338_v14 = vadd.f32 %v16985_v39, %v23094_v56  ;;  %v17342_v15 = vadd.f32 %v16985_v39, %v23096_v29  ;;  %v23098_v50 = vld [vmem:[#allocation169_spill] sm:$0xff]  ;;  %v8739_v56 = vsel %vm2529_vm5, %v8515_v53, 0.0  ;;  %v23105_v29 = vcombine.high %v23021_v25, %v23022_v11 }
 0x3df   : > { %23089 = vst [vmem:[#allocation45_spill] sm:$0xff] %v17326_v22  ;;  %23091 = vst [vmem:[#allocation120_spill] sm:$0xff] %v17330_v44  ;;  %v17346_v35 = vadd.f32 %v16985_v39, %v23098_v50  ;;  %v23103_v22 = vld [vmem:[#allocation47_spill] sm:$0xff]  ;;  %v23106_v50 = vld [vmem:[#allocation48_spill] sm:$0xff]  ;;  %8740 = vadd.xlane.f32.xlu0 %v8739_v56  ;;  %v23110_v25 = vcombine.high %v23055_v49, %v23056_v23  ;;  %v23111_v53 = vcombine.high %v16598_v20, %v16623_v31 }
 0x3e0   : > { %23092 = vst [vmem:[#allocation208_spill] sm:$0xff] %v17332_v43  ;;  %23093 = vst [vmem:[#allocation209_spill] sm:$0xff] %v17334_v57  ;;  %v17356_v9 = vadd.f32 %v23103_v22, %v17293_v40  ;;  %v17363_v57 = vrot.slane %v23105_v29, %v22760_v33  ;;  %v17367_v10 = vadd.f32 %v23106_v50, %v17305_v34  ;;  %v23115_v23 = vld [vmem:[#allocation53_spill] sm:$0xff]  ;;  %v23226_v43 = vld [vmem:[#allocation124_spill] sm:$0xff] }
 0x3e1   : > { %23095 = vst [vmem:[#allocation123_spill] sm:$0xff] %v17338_v14  ;;  %23097 = vst [vmem:[#allocation165_spill] sm:$0xff] %v17342_v15  ;;  %v8265_v22 = vadd.f32 %v17103_v3, %v17313_v60  ;;  %v17380_v11 = vrot.slane %v23110_v25, %v22760_v33  ;;  %v17386_v29 = vrot.slane %v23111_v53, %v22760_v33 }
 0x3e2   : > { %23099 = vst [vmem:[#allocation169_spill] sm:$0xff] %v17346_v35  ;;  %23100 = vst [vmem:[#allocation210_spill] sm:$0xff] %v17348_v59  ;;  %v23112_v50 = vcombine.high %v23024_v48, %v23025_v0  ;;  %v17402_v56 = vadd.f32 %v23115_v23, %v17338_v14  ;;  %v17406_v20 = vadd.f32 %v17052_v5, %v17342_v15  ;;  %v17412_v48 = vpop.f32.mrb[100].mxu0  ;;  %v23120_v0 = vld [vmem:[#allocation138_spill] sm:$0xff]  ;;  %v17425_v5 = vpop.f32.mrb[100].mxu1  ;;  %v23282_v15 = vld [vmem:[#allocation96_spill] sm:$0xff] }
 0x3e3   : > { %23102 = vst [vmem:[#allocation46_spill] sm:$0xff] %v17352_v62  ;;  %23104 = vst [vmem:[#allocation47_spill] sm:$0xff] %v17356_v9  ;;  %v8604_v62 = vsel %vm2529_vm5, %v8470_v32, 0.0  ;;  %v6845_v32 = vcombine.high %v17183_v13, %v17183_v13  ;;  %v17410_v31 = vadd.f32 %v23048_v28, %v17346_v35  ;;  %v17416_v13 = vadd.f32 %v16985_v39, %v23120_v0  ;;  %v23125_v28 = vld [vmem:[#allocation145_spill] sm:$0xff]  ;;  %v23136_v9 = vld [vmem:[#allocation142_spill] sm:$0xff] }
 0x3e4   : > { %23107 = vst [vmem:[#allocation48_spill] sm:$0xff] %v17367_v10  ;;  %23109 = vst [vmem:[#allocation49_spill] sm:$0xff] %v17371_v47  ;;  %8605 = vadd.xlane.f32.xlu1 %v8604_v62  ;;  %v17392_v2 = vrot.slane %v23112_v50, %v22760_v33  ;;  %v23113_v62 = vld [vmem:[#allocation52_spill] sm:$0xff]  ;;  %v4733_v25 = vcombine.low %v17380_v11, %v17386_v29  ;;  %v17431_v23 = vadd.f32 %v16985_v39, %v23125_v28 }
 0x3e5   : > { %v17398_v49 = vadd.f32 %v23113_v62, %v17330_v44  ;;  %23116 = vst [vmem:[#allocation53_spill] sm:$0xff] %v17402_v56  ;;  %23117 = vst [vmem:[#allocation211_spill] sm:$0xff] %v17406_v20  ;;  %v17423_v50 = vrot.slane %v6845_v32, %v22957_v38  ;;  %v17427_v62 = vpop.f32.mrb[101].mxu0  ;;  %v17439_v44 = vadd.f32 %v16528_v54, %v16927_v61  ;;  %v17445_v56 = vpop.f32.mrb[101].mxu1  ;;  %v23131_v10 = vld [vmem:[#allocation60_spill] sm:$0xff]  ;;  %v23275_v20 = vld [vmem:[#allocation203_spill] sm:$0xff] }
 0x3e6   : > { %23118 = vst [vmem:[#allocation212_spill] sm:$0xff] %v17410_v31  ;;  %23119 = vst [vmem:[#allocation213_spill] sm:$0xff] %v17412_v48  ;;  %v5414_v53 = vcombine.high %v17363_v57, %v17392_v2  ;;  %v17443_v32 = vadd.f32 %v16528_v54, %v17109_v4  ;;  %v17447_v14 = vpop.f32.mrb[102].mxu0  ;;  %v7768_v28 = vmul.f32 %v23131_v10, %v17161_v36  ;;  %v17454_v41 = vpop.f32.mrb[102].mxu1  ;;  %v23141_v36 = vld [vmem:[#allocation84_spill] sm:$0xff] }
 0x3e7   : > { %23114 = vst [vmem:[#allocation52_spill] sm:$0xff] %v17398_v49  ;;  %23121 = vst [vmem:[#allocation138_spill] sm:$0xff] %v17416_v13  ;;  %v23127_v49 = vld [vmem:[#allocation144_spill] sm:$0xff]  ;;  %v8344_v34 = vmul.f32 %v17239_v21, %v4733_v25  ;;  %v17456_v61 = vpop.f32.mrb[103].mxu0  ;;  %v17460_v4 = vadd.f32 %v16985_v39, %v23134_v8  ;;  %v17464_v40 = vadd.f32 %v16985_v39, %v23136_v9 }
 0x3e8   : > { %23122 = vst [vmem:[#allocation214_spill] sm:$0xff] %v17423_v50  ;;  %23123 = vst [vmem:[#allocation215_spill] sm:$0xff] %v17425_v5  ;;  %v17435_v0 = vadd.f32 %v16985_v39, %v23127_v49  ;;  %v7817_v49 = vmul.f32 %v17423_v50, %v17313_v60  ;;  %v8393_v47 = vmul.f32 %v8265_v22, %v5414_v53  ;;  %v17472_v22 = vpop.f32.mrb[103].mxu1 }
 0x3e9   : > { %23124 = vst [vmem:[#allocation216_spill] sm:$0xff] %v17427_v62  ;;  %23126 = vst [vmem:[#allocation145_spill] sm:$0xff] %v17431_v23  ;;  %v17476_v25 = vadd.f32 %v16528_v54, %v16943_v63  ;;  %v8472_v8 = vadd.f32 %v8344_v34, %v7768_v28  ;;  %v17480_v9 = vadd.f32 %v16528_v54, %v17124_v42  ;;  %v2054_v34 = vld [vmem:[#allocation2 + $0x38] sm:$0xff]  ;;  %v23149_v62 = vld [vmem:[#allocation132_spill] sm:$0xff] }
 0x3ea   : > { %23128 = vst [vmem:[#allocation144_spill] sm:$0xff] %v17435_v0  ;;  %23129 = vst [vmem:[#allocation217_spill] sm:$0xff] %v17445_v56  ;;  %v8521_v53 = vadd.f32 %v8393_v47, %v7817_v49  ;;  %v8263_v60 = vadd.f32 %v17118_v18, %v17416_v13  ;;  %v17486_v21 = vadd.f32 %v17103_v3, %v17431_v23  ;;  %13850 = vmatmul.mubr.msk.f32.gmra.mrb[130].mxu1 %vm2529_vm5, %v2054_v34  ;;  %v17513_v49 = vpop.f32.mrb[104].mxu0  ;;  %v23147_v3 = vld [vmem:[#allocation136_spill] sm:$0xff] }
 0x3eb   : > { %23130 = vst [vmem:[#allocation218_spill] sm:$0xff] %v17447_v14  ;;  %23132 = vst [vmem:[#allocation60_spill] sm:$0xff] %v17454_v41  ;;  %v17466_v14 = vld [vmem:[#allocation3 + $0x20] sm:$0xff]  ;;  %v17490_v10 = vadd.f32 %v17118_v18, %v17435_v0  ;;  %v17494_v63 = vadd.f32 %v16985_v39, %v23141_v36  ;;  %v8610_v42 = vsel %vm2529_vm5, %v8472_v8, 0.0  ;;  %v17505_v18 = vadd.f32 %v17145_v55, %v17460_v4  ;;  %v23144_v8 = vld [vmem:[#allocation140_spill] sm:$0xff]  ;;  %v17533_v28 = vpop.f32.mrb[105].mxu0 }
 0x3ec   : > { %23133 = vst [vmem:[#allocation219_spill] sm:$0xff] %v17456_v61  ;;  %23135 = vst [vmem:[#allocation135_spill] sm:$0xff] %v17460_v4  ;;  %v7254_v54 = vrot.slane %v17466_v14, %v22948_v52  ;;  %v8757_v47 = vsel %vm2529_vm5, %v8521_v53, 0.0  ;;  %v17509_v36 = vadd.f32 %v17122_v6, %v17464_v40  ;;  %8611 = vadd.xlane.f32.xlu1 %v8610_v42 }
 0x3ed   : > { %23137 = vst [vmem:[#allocation142_spill] sm:$0xff] %v17464_v40  ;;  %23138 = vst [vmem:[#allocation220_spill] sm:$0xff] %v17472_v22  ;;  %8758 = vadd.xlane.f32.xlu0 %v8757_v47  ;;  %v17517_v53 = vadd.f32 %v16985_v39, %v23144_v8  ;;  %v17521_v34 = vadd.f32 %v16985_v39, %v16565_v17  ;;  %v17525_v61 = vadd.f32 %v16985_v39, %v23147_v3  ;;  %v17531_v47 = vpop.f32.mrb[104].mxu1  ;;  %v17542_v17 = vld [vmem:[%s22657_s4] ss:$0 sm:$0xff] }
 0x3ee   : > { %23139 = vst [vmem:[#allocation221_spill] sm:$0xff] %v17486_v21  ;;  %23140 = vst [vmem:[#allocation222_spill] sm:$0xff] %v17490_v10  ;;  %v17529_v42 = vadd.f32 %v16985_v39, %v23149_v62  ;;  %v17537_v8 = vadd.f32 %v17145_v55, %v17494_v63  ;;  %v17546_v3 = vadd.f32 %v17542_v17, %v16960_v46  ;;  %v17556_v55 = vpop.f32.mrb[106].mxu0 }
 0x3ef   : > { %23142 = vst [vmem:[#allocation84_spill] sm:$0xff] %v17494_v63  ;;  %23143 = vst [vmem:[#allocation223_spill] sm:$0xff] %v17513_v49  ;;  %v17550_v62 = vadd.f32 %v17542_v17, %v17137_v51  ;;  %v17554_v49 = vpop.f32.mrb[105].mxu1  ;;  %v17560_v48 = vadd.f32 %v16985_v39, %v16605_v24  ;;  %v7262_v22 = vcombine.high %v7254_v54, %v7254_v54  ;;  %v17568_v41 = vpop.f32.mrb[107].mxu0 }
 0x3f0   : > { %23145 = vst [vmem:[#allocation140_spill] sm:$0xff] %v17517_v53  ;;  %23146 = vst [vmem:[#allocation224_spill] sm:$0xff] %v17521_v34  ;;  %v5413_v63 = vcombine.low %v17363_v57, %v17392_v2  ;;  %v17566_v51 = vpop.f32.mrb[106].mxu1  ;;  %v17581_v57 = vadd.f32 %v17122_v6, %v17517_v53  ;;  %v17585_v2 = vadd.f32 %v17214_v1, %v17521_v34 }
 0x3f1   : > { %23148 = vst [vmem:[#allocation136_spill] sm:$0xff] %v17525_v61  ;;  %23150 = vst [vmem:[#allocation132_spill] sm:$0xff] %v17529_v42  ;;  %v17577_v56 = vpop.f32.mrb[107].mxu1 }
 0x3f2   : > { %23151 = vst [vmem:[#allocation225_spill] sm:$0xff] %v17531_v47  ;;  %23152 = vst [vmem:[#allocation226_spill] sm:$0xff] %v17533_v28  ;;  %v4734_v28 = vcombine.high %v17380_v11, %v17386_v29  ;;  %v8391_v6 = vmul.f32 %v8263_v60, %v5413_v63  ;;  %v17603_v11 = vadd.f32 %v17217_v7, %v17560_v48 }
 0x3f3   : > { %23153 = vst [vmem:[#allocation227_spill] sm:$0xff] %v17537_v8  ;;  %23154 = vst [vmem:[#allocation228_spill] sm:$0xff] %v17554_v49  ;;  %v23157_v8 = vld [vmem:[#allocation62_spill] sm:$0xff]  ;;  %v23167_v60 = vcombine.low %v16833_v19, %v16903_v16  ;;  %v7284_v63 = vrot.slane %v7262_v22, %v22948_v52  ;;  %v23228_v49 = vld [vmem:[#allocation36_spill] sm:$0xff] }
 0x3f4   : > { %23155 = vst [vmem:[#allocation229_spill] sm:$0xff] %v17556_v55  ;;  %23156 = vst [vmem:[#allocation230_spill] sm:$0xff] %v17560_v48  ;;  %v7770_v46 = vmul.f32 %v23157_v8, %v17153_v58  ;;  %v8346_v24 = vmul.f32 %v17225_v27, %v4734_v28  ;;  %v6843_v55 = vcombine.high %v17058_v26, %v17058_v26 }
 0x3f5   : > { %23158 = vst [vmem:[#allocation62_spill] sm:$0xff] %v17566_v51  ;;  %23159 = vst [vmem:[#allocation231_spill] sm:$0xff] %v17568_v41  ;;  %v17589_v8 = vadd.f32 %v17217_v7, %v17525_v61  ;;  %v17593_v27 = vadd.f32 %v17214_v1, %v17529_v42  ;;  %v17596_v26 = vrot.slane %v7254_v54, %v22948_v52 }
 0x3f6   : > { %23160 = vst [vmem:[#allocation232_spill] sm:$0xff] %v17577_v56  ;;  %23161 = vst [vmem:[#allocation233_spill] sm:$0xff] %v17581_v57  ;;  %v8474_v28 = vadd.f32 %v8346_v24, %v7770_v46  ;;  %v17599_v29 = vrot.slane %v6843_v55, %v22957_v38  ;;  %v23165_v58 = vcombine.high %v16830_v37, %v16896_v30  ;;  %v17629_v46 = vpop.f32.mrb[108].mxu0  ;;  %v23172_v24 = vld [vmem:[#allocation156_spill] sm:$0xff]  ;;  %v23217_v57 = vld [vmem:[#allocation130_spill] sm:$0xff] }
 0x3f7   : > { %23162 = vst [vmem:[#allocation234_spill] sm:$0xff] %v17593_v27  ;;  %23164 = vst [vmem:[#allocation236_spill] sm:$0xff] %v17603_v11  ;;  %v17613_v1 = vadd.f32 %v17542_v17, %v16969_v12  ;;  %v17617_v54 = vadd.f32 %v17542_v17, %v17149_v45  ;;  %v17623_v7 = vrot.slane %v23167_v60, %v22760_v33  ;;  %v23187_v27 = vld [vmem:[#allocation191_spill] sm:$0xff] }
 0x3f8   : > { %23163 = vst [vmem:[#allocation235_spill] sm:$0xff] %v17599_v29  ;;  %v17609_v41 = vrot.slane %v23165_v58, %v22760_v33  ;;  %v8616_v55 = vsel %vm2529_vm5, %v8474_v28, 0.0  ;;  %v7815_v58 = vmul.f32 %v17599_v29, %v17416_v13  ;;  %23169 = vst [vmem:[#allocation239_spill] sm:$0xff] %v17629_v46  ;;  %v23170_v12 = vcombine.high %v16833_v19, %v16903_v16  ;;  %v17647_v13 = vpop.f32.mrb[108].mxu1  ;;  %v17649_v46 = vpop.f32.mrb[109].mxu0  ;;  %v23178_v16 = vld [vmem:[#allocation178_spill] sm:$0xff] }
 0x3f9   : > { %23168 = vst [vmem:[#allocation238_spill] sm:$0xff] %v17623_v7  ;;  %8617 = vadd.xlane.f32.xlu1 %v8616_v55  ;;  %23177 = vst [vmem:[#allocation241_spill] sm:$0xff] %v17649_v46  ;;  %v17653_v19 = vadd.f32 %v16985_v39, %v23178_v16  ;;  %v17661_v22 = vpop.f32.mrb[109].mxu1  ;;  %v23186_v16 = vld [vmem:[#allocation55_spill] sm:$0xff]  ;;  %v7294_v50 = vcombine.high %v7284_v63, %v7284_v63 }
 0x3fa   : > { %23166 = vst [vmem:[#allocation237_spill] sm:$0xff] %v17609_v41  ;;  %v17635_v45 = vrot.slane %v23170_v12, %v22760_v33  ;;  %v23173_v41 = vld [vmem:[#allocation190_spill] sm:$0xff]  ;;  %v8022_v12 = vrot.slane %v17596_v26, %v22957_v38  ;;  %23182 = vst [vmem:[#allocation242_spill] sm:$0xff] %v17661_v22  ;;  %v23188_v42 = vcombine.low %v23186_v16, %v23187_v27 }
 0x3fb   : > { %v23174_v60 = vcombine.low %v23172_v24, %v23173_v41  ;;  %23176 = vst [vmem:[#allocation190_spill] sm:$0xff] %v17647_v13  ;;  %23179 = vst [vmem:[#allocation178_spill] sm:$0xff] %v17653_v19  ;;  %v23184_v28 = vcombine.high %v23172_v24, %v23173_v41  ;;  %v17689_v41 = vpop.f32.mrb[110].mxu1  ;;  %v23209_v13 = vld [vmem:[#allocation176_spill] sm:$0xff] }
 0x3fc   : > { %23171 = vst [vmem:[#allocation240_spill] sm:$0xff] %v17635_v45  ;;  %v17663_v45 = vpop.f32.mrb[110].mxu0  ;;  %v17675_v11 = vrot.slane %v23188_v42, %v22760_v33 }
 0x3fd   : > { %v17641_v7 = vrot.slane %v23174_v60, %v22760_v33  ;;  %v23180_v60 = vld [vmem:[#allocation185_spill] sm:$0xff]  ;;  %23183 = vst [vmem:[#allocation243_spill] sm:$0xff] %v17663_v45  ;;  %v17669_v46 = vrot.slane %v23184_v28, %v22760_v33  ;;  %v23193_v45 = vld [vmem:[#allocation195_spill] sm:$0xff]  ;;  %v17691_v24 = vpop.f32.mrb[111].mxu0 }
 0x3fe   : > { %v17659_v55 = vadd.f32 %v16985_v39, %v23180_v60  ;;  %23189 = vst [vmem:[#allocation55_spill] sm:$0xff] %v17675_v11  ;;  %v23192_v60 = vld [vmem:[#allocation193_spill] sm:$0xff]  ;;  %23196 = vst [vmem:[#allocation195_spill] sm:$0xff] %v17689_v41  ;;  %v8026_v11 = vrot.slane %v7284_v63, %v22957_v38  ;;  %v17765_v59 = vpop.f32.mrb[112].mxu0 }
 0x3ff   : > { %23175 = vst [vmem:[#allocation156_spill] sm:$0xff] %v17641_v7  ;;  %v8519_v7 = vadd.f32 %v8391_v6, %v7815_v58  ;;  %23185 = vst [vmem:[#allocation244_spill] sm:$0xff] %v17669_v46  ;;  %v23190_v6 = vcombine.high %v23186_v16, %v23187_v27  ;;  %v23194_v48 = vcombine.low %v23192_v60, %v23193_v45  ;;  %v23198_v28 = vld [vmem:[#allocation177_spill] sm:$0xff]  ;;  %v23200_v46 = vld [vmem:[#allocation182_spill] sm:$0xff] }
 0x400   : > { %23181 = vst [vmem:[#allocation185_spill] sm:$0xff] %v17659_v55  ;;  %23197 = vst [vmem:[#allocation245_spill] sm:$0xff] %v17691_v24  ;;  %v17695_v42 = vadd.f32 %v16985_v39, %v23198_v28  ;;  %v17700_v27 = vadd.f32 %v16985_v39, %v23200_v46  ;;  %v7247_v28 = vcombine.high %v17466_v14, %v17466_v14  ;;  %v23206_v24 = vld [vmem:[#allocation158_spill] sm:$0xff]  ;;  %v23213_v14 = vld [vmem:[#allocation68_spill] sm:$0xff] }
 0x401   : > { %v17681_v58 = vrot.slane %v23190_v6, %v22760_v33  ;;  %v17687_v22 = vrot.slane %v23194_v48, %v22760_v33  ;;  %v8751_v16 = vsel %vm2529_vm5, %v8519_v7, 0.0  ;;  %v17703_v6 = vpop.f32.mrb[111].mxu1  ;;  %v23203_v48 = vcombine.high %v23192_v60, %v23193_v45  ;;  %v23208_v7 = vld [vmem:[#allocation173_spill] sm:$0xff] }
 0x402   : > { %23199 = vst [vmem:[#allocation177_spill] sm:$0xff] %v17695_v42  ;;  %23201 = vst [vmem:[#allocation182_spill] sm:$0xff] %v17700_v27  ;;  %8752 = vadd.xlane.f32.xlu0 %v8751_v16  ;;  %v17726_v45 = vadd.f32 %v8022_v12, %v17653_v19  ;;  %v17729_v60 = vadd.f32 %v8022_v12, %v17659_v55  ;;  %v23214_v16 = vld [vmem:[#allocation72_spill] sm:$0xff]  ;;  %v23221_v55 = vld [vmem:[#allocation102_spill] sm:$0xff]  ;;  %v17756_v23 = vadd.f32 %v8026_v11, %v17695_v42 }
 0x403   : > { %23191 = vst [vmem:[#allocation191_spill] sm:$0xff] %v17681_v58  ;;  %23195 = vst [vmem:[#allocation193_spill] sm:$0xff] %v17687_v22  ;;  %v17709_v58 = vrot.slane %v23203_v48, %v22760_v33  ;;  %v23205_v22 = vld [vmem:[#allocation151_spill] sm:$0xff]  ;;  %v23215_v48 = vcombine.low %v23213_v14, %v23214_v16  ;;  %v7261_v51 = vrot.slane %v7247_v28, %v22948_v52 }
 0x404   : > { %23202 = vst [vmem:[#allocation246_spill] sm:$0xff] %v17703_v6  ;;  %v23207_v41 = vcombine.low %v23205_v22, %v23206_v24  ;;  %v23210_v6 = vcombine.low %v23208_v7, %v23209_v13  ;;  %23211 = vst [vmem:[#allocation151_spill] sm:$0xff] %v17726_v45  ;;  %v23227_v19 = vld [vmem:[#allocation79_spill] sm:$0xff] }
 0x405   : > { %23204 = vst [vmem:[#allocation247_spill] sm:$0xff] %v17709_v58  ;;  %23212 = vst [vmem:[#allocation158_spill] sm:$0xff] %v17729_v60  ;;  %v17735_v58 = vrot.slane %v23215_v48, %v22760_v33  ;;  %v23222_v60 = vcombine.high %v23221_v55, %v23221_v55 }
 0x406   : > { %v17717_v46 = vrot.slane %v23207_v41, %v22760_v33  ;;  %v17723_v5 = vrot.slane %v23210_v6, %v22760_v33  ;;  %v23216_v41 = vld [vmem:[#allocation125_spill] sm:$0xff]  ;;  %v23219_v6 = vld [vmem:[#allocation82_spill] sm:$0xff]  ;;  %23223 = vst [vmem:[#allocation176_spill] sm:$0xff] %v17756_v23  ;;  %23225 = vst [vmem:[#allocation72_spill] sm:$0xff] %v17765_v59 }
 0x407   : > { %v23218_v53 = vcombine.low %v23216_v41, %v23217_v57  ;;  %v17745_v21 = vadd.f32 %v16985_v39, %v23219_v6  ;;  %v17753_v48 = vrot.slane %v23222_v60, %v22948_v52  ;;  %v7292_v6 = vcombine.high %v17596_v26, %v17596_v26  ;;  %v23232_v26 = vld [vmem:[#allocation187_spill] sm:$0xff]  ;;  %v23234_v59 = vld [vmem:[#allocation197_spill] sm:$0xff] }
 0x408   : > { %v4735_v12 = vcombine.low %v17717_v46, %v17723_v5  ;;  %v7772_v60 = vmul.f32 %v23227_v19, %v23226_v43  ;;  %v4301_v28 = vadd.f32 %v17542_v17, %v23234_v59  ;;  %v23235_v19 = vld [vmem:[#allocation129_spill] sm:$0xff]  ;;  %v17791_v43 = vrot.slane %v7294_v50, %v22957_v38 }
 0x409   : > { %v17741_v56 = vrot.slane %v23218_v53, %v22760_v33  ;;  %23220 = vst [vmem:[#allocation173_spill] sm:$0xff] %v17745_v21  ;;  %v17759_v53 = vadd.f32 %v8026_v11, %v17700_v27  ;;  %v17773_v42 = vrot.slane %v17753_v48, %v22957_v38  ;;  %v17775_v11 = vpop.f32.mrb[112].mxu1  ;;  %v17777_v27 = vpop.f32.mrb[113].mxu0 }
 0x40a   : > { %v8348_v47 = vmul.f32 %v23228_v49, %v4735_v12  ;;  %23230 = vst [vmem:[#allocation130_spill] sm:$0xff] %v17775_v11  ;;  %23231 = vst [vmem:[#allocation82_spill] sm:$0xff] %v17777_v27  ;;  %v4333_v49 = vadd.f32 %v17542_v17, %v23235_v19  ;;  %v17788_v12 = vpop.f32.mrb[113].mxu1  ;;  %v23237_v11 = vld [vmem:[#allocation188_spill] sm:$0xff]  ;;  %v17801_v59 = vpop.f32.mrb[114].mxu0 }
 0x40b   : > { %23224 = vst [vmem:[#allocation68_spill] sm:$0xff] %v17759_v53  ;;  %v5416_v63 = vcombine.high %v17735_v58, %v17741_v56  ;;  %23229 = vst [vmem:[#allocation125_spill] sm:$0xff] %v17773_v42  ;;  %v17781_v53 = vadd.f32 %v16985_v39, %v23232_v26  ;;  %v17795_v27 = vadd.f32 %v16985_v39, %v23237_v11  ;;  %v17799_v10 = vpop.f32.mrb[114].mxu1  ;;  %v17812_v11 = vpop.f32.mrb[115].mxu0 }
 0x40c   : > { %23236 = vst [vmem:[#allocation79_spill] sm:$0xff] %v17788_v12  ;;  %v8476_v45 = vadd.f32 %v8348_v47, %v7772_v60  ;;  %v7821_v26 = vmul.f32 %v17773_v42, %v17460_v4  ;;  %23239 = vst [vmem:[#allocation187_spill] sm:$0xff] %v17799_v10  ;;  %v6147_v50 = vcombine.low %v4301_v28, %v4333_v49  ;;  %v17810_v29 = vpop.f32.mrb[115].mxu1  ;;  %v23245_v47 = vld [vmem:[#allocation119_spill] sm:$0xff] }
 0x40d   : > { %23233 = vst [vmem:[#allocation102_spill] sm:$0xff] %v17781_v53  ;;  %v8397_v23 = vmul.f32 %v17505_v18, %v5416_v63  ;;  %23238 = vst [vmem:[#allocation36_spill] sm:$0xff] %v17795_v27  ;;  %v17804_v18 = vrot.slane %v7292_v6, %v22957_v38  ;;  %v23241_v63 = vld [vmem:[#allocation189_spill] sm:$0xff]  ;;  %v6148_v12 = vcombine.high %v4301_v28, %v4333_v49  ;;  %v23247_v6 = vld [vmem:[#allocation32_spill] sm:$0xff] }
 0x40e   : > { %23240 = vst [vmem:[#allocation197_spill] sm:$0xff] %v17801_v59  ;;  %v17808_v19 = vadd.f32 %v16985_v39, %v23241_v63  ;;  %23243 = vst [vmem:[#allocation188_spill] sm:$0xff] %v17810_v29  ;;  %v17816_v60 = vadd.f32 %v16985_v39, %v23245_v47  ;;  %v7263_v4 = vcombine.high %v7261_v51, %v7261_v51  ;;  %v8622_v59 = vsel %vm2529_vm5, %v8476_v45, 0.0  ;;  %v23256_v29 = vld [vmem:[#allocation34_spill] sm:$0xff] }
 0x40f   : > { %23244 = vst [vmem:[#allocation189_spill] sm:$0xff] %v17812_v11  ;;  %v8525_v10 = vadd.f32 %v8397_v23, %v7821_v26  ;;  %v23248_v42 = vcombine.low %v17439_v44, %v17443_v32  ;;  %v23250_v28 = vcombine.high %v17439_v44, %v17443_v32  ;;  %8623 = vadd.xlane.f32.xlu1 %v8622_v59  ;;  %v23254_v23 = vld [vmem:[#allocation126_spill] sm:$0xff]  ;;  %v23257_v32 = vld [vmem:[#allocation199_spill] sm:$0xff] }
 0x410   : > { %23242 = vst [vmem:[#allocation129_spill] sm:$0xff] %v17808_v19  ;;  %23246 = vst [vmem:[#allocation119_spill] sm:$0xff] %v17816_v60  ;;  %v17832_v47 = vrot.slane %v6147_v50, %v23247_v6  ;;  %v17835_v11 = vrot.slane %v6148_v12, %v23247_v6  ;;  %v17839_v45 = vadd.f32 %v16985_v39, %v23254_v23  ;;  %v23259_v23 = vld [vmem:[#allocation58_spill] sm:$0xff]  ;;  %v17869_v50 = vpop.f32.mrb[116].mxu1 }
 0x411   : > { %v17823_v63 = vrot.slane %v23248_v42, %v23247_v6  ;;  %v17829_v49 = vrot.slane %v23250_v28, %v23247_v6  ;;  %v17842_v42 = vrot.slane %v7261_v51, %v22948_v52  ;;  %v8769_v26 = vsel %vm2529_vm5, %v8525_v10, 0.0  ;;  %v17855_v51 = vpop.f32.mrb[116].mxu0  ;;  %v17884_v30 = vpop.f32.mrb[117].mxu1 }
 0x412   : > { %23252 = vst [vmem:[#allocation250_spill] sm:$0xff] %v17832_v47  ;;  %23253 = vst [vmem:[#allocation251_spill] sm:$0xff] %v17835_v11  ;;  %v4325_v44 = vadd.f32 %v17542_v17, %v23256_v29  ;;  %v4293_v59 = vadd.f32 %v17542_v17, %v23257_v32  ;;  %8770 = vadd.xlane.f32.xlu0 %v8769_v26  ;;  %v17859_v10 = vadd.f32 %v16985_v39, %v23259_v23  ;;  %v23261_v29 = vld [vmem:[#allocation172_spill] sm:$0xff]  ;;  %v23262_v32 = vld [vmem:[#allocation74_spill] sm:$0xff]  ;;  %v17871_v47 = vpop.f32.mrb[117].mxu0  ;;  %v17896_v11 = vpop.f32.mrb[118].mxu1 }
 0x413   : > { %23249 = vst [vmem:[#allocation248_spill] sm:$0xff] %v17823_v63  ;;  %23251 = vst [vmem:[#allocation249_spill] sm:$0xff] %v17829_v49  ;;  %v4304_v0 = vadd.f32 %v17542_v17, %v23261_v29  ;;  %v17865_v26 = vadd.f32 %v16985_v39, %v23262_v32  ;;  %v17874_v28 = vrot.slane %v7263_v4, %v22948_v52  ;;  %v17880_v63 = vld [vmem:[#allocation2 + $0x20] sm:$0xff]  ;;  %v17898_v49 = vpop.f32.mrb[118].mxu0 }
 0x414   : > { %23255 = vst [vmem:[#allocation126_spill] sm:$0xff] %v17839_v45  ;;  %23258 = vst [vmem:[#allocation34_spill] sm:$0xff] %v17855_v51  ;;  %v23266_v51 = vld [vmem:[#allocation95_spill] sm:$0xff]  ;;  %v6847_v29 = vcombine.high %v17880_v63, %v17880_v63  ;;  %v5603_v32 = vcombine.low %v4293_v59, %v4325_v44  ;;  %v17888_v12 = vrot.slane %v17842_v42, %v22957_v38 }
 0x415   : > { %23260 = vst [vmem:[#allocation199_spill] sm:$0xff] %v17859_v10  ;;  %23263 = vst [vmem:[#allocation58_spill] sm:$0xff] %v17865_v26  ;;  %v17878_v23 = vadd.f32 %v17542_v17, %v23266_v51  ;;  %v7293_v51 = vcombine.high %v17842_v42, %v17842_v42  ;;  %v4736_v42 = vcombine.high %v17717_v46, %v17723_v5 }
 0x416   : > { %23264 = vst [vmem:[#allocation172_spill] sm:$0xff] %v17869_v50  ;;  %23265 = vst [vmem:[#allocation74_spill] sm:$0xff] %v17871_v47  ;;  %v23269_v47 = vld [vmem:[#allocation147_spill] sm:$0xff]  ;;  %v5604_v50 = vcombine.high %v4293_v59, %v4325_v44  ;;  %v17907_v37 = vrot.slane %v5603_v32, %v23247_v6  ;;  %v17913_v44 = vpop.f32.mrb[119].mxu1  ;;  %v17915_v59 = vpop.f32.mrb[119].mxu0  ;;  %v5415_v32 = vcombine.low %v17735_v58, %v17741_v56 }
 0x417   : > { %23267 = vst [vmem:[#allocation95_spill] sm:$0xff] %v17880_v63  ;;  %23268 = vst [vmem:[#allocation252_spill] sm:$0xff] %v17884_v30  ;;  %v17892_v4 = vadd.f32 %v16985_v39, %v23269_v47  ;;  %v23273_v30 = vcombine.low %v17476_v25, %v17480_v9  ;;  %v4336_v47 = vadd.f32 %v17542_v17, %v23275_v20 }
 0x418   : > { %23271 = vst [vmem:[#allocation253_spill] sm:$0xff] %v17896_v11  ;;  %23272 = vst [vmem:[#allocation254_spill] sm:$0xff] %v17898_v49  ;;  %v23278_v49 = vcombine.high %v17476_v25, %v17480_v9  ;;  %v17930_v20 = vrot.slane %v23221_v55, %v22948_v52  ;;  %v17933_v5 = vrot.slane %v6847_v29, %v22948_v52  ;;  %v23280_v29 = vld [vmem:[#allocation44_spill] sm:$0xff] }
 0x419   : > { %23270 = vst [vmem:[#allocation147_spill] sm:$0xff] %v17892_v4  ;;  %v17904_v63 = vrot.slane %v23273_v30, %v23247_v6  ;;  %23274 = vst [vmem:[#allocation255_spill] sm:$0xff] %v17907_v37  ;;  %v17924_v30 = vrot.slane %v5604_v50, %v23247_v6  ;;  %v23279_v46 = vcombine.low %v17546_v3, %v17550_v62  ;;  %v17959_v37 = vpop.f32.mrb[120].mxu0 }
 0x41a   : > { %23276 = vst [vmem:[#allocation203_spill] sm:$0xff] %v17913_v44  ;;  %23277 = vst [vmem:[#allocation256_spill] sm:$0xff] %v17915_v59  ;;  %v17921_v11 = vrot.slane %v23278_v49, %v23247_v6  ;;  %v6419_v58 = vcombine.low %v4304_v0, %v4336_v47  ;;  %v6420_v50 = vcombine.high %v4304_v0, %v4336_v47  ;;  %v23281_v59 = vld [vmem:[#allocation81_spill] sm:$0xff]  ;;  %v17957_v49 = vpop.trf.xlu0 }
 0x41b   : > { %v17939_v25 = vrot.slane %v23279_v46, %v23247_v6  ;;  %v7774_v44 = vmul.f32 %v23281_v59, %v23280_v29  ;;  %v8350_v46 = vmul.f32 %v23282_v15, %v4736_v42  ;;  %v17954_v31 = vrot.slane %v17930_v20, %v22957_v38  ;;  %23283 = vst [vmem:[#allocation81_spill] sm:$0xff] %v17957_v49  ;;  %v23286_v42 = vld [vmem:[#allocation66_spill] sm:$0xff] }
 0x41c   : > { %v8395_v9 = vmul.f32 %v17509_v36, %v5415_v32  ;;  %23284 = vst [vmem:[#allocation96_spill] sm:$0xff] %v17959_v37  ;;  %v23285_v55 = vcombine.high %v17546_v3, %v17550_v62  ;;  %v17968_v47 = vrot.slane %v6419_v58, %v23247_v6  ;;  %v17971_v15 = vrot.slane %v6420_v50, %v23247_v6  ;;  %v17975_v36 = vpop.f32.mrb[120].mxu1  ;;  %v17977_v32 = vpop.f32.mrb[121].mxu0 }
 0x41d   : > { %v4328_v59 = vadd.f32 %v17542_v17, %v23286_v42  ;;  %23287 = vst [vmem:[#allocation66_spill] sm:$0xff] %v17975_v36  ;;  %23288 = vst [vmem:[#allocation257_spill] sm:$0xff] %v17977_v32  ;;  %v7295_v56 = vcombine.high %v17874_v28, %v17874_v28  ;;  %v6863_v3 = vcombine.high %v17933_v5, %v17933_v5  ;;  %v17985_v58 = vpop.f32.mrb[121].mxu1  ;;  %v23294_v36 = vld [vmem:[#allocation139_spill] sm:$0xff] }
 0x41e   : > { %v17965_v0 = vrot.slane %v23285_v55, %v23247_v6  ;;  %v8478_v62 = vadd.f32 %v8350_v46, %v7774_v44  ;;  %v7819_v55 = vmul.f32 %v17954_v31, %v17464_v40  ;;  %23289 = vst [vmem:[#allocation258_spill] sm:$0xff] %v17985_v58  ;;  %v17995_v32 = vpop.f32.mrb[122].mxu1  ;;  %v17997_v44 = vpop.f32.mrb[122].mxu0  ;;  %v8042_v29 = vrot.slane %v17874_v28, %v22957_v38 }
 0x41f   : > { %23290 = vst [vmem:[#allocation259_spill] sm:$0xff] %v17995_v32  ;;  %23291 = vst [vmem:[#allocation260_spill] sm:$0xff] %v17997_v44  ;;  %v5875_v37 = vcombine.low %v17878_v23, %v4328_v59  ;;  %v5876_v50 = vcombine.high %v17878_v23, %v4328_v59  ;;  %v18002_v58 = vpop.f32.mrb[123].mxu1  ;;  %v18004_v42 = vpop.f32.mrb[123].mxu0  ;;  %v18010_v49 = vadd.f32 %v16985_v39, %v23294_v36  ;;  %v23296_v32 = vld [vmem:[#allocation56_spill] sm:$0xff] }
 0x420   : > { %v8628_v46 = vsel %vm2529_vm5, %v8478_v62, 0.0  ;;  %v8523_v40 = vadd.f32 %v8395_v9, %v7819_v55  ;;  %23292 = vst [vmem:[#allocation261_spill] sm:$0xff] %v18002_v58  ;;  %23293 = vst [vmem:[#allocation262_spill] sm:$0xff] %v18004_v42  ;;  %v18014_v44 = vadd.f32 %v16985_v39, %v23296_v32  ;;  %v23298_v9 = vcombine.low %v17613_v1, %v17617_v54  ;;  %v18022_v59 = vld [vmem:[#allocation3 + $0x28] sm:$0xff] }
 0x421   : > { %23295 = vst [vmem:[#allocation139_spill] sm:$0xff] %v18010_v49  ;;  %8629 = vadd.xlane.f32.xlu1 %v8628_v46  ;;  %v23300_v28 = vcombine.high %v17613_v1, %v17617_v54  ;;  %v18032_v32 = vrot.slane %v5875_v37, %v23247_v6  ;;  %v18035_v55 = vrot.slane %v5876_v50, %v23247_v6  ;;  %v18044_v54 = vpop.trf.xlu0  ;;  %v18072_v37 = vpop.f32.mrb[124].mxu1 }
 0x422   : > { %23297 = vst [vmem:[#allocation56_spill] sm:$0xff] %v18014_v44  ;;  %v18020_v23 = vrot.slane %v23298_v9, %v23247_v6  ;;  %v8763_v36 = vsel %vm2529_vm5, %v8523_v40, 0.0  ;;  %v8050_v9 = vrot.slane %v7295_v56, %v22957_v38  ;;  %v8046_v46 = vrot.slane %v7293_v51, %v22957_v38  ;;  %23303 = vst [vmem:[#allocation266_spill] sm:$0xff] %v18044_v54 }
 0x423   : > { %v18028_v62 = vrot.slane %v23300_v28, %v23247_v6  ;;  %23301 = vst [vmem:[#allocation264_spill] sm:$0xff] %v18032_v32  ;;  %v18040_v42 = vrot.slane %v6863_v3, %v22948_v52  ;;  %v7303_v1 = vrot.slane %v18022_v59, %v22948_v52  ;;  %8764 = vadd.xlane.f32.xlu0 %v8763_v36  ;;  %v18054_v3 = vpop.f32.mrb[124].mxu0  ;;  %23307 = vst [vmem:[#allocation270_spill] sm:$0xff] %v18072_v37  ;;  %v23333_v32 = vld [vmem:[#allocation78_spill] sm:$0xff] }
 0x424   : > { %23299 = vst [vmem:[#allocation263_spill] sm:$0xff] %v18020_v23  ;;  %23304 = vst [vmem:[#allocation267_spill] sm:$0xff] %v18054_v3  ;;  %v18058_v50 = vadd.f32 %v17791_v43, %v17745_v21  ;;  %v18062_v28 = vadd.f32 %v17804_v18, %v17781_v53  ;;  %v18066_v36 = vadd.f32 %v17791_v43, %v17795_v27  ;;  %v18074_v51 = vpop.f32.mrb[125].mxu0 }
 0x425   : > { %23302 = vst [vmem:[#allocation265_spill] sm:$0xff] %v18040_v42  ;;  %v18070_v40 = vadd.f32 %v17804_v18, %v17808_v19  ;;  %23308 = vst [vmem:[#allocation271_spill] sm:$0xff] %v18074_v51  ;;  %v18077_v56 = vadd.f32 %v8042_v29, %v17816_v60  ;;  %v18081_v54 = vadd.f32 %v17888_v12, %v17839_v45  ;;  %v18090_v18 = vpop.f32.mrb[125].mxu1  ;;  %v23425_v60 = vld [vmem:[#allocation94_spill] sm:$0xff] }
 0x426   : > { %23305 = vst [vmem:[#allocation268_spill] sm:$0xff] %v18066_v36  ;;  %v18084_v3 = vadd.f32 %v8042_v29, %v17859_v10  ;;  %v18088_v43 = vadd.f32 %v17888_v12, %v17865_v26  ;;  %23312 = vst [vmem:[#allocation275_spill] sm:$0xff] %v18090_v18  ;;  %v18093_v27 = vadd.f32 %v8050_v9, %v17892_v4  ;;  %v18103_v29 = vpop.f32.mrb[126].mxu1  ;;  %v23317_v10 = vld [vmem:[#allocation121_spill] sm:$0xff] }
 0x427   : > { %23306 = vst [vmem:[#allocation269_spill] sm:$0xff] %v18070_v40  ;;  %23309 = vst [vmem:[#allocation272_spill] sm:$0xff] %v18077_v56  ;;  %v18096_v51 = vadd.f32 %v8046_v46, %v18010_v49  ;;  %v6895_v19 = vcombine.high %v18040_v42, %v18040_v42  ;;  %v18101_v36 = vadd.f32 %v8050_v9, %v18014_v44 }
 0x428   : > { %23310 = vst [vmem:[#allocation273_spill] sm:$0xff] %v18084_v3  ;;  %23311 = vst [vmem:[#allocation274_spill] sm:$0xff] %v18088_v43  ;;  %v18107_v12 = vadd.f32 %v16985_v39, %v23317_v10  ;;  %v7311_v26 = vcombine.high %v7303_v1, %v7303_v1  ;;  %v23319_v3 = vcombine.high %v23205_v22, %v23206_v24  ;;  %v18130_v24 = vld [vmem:[#allocation3 + $0x30] sm:$0xff] }
 0x429   : > { %23313 = vst [vmem:[#allocation276_spill] sm:$0xff] %v18093_v27  ;;  %23314 = vst [vmem:[#allocation277_spill] sm:$0xff] %v18096_v51  ;;  %v23320_v40 = vcombine.high %v23208_v7, %v23209_v13  ;;  %v18118_v9 = vrot.slane %v7303_v1, %v22948_v52  ;;  %v6846_v22 = vcombine.high %v17753_v48, %v17753_v48  ;;  %v18132_v13 = vpop.trf.xlu0  ;;  %v23325_v7 = vld [vmem:[#allocation171_spill] sm:$0xff]  ;;  %v23359_v51 = vld [vmem:[#allocation160_spill] sm:$0xff] }
 0x42a   : > { %23315 = vst [vmem:[#allocation278_spill] sm:$0xff] %v18101_v36  ;;  %23316 = vst [vmem:[#allocation279_spill] sm:$0xff] %v18103_v29  ;;  %v4698_v43 = vrot.slane %v23319_v3, %v22760_v33  ;;  %v23321_v36 = vcombine.high %v23213_v14, %v23214_v16  ;;  %v23322_v29 = vcombine.high %v23216_v41, %v23217_v57  ;;  %v18142_v16 = vld [vmem:[#allocation2 + $0x28] sm:$0xff] }
 0x42b   : > { %23318 = vst [vmem:[#allocation121_spill] sm:$0xff] %v18107_v12  ;;  %v4730_v18 = vrot.slane %v23320_v40, %v22760_v33  ;;  %23323 = vst [vmem:[#allocation280_spill] sm:$0xff] %v18130_v24  ;;  %v18136_v1 = vadd.f32 %v16985_v39, %v23325_v7  ;;  %v23327_v40 = vld [vmem:[#allocation149_spill] sm:$0xff]  ;;  %v6903_v57 = vrot.slane %v18142_v16, %v22948_v52 }
 0x42c   : > { %v5378_v10 = vrot.slane %v23321_v36, %v22760_v33  ;;  %v5410_v37 = vrot.slane %v23322_v29, %v22760_v33  ;;  %23324 = vst [vmem:[#allocation281_spill] sm:$0xff] %v18132_v13  ;;  %v18140_v14 = vadd.f32 %v16985_v39, %v23327_v40  ;;  %v18147_v48 = vrot.slane %v6895_v19, %v22957_v38  ;;  %v23331_v40 = vld [vmem:[#allocation41_spill] sm:$0xff]  ;;  %v23332_v13 = vld [vmem:[#allocation87_spill] sm:$0xff] }
 0x42d   : > { %23326 = vst [vmem:[#allocation171_spill] sm:$0xff] %v18136_v1  ;;  %v4737_v41 = vcombine.low %v4698_v43, %v4730_v18  ;;  %v18151_v3 = vrot.slane %v18118_v9, %v22957_v38  ;;  %v18154_v29 = vrot.slane %v6846_v22, %v22957_v38  ;;  %v18157_v7 = vrot.slane %v7311_v26, %v22948_v52 }
 0x42e   : > { %23328 = vst [vmem:[#allocation149_spill] sm:$0xff] %v18140_v14  ;;  %23329 = vst [vmem:[#allocation282_spill] sm:$0xff] %v18147_v48  ;;  %v5418_v36 = vcombine.high %v5378_v10, %v5410_v37  ;;  %v7776_v58 = vmul.f32 %v23332_v13, %v23331_v40  ;;  %v18164_v19 = vrot.slane %v18130_v24, %v22948_v52 }
 0x42f   : > { %23330 = vst [vmem:[#allocation283_spill] sm:$0xff] %v18154_v29  ;;  %v8352_v23 = vmul.f32 %v23333_v32, %v4737_v41  ;;  %v18168_v27 = vmul.f32 %v18147_v48, %v18014_v44  ;;  %v18171_v4 = vadd.f32 %v8046_v46, %v18107_v12  ;;  %v7825_v26 = vmul.f32 %v18154_v29, %v17521_v34  ;;  %v18184_v12 = vpop.trf.xlu0  ;;  %v23358_v48 = vld [vmem:[#allocation51_spill] sm:$0xff] }
 0x430   : > { %v8401_v22 = vmul.f32 %v17585_v2, %v5418_v36  ;;  %v8058_v13 = vrot.slane %v18157_v7, %v22957_v38  ;;  %v6911_v32 = vcombine.high %v6903_v57, %v6903_v57  ;;  %v4738_v40 = vcombine.high %v4698_v43, %v4730_v18  ;;  %23337 = vst [vmem:[#allocation285_spill] sm:$0xff] %v18184_v12  ;;  %v23338_v36 = vld [vmem:[#allocation63_spill] sm:$0xff]  ;;  %v18192_v18 = vpop.f32.mrb[127].mxu1 }
 0x431   : > { %23334 = vst [vmem:[#allocation87_spill] sm:$0xff] %v18168_v27  ;;  %23335 = vst [vmem:[#allocation78_spill] sm:$0xff] %v18171_v4  ;;  %v8480_v41 = vadd.f32 %v8352_v23, %v7776_v58  ;;  %v18180_v49 = vadd.f32 %v18151_v3, %v18140_v14  ;;  %v5417_v27 = vcombine.low %v5378_v10, %v5410_v37  ;;  %v23339_v4 = vld [vmem:[#allocation89_spill] sm:$0xff]  ;;  %v23340_v23 = vld [vmem:[#allocation150_spill] sm:$0xff] }
 0x432   : > { %v8529_v44 = vadd.f32 %v8401_v22, %v7825_v26  ;;  %v6844_v46 = vcombine.high %v17930_v20, %v17930_v20  ;;  %v7360_v2 = vcombine.high %v18164_v19, %v18164_v19  ;;  %v7778_v58 = vmul.f32 %v23339_v4, %v23338_v36  ;;  %23341 = vst [vmem:[#allocation89_spill] sm:$0xff] %v18192_v18  ;;  %v23357_v14 = vld [vmem:[#allocation86_spill] sm:$0xff]  ;;  %v23444_v29 = vld [vmem:[#allocation251_spill] sm:$0xff] }
 0x433   : > { %23336 = vst [vmem:[#allocation284_spill] sm:$0xff] %v18180_v49  ;;  %v8634_v34 = vsel %vm2529_vm5, %v8480_v41, 0.0  ;;  %v8354_v43 = vmul.f32 %v23340_v23, %v4738_v40  ;;  %v23342_v49 = vld [vmem:[#allocation29_spill] sm:$0xff]  ;;  %v8399_v26 = vmul.f32 %v17589_v8, %v5417_v27  ;;  %v18204_v22 = vadd.f32 %v8058_v13, %v18136_v1  ;;  %v23345_v40 = vld [vmem:[#allocation192_spill] sm:$0xff]  ;;  %v23350_v8 = vld [vmem:[#allocation174_spill] sm:$0xff] }
 0x434   : > { %v18196_v37 = vadd.f32 %v16985_v39, %v23342_v49  ;;  %8635 = vadd.xlane.f32.xlu1 %v8634_v34  ;;  %v8781_v20 = vsel %vm2529_vm5, %v8529_v44, 0.0  ;;  %v18200_v10 = vrot.slane %v6844_v46, %v22957_v38  ;;  %v6933_v4 = vrot.slane %v6911_v32, %v22948_v52  ;;  %v23347_v44 = vld [vmem:[#allocation153_spill] sm:$0xff]  ;;  %v23351_v27 = vld [vmem:[#allocation179_spill] sm:$0xff] }
 0x435   : > { %23344 = vst [vmem:[#allocation29_spill] sm:$0xff] %v18204_v22  ;;  %v18209_v41 = vadd.f32 %v16985_v39, %v23345_v40  ;;  %8782 = vadd.xlane.f32.xlu0 %v8781_v20  ;;  %v8482_v49 = vadd.f32 %v8354_v43, %v7778_v58  ;;  %v23348_v46 = vld [vmem:[#allocation161_spill] sm:$0xff]  ;;  %v23352_v12 = vcombine.low %v23350_v8, %v23351_v27  ;;  %v23354_v22 = vld [vmem:[#allocation38_spill] sm:$0xff]  ;;  %v23356_v20 = vld [vmem:[#allocation75_spill] sm:$0xff] }
 0x436   : > { %23343 = vst [vmem:[#allocation150_spill] sm:$0xff] %v18196_v37  ;;  %v7823_v34 = vmul.f32 %v18200_v10, %v17525_v61  ;;  %v23349_v23 = vcombine.low %v23347_v44, %v23348_v46  ;;  %v23353_v32 = vld [vmem:[#allocation37_spill] sm:$0xff]  ;;  %v18224_v39 = vrot.slane %v6903_v57, %v22948_v52  ;;  %v18227_v58 = vrot.slane %v7360_v2, %v22948_v52  ;;  %v18237_v57 = vpop.f32.mrb[126].mxu0 }
 0x437   : > { %23346 = vst [vmem:[#allocation192_spill] sm:$0xff] %v18209_v41  ;;  %v5523_v18 = vrot.slane %v23352_v12, %v22760_v33  ;;  %v4731_v1 = vcombine.low %v23354_v22, %v23353_v32  ;;  %v8640_v43 = vsel %vm2529_vm5, %v8482_v49, 0.0  ;;  %v7812_v40 = vmul.f32 %v23356_v20, %v17346_v35  ;;  %v18235_v22 = vpop.xlane.xlu0 %8698  ;;  %23361 = vst [vmem:[#allocation174_spill] sm:$0xff] %v18237_v57  ;;  %v18245_v20 = vld [vmem:[#allocation2 + $0x30] sm:$0xff]  ;;  %v23375_v57 = vld [vmem:[#allocation198_spill] sm:$0xff] }
 0x438   : > { %v5491_v36 = vrot.slane %v23349_v23, %v22760_v33  ;;  %23355 = vst [vmem:[#allocation153_spill] sm:$0xff] %v18227_v58  ;;  %8641 = vadd.xlane.f32.xlu1 %v8640_v43  ;;  %v8527_v23 = vadd.f32 %v8399_v26, %v7823_v34  ;;  %v7764_v12 = vmul.f32 %v23358_v48, %v23357_v14  ;;  %23360 = vst [vmem:[#allocation161_spill] sm:$0xff] %v18235_v22  ;;  %v18251_v48 = vpop.f32.mrb[127].mxu0  ;;  %v23368_v34 = vld [vmem:[#allocation212_spill] sm:$0xff]  ;;  %v23369_v14 = vld [vmem:[#allocation39_spill] sm:$0xff] }
 0x439   : > { %v8340_v56 = vmul.f32 %v23359_v51, %v4731_v1  ;;  %v18240_v2 = vrot.slane %v6933_v4, %v22957_v38  ;;  %v18243_v49 = vadd.f32 %v8058_v13, %v18196_v37  ;;  %v6943_v32 = vcombine.high %v6933_v4, %v6933_v4  ;;  %23364 = vst [vmem:[#allocation38_spill] sm:$0xff] %v18245_v20  ;;  %v18264_v4 = vld [vmem:[%s22696_s0] ss:$0 sm:$0xff] }
 0x43a   : > { %v5547_v61 = vcombine.low %v5491_v36, %v5523_v18  ;;  %v18249_v26 = vrot.slane %v18245_v20, %v22948_v52  ;;  %23366 = vst [vmem:[#allocation51_spill] sm:$0xff] %v18251_v48  ;;  %v18255_v51 = vrot.slane %v18224_v39, %v22957_v38  ;;  %v8775_v1 = vsel %vm2529_vm5, %v8527_v23, 0.0  ;;  %v23378_v48 = vld [vmem:[#allocation165_spill] sm:$0xff] }
 0x43b   : > { %23362 = vst [vmem:[#allocation179_spill] sm:$0xff] %v18240_v2  ;;  %23363 = vst [vmem:[#allocation37_spill] sm:$0xff] %v18243_v49  ;;  %v8468_v35 = vadd.f32 %v8340_v56, %v7764_v12  ;;  %v6896_v13 = vcombine.high %v18142_v16, %v18142_v16  ;;  %v18268_v22 = vadd.f32 %v18264_v4, %v23369_v14  ;;  %8776 = vadd.xlane.f32.xlu0 %v8775_v1  ;;  %v23373_v16 = vld [vmem:[#allocation196_spill] sm:$0xff] }
 0x43c   : > { %23365 = vst [vmem:[#allocation75_spill] sm:$0xff] %v18249_v26  ;;  %23367 = vst [vmem:[#allocation160_spill] sm:$0xff] %v18255_v51  ;;  %v8388_v43 = vmul.f32 %v23368_v34, %v5547_v61  ;;  %v18272_v37 = vrot.slane %v18227_v58, %v22957_v38  ;;  %v6960_v61 = vcombine.high %v18249_v26, %v18249_v26  ;;  %v23410_v26 = vld [vmem:[#allocation222_spill] sm:$0xff] }
 0x43d   : > { %23370 = vst [vmem:[#allocation212_spill] sm:$0xff] %v18268_v22  ;;  %v18278_v56 = vadd.f32 %v18151_v3, %v18209_v41  ;;  %v18282_v23 = vadd.f32 %v18264_v4, %v23373_v16  ;;  %v7343_v14 = vcombine.high %v18157_v7, %v18157_v7  ;;  %v7618_v34 = vrot.slane %v6943_v32, %v22957_v38  ;;  %v23379_v7 = vld [vmem:[#allocation61_spill] sm:$0xff] }
 0x43e   : > { %23371 = vst [vmem:[#allocation39_spill] sm:$0xff] %v18272_v37  ;;  %v8516_v12 = vadd.f32 %v8388_v43, %v7812_v40  ;;  %v18289_v1 = vadd.f32 %v18264_v4, %v23375_v57  ;;  %v7341_v49 = vcombine.high %v18118_v9, %v18118_v9  ;;  %v18294_v3 = vrot.slane %v6960_v61, %v22948_v52  ;;  %v18300_v43 = vpop.xlane.xlu0 %8596 }
 0x43f   : > { %23372 = vst [vmem:[#allocation286_spill] sm:$0xff] %v18278_v56  ;;  %23374 = vst [vmem:[#allocation196_spill] sm:$0xff] %v18282_v23  ;;  %v8598_v16 = vsel %vm2529_vm5, %v8468_v35, 0.0  ;;  %v5548_v56 = vcombine.high %v5491_v36, %v5523_v18  ;;  %v7814_v40 = vmul.f32 %v23379_v7, %v23378_v48  ;;  %v6910_v32 = vrot.slane %v6896_v13, %v22948_v52  ;;  %v23383_v35 = vld [vmem:[#allocation211_spill] sm:$0xff]  ;;  %v23384_v18 = vld [vmem:[#allocation77_spill] sm:$0xff] }
 0x440   : > { %23376 = vst [vmem:[#allocation198_spill] sm:$0xff] %v18289_v1  ;;  %23377 = vst [vmem:[#allocation287_spill] sm:$0xff] %v18294_v3  ;;  %v8742_v41 = vsel %vm2529_vm5, %v8516_v12, 0.0  ;;  %v7296_v57 = vcombine.high %v18022_v59, %v18022_v59  ;;  %v8309_v9 = vadd.f32 %v18272_v37, %v18268_v22  ;;  %8599 = vadd.xlane.f32.xlu0 %v8598_v16  ;;  %v23381_v61 = vlaneseq  ;;  %v23385_v7 = vld [vmem:[#allocation146_spill] sm:$0xff]  ;;  %v23388_v13 = vld [vmem:[#allocation248_spill] sm:$0xff] }
 0x441   : > { %23380 = vst [vmem:[#allocation61_spill] sm:$0xff] %v18300_v43  ;;  %8743 = vadd.xlane.f32.xlu1 %v8742_v41  ;;  %v8390_v36 = vmul.f32 %v23383_v35, %v5548_v56  ;;  %v23386_v48 = vcombine.low %v23384_v18, %v23385_v7  ;;  %v23389_v43 = vld [vmem:[#allocation250_spill] sm:$0xff]  ;;  %v18325_v41 = vrot.slane %v18294_v3, %v22957_v38  ;;  %v23398_v3 = vld [vmem:[#allocation144_spill] sm:$0xff] }
 0x442   : > { %v18308_v12 = vand.u32 127, %v23381_v61  ;;  %v23390_v59 = vcombine.low %v23388_v13, %v23389_v43  ;;  %v18328_v16 = vmul.f32 %v7618_v34, %v18282_v23  ;;  %v8066_v56 = vrot.slane %v7343_v14, %v22957_v38  ;;  %v23394_v61 = vld [vmem:[#allocation200_spill] sm:$0xff] }
 0x443   : > { %v18315_v2 = vrot.slane %v23386_v48, %v22760_v33  ;;  %23392 = vst [vmem:[#allocation146_spill] sm:$0xff] %v18325_v41  ;;  %v18333_v35 = vadd.f32 %v18264_v4, %v23394_v61  ;;  %v23396_v48 = vcombine.high %v23347_v44, %v23348_v46  ;;  %v8518_v7 = vadd.f32 %v8390_v36, %v7814_v40  ;;  %v23399_v44 = vld [vmem:[#allocation235_spill] sm:$0xff]  ;;  %v23400_v40 = vld [vmem:[#allocation73_spill] sm:$0xff]  ;;  %v23401_v36 = vld [vmem:[#allocation64_spill] sm:$0xff] }
 0x444   : > { %23382 = vst [vmem:[#allocation288_spill] sm:$0xff] %v18308_v12  ;;  %v18321_v51 = vrot.slane %v23390_v59, %v22760_v33  ;;  %23393 = vst [vmem:[#allocation248_spill] sm:$0xff] %v18328_v16  ;;  %v7861_v12 = vmul.f32 %v18325_v41, %v18268_v22  ;;  %v23397_v14 = vcombine.high %v23350_v8, %v23351_v27  ;;  %v23403_v27 = vld [vmem:[#allocation255_spill] sm:$0xff] }
 0x445   : > { %23387 = vst [vmem:[#allocation211_spill] sm:$0xff] %v18315_v2  ;;  %23395 = vst [vmem:[#allocation250_spill] sm:$0xff] %v18333_v35  ;;  %v18339_v18 = vrot.slane %v23396_v48, %v22760_v33  ;;  %v6912_v61 = vcombine.high %v6910_v32, %v6910_v32  ;;  %v7310_v37 = vrot.slane %v7296_v57, %v22948_v52  ;;  %v8748_v22 = vsel %vm2529_vm5, %v8518_v7, 0.0 }
 0x446   : > { %23391 = vst [vmem:[#allocation77_spill] sm:$0xff] %v18321_v51  ;;  %v6228_v59 = vcombine.high %v18315_v2, %v18321_v51  ;;  %v18349_v16 = vrot.slane %v23397_v14, %v22760_v33  ;;  %v7816_v46 = vmul.f32 %v23399_v44, %v23398_v3  ;;  %v23402_v48 = vcombine.low %v23400_v40, %v23401_v36  ;;  %v18369_v51 = vpop.xlane.xlu0 %8608 }
 0x447   : > { %v23404_v14 = vcombine.low %v17904_v63, %v23403_v27  ;;  %23405 = vst [vmem:[#allocation200_spill] sm:$0xff] %v18369_v51  ;;  %v18372_v44 = vadd.f32 %v8066_v56, %v18282_v23  ;;  %v18376_v3 = vmul.f32 %v7618_v34, %v18333_v35  ;;  %8749 = vadd.xlane.f32.xlu1 %v8748_v22  ;;  %v23411_v51 = vld [vmem:[#allocation201_spill] sm:$0xff] }
 0x448   : > { %v18358_v2 = vrot.slane %v23402_v48, %v22760_v33  ;;  %v8437_v41 = vmul.f32 %v8309_v9, %v6228_v59  ;;  %v5549_v8 = vcombine.low %v18339_v18, %v18349_v16  ;;  %v8062_v48 = vrot.slane %v7341_v49, %v22957_v38  ;;  %v23408_v9 = vld [vmem:[#allocation95_spill] sm:$0xff] }
 0x449   : > { %v18367_v57 = vrot.slane %v23404_v14, %v22760_v33  ;;  %23406 = vst [vmem:[#allocation235_spill] sm:$0xff] %v18372_v44  ;;  %23407 = vst [vmem:[#allocation73_spill] sm:$0xff] %v18376_v3  ;;  %v18380_v7 = vrot.slane %v23408_v9, %v22948_v52  ;;  %v18383_v59 = vadd.f32 %v8066_v56, %v18333_v35  ;;  %v23415_v35 = vld [vmem:[#allocation151_spill] sm:$0xff] }
 0x44a   : > { %v8565_v14 = vadd.f32 %v8437_v41, %v7861_v12  ;;  %v8392_v58 = vmul.f32 %v23410_v26, %v5549_v8  ;;  %v18390_v49 = vadd.f32 %v18264_v4, %v23411_v51  ;;  %v6941_v22 = vcombine.high %v18224_v39, %v18224_v39  ;;  %v23413_v8 = vld [vmem:[#allocation50_spill] sm:$0xff]  ;;  %v18429_v44 = vpop.xlane.xlu0 %8614 }
 0x44b   : > { %23409 = vst [vmem:[#allocation64_spill] sm:$0xff] %v18383_v59  ;;  %v5683_v23 = vcombine.low %v18358_v2, %v18367_v57  ;;  %v7312_v34 = vcombine.high %v7310_v37, %v7310_v37  ;;  %v18396_v9 = vrot.slane %v18380_v7, %v22948_v52  ;;  %v18399_v56 = vrot.slane %v6912_v61, %v22948_v52  ;;  %v23416_v59 = vld [vmem:[#allocation225_spill] sm:$0xff] }
 0x44c   : > { %23412 = vst [vmem:[#allocation255_spill] sm:$0xff] %v18390_v49  ;;  %v18402_v26 = vrot.slane %v6910_v32, %v22948_v52  ;;  %v8889_v12 = vsel %vm2529_vm5, %v8565_v14, 0.0  ;;  %v8520_v41 = vadd.f32 %v8392_v58, %v7816_v46  ;;  %v18407_v51 = vadd.f32 %v17542_v17, %v23413_v8  ;;  %v23417_v14 = vld [vmem:[#allocation206_spill] sm:$0xff]  ;;  %23419 = vst [vmem:[#allocation222_spill] sm:$0xff] %v18429_v44 }
 0x44d   : > { %8890 = vadd.xlane.f32.xlu0 %v8889_v12  ;;  %v18411_v39 = vrot.slane %v18396_v9, %v22957_v38  ;;  %v8403_v3 = vmul.f32 %v23415_v35, %v5683_v23  ;;  %v18416_v61 = vadd.f32 %v17542_v17, %v23416_v59  ;;  %v18422_v58 = vadd.f32 %v17542_v17, %v23417_v14  ;;  %v23418_v12 = vld [vmem:[#allocation228_spill] sm:$0xff]  ;;  %v23421_v35 = vld [vmem:[#allocation178_spill] sm:$0xff] }
 0x44e   : > { %v7622_v32 = vrot.slane %v18402_v26, %v22957_v38  ;;  %v8754_v46 = vsel %vm2529_vm5, %v8520_v41, 0.0  ;;  %v18427_v8 = vadd.f32 %v17542_v17, %v23418_v12  ;;  %v18432_v23 = vadd.f32 %v8062_v48, %v18289_v1  ;;  %v23422_v44 = vld [vmem:[#allocation30_spill] sm:$0xff] }
 0x44f   : > { %23414 = vst [vmem:[#allocation95_spill] sm:$0xff] %v18411_v39  ;;  %8755 = vadd.xlane.f32.xlu1 %v8754_v46  ;;  %v7827_v59 = vmul.f32 %v18411_v39, %v23421_v35  ;;  %v18441_v41 = vrot.slane %v7312_v34, %v22948_v52  ;;  %v7626_v12 = vrot.slane %v18399_v56, %v22957_v38  ;;  %v23429_v46 = vld [vmem:[#allocation208_spill] sm:$0xff] }
 0x450   : > { %23420 = vst [vmem:[#allocation201_spill] sm:$0xff] %v18432_v23  ;;  %v18447_v1 = vadd.f32 %v18264_v4, %v23422_v44  ;;  %v18452_v35 = vadd.f32 %v8062_v48, %v18390_v49  ;;  %v18456_v39 = vadd.f32 %v18264_v4, %v23425_v60  ;;  %v18459_v34 = vrot.slane %v7310_v37, %v22948_v52 }
 0x451   : > { %v8531_v14 = vadd.f32 %v8403_v3, %v7827_v59  ;;  %v18462_v23 = vrot.slane %v6941_v22, %v22957_v38  ;;  %v8074_v44 = vrot.slane %v18441_v41, %v22957_v38  ;;  %v18475_v37 = vadd.f32 %v17542_v17, %v23429_v46  ;;  %v23430_v22 = vld [vmem:[#allocation62_spill] sm:$0xff]  ;;  %v18497_v46 = vpop.xlane.xlu0 %8620 }
 0x452   : > { %23423 = vst [vmem:[#allocation50_spill] sm:$0xff] %v18447_v1  ;;  %23424 = vst [vmem:[#allocation151_spill] sm:$0xff] %v18452_v35  ;;  %v18467_v24 = vmul.f32 %v7622_v32, %v18447_v1  ;;  %v8070_v60 = vrot.slane %v18459_v34, %v22957_v38  ;;  %v18480_v59 = vadd.f32 %v17542_v17, %v23430_v22  ;;  %v23437_v22 = vld [vmem:[#allocation210_spill] sm:$0xff] }
 0x453   : > { %23426 = vst [vmem:[#allocation225_spill] sm:$0xff] %v18456_v39  ;;  %23427 = vst [vmem:[#allocation206_spill] sm:$0xff] %v18462_v23  ;;  %v8787_v3 = vsel %vm2529_vm5, %v8531_v14, 0.0  ;;  %v18483_v49 = vmul.f32 %v7626_v12, %v18456_v39  ;;  %v23432_v48 = vcombine.high %v23388_v13, %v23389_v43  ;;  %v5550_v14 = vcombine.high %v18339_v18, %v18349_v16  ;;  %v23438_v13 = vld [vmem:[#allocation145_spill] sm:$0xff] }
 0x454   : > { %23428 = vst [vmem:[#allocation228_spill] sm:$0xff] %v18467_v24  ;;  %v23434_v24 = vld [vmem:[#allocation152_spill] sm:$0xff]  ;;  %8788 = vadd.xlane.f32.xlu0 %v8787_v3  ;;  %23436 = vst [vmem:[#allocation62_spill] sm:$0xff] %v18497_v46  ;;  %v18501_v42 = vadd.f32 %v17542_v17, %v23437_v22  ;;  %v5684_v16 = vcombine.high %v18358_v2, %v18367_v57  ;;  %v6862_v18 = vcombine.high %v18380_v7, %v18380_v7  ;;  %v23443_v43 = vld [vmem:[#allocation249_spill] sm:$0xff] }
 0x455   : > { %23431 = vst [vmem:[#allocation30_spill] sm:$0xff] %v18483_v49  ;;  %v18489_v35 = vrot.slane %v23432_v48, %v22760_v33  ;;  %v18493_v23 = vadd.f32 %v18264_v4, %v23434_v24  ;;  %v23439_v48 = vld [vmem:[#allocation214_spill] sm:$0xff]  ;;  %v23441_v46 = vld [vmem:[#allocation232_spill] sm:$0xff]  ;;  %v18519_v49 = vadd.f32 %v8074_v44, %v18456_v39  ;;  %v23445_v20 = vcombine.low %v23443_v43, %v23444_v29  ;;  %v23449_v7 = vld [vmem:[#allocation35_spill] sm:$0xff] }
 0x456   : > { %v7818_v24 = vmul.f32 %v23439_v48, %v23438_v13  ;;  %v18516_v22 = vadd.f32 %v17542_v17, %v23441_v46  ;;  %v23447_v2 = vcombine.high %v23443_v43, %v23444_v29  ;;  %v18541_v39 = vrot.slane %v6862_v18, %v22948_v52  ;;  %v23453_v43 = vld [vmem:[#allocation176_spill] sm:$0xff]  ;;  %v23456_v18 = vld [vmem:[#allocation162_spill] sm:$0xff] }
 0x457   : > { %23433 = vst [vmem:[#allocation94_spill] sm:$0xff] %v18489_v35  ;;  %23435 = vst [vmem:[#allocation208_spill] sm:$0xff] %v18493_v23  ;;  %v23440_v35 = vld [vmem:[#allocation221_spill] sm:$0xff]  ;;  %v18525_v48 = vrot.slane %v23445_v20, %v22760_v33  ;;  %v18546_v13 = vmul.f32 %v7626_v12, %v18493_v23  ;;  %v18549_v29 = vadd.f32 %v8074_v44, %v18493_v23  ;;  %v23458_v44 = vld [vmem:[#allocation175_spill] sm:$0xff] }
 0x458   : > { %v8394_v3 = vmul.f32 %v23440_v35, %v5550_v14  ;;  %23442 = vst [vmem:[#allocation152_spill] sm:$0xff] %v18519_v49  ;;  %v18531_v57 = vrot.slane %v23447_v2, %v22760_v33  ;;  %v18535_v35 = vadd.f32 %v18264_v4, %v23449_v7  ;;  %v18538_v14 = vadd.f32 %v8070_v60, %v18447_v1  ;;  %v23459_v23 = vld [vmem:[#allocation180_spill] sm:$0xff]  ;;  %v23463_v7 = vld [vmem:[#allocation71_spill] sm:$0xff] }
 0x459   : > { %23446 = vst [vmem:[#allocation210_spill] sm:$0xff] %v18525_v48  ;;  %23451 = vst [vmem:[#allocation232_spill] sm:$0xff] %v18546_v13  ;;  %v8405_v2 = vmul.f32 %v23453_v43, %v5684_v16  ;;  %v23460_v13 = vcombine.low %v23458_v44, %v23459_v23  ;;  %v18571_v43 = vpop.xlane.xlu0 %8626  ;;  %v23466_v48 = vcombine.high %v23400_v40, %v23401_v36 }
 0x45a   : > { %23448 = vst [vmem:[#allocation214_spill] sm:$0xff] %v18531_v57  ;;  %23450 = vst [vmem:[#allocation221_spill] sm:$0xff] %v18535_v35  ;;  %v8522_v46 = vadd.f32 %v8394_v3, %v7818_v24  ;;  %v18557_v24 = vrot.slane %v18541_v39, %v22957_v38  ;;  %v23455_v3 = vld [vmem:[#allocation154_spill] sm:$0xff]  ;;  %v23465_v57 = vld [vmem:[#allocation140_spill] sm:$0xff]  ;;  %v23469_v40 = vcombine.low %v17939_v25, %v17968_v47 }
 0x45b   : > { %23452 = vst [vmem:[#allocation249_spill] sm:$0xff] %v18549_v29  ;;  %v23457_v20 = vcombine.low %v23455_v3, %v23456_v18  ;;  %v18569_v16 = vrot.slane %v23460_v13, %v22760_v33  ;;  %23461 = vst [vmem:[#allocation35_spill] sm:$0xff] %v18571_v43  ;;  %v18578_v29 = vadd.f32 %v18264_v4, %v23463_v7  ;;  %v23467_v13 = vld [vmem:[#allocation177_spill] sm:$0xff] }
 0x45c   : > { %v8760_v1 = vsel %vm2529_vm5, %v8522_v46, 0.0  ;;  %23454 = vst [vmem:[#allocation251_spill] sm:$0xff] %v18557_v24  ;;  %v18574_v46 = vmul.f32 %v7622_v32, %v18535_v35  ;;  %v18586_v49 = vrot.slane %v23466_v48, %v22760_v33  ;;  %v7829_v43 = vmul.f32 %v18557_v24, %v23467_v13 }
 0x45d   : > { %v18563_v12 = vrot.slane %v23457_v20, %v22760_v33  ;;  %23464 = vst [vmem:[#allocation154_spill] sm:$0xff] %v18578_v29  ;;  %8761 = vadd.xlane.f32.xlu1 %v8760_v1  ;;  %v7820_v20 = vmul.f32 %v17954_v31, %v23465_v57  ;;  %v23468_v7 = vcombine.high %v17904_v63, %v23403_v27  ;;  %v23476_v57 = vld [vmem:[#allocation233_spill] sm:$0xff] }
 0x45e   : > { %23462 = vst [vmem:[#allocation176_spill] sm:$0xff] %v18574_v46  ;;  %v6892_v31 = vcombine.high %v18396_v9, %v18396_v9  ;;  %v18604_v36 = vrot.slane %v23469_v40, %v22760_v33  ;;  %v23471_v48 = vcombine.high %v17939_v25, %v17968_v47  ;;  %v23473_v63 = vcombine.low %v17965_v0, %v17971_v15 }
 0x45f   : > { %v5551_v32 = vcombine.low %v18563_v12, %v18569_v16  ;;  %v18596_v1 = vrot.slane %v23468_v7, %v22760_v33  ;;  %v18619_v9 = vadd.f32 %v8070_v60, %v18535_v35  ;;  %v8533_v7 = vadd.f32 %v8405_v2, %v7829_v43  ;;  %v23480_v60 = vld [vmem:[#allocation215_spill] sm:$0xff]  ;;  %v23481_v43 = vld [vmem:[#allocation190_spill] sm:$0xff] }
 0x460   : > { %23470 = vst [vmem:[#allocation162_spill] sm:$0xff] %v18604_v36  ;;  %v18610_v13 = vrot.slane %v23471_v48, %v22760_v33  ;;  %v18616_v27 = vrot.slane %v23473_v63, %v22760_v33  ;;  %v18625_v24 = vrot.slane %v6892_v31, %v22957_v38  ;;  %v23478_v25 = vcombine.high %v17965_v0, %v17971_v15  ;;  %v18643_v0 = vpop.xlane.xlu0 %8632  ;;  %v23571_v36 = vld [vmem:[#allocation45_spill] sm:$0xff] }
 0x461   : > { %23475 = vst [vmem:[#allocation71_spill] sm:$0xff] %v18619_v9  ;;  %v8396_v46 = vmul.f32 %v23476_v57, %v5551_v32  ;;  %v5685_v40 = vcombine.low %v18586_v49, %v18596_v1  ;;  %v6944_v48 = vcombine.high %v18399_v56, %v18399_v56  ;;  %v4365_v2 = vadd.f32 %v17542_v17, %v23480_v60  ;;  %v23483_v56 = vld [vmem:[#allocation59_spill] sm:$0xff] }
 0x462   : > { %23472 = vst [vmem:[#allocation175_spill] sm:$0xff] %v18610_v13  ;;  %23474 = vst [vmem:[#allocation180_spill] sm:$0xff] %v18616_v27  ;;  %v18631_v47 = vrot.slane %v23478_v25, %v22760_v33  ;;  %v4397_v57 = vadd.f32 %v17542_v17, %v23481_v43  ;;  %v8793_v32 = vsel %vm2529_vm5, %v8533_v7, 0.0  ;;  %v7831_v31 = vmul.f32 %v18625_v24, %v17781_v53  ;;  %v23570_v13 = vld [vmem:[#allocation97_spill] sm:$0xff] }
 0x463   : > { %23477 = vst [vmem:[#allocation233_spill] sm:$0xff] %v18625_v24  ;;  %v8524_v63 = vadd.f32 %v8396_v46, %v7820_v20  ;;  %v8407_v35 = vmul.f32 %v18062_v28, %v5685_v40  ;;  %23482 = vst [vmem:[#allocation215_spill] sm:$0xff] %v18643_v0  ;;  %v7344_v15 = vcombine.high %v18441_v41, %v18441_v41  ;;  %8794 = vadd.xlane.f32.xlu0 %v8793_v32  ;;  %v23485_v20 = vld [vmem:[#allocation217_spill] sm:$0xff]  ;;  %v23492_v46 = vld [vmem:[#allocation195_spill] sm:$0xff] }
 0x464   : > { %23479 = vst [vmem:[#allocation289_spill] sm:$0xff] %v18631_v47  ;;  %v18649_v25 = vadd.f32 %v18264_v4, %v23483_v56  ;;  %v6251_v60 = vcombine.low %v4365_v2, %v4397_v57  ;;  %v6252_v43 = vcombine.high %v4365_v2, %v4397_v57  ;;  %v4357_v7 = vadd.f32 %v17542_v17, %v23485_v20  ;;  %v23491_v20 = vld [vmem:[#allocation242_spill] sm:$0xff] }
 0x465   : > { %v8766_v28 = vsel %vm2529_vm5, %v8524_v63, 0.0  ;;  %v8535_v40 = vadd.f32 %v8407_v35, %v7831_v31  ;;  %v23486_v41 = vcombine.low %v18407_v51, %v18416_v61  ;;  %v23487_v32 = vcombine.high %v18407_v51, %v18416_v61  ;;  %v23490_v35 = vld [vmem:[#allocation60_spill] sm:$0xff] }
 0x466   : > { %23484 = vst [vmem:[#allocation190_spill] sm:$0xff] %v18649_v25  ;;  %8767 = vadd.xlane.f32.xlu1 %v8766_v28  ;;  %v18669_v57 = vrot.slane %v6251_v60, %v23247_v6  ;;  %v18672_v56 = vrot.slane %v6252_v43, %v23247_v6  ;;  %v4368_v63 = vadd.f32 %v17542_v17, %v23490_v35  ;;  %v18701_v60 = vpop.xlane.xlu0 %8638 }
 0x467   : > { %v18660_v53 = vrot.slane %v23486_v41, %v23247_v6  ;;  %v18666_v2 = vrot.slane %v23487_v32, %v23247_v6  ;;  %v8799_v31 = vsel %vm2529_vm5, %v8535_v40, 0.0  ;;  %v4389_v41 = vadd.f32 %v17542_v17, %v23491_v20  ;;  %23497 = vst [vmem:[#allocation195_spill] sm:$0xff] %v18701_v60 }
 0x468   : > { %23489 = vst [vmem:[#allocation217_spill] sm:$0xff] %v18672_v56  ;;  %v4400_v51 = vadd.f32 %v17542_v17, %v23492_v46  ;;  %8800 = vadd.xlane.f32.xlu0 %v8799_v31  ;;  %v23493_v40 = vcombine.low %v18422_v58, %v18427_v8  ;;  %v23495_v46 = vcombine.high %v18422_v58, %v18427_v8 }
 0x469   : > { %23488 = vst [vmem:[#allocation59_spill] sm:$0xff] %v18666_v2  ;;  %v5707_v31 = vcombine.low %v4357_v7, %v4389_v41  ;;  %v5708_v20 = vcombine.high %v4357_v7, %v4389_v41  ;;  %v23498_v28 = vcombine.low %v18475_v37, %v18480_v59  ;;  %v23499_v58 = vcombine.high %v18475_v37, %v18480_v59 }
 0x46a   : > { %v18693_v32 = vrot.slane %v23493_v40, %v23247_v6  ;;  %v18699_v35 = vrot.slane %v23495_v46, %v23247_v6  ;;  %v6523_v61 = vcombine.low %v4368_v63, %v4400_v51  ;;  %v6524_v9 = vcombine.high %v4368_v63, %v4400_v51  ;;  %v23502_v46 = vld [vmem:[#allocation84_spill] sm:$0xff]  ;;  %v18756_v59 = vpop.xlane.xlu0 %8692 }
 0x46b   : > { %v18707_v43 = vrot.slane %v23498_v28, %v23247_v6  ;;  %v5552_v40 = vcombine.high %v18563_v12, %v18569_v16  ;;  %v18715_v8 = vrot.slane %v23499_v58, %v23247_v6  ;;  %v18718_v7 = vrot.slane %v5707_v31, %v23247_v6  ;;  %v23503_v28 = vld [vmem:[#allocation125_spill] sm:$0xff]  ;;  %v23504_v16 = vld [vmem:[#allocation227_spill] sm:$0xff]  ;;  %v23505_v58 = vld [vmem:[#allocation220_spill] sm:$0xff] }
 0x46c   : > { %23494 = vst [vmem:[#allocation60_spill] sm:$0xff] %v18693_v32  ;;  %23496 = vst [vmem:[#allocation242_spill] sm:$0xff] %v18699_v35  ;;  %v18721_v41 = vrot.slane %v5708_v20, %v23247_v6  ;;  %v7822_v60 = vmul.f32 %v23503_v28, %v23502_v46  ;;  %v18726_v63 = vrot.slane %v6523_v61, %v23247_v6  ;;  %v23506_v61 = vld [vmem:[#allocation246_spill] sm:$0xff] }
 0x46d   : > { %23500 = vst [vmem:[#allocation290_spill] sm:$0xff] %v18718_v7  ;;  %v18729_v12 = vrot.slane %v6524_v9, %v23247_v6  ;;  %v8398_v51 = vmul.f32 %v23504_v16, %v5552_v40  ;;  %v5686_v37 = vcombine.high %v18586_v49, %v18596_v1  ;;  %v4360_v28 = vadd.f32 %v17542_v17, %v23505_v58 }
 0x46e   : > { %23501 = vst [vmem:[#allocation291_spill] sm:$0xff] %v18721_v41  ;;  %v6894_v20 = vcombine.high %v18541_v39, %v18541_v39  ;;  %v4392_v31 = vadd.f32 %v17542_v17, %v23506_v61  ;;  %23507 = vst [vmem:[#allocation125_spill] sm:$0xff] %v18756_v59  ;;  %v7634_v40 = vrot.slane %v6944_v48, %v22957_v38 }
 0x46f   : > { %v8526_v16 = vadd.f32 %v8398_v51, %v7822_v60  ;;  %v8082_v9 = vrot.slane %v7344_v15, %v22957_v38  ;;  %v7342_v49 = vcombine.high %v18459_v34, %v18459_v34  ;;  %v8409_v1 = vmul.f32 %v18058_v50, %v5686_v37 }
 0x470   : > { %v18765_v60 = vrot.slane %v6894_v20, %v22957_v38  ;;  %v5979_v39 = vcombine.low %v4360_v28, %v4392_v31  ;;  %v5980_v51 = vcombine.high %v4360_v28, %v4392_v31  ;;  %v18769_v17 = vrot.slane %v18164_v19, %v22948_v52 }
 0x471   : > { %v8772_v58 = vsel %vm2529_vm5, %v8526_v16, 0.0  ;;  %v23509_v48 = vcombine.low %v18501_v42, %v18516_v22  ;;  %v23510_v50 = vcombine.high %v23455_v3, %v23456_v18  ;;  %v23511_v37 = vcombine.high %v23458_v44, %v23459_v23  ;;  %v23513_v16 = vld [vmem:[#allocation230_spill] sm:$0xff]  ;;  %v23514_v44 = vld [vmem:[#allocation127_spill] sm:$0xff] }
 0x472   : > { %23508 = vst [vmem:[#allocation227_spill] sm:$0xff] %v18765_v60  ;;  %8773 = vadd.xlane.f32.xlu1 %v8772_v58  ;;  %v23512_v19 = vcombine.high %v18501_v42, %v18516_v22  ;;  %v7833_v61 = vmul.f32 %v18765_v60, %v17745_v21  ;;  %v18794_v28 = vrot.slane %v5979_v39, %v23247_v6  ;;  %v23515_v58 = vld [vmem:[#allocation28_spill] sm:$0xff]  ;;  %v18817_v21 = vpop.xlane.xlu0 %8644  ;;  %v23540_v60 = vld [vmem:[#allocation283_spill] sm:$0xff] }
 0x473   : > { %v18775_v15 = vrot.slane %v23509_v48, %v23247_v6  ;;  %v5514_v34 = vrot.slane %v23510_v50, %v22760_v33  ;;  %v5546_v31 = vrot.slane %v23511_v37, %v22760_v33  ;;  %v18797_v3 = vrot.slane %v5980_v51, %v23247_v6  ;;  %v18809_v37 = vpop.f32.mrb[128].mxu0  ;;  %23519 = vst [vmem:[#allocation246_spill] sm:$0xff] %v18817_v21  ;;  %v23523_v51 = vld [vmem:[#allocation202_spill] sm:$0xff] }
 0x474   : > { %v18789_v20 = vrot.slane %v23512_v19, %v23247_v6  ;;  %v7824_v23 = vmul.f32 %v18200_v10, %v23513_v16  ;;  %v23516_v48 = vcombine.low %v23514_v44, %v23515_v58  ;;  %v23517_v22 = vcombine.low %v17921_v11, %v17924_v30  ;;  %23518 = vst [vmem:[#allocation220_spill] sm:$0xff] %v18809_v37 }
 0x475   : > { %v5553_v18 = vcombine.low %v5514_v34, %v5546_v31  ;;  %v8537_v39 = vadd.f32 %v8409_v1, %v7833_v61  ;;  %v18826_v1 = vrot.slane %v17933_v5, %v22948_v52  ;;  %v23522_v61 = vcombine.high %v18402_v26, %v18402_v26 }
 0x476   : > { %v5643_v42 = vrot.slane %v23516_v48, %v22760_v33  ;;  %v5675_v50 = vrot.slane %v23517_v22, %v22760_v33  ;;  %v18819_v48 = vpop.f32.mrb[129].mxu0  ;;  %v23521_v22 = vld [vmem:[#allocation236_spill] sm:$0xff]  ;;  %v8078_v10 = vrot.slane %v7342_v49, %v22957_v38  ;;  %v18835_v21 = vadd.f32 %v18264_v4, %v23523_v51 }
 0x477   : > { %23520 = vst [vmem:[#allocation127_spill] sm:$0xff] %v18819_v48  ;;  %v8400_v46 = vmul.f32 %v23521_v22, %v5553_v18  ;;  %v7630_v19 = vrot.slane %v23522_v61, %v22957_v38  ;;  %v8805_v16 = vsel %vm2529_vm5, %v8537_v39, 0.0  ;;  %v23525_v18 = vcombine.low %v18028_v62, %v18035_v55  ;;  %v18849_v61 = vpop.f32.mrb[130].mxu0  ;;  %v23538_v48 = vld [vmem:[#allocation38_spill] sm:$0xff] }
 0x478   : > { %v5687_v37 = vcombine.low %v5643_v42, %v5675_v50  ;;  %23524 = vst [vmem:[#allocation28_spill] sm:$0xff] %v18835_v21  ;;  %8806 = vadd.xlane.f32.xlu0 %v8805_v16  ;;  %v18846_v26 = vrot.slane %v18826_v1, %v22957_v38  ;;  %23527 = vst [vmem:[#allocation202_spill] sm:$0xff] %v18849_v61  ;;  %v23528_v39 = vcombine.high %v18028_v62, %v18035_v55 }
 0x479   : > { %v18842_v22 = vrot.slane %v23525_v18, %v22760_v33  ;;  %v8528_v5 = vadd.f32 %v8400_v46, %v7824_v23  ;;  %v18858_v59 = vmul.f32 %v7634_v40, %v18578_v29  ;;  %v18861_v16 = vadd.f32 %v8082_v9, %v18578_v29  ;;  %v23530_v46 = vld [vmem:[#allocation204_spill] sm:$0xff]  ;;  %v18867_v18 = vpop.f32.mrb[131].mxu0 }
 0x47a   : > { %23526 = vst [vmem:[#allocation236_spill] sm:$0xff] %v18846_v26  ;;  %v8411_v49 = vmul.f32 %v18081_v54, %v5687_v37  ;;  %v18855_v51 = vrot.slane %v23528_v39, %v22760_v33  ;;  %v18865_v23 = vadd.f32 %v18264_v4, %v23530_v46  ;;  %23532 = vst [vmem:[#allocation293_spill] sm:$0xff] %v18867_v18  ;;  %v23533_v54 = vld [vmem:[#allocation205_spill] sm:$0xff]  ;;  %v18890_v18 = vpop.xlane.xlu0 %8650 }
 0x47b   : > { %23529 = vst [vmem:[#allocation292_spill] sm:$0xff] %v18858_v59  ;;  %v18871_v37 = vadd.f32 %v18264_v4, %v23533_v54  ;;  %v8086_v62 = vrot.slane %v18769_v17, %v22957_v38  ;;  %v8778_v55 = vsel %vm2529_vm5, %v8528_v5, 0.0  ;;  %v7835_v39 = vmul.f32 %v18846_v26, %v17839_v45  ;;  %23537 = vst [vmem:[#allocation296_spill] sm:$0xff] %v18890_v18  ;;  %v23539_v26 = vld [vmem:[#allocation132_spill] sm:$0xff]  ;;  %v23553_v18 = vld [vmem:[#allocation153_spill] sm:$0xff] }
 0x47c   : > { %23531 = vst [vmem:[#allocation204_spill] sm:$0xff] %v18865_v23  ;;  %v18879_v29 = vmul.f32 %v7630_v19, %v18649_v25  ;;  %v18882_v46 = vadd.f32 %v8078_v10, %v18649_v25  ;;  %v18885_v61 = vmul.f32 %v7634_v40, %v18835_v21  ;;  %v18888_v54 = vadd.f32 %v8082_v9, %v18835_v21  ;;  %v23543_v9 = vld [vmem:[#allocation265_spill] sm:$0xff] }
 0x47d   : > { %23534 = vst [vmem:[#allocation205_spill] sm:$0xff] %v18871_v37  ;;  %8779 = vadd.xlane.f32.xlu1 %v8778_v55  ;;  %v6945_v5 = vcombine.high %v23538_v48, %v23538_v48  ;;  %v8539_v47 = vadd.f32 %v8411_v49, %v7835_v39  ;;  %v5554_v45 = vcombine.high %v5514_v34, %v5546_v31  ;;  %v23545_v48 = vld [vmem:[#allocation207_spill] sm:$0xff]  ;;  %v23547_v31 = vld [vmem:[#allocation234_spill] sm:$0xff]  ;;  %v23548_v49 = vld [vmem:[#allocation209_spill] sm:$0xff] }
 0x47e   : > { %23535 = vst [vmem:[#allocation294_spill] sm:$0xff] %v18885_v61  ;;  %23536 = vst [vmem:[#allocation295_spill] sm:$0xff] %v18888_v54  ;;  %v7826_v27 = vmul.f32 %v23540_v60, %v23539_v26  ;;  %v18897_v25 = vmul.f32 %v7630_v19, %v18865_v23  ;;  %v18900_v40 = vadd.f32 %v8078_v10, %v18865_v23  ;;  %v23551_v39 = vld [vmem:[#allocation119_spill] sm:$0xff]  ;;  %v23552_v23 = vld [vmem:[#allocation272_spill] sm:$0xff]  ;;  %v18941_v41 = vpop.xlane.xlu0 %8656 }
 0x47f   : > { %v5688_v61 = vcombine.high %v5643_v42, %v5675_v50  ;;  %v18904_v55 = vrot.slane %v23543_v9, %v22957_v38  ;;  %v18907_v21 = vadd.f32 %v8086_v62, %v18871_v37  ;;  %v18911_v34 = vadd.f32 %v18264_v4, %v23545_v48  ;;  %v23550_v42 = vld [vmem:[#allocation280_spill] sm:$0xff]  ;;  %v23556_v54 = vld [vmem:[#allocation163_spill] sm:$0xff]  ;;  %23561 = vst [vmem:[#allocation209_spill] sm:$0xff] %v18941_v41 }
 0x480   : > { %23541 = vst [vmem:[#allocation38_spill] sm:$0xff] %v18897_v25  ;;  %23542 = vst [vmem:[#allocation283_spill] sm:$0xff] %v18900_v40  ;;  %v8811_v60 = vsel %vm2529_vm5, %v8539_v47, 0.0  ;;  %v8402_v19 = vmul.f32 %v23547_v31, %v5554_v45  ;;  %v18917_v10 = vadd.f32 %v18264_v4, %v23548_v49  ;;  %v7345_v50 = vcombine.high %v23550_v42, %v23550_v42  ;;  %v23554_v47 = vld [vmem:[#allocation75_spill] sm:$0xff] }
 0x481   : > { %23544 = vst [vmem:[#allocation265_spill] sm:$0xff] %v18904_v55  ;;  %23546 = vst [vmem:[#allocation207_spill] sm:$0xff] %v18911_v34  ;;  %8812 = vadd.xlane.f32.xlu0 %v8811_v60  ;;  %v7837_v9 = vmul.f32 %v18904_v55, %v23551_v39  ;;  %v8413_v26 = vmul.f32 %v23552_v23, %v5688_v61  ;;  %v7392_v48 = vcombine.high %v23553_v18, %v23553_v18  ;;  %v23555_v60 = vld [vmem:[#allocation167_spill] sm:$0xff]  ;;  %v23559_v23 = vld [vmem:[#allocation181_spill] sm:$0xff] }
 0x482   : > { %23549 = vst [vmem:[#allocation234_spill] sm:$0xff] %v18917_v10  ;;  %v18928_v25 = vrot.slane %v23554_v47, %v22948_v52  ;;  %v6959_v45 = vrot.slane %v6945_v5, %v22948_v52  ;;  %v8530_v31 = vadd.f32 %v8402_v19, %v7826_v27  ;;  %v7390_v49 = vcombine.high %v18769_v17, %v18769_v17  ;;  %v23558_v61 = vld [vmem:[#allocation183_spill] sm:$0xff]  ;;  %v23562_v47 = vld [vmem:[#allocation213_spill] sm:$0xff] }
 0x483   : > { %v8541_v42 = vadd.f32 %v8413_v26, %v7837_v9  ;;  %v23557_v39 = vcombine.low %v23555_v60, %v23556_v54  ;;  %v23560_v18 = vcombine.low %v23558_v61, %v23559_v23  ;;  %v18945_v5 = vadd.f32 %v18264_v4, %v23562_v47  ;;  %v23564_v27 = vld [vmem:[#allocation287_spill] sm:$0xff] }
 0x484   : > { %v6992_v17 = vcombine.high %v23564_v27, %v23564_v27  ;;  %v6990_v26 = vcombine.high %v18928_v25, %v18928_v25  ;;  %v8784_v19 = vsel %vm2529_vm5, %v8530_v31, 0.0  ;;  %v8098_v47 = vrot.slane %v7392_v48, %v22957_v38  ;;  %v23572_v48 = vld [vmem:[#allocation39_spill] sm:$0xff] }
 0x485   : > { %v4947_v40 = vrot.slane %v23557_v39, %v22760_v33  ;;  %v4979_v55 = vrot.slane %v23560_v18, %v22760_v33  ;;  %23563 = vst [vmem:[#allocation280_spill] sm:$0xff] %v18945_v5  ;;  %v23565_v39 = vld [vmem:[#allocation216_spill] sm:$0xff]  ;;  %v7359_v18 = vrot.slane %v7345_v50, %v22948_v52  ;;  %8785 = vadd.xlane.f32.xlu1 %v8784_v19  ;;  %v8817_v41 = vsel %vm2529_vm5, %v8541_v42, 0.0  ;;  %v23569_v19 = vld [vmem:[#allocation43_spill] sm:$0xff] }
 0x486   : > { %v18954_v9 = vadd.f32 %v18264_v4, %v23565_v39  ;;  %v6961_v24 = vcombine.high %v6959_v45, %v6959_v45  ;;  %8818 = vadd.xlane.f32.xlu0 %v8817_v41  ;;  %v23567_v27 = vcombine.high %v23514_v44, %v23515_v58  ;;  %v23568_v31 = vcombine.high %v17921_v11, %v17924_v30 }
 0x487   : > { %v5003_v35 = vcombine.low %v4947_v40, %v4979_v55  ;;  %v8094_v50 = vrot.slane %v7390_v49, %v22957_v38  ;;  %v7780_v42 = vmul.f32 %v23570_v13, %v23569_v19  ;;  %v6893_v41 = vcombine.high %v18826_v1, %v18826_v1  ;;  %v23577_v1 = vld [vmem:[#allocation218_spill] sm:$0xff] }
 0x488   : > { %23566 = vst [vmem:[#allocation272_spill] sm:$0xff] %v18954_v9  ;;  %v5650_v0 = vrot.slane %v23567_v27, %v22760_v33  ;;  %v5682_v39 = vrot.slane %v23568_v31, %v22760_v33  ;;  %v18975_v32 = vadd.f32 %v23572_v48, %v18911_v34  ;;  %v18978_v44 = vrot.slane %v6992_v17, %v22957_v38  ;;  %v23579_v31 = vld [vmem:[#allocation277_spill] sm:$0xff] }
 0x489   : > { %v8356_v7 = vmul.f32 %v23571_v36, %v5003_v35  ;;  %v18981_v11 = vrot.slane %v6990_v26, %v22957_v38  ;;  %v18984_v58 = vadd.f32 %v8086_v62, %v18917_v10  ;;  %v7361_v13 = vcombine.high %v7359_v18, %v7359_v18  ;;  %v18989_v35 = vpop.xlane.xlu0 %8662 }
 0x48a   : > { %23573 = vst [vmem:[#allocation153_spill] sm:$0xff] %v18978_v44  ;;  %v5689_v30 = vcombine.low %v5650_v0, %v5682_v39  ;;  %v18987_v36 = vrot.slane %v6893_v41, %v22957_v38  ;;  %23576 = vst [vmem:[#allocation163_spill] sm:$0xff] %v18989_v35  ;;  %v18993_v27 = vadd.f32 %v18264_v4, %v23577_v1  ;;  %v23582_v41 = vld [vmem:[#allocation139_spill] sm:$0xff] }
 0x48b   : > { %23574 = vst [vmem:[#allocation75_spill] sm:$0xff] %v18981_v11  ;;  %v8484_v49 = vadd.f32 %v8356_v7, %v7780_v42  ;;  %v6989_v17 = vrot.slane %v6961_v24, %v22948_v52  ;;  %v18997_v26 = vrot.slane %v6959_v45, %v22948_v52  ;;  %v19001_v62 = vadd.f32 %v8098_v47, %v18945_v5  ;;  %v23586_v35 = vld [vmem:[#allocation219_spill] sm:$0xff] }
 0x48c   : > { %23575 = vst [vmem:[#allocation167_spill] sm:$0xff] %v18987_v36  ;;  %23578 = vst [vmem:[#allocation183_spill] sm:$0xff] %v18993_v27  ;;  %v8415_v48 = vmul.f32 %v23579_v31, %v5689_v30  ;;  %v19004_v7 = vadd.f32 %v8094_v50, %v18954_v9  ;;  %v7839_v19 = vmul.f32 %v18987_v36, %v23582_v41  ;;  %v23585_v30 = vld [vmem:[#allocation288_spill] sm:$0xff] }
 0x48d   : > { %23580 = vst [vmem:[#allocation181_spill] sm:$0xff] %v19001_v62  ;;  %v8646_v42 = vsel %vm2529_vm5, %v8484_v49, 0.0  ;;  %v19011_v1 = vmul.f32 %v18978_v44, %v18945_v5  ;;  %v19015_v24 = vmul.f32 %v18981_v11, %v18954_v9  ;;  %v19018_v45 = vrot.slane %v7359_v18, %v22948_v52  ;;  %v23589_v9 = vld [vmem:[#allocation27_spill] sm:$0xff]  ;;  %v19048_v56 = vpop.xlane.xlu0 %8668  ;;  %v23602_v44 = vld [vmem:[#allocation282_spill] sm:$0xff]  ;;  %v23687_v11 = vld [vmem:[#allocation29_spill] sm:$0xff] }
 0x48e   : > { %23581 = vst [vmem:[#allocation213_spill] sm:$0xff] %v19004_v7  ;;  %v19021_v31 = vadd.s32 4294967288, %v23585_v30  ;;  %8647 = vadd.xlane.f32.xlu1 %v8646_v42  ;;  %v19025_v49 = vadd.f32 %v18264_v4, %v23586_v35  ;;  %v7389_v41 = vrot.slane %v7361_v13, %v22948_v52  ;;  %v8543_v36 = vadd.f32 %v8415_v48, %v7839_v19  ;;  %v19042_v35 = vpop.permute.xlu1 %10003  ;;  %v23593_v19 = vld [vmem:[#allocation157_spill] sm:$0xff] }
 0x48f   : > { %23583 = vst [vmem:[#allocation287_spill] sm:$0xff] %v19011_v1  ;;  %23584 = vst [vmem:[#allocation216_spill] sm:$0xff] %v19015_v24  ;;  %v5004_v5 = vcombine.high %v4947_v40, %v4979_v55  ;;  %v19029_v7 = vadd.f32 %v8098_v47, %v18993_v27  ;;  %v19033_v24 = vsub.s32 %v23585_v30, %v23589_v9  ;;  %v23594_v40 = vld [vmem:[#allocation100_spill] sm:$0xff]  ;;  %v23597_v30 = vld [vmem:[#allocation223_spill] sm:$0xff] }
 0x490   : > { %23587 = vst [vmem:[#allocation97_spill] sm:$0xff] %v19025_v49  ;;  %v19036_v18 = vrot.slane %v6989_v17, %v22957_v38  ;;  %v19040_v42 = vrot.slane %v18997_v26, %v22957_v38  ;;  %23592 = vst [vmem:[#allocation277_spill] sm:$0xff] %v19042_v35  ;;  %v8823_v13 = vsel %vm2529_vm5, %v8543_v36, 0.0  ;;  %v7782_v55 = vmul.f32 %v23594_v40, %v23593_v19  ;;  %v23595_v47 = vld [vmem:[#allocation40_spill] sm:$0xff]  ;;  %v23601_v36 = vld [vmem:[#allocation147_spill] sm:$0xff] }
 0x491   : > { %23588 = vst [vmem:[#allocation45_spill] sm:$0xff] %v19029_v7  ;;  %v8358_v48 = vmul.f32 %v23595_v47, %v5004_v5  ;;  %v5690_v59 = vcombine.high %v5650_v0, %v5682_v39  ;;  %23596 = vst [vmem:[#allocation288_spill] sm:$0xff] %v19048_v56  ;;  %v19052_v2 = vadd.f32 %v18264_v4, %v23597_v30  ;;  %v23599_v7 = vld [vmem:[#allocation226_spill] sm:$0xff]  ;;  %8824 = vadd.xlane.f32.xlu0 %v8823_v13  ;;  %v23604_v47 = vld [vmem:[#allocation276_spill] sm:$0xff] }
 0x492   : > { %23590 = vst [vmem:[#allocation39_spill] sm:$0xff] %v19036_v18  ;;  %23591 = vst [vmem:[#allocation218_spill] sm:$0xff] %v19040_v42  ;;  %v19056_v1 = vadd.f32 %v18264_v4, %v23599_v7  ;;  %v8102_v35 = vrot.slane %v19018_v45, %v22957_v38  ;;  %v7841_v40 = vmul.f32 %v23602_v44, %v23601_v36  ;;  %v23608_v36 = vld [vmem:[#allocation77_spill] sm:$0xff] }
 0x493   : > { %23598 = vst [vmem:[#allocation219_spill] sm:$0xff] %v19052_v2  ;;  %v19063_v5 = vadd.f32 %v8094_v50, %v19025_v49  ;;  %v8106_v0 = vrot.slane %v7389_v41, %v22957_v38  ;;  %v8486_v39 = vadd.f32 %v8358_v48, %v7782_v55  ;;  %v8417_v30 = vmul.f32 %v23604_v47, %v5690_v59  ;;  %v23609_v55 = vld [vmem:[#allocation211_spill] sm:$0xff] }
 0x494   : > { %23600 = vst [vmem:[#allocation100_spill] sm:$0xff] %v19056_v1  ;;  %v19069_v19 = vmul.f32 %v19040_v42, %v19056_v1  ;;  %v23606_v7 = vcombine.high %v23555_v60, %v23556_v54  ;;  %v23607_v50 = vcombine.high %v23558_v61, %v23559_v23  ;;  %v6227_v48 = vcombine.low %v23609_v55, %v23608_v36  ;;  %v23620_v55 = vld [vmem:[#allocation103_spill] sm:$0xff]  ;;  %v23651_v42 = vld [vmem:[#allocation188_spill] sm:$0xff] }
 0x495   : > { %23603 = vst [vmem:[#allocation40_spill] sm:$0xff] %v19063_v5  ;;  %v19087_v59 = vmul.f32 %v19036_v18, %v19052_v2  ;;  %v6993_v47 = vcombine.high %v6989_v17, %v6989_v17  ;;  %v8652_v56 = vsel %vm2529_vm5, %v8486_v39, 0.0  ;;  %v19091_v54 = vadd.f32 %v8102_v35, %v19056_v1  ;;  %v19103_v17 = vpop.permute.xlu1 %10006  ;;  %v23614_v39 = vld [vmem:[#allocation229_spill] sm:$0xff] }
 0x496   : > { %23605 = vst [vmem:[#allocation223_spill] sm:$0xff] %v19069_v19  ;;  %v19075_v13 = vrot.slane %v23606_v7, %v22760_v33  ;;  %v19081_v44 = vrot.slane %v23607_v50, %v22760_v33  ;;  %v8545_v19 = vadd.f32 %v8417_v30, %v7841_v40  ;;  %8653 = vadd.xlane.f32.xlu1 %v8652_v56  ;;  %23613 = vst [vmem:[#allocation77_spill] sm:$0xff] %v19103_v17  ;;  %v23616_v30 = vld [vmem:[#allocation231_spill] sm:$0xff]  ;;  %v19114_v50 = vpop.xlane.xlu0 %8674  ;;  %v23654_v5 = vld [vmem:[#allocation261_spill] sm:$0xff] }
 0x497   : > { %23610 = vst [vmem:[#allocation226_spill] sm:$0xff] %v19087_v59  ;;  %23611 = vst [vmem:[#allocation282_spill] sm:$0xff] %v19091_v54  ;;  %v19097_v61 = vrot.slane %v18928_v25, %v22957_v38  ;;  %v8435_v23 = vmul.f32 %v18907_v21, %v6227_v48  ;;  %v19101_v36 = vadd.f32 %v8106_v0, %v19052_v2  ;;  %v23619_v21 = vld [vmem:[#allocation92_spill] sm:$0xff]  ;;  %v23621_v2 = vld [vmem:[#allocation47_spill] sm:$0xff] }
 0x498   : > { %v5005_v60 = vcombine.low %v19075_v13, %v19081_v44  ;;  %v19107_v40 = vadd.f32 %v18264_v4, %v23614_v39  ;;  %v19111_v56 = vadd.f32 %v18264_v4, %v23616_v30  ;;  %v8829_v7 = vsel %vm2529_vm5, %v8545_v19, 0.0  ;;  %23618 = vst [vmem:[#allocation231_spill] sm:$0xff] %v19114_v50  ;;  %v19129_v19 = vld [vmem:[%s22657_s4] ss:$0 sm:$0xff]  ;;  %v19215_v54 = vld [vmem:[#allocation3 + $0x38] sm:$0xff] }
 0x499   : > { %23612 = vst [vmem:[#allocation276_spill] sm:$0xff] %v19101_v36  ;;  %v7393_v25 = vcombine.high %v7389_v41, %v7389_v41  ;;  %8830 = vadd.xlane.f32.xlu0 %v8829_v7  ;;  %v7784_v48 = vmul.f32 %v23620_v55, %v23619_v21  ;;  %v7859_v17 = vmul.f32 %v19097_v61, %v18871_v37  ;;  %v23623_v41 = vld [vmem:[#allocation130_spill] sm:$0xff]  ;;  %v23627_v59 = vld [vmem:[#allocation239_spill] sm:$0xff]  ;;  %v23652_v36 = vld [vmem:[#allocation149_spill] sm:$0xff] }
 0x49a   : > { %23615 = vst [vmem:[#allocation211_spill] sm:$0xff] %v19107_v40  ;;  %23617 = vst [vmem:[#allocation229_spill] sm:$0xff] %v19111_v56  ;;  %v8360_v1 = vmul.f32 %v23621_v2, %v5005_v60  ;;  %v19122_v39 = vrot.slane %v6993_v47, %v22957_v38  ;;  %v6991_v30 = vcombine.high %v18997_v26, %v18997_v26  ;;  %v23624_v55 = vld [vmem:[#allocation66_spill] sm:$0xff]  ;;  %v23625_v60 = vld [vmem:[#allocation79_spill] sm:$0xff] }
 0x49b   : > { %v19133_v7 = vadd.f32 %v19129_v19, %v23623_v41  ;;  %v19137_v2 = vadd.f32 %v19129_v19, %v23624_v55  ;;  %v19141_v47 = vadd.f32 %v19129_v19, %v23625_v60  ;;  %v8563_v21 = vadd.f32 %v8435_v23, %v7859_v17  ;;  %v23626_v26 = vld [vmem:[#allocation258_spill] sm:$0xff]  ;;  %v19172_v60 = vpop.xlane.xlu1 %8602  ;;  %v23639_v55 = vld [vmem:[#allocation259_spill] sm:$0xff] }
 0x49c   : > { %23622 = vst [vmem:[#allocation103_spill] sm:$0xff] %v19122_v39  ;;  %v8488_v37 = vadd.f32 %v8360_v1, %v7784_v48  ;;  %v19145_v50 = vadd.f32 %v19129_v19, %v23626_v26  ;;  %v19149_v18 = vadd.f32 %v18264_v4, %v23627_v59  ;;  %v7391_v41 = vcombine.high %v19018_v45, %v19018_v45 }
 0x49d   : > { %v8114_v1 = vrot.slane %v7393_v25, %v22957_v38  ;;  %v8883_v17 = vsel %vm2529_vm5, %v8563_v21, 0.0  ;;  %v19164_v59 = vsub.s32 %v19021_v31, %v23589_v9  ;;  %v19167_v45 = vadd.f32 %v8106_v0, %v19107_v40  ;;  %23632 = vst [vmem:[#allocation258_spill] sm:$0xff] %v19172_v60  ;;  %v23635_v21 = vld [vmem:[#allocation241_spill] sm:$0xff]  ;;  %23647 = vst [vmem:[#allocation259_spill] sm:$0xff] %v19215_v54 }
 0x49e   : > { %23628 = vst [vmem:[#allocation47_spill] sm:$0xff] %v19149_v18  ;;  %v8658_v23 = vsel %vm2529_vm5, %v8488_v37, 0.0  ;;  %v19170_v26 = vadd.f32 %v8102_v35, %v19111_v56  ;;  %8884 = vadd.xlane.f32.xlu0 %v8883_v17  ;;  %v19174_v37 = vpop.xlane.xlu0 %8680  ;;  %v19178_v25 = vmul.f32 %v19122_v39, %v19149_v18  ;;  %v19182_v31 = vadd.f32 %v18264_v4, %v23635_v21  ;;  %v23645_v39 = vld [vmem:[#allocation264_spill] sm:$0xff] }
 0x49f   : > { %23629 = vst [vmem:[#allocation130_spill] sm:$0xff] %v19164_v59  ;;  %23630 = vst [vmem:[#allocation66_spill] sm:$0xff] %v19167_v45  ;;  %8659 = vadd.xlane.f32.xlu1 %v8658_v23  ;;  %v19185_v0 = vrot.slane %v6991_v30, %v22957_v38  ;;  %v19190_v48 = vrot.slane %v7391_v41, %v22957_v38  ;;  %v23638_v23 = vld [vmem:[#allocation187_spill] sm:$0xff]  ;;  %v19198_v9 = vadd.f32 %v19129_v19, %v23639_v55  ;;  %v23641_v41 = vld [vmem:[#allocation148_spill] sm:$0xff] }
 0x4a0   : > { %23631 = vst [vmem:[#allocation79_spill] sm:$0xff] %v19170_v26  ;;  %23633 = vst [vmem:[#allocation239_spill] sm:$0xff] %v19174_v37  ;;  %v19194_v17 = vadd.f32 %v19129_v19, %v23638_v23  ;;  %v5006_v21 = vcombine.high %v19075_v13, %v19081_v44  ;;  %v19203_v30 = vadd.f32 %v8114_v1, %v19149_v18  ;;  %v23642_v37 = vld [vmem:[#allocation194_spill] sm:$0xff]  ;;  %v23644_v23 = vld [vmem:[#allocation263_spill] sm:$0xff]  ;;  %v19234_v13 = vpop.xlane.xlu1 %8695 }
 0x4a1   : > { %23634 = vst [vmem:[#allocation297_spill] sm:$0xff] %v19178_v25  ;;  %23636 = vst [vmem:[#allocation241_spill] sm:$0xff] %v19182_v31  ;;  %v23643_v59 = vcombine.low %v23641_v41, %v23642_v37  ;;  %v23646_v40 = vcombine.low %v23644_v23, %v23645_v39  ;;  %v23648_v18 = vld [vmem:[#allocation88_spill] sm:$0xff]  ;;  %v19232_v27 = vadd.f32 %v19129_v19, %v23654_v5 }
 0x4a2   : > { %23637 = vst [vmem:[#allocation298_spill] sm:$0xff] %v19185_v0  ;;  %23640 = vst [vmem:[#allocation187_spill] sm:$0xff] %v19203_v30  ;;  %v23649_v35 = vld [vmem:[#allocation104_spill] sm:$0xff]  ;;  %v23650_v30 = vld [vmem:[#allocation46_spill] sm:$0xff]  ;;  %v19238_v44 = vmul.f32 %v19185_v0, %v19182_v31  ;;  %v7401_v5 = vrot.slane %v19215_v54, %v22948_v52 }
 0x4a3   : > { %v5899_v25 = vrot.slane %v23643_v59, %v22760_v33  ;;  %v5931_v55 = vrot.slane %v23646_v40, %v22760_v33  ;;  %v7786_v60 = vmul.f32 %v23649_v35, %v23648_v18  ;;  %v8362_v45 = vmul.f32 %v23650_v30, %v5006_v21  ;;  %v23653_v40 = vld [vmem:[#allocation160_spill] sm:$0xff]  ;;  %23655 = vst [vmem:[#allocation148_spill] sm:$0xff] %v19234_v13 }
 0x4a4   : > { %v19226_v59 = vadd.f32 %v19129_v19, %v23651_v42  ;;  %v7843_v26 = vmul.f32 %v23653_v40, %v23652_v36  ;;  %23656 = vst [vmem:[#allocation194_spill] sm:$0xff] %v19238_v44  ;;  %v19242_v35 = vadd.f32 %v19190_v48, %v19182_v31  ;;  %v23658_v42 = vld [vmem:[#allocation243_spill] sm:$0xff]  ;;  %v19248_v36 = vpop.xlane.xlu0 %8686  ;;  %v23661_v18 = vld [vmem:[#allocation284_spill] sm:$0xff]  ;;  %v23662_v31 = vcombine.low %v18707_v43, %v18726_v63 }
 0x4a5   : > { %v5955_v56 = vcombine.low %v5899_v25, %v5931_v55  ;;  %v19246_v21 = vadd.f32 %v18264_v4, %v23658_v42  ;;  %v8490_v30 = vadd.f32 %v8362_v45, %v7786_v60  ;;  %23660 = vst [vmem:[#allocation104_spill] sm:$0xff] %v19248_v36  ;;  %v23664_v45 = vld [vmem:[#allocation168_spill] sm:$0xff]  ;;  %v23670_v44 = vcombine.high %v18707_v43, %v18726_v63 }
 0x4a6   : > { %23657 = vst [vmem:[#allocation263_spill] sm:$0xff] %v19242_v35  ;;  %v19261_v42 = vrot.slane %v23662_v31, %v22760_v33  ;;  %v23665_v36 = vld [vmem:[#allocation164_spill] sm:$0xff] }
 0x4a7   : > { %23659 = vst [vmem:[#allocation264_spill] sm:$0xff] %v19246_v21  ;;  %v8419_v13 = vmul.f32 %v23661_v18, %v5955_v56  ;;  %v8664_v60 = vsel %vm2529_vm5, %v8490_v30, 0.0  ;;  %v23666_v35 = vcombine.low %v23664_v45, %v23665_v36  ;;  %v23667_v18 = vld [vmem:[#allocation184_spill] sm:$0xff]  ;;  %v23668_v56 = vld [vmem:[#allocation186_spill] sm:$0xff]  ;;  %v19280_v31 = vrot.slane %v23670_v44, %v22760_v33 }
 0x4a8   : > { %23663 = vst [vmem:[#allocation46_spill] sm:$0xff] %v19261_v42  ;;  %v23669_v40 = vcombine.low %v23667_v18, %v23668_v56  ;;  %v23672_v30 = vcombine.low %v18715_v8, %v18729_v12  ;;  %8665 = vadd.xlane.f32.xlu1 %v8664_v60  ;;  %v19297_v43 = vadd.f32 %v8114_v1, %v19246_v21 }
 0x4a9   : > { %v19268_v54 = vrot.slane %v23666_v35, %v22760_v33  ;;  %23671 = vst [vmem:[#allocation188_spill] sm:$0xff] %v19280_v31  ;;  %v23674_v35 = vcombine.high %v18715_v8, %v18729_v12  ;;  %v5956_v44 = vcombine.high %v5899_v25, %v5931_v55  ;;  %v7409_v8 = vcombine.high %v7401_v5, %v7401_v5  ;;  %v23684_v25 = vld [vmem:[#allocation112_spill] sm:$0xff]  ;;  %v23685_v55 = vld [vmem:[#allocation105_spill] sm:$0xff] }
 0x4aa   : > { %v19274_v0 = vrot.slane %v23669_v40, %v22760_v33  ;;  %v19286_v42 = vrot.slane %v23672_v30, %v22760_v33  ;;  %v8547_v40 = vadd.f32 %v8419_v13, %v7843_v26  ;;  %v23677_v30 = vcombine.low %v18775_v15, %v18794_v28  ;;  %v23679_v26 = vld [vmem:[#allocation171_spill] sm:$0xff] }
 0x4ab   : > { %v19292_v62 = vrot.slane %v23674_v35, %v22760_v33  ;;  %v23680_v13 = vld [vmem:[#allocation179_spill] sm:$0xff]  ;;  %v19310_v35 = vpop.xlane.xlu1 %8701  ;;  %v23682_v1 = vcombine.high %v18775_v15, %v18794_v28  ;;  %v8421_v31 = vmul.f32 %v23687_v11, %v5956_v44  ;;  %v23691_v15 = vcombine.high %v18789_v20, %v18797_v3  ;;  %v23695_v44 = vld [vmem:[#allocation245_spill] sm:$0xff] }
 0x4ac   : > { %23673 = vst [vmem:[#allocation261_spill] sm:$0xff] %v19286_v42  ;;  %v5007_v63 = vcombine.low %v19268_v54, %v19274_v0  ;;  %v19305_v42 = vrot.slane %v23677_v30, %v22760_v33  ;;  %v8835_v12 = vsel %vm2529_vm5, %v8547_v40, 0.0  ;;  %v7845_v60 = vmul.f32 %v23680_v13, %v23679_v26  ;;  %23681 = vst [vmem:[#allocation168_spill] sm:$0xff] %v19310_v35  ;;  %v23686_v30 = vld [vmem:[#allocation49_spill] sm:$0xff]  ;;  %v19322_v40 = vpop.xlane.xlu0 %8710 }
 0x4ad   : > { %23675 = vst [vmem:[#allocation243_spill] sm:$0xff] %v19292_v62  ;;  %v19316_v49 = vrot.slane %v23682_v1, %v22760_v33  ;;  %8836 = vadd.xlane.f32.xlu0 %v8835_v12  ;;  %v7788_v62 = vmul.f32 %v23685_v55, %v23684_v25  ;;  %23688 = vst [vmem:[#allocation184_spill] sm:$0xff] %v19322_v40  ;;  %v23689_v26 = vcombine.low %v18789_v20, %v18797_v3  ;;  %v23693_v12 = vld [vmem:[#allocation172_spill] sm:$0xff]  ;;  %v23698_v13 = vld [vmem:[#allocation253_spill] sm:$0xff] }
 0x4ae   : > { %23678 = vst [vmem:[#allocation284_spill] sm:$0xff] %v19305_v42  ;;  %v8364_v42 = vmul.f32 %v23686_v30, %v5007_v63  ;;  %v19334_v28 = vrot.slane %v23691_v15, %v22760_v33  ;;  %v4429_v1 = vadd.f32 %v19129_v19, %v23693_v12  ;;  %v23694_v63 = vld [vmem:[#allocation270_spill] sm:$0xff]  ;;  %v19342_v55 = vadd.f32 %v18264_v4, %v23695_v44  ;;  %v23697_v20 = vld [vmem:[#allocation252_spill] sm:$0xff] }
 0x4af   : > { %23683 = vst [vmem:[#allocation164_spill] sm:$0xff] %v19316_v49  ;;  %v19328_v35 = vrot.slane %v23689_v26, %v22760_v33  ;;  %v4461_v11 = vadd.f32 %v19129_v19, %v23694_v63  ;;  %v19345_v30 = vrot.slane %v7401_v5, %v22948_v52  ;;  %v8549_v25 = vadd.f32 %v8421_v31, %v7845_v60  ;;  %v19374_v60 = vpop.xlane.xlu1 %8707 }
 0x4b0   : > { %23692 = vst [vmem:[#allocation105_spill] sm:$0xff] %v19334_v28  ;;  %23696 = vst [vmem:[#allocation49_spill] sm:$0xff] %v19342_v55  ;;  %v8492_v26 = vadd.f32 %v8364_v42, %v7788_v62  ;;  %v19348_v40 = vrot.slane %v7409_v8, %v22948_v52  ;;  %v4421_v3 = vadd.f32 %v19129_v19, %v23697_v20  ;;  %v23705_v20 = vld [vmem:[#allocation279_spill] sm:$0xff] }
 0x4b1   : > { %23690 = vst [vmem:[#allocation186_spill] sm:$0xff] %v19328_v35  ;;  %v6283_v15 = vcombine.low %v4429_v1, %v4461_v11  ;;  %v6284_v12 = vcombine.high %v4429_v1, %v4461_v11  ;;  %v4432_v63 = vadd.f32 %v19129_v19, %v23698_v13  ;;  %v23699_v44 = vcombine.low %v19133_v7, %v19137_v2  ;;  %v23702_v1 = vld [vmem:[#allocation203_spill] sm:$0xff]  ;;  %v23711_v35 = vld [vmem:[#allocation106_spill] sm:$0xff] }
 0x4b2   : > { %v8670_v62 = vsel %vm2529_vm5, %v8492_v26, 0.0  ;;  %v8841_v5 = vsel %vm2529_vm5, %v8549_v25, 0.0  ;;  %v23700_v42 = vcombine.high %v19133_v7, %v19137_v2  ;;  %23701 = vst [vmem:[#allocation29_spill] sm:$0xff] %v19374_v60  ;;  %v4424_v11 = vadd.f32 %v19129_v19, %v23702_v1  ;;  %v23704_v2 = vld [vmem:[#allocation275_spill] sm:$0xff] }
 0x4b3   : > { %v19358_v28 = vrot.slane %v23699_v44, %v23247_v6  ;;  %8671 = vadd.xlane.f32.xlu1 %v8670_v62  ;;  %8842 = vadd.xlane.f32.xlu0 %v8841_v5  ;;  %v19369_v8 = vrot.slane %v6283_v15, %v23247_v6  ;;  %v19372_v13 = vrot.slane %v6284_v12, %v23247_v6  ;;  %v19388_v44 = vpop.xlane.xlu0 %8704 }
 0x4b4   : > { %v19366_v31 = vrot.slane %v23700_v42, %v23247_v6  ;;  %v23703_v25 = vcombine.low %v19141_v47, %v19145_v50  ;;  %v4453_v26 = vadd.f32 %v19129_v19, %v23704_v2  ;;  %v4464_v15 = vadd.f32 %v19129_v19, %v23705_v20  ;;  %23706 = vst [vmem:[#allocation172_spill] sm:$0xff] %v19388_v44 }
 0x4b5   : > { %v23707_v1 = vcombine.high %v19141_v47, %v19145_v50  ;;  %v23708_v2 = vcombine.low %v19194_v17, %v19198_v9  ;;  %v23709_v5 = vcombine.high %v19194_v17, %v19198_v9  ;;  %v5008_v50 = vcombine.high %v19268_v54, %v19274_v0  ;;  %v23713_v54 = vld [vmem:[#allocation48_spill] sm:$0xff] }
 0x4b6   : > { %v19382_v7 = vrot.slane %v23703_v25, %v23247_v6  ;;  %v5739_v12 = vcombine.low %v4421_v3, %v4453_v26  ;;  %v5740_v62 = vcombine.high %v4421_v3, %v4453_v26  ;;  %v6555_v42 = vcombine.low %v4432_v63, %v4464_v15 }
 0x4b7   : > { %v19402_v25 = vrot.slane %v23707_v1, %v23247_v6  ;;  %v19408_v20 = vrot.slane %v23708_v2, %v23247_v6  ;;  %v19414_v44 = vrot.slane %v23709_v5, %v23247_v6  ;;  %v6556_v60 = vcombine.high %v4432_v63, %v4464_v15  ;;  %v23710_v2 = vld [vmem:[#allocation109_spill] sm:$0xff]  ;;  %v19451_v5 = vpop.xlane.xlu0 %8722 }
 0x4b8   : > { %v19419_v47 = vrot.slane %v5739_v12, %v23247_v6  ;;  %v19422_v1 = vrot.slane %v5740_v62, %v23247_v6  ;;  %v7790_v3 = vmul.f32 %v23711_v35, %v23710_v2  ;;  %v23712_v9 = vcombine.high %v23644_v23, %v23645_v39  ;;  %v19441_v62 = vpop.xlane.xlu1 %8713  ;;  %23716 = vst [vmem:[#allocation245_spill] sm:$0xff] %v19451_v5  ;;  %v23718_v23 = vld [vmem:[#allocation206_spill] sm:$0xff]  ;;  %v23720_v2 = vld [vmem:[#allocation72_spill] sm:$0xff] }
 0x4b9   : > { %v19431_v26 = vrot.slane %v6555_v42, %v23247_v6  ;;  %v19434_v63 = vrot.slane %v6556_v60, %v23247_v6  ;;  %v8366_v0 = vmul.f32 %v23713_v54, %v5008_v50  ;;  %v23714_v15 = vcombine.high %v23641_v41, %v23642_v37  ;;  %23715 = vst [vmem:[#allocation270_spill] sm:$0xff] %v19441_v62  ;;  %v23719_v60 = vld [vmem:[#allocation89_spill] sm:$0xff]  ;;  %v19474_v42 = vld [vmem:[%s22696_s0] ss:$0 sm:$0xff] }
 0x4ba   : > { %v5938_v17 = vrot.slane %v23712_v9, %v22760_v33  ;;  %v4456_v35 = vadd.f32 %v19129_v19, %v23719_v60  ;;  %v19467_v37 = vadd.f32 %v18264_v4, %v23720_v2  ;;  %v8122_v41 = vrot.slane %v19348_v40, %v22957_v38  ;;  %v23724_v4 = vld [vmem:[#allocation201_spill] sm:$0xff] }
 0x4bb   : > { %v5906_v12 = vrot.slane %v23714_v15, %v22760_v33  ;;  %v8494_v9 = vadd.f32 %v8366_v0, %v7790_v3  ;;  %v23717_v15 = vld [vmem:[#allocation198_spill] sm:$0xff]  ;;  %v19482_v50 = vrot.slane %v19345_v30, %v22957_v38  ;;  %v23725_v5 = vcombine.low %v19226_v59, %v19232_v27 }
 0x4bc   : > { %v7847_v39 = vmul.f32 %v23718_v23, %v23717_v15  ;;  %23721 = vst [vmem:[#allocation252_spill] sm:$0xff] %v19467_v37  ;;  %v23722_v3 = vld [vmem:[#allocation82_spill] sm:$0xff]  ;;  %v6011_v60 = vcombine.low %v4424_v11, %v4456_v35  ;;  %v6012_v15 = vcombine.high %v4424_v11, %v4456_v35  ;;  %v23730_v11 = vcombine.high %v19226_v59, %v19232_v27 }
 0x4bd   : > { %v5957_v54 = vcombine.low %v5906_v12, %v5938_v17  ;;  %v19478_v0 = vadd.f32 %v19474_v42, %v23722_v3  ;;  %v8676_v19 = vsel %vm2529_vm5, %v8494_v9, 0.0  ;;  %v19490_v62 = vrot.slane %v23725_v5, %v23247_v6 }
 0x4be   : > { %8677 = vadd.xlane.f32.xlu1 %v8676_v19  ;;  %v23727_v3 = vcombine.high %v23664_v45, %v23665_v36  ;;  %v23728_v9 = vcombine.high %v23667_v18, %v23668_v56  ;;  %v19506_v35 = vrot.slane %v23730_v11, %v23247_v6  ;;  %v19509_v19 = vrot.slane %v6011_v60, %v23247_v6  ;;  %v19514_v45 = vpop.xlane.xlu0 %8716  ;;  %v14231_v18 = vld [vmem:[#allocation2 + $0x38] sm:$0xff]  ;;  %v23737_v60 = vld [vmem:[#allocation107_spill] sm:$0xff] }
 0x4bf   : > { %23723 = vst [vmem:[#allocation253_spill] sm:$0xff] %v19478_v0  ;;  %v8423_v2 = vmul.f32 %v23724_v4, %v5957_v54  ;;  %23726 = vst [vmem:[#allocation203_spill] sm:$0xff] %v19490_v62  ;;  %v5958_v54 = vcombine.high %v5906_v12, %v5938_v17  ;;  %v19500_v4 = vpop.xlane.xlu1 %8719  ;;  %v19512_v36 = vrot.slane %v6012_v15, %v23247_v6 }
 0x4c0   : > { %v4970_v23 = vrot.slane %v23727_v3, %v22760_v33  ;;  %v5002_v49 = vrot.slane %v23728_v9, %v22760_v33  ;;  %23729 = vst [vmem:[#allocation275_spill] sm:$0xff] %v19500_v4  ;;  %23731 = vst [vmem:[#allocation279_spill] sm:$0xff] %v19506_v35  ;;  %v6994_v56 = vcombine.high %v14231_v18, %v14231_v18  ;;  %v23735_v3 = vld [vmem:[#allocation235_spill] sm:$0xff]  ;;  %v23748_v35 = vld [vmem:[#allocation113_spill] sm:$0xff] }
 0x4c1   : > { %v8551_v5 = vadd.f32 %v8423_v2, %v7847_v39  ;;  %23732 = vst [vmem:[#allocation106_spill] sm:$0xff] %v19509_v19  ;;  %23733 = vst [vmem:[#allocation48_spill] sm:$0xff] %v19512_v36  ;;  %v7001_v17 = vrot.slane %v14231_v18, %v22948_v52  ;;  %v8425_v9 = vmul.f32 %v23735_v3, %v5958_v54  ;;  %v23736_v2 = vld [vmem:[#allocation123_spill] sm:$0xff]  ;;  %v23738_v18 = vld [vmem:[#allocation53_spill] sm:$0xff] }
 0x4c2   : > { %23734 = vst [vmem:[#allocation89_spill] sm:$0xff] %v19514_v45  ;;  %v5009_v12 = vcombine.low %v4970_v23, %v5002_v49  ;;  %v7792_v11 = vmul.f32 %v23737_v60, %v23736_v2  ;;  %v23739_v3 = vld [vmem:[#allocation248_spill] sm:$0xff]  ;;  %v19533_v59 = vadd.f32 %v19190_v48, %v19342_v55  ;;  %v19544_v60 = vadd.f32 %v8122_v41, %v19467_v37  ;;  %v23745_v39 = vld [vmem:[#allocation193_spill] sm:$0xff]  ;;  %v19558_v15 = vpop.xlane.xlu0 %8734  ;;  %v23756_v19 = vld [vmem:[#allocation30_spill] sm:$0xff] }
 0x4c3   : > { %v8847_v27 = vsel %vm2529_vm5, %v8551_v5, 0.0  ;;  %v8553_v5 = vadd.f32 %v8425_v9, %v23739_v3  ;;  %v23742_v9 = vld [vmem:[#allocation197_spill] sm:$0xff]  ;;  %v19553_v3 = vpop.xlane.xlu1 %8725  ;;  %v7009_v45 = vcombine.high %v7001_v17, %v7001_v17  ;;  %v5010_v4 = vcombine.high %v4970_v23, %v5002_v49  ;;  %23746 = vst [vmem:[#allocation201_spill] sm:$0xff] %v19558_v15 }
 0x4c4   : > { %8848 = vadd.xlane.f32.xlu0 %v8847_v27  ;;  %v8368_v54 = vmul.f32 %v23738_v18, %v5009_v12  ;;  %v19539_v27 = vadd.f32 %v19482_v50, %v19478_v0  ;;  %v19547_v12 = vrot.slane %v6994_v56, %v22948_v52  ;;  %v19551_v48 = vadd.f32 %v19474_v42, %v23742_v9  ;;  %v23747_v9 = vld [vmem:[#allocation120_spill] sm:$0xff] }
 0x4c5   : > { %23744 = vst [vmem:[#allocation82_spill] sm:$0xff] %v19553_v3  ;;  %v8853_v2 = vsel %vm2529_vm5, %v8553_v5, 0.0  ;;  %v5959_v6 = vcombine.low %v23745_v39, %v18842_v22  ;;  %v19561_v36 = vrot.slane %v7001_v17, %v22948_v52  ;;  %v23749_v5 = vld [vmem:[#allocation52_spill] sm:$0xff]  ;;  %v23750_v15 = vcombine.low %v18660_v53, %v18669_v57 }
 0x4c6   : > { %23743 = vst [vmem:[#allocation72_spill] sm:$0xff] %v19551_v48  ;;  %v8496_v18 = vadd.f32 %v8368_v54, %v7792_v11  ;;  %v7794_v11 = vmul.f32 %v23748_v35, %v23747_v9  ;;  %v5960_v54 = vcombine.high %v23745_v39, %v18842_v22  ;;  %v8370_v49 = vmul.f32 %v23749_v5, %v5010_v4  ;;  %v23753_v39 = vld [vmem:[#allocation152_spill] sm:$0xff] }
 0x4c7   : > { %v8427_v23 = vmul.f32 %v18538_v14, %v5959_v6  ;;  %v6307_v17 = vrot.slane %v23750_v15, %v22760_v33  ;;  %v19581_v22 = vadd.f32 %v8122_v41, %v19551_v48  ;;  %v23754_v14 = vld [vmem:[#allocation247_spill] sm:$0xff]  ;;  %v23755_v5 = vld [vmem:[#allocation228_spill] sm:$0xff] }
 0x4c8   : > { %v8682_v56 = vsel %vm2529_vm5, %v8496_v18, 0.0  ;;  %8854 = vadd.xlane.f32.xlu0 %v8853_v2  ;;  %v23751_v2 = vcombine.low %v19358_v28, %v19369_v8  ;;  %v8429_v4 = vmul.f32 %v23753_v39, %v5960_v54  ;;  %v5961_v6 = vcombine.low %v23754_v14, %v18855_v51 }
 0x4c9   : > { %8683 = vadd.xlane.f32.xlu1 %v8682_v56  ;;  %23752 = vst [vmem:[#allocation235_spill] sm:$0xff] %v19581_v22  ;;  %v8498_v56 = vadd.f32 %v8370_v49, %v7794_v11  ;;  %v8555_v9 = vadd.f32 %v8427_v23, %v23755_v5  ;;  %v5962_v41 = vcombine.high %v23754_v14, %v18855_v51  ;;  %v19593_v22 = vpop.xlane.xlu1 %8731  ;;  %v23761_v51 = vld [vmem:[#allocation146_spill] sm:$0xff] }
 0x4ca   : > { %v6339_v18 = vrot.slane %v23751_v2, %v22760_v33  ;;  %v8557_v62 = vadd.f32 %v8429_v4, %v23756_v19  ;;  %v7860_v2 = vmul.f32 %v19097_v61, %v18917_v10  ;;  %v8431_v35 = vmul.f32 %v18882_v46, %v5961_v6  ;;  %23757 = vst [vmem:[#allocation107_spill] sm:$0xff] %v19593_v22  ;;  %v23759_v61 = vld [vmem:[#allocation189_spill] sm:$0xff] }
 0x4cb   : > { %v8688_v54 = vsel %vm2529_vm5, %v8498_v56, 0.0  ;;  %v8859_v11 = vsel %vm2529_vm5, %v8555_v9, 0.0  ;;  %v7031_v19 = vrot.slane %v7009_v45, %v22948_v52  ;;  %v19604_v46 = vadd.f32 %v19474_v42, %v23759_v61  ;;  %v23764_v56 = vld [vmem:[#allocation94_spill] sm:$0xff]  ;;  %v23770_v61 = vld [vmem:[#allocation153_spill] sm:$0xff] }
 0x4cc   : > { %v6363_v15 = vcombine.low %v6307_v17, %v6339_v18  ;;  %v6364_v3 = vcombine.high %v6307_v17, %v6339_v18  ;;  %v19599_v17 = vpop.xlane.xlu0 %8728  ;;  %8860 = vadd.xlane.f32.xlu0 %v8859_v11  ;;  %v7862_v18 = vmul.f32 %v23761_v51, %v18911_v34  ;;  %v8559_v9 = vadd.f32 %v8431_v35, %v18879_v29  ;;  %v23765_v29 = vld [vmem:[#allocation237_spill] sm:$0xff] }
 0x4cd   : > { %23758 = vst [vmem:[#allocation53_spill] sm:$0xff] %v19599_v17  ;;  %23760 = vst [vmem:[#allocation248_spill] sm:$0xff] %v19604_v46  ;;  %8689 = vadd.xlane.f32.xlu1 %v8688_v54  ;;  %v23763_v45 = vcombine.high %v19358_v28, %v19369_v8  ;;  %v19619_v4 = vrot.slane %v19561_v36, %v22957_v38  ;;  %v8865_v14 = vsel %vm2529_vm5, %v8557_v62, 0.0  ;;  %v23768_v28 = vld [vmem:[#allocation181_spill] sm:$0xff]  ;;  %v19631_v51 = vpop.xlane.xlu1 %8737 }
 0x4ce   : > { %v8436_v49 = vmul.f32 %v18984_v58, %v6363_v15  ;;  %v8438_v23 = vmul.f32 %v18975_v32, %v6364_v3  ;;  %v23762_v32 = vcombine.high %v18660_v53, %v18669_v57  ;;  %v8433_v6 = vmul.f32 %v18861_v16, %v5962_v41  ;;  %v23766_v15 = vld [vmem:[#allocation97_spill] sm:$0xff]  ;;  %23771 = vst [vmem:[#allocation197_spill] sm:$0xff] %v19631_v51  ;;  %v23787_v51 = vld [vmem:[#allocation216_spill] sm:$0xff] }
 0x4cf   : > { %v6346_v3 = vrot.slane %v23763_v45, %v22760_v33  ;;  %v6230_v35 = vcombine.high %v23765_v29, %v23764_v56  ;;  %v19634_v16 = vrot.slane %v7031_v19, %v22957_v38  ;;  %v8871_v41 = vsel %vm2529_vm5, %v8559_v9, 0.0  ;;  %v23774_v45 = vld [vmem:[#allocation287_spill] sm:$0xff]  ;;  %v23790_v10 = vld [vmem:[#allocation229_spill] sm:$0xff] }
 0x4d0   : > { %v8564_v39 = vadd.f32 %v8436_v49, %v7860_v2  ;;  %v6314_v58 = vrot.slane %v23762_v32, %v22760_v33  ;;  %v8566_v53 = vadd.f32 %v8438_v23, %v7862_v18  ;;  %v23767_v2 = vld [vmem:[#allocation75_spill] sm:$0xff]  ;;  %8866 = vadd.xlane.f32.xlu0 %v8865_v14  ;;  %v23772_v23 = vld [vmem:[#allocation40_spill] sm:$0xff]  ;;  %v19640_v32 = vpop.xlane.xlu0 %8746  ;;  %v23779_v9 = vcombine.low %v19366_v31, %v19372_v13  ;;  %v23827_v22 = vld [vmem:[#allocation297_spill] sm:$0xff] }
 0x4d1   : > { %v7864_v54 = vmul.f32 %v23767_v2, %v23766_v15  ;;  %v8441_v8 = vmul.f32 %v23768_v28, %v6230_v35  ;;  %v23769_v49 = vld [vmem:[#allocation183_spill] sm:$0xff]  ;;  %23773 = vst [vmem:[#allocation193_spill] sm:$0xff] %v19640_v32  ;;  %v23785_v32 = vld [vmem:[#allocation34_spill] sm:$0xff] }
 0x4d2   : > { %v8886_v5 = vsel %vm2529_vm5, %v8564_v39, 0.0  ;;  %v6365_v57 = vcombine.low %v6314_v58, %v6346_v3  ;;  %v6366_v11 = vcombine.high %v6314_v58, %v6346_v3  ;;  %v7866_v62 = vmul.f32 %v23770_v61, %v23769_v49  ;;  %v23775_v58 = vld [vmem:[#allocation45_spill] sm:$0xff]  ;;  %v23776_v35 = vld [vmem:[#allocation59_spill] sm:$0xff] }
 0x4d3   : > { %8887 = vadd.xlane.f32.xlu1 %v8886_v5  ;;  %v6229_v39 = vcombine.low %v23765_v29, %v23764_v56  ;;  %v8569_v14 = vadd.f32 %v8441_v8, %v23774_v45  ;;  %v23777_v5 = vld [vmem:[#allocation217_spill] sm:$0xff]  ;;  %v6355_v61 = vrot.slane %v23779_v9, %v22760_v33  ;;  %v23782_v45 = vld [vmem:[#allocation210_spill] sm:$0xff]  ;;  %v19661_v9 = vadd.f32 %v19474_v42, %v23785_v32 }
 0x4d4   : > { %v8440_v18 = vmul.f32 %v23772_v23, %v6365_v57  ;;  %v8442_v3 = vmul.f32 %v23775_v58, %v6366_v11  ;;  %v23778_v2 = vcombine.low %v23776_v35, %v23777_v5  ;;  %v8892_v57 = vsel %vm2529_vm5, %v8566_v53, 0.0  ;;  %v23780_v23 = vld [vmem:[#allocation292_spill] sm:$0xff]  ;;  %v23781_v49 = vld [vmem:[#allocation213_spill] sm:$0xff]  ;;  %8872 = vadd.xlane.f32.xlu0 %v8871_v41  ;;  %v23783_v58 = vld [vmem:[#allocation238_spill] sm:$0xff] }
 0x4d5   : > { %v8561_v56 = vadd.f32 %v8433_v6, %v23780_v23  ;;  %v8439_v15 = vmul.f32 %v23781_v49, %v6229_v39  ;;  %v6232_v34 = vcombine.high %v23783_v58, %v23782_v45  ;;  %23786 = vst [vmem:[#allocation113_spill] sm:$0xff] %v19661_v9  ;;  %v7041_v53 = vcombine.high %v7031_v19, %v7031_v19  ;;  %v23788_v49 = vld [vmem:[#allocation79_spill] sm:$0xff]  ;;  %v23791_v32 = vld [vmem:[#allocation218_spill] sm:$0xff] }
 0x4d6   : > { %v6323_v28 = vrot.slane %v23778_v2, %v22760_v33  ;;  %v8568_v29 = vadd.f32 %v8440_v18, %v7864_v54  ;;  %v8570_v8 = vadd.f32 %v8442_v3, %v7866_v62  ;;  %v7441_v54 = vcombine.high %v19348_v40, %v19348_v40  ;;  %v23789_v62 = vld [vmem:[#allocation276_spill] sm:$0xff]  ;;  %v19668_v3 = vpop.xlane.xlu1 %8605 }
 0x4d7   : > { %8893 = vadd.xlane.f32.xlu1 %v8892_v57  ;;  %v8567_v6 = vadd.f32 %v8439_v15, %v23787_v51  ;;  %v8445_v18 = vmul.f32 %v23789_v62, %v6232_v34  ;;  %v8877_v57 = vsel %vm2529_vm5, %v8561_v56, 0.0  ;;  %v7868_v17 = vmul.f32 %v23791_v32, %v23790_v10  ;;  %v19676_v15 = vpop.xlane.xlu0 %8740  ;;  %v23793_v56 = vld [vmem:[#allocation66_spill] sm:$0xff]  ;;  %v23798_v32 = vld [vmem:[#allocation39_spill] sm:$0xff] }
 0x4d8   : > { %v6367_v11 = vcombine.low %v6323_v28, %v6355_v61  ;;  %v6368_v39 = vcombine.high %v6323_v28, %v6355_v61  ;;  %v8898_v23 = vsel %vm2529_vm5, %v8568_v29, 0.0  ;;  %v6231_v19 = vcombine.low %v23783_v58, %v23782_v45  ;;  %23792 = vst [vmem:[#allocation52_spill] sm:$0xff] %v19676_v15  ;;  %8878 = vadd.xlane.f32.xlu0 %v8877_v57 }
 0x4d9   : > { %v19680_v40 = vmul.f32 %v19619_v4, %v19604_v46  ;;  %v19684_v34 = vadd.f32 %v19482_v50, %v19604_v46  ;;  %v7039_v51 = vcombine.high %v19561_v36, %v19561_v36  ;;  %v7682_v28 = vrot.slane %v7041_v53, %v22957_v38 }
 0x4da   : > { %v8444_v41 = vmul.f32 %v23788_v49, %v6367_v11  ;;  %v7439_v61 = vcombine.high %v19345_v30, %v19345_v30  ;;  %v8446_v29 = vmul.f32 %v23793_v56, %v6368_v39  ;;  %v23794_v11 = vld [vmem:[#allocation282_spill] sm:$0xff]  ;;  %v19695_v58 = vmul.f32 %v19634_v16, %v19551_v48  ;;  %v23800_v56 = vld [vmem:[#allocation240_spill] sm:$0xff] }
 0x4db   : > { %8899 = vadd.xlane.f32.xlu1 %v8898_v23  ;;  %v8443_v45 = vmul.f32 %v23794_v11, %v6231_v19  ;;  %v8130_v50 = vrot.slane %v7441_v54, %v22957_v38  ;;  %v23795_v36 = vcombine.high %v23776_v35, %v23777_v5  ;;  %v23796_v53 = vcombine.high %v19366_v31, %v19372_v13  ;;  %v23797_v23 = vld [vmem:[#allocation211_spill] sm:$0xff]  ;;  %v23799_v5 = vld [vmem:[#allocation214_spill] sm:$0xff] }
 0x4dc   : > { %v8901_v62 = vsel %vm2529_vm5, %v8569_v14, 0.0  ;;  %v8904_v39 = vsel %vm2529_vm5, %v8570_v8, 0.0  ;;  %v8572_v57 = vadd.f32 %v8444_v41, %v7868_v17  ;;  %v7870_v19 = vmul.f32 %v23798_v32, %v23797_v23  ;;  %v23801_v13 = vld [vmem:[#allocation74_spill] sm:$0xff]  ;;  %v19728_v41 = vpop.xlane.xlu0 %8758 }
 0x4dd   : > { %v6330_v49 = vrot.slane %v23795_v36, %v22760_v33  ;;  %v6362_v30 = vrot.slane %v23796_v53, %v22760_v33  ;;  %v19711_v54 = vrot.slane %v7039_v51, %v22957_v38  ;;  %8902 = vadd.xlane.f32.xlu0 %v8901_v62  ;;  %v6234_v11 = vcombine.high %v23800_v56, %v23799_v5  ;;  %v19715_v36 = vpop.xlane.xlu1 %8611  ;;  %v23804_v51 = vld [vmem:[#allocation226_spill] sm:$0xff] }
 0x4de   : > { %v19718_v31 = vmul.f32 %v7682_v28, %v19661_v9  ;;  %v19722_v17 = vadd.f32 %v19474_v42, %v23801_v13  ;;  %v19725_v14 = vrot.slane %v7439_v61, %v22957_v38  ;;  %v8895_v8 = vsel %vm2529_vm5, %v8567_v6, 0.0  ;;  %23803 = vst [vmem:[#allocation247_spill] sm:$0xff] %v19728_v41  ;;  %v23806_v13 = vld [vmem:[#allocation298_spill] sm:$0xff] }
 0x4df   : > { %8905 = vadd.xlane.f32.xlu1 %v8904_v39  ;;  %v6369_v35 = vcombine.low %v6330_v49, %v6362_v30  ;;  %v8573_v53 = vadd.f32 %v8445_v18, %v23804_v51  ;;  %v23805_v39 = vld [vmem:[#allocation187_spill] sm:$0xff]  ;;  %v6370_v48 = vcombine.high %v6330_v49, %v6362_v30  ;;  %v8910_v46 = vsel %vm2529_vm5, %v8572_v57, 0.0  ;;  %v23808_v49 = vld [vmem:[#allocation254_spill] sm:$0xff] }
 0x4e0   : > { %23802 = vst [vmem:[#allocation152_spill] sm:$0xff] %v19722_v17  ;;  %v8449_v32 = vmul.f32 %v23805_v39, %v6234_v11  ;;  %v8574_v23 = vadd.f32 %v8446_v29, %v7870_v19  ;;  %v7872_v10 = vmul.f32 %v23806_v13, %v19342_v55  ;;  %v6233_v61 = vcombine.low %v23800_v56, %v23799_v5  ;;  %v23810_v19 = vld [vmem:[#allocation263_spill] sm:$0xff]  ;;  %v23812_v39 = vld [vmem:[#allocation60_spill] sm:$0xff] }
 0x4e1   : > { %v8448_v62 = vmul.f32 %v19533_v59, %v6369_v35  ;;  %v19739_v6 = vadd.f32 %v8130_v50, %v19661_v9  ;;  %v19743_v18 = vmul.f32 %v19711_v54, %v19722_v17  ;;  %v23807_v59 = vld [vmem:[#allocation259_spill] sm:$0xff]  ;;  %8896 = vadd.xlane.f32.xlu0 %v8895_v8  ;;  %v19749_v29 = vadd.f32 %v19725_v14, %v19722_v17  ;;  %v23813_v8 = vld [vmem:[#allocation290_spill] sm:$0xff]  ;;  %v19774_v17 = vpop.xlane.xlu0 %8752 }
 0x4e2   : > { %v7394_v35 = vcombine.high %v23807_v59, %v23807_v59  ;;  %v19753_v30 = vadd.f32 %v19474_v42, %v23808_v49  ;;  %v8450_v57 = vmul.f32 %v19297_v43, %v6370_v48  ;;  %v8447_v5 = vmul.f32 %v23810_v19, %v6233_v61  ;;  %v23811_v11 = vld [vmem:[#allocation223_spill] sm:$0xff]  ;;  %v19767_v49 = vpop.xlane.xlu1 %8617  ;;  %v23817_v19 = vld [vmem:[#allocation162_spill] sm:$0xff]  ;;  %23819 = vst [vmem:[#allocation30_spill] sm:$0xff] %v19774_v17  ;;  %v23824_v17 = vld [vmem:[#allocation256_spill] sm:$0xff] }
 0x4e3   : > { %8911 = vadd.xlane.f32.xlu1 %v8910_v46  ;;  %v8913_v56 = vsel %vm2529_vm5, %v8573_v53, 0.0  ;;  %v8571_v51 = vadd.f32 %v8443_v45, %v23811_v11  ;;  %v23814_v46 = vcombine.low %v23812_v39, %v23813_v8  ;;  %v23815_v59 = vcombine.low %v19382_v7, %v19419_v47  ;;  %v23816_v61 = vld [vmem:[#allocation103_spill] sm:$0xff]  ;;  %v23818_v45 = vld [vmem:[#allocation156_spill] sm:$0xff] }
 0x4e4   : > { %23809 = vst [vmem:[#allocation228_spill] sm:$0xff] %v19753_v30  ;;  %v8916_v43 = vsel %vm2529_vm5, %v8574_v23, 0.0  ;;  %v8576_v48 = vadd.f32 %v8448_v62, %v7872_v10  ;;  %v7874_v53 = vmul.f32 %v23816_v61, %v19246_v21  ;;  %v6500_v11 = vcombine.high %v23818_v45, %v23817_v19  ;;  %v23828_v10 = vld [vmem:[#allocation68_spill] sm:$0xff] }
 0x4e5   : > { %v5763_v13 = vrot.slane %v23814_v46, %v22760_v33  ;;  %v5795_v9 = vrot.slane %v23815_v59, %v22760_v33  ;;  %v23820_v46 = vcombine.high %v19547_v12, %v19547_v12  ;;  %v7408_v59 = vrot.slane %v7394_v35, %v22948_v52  ;;  %8914 = vadd.xlane.f32.xlu0 %v8913_v56  ;;  %v23826_v35 = vld [vmem:[#allocation158_spill] sm:$0xff] }
 0x4e6   : > { %v19786_v61 = vmul.f32 %v7682_v28, %v19753_v30  ;;  %v19789_v21 = vadd.f32 %v8130_v50, %v19753_v30  ;;  %v19793_v15 = vadd.f32 %v19474_v42, %v23824_v17  ;;  %v8922_v62 = vsel %vm2529_vm5, %v8576_v48, 0.0  ;;  %v23829_v30 = vld [vmem:[#allocation96_spill] sm:$0xff] }
 0x4e7   : > { %v19780_v55 = vrot.slane %v23820_v46, %v22948_v52  ;;  %8917 = vadd.xlane.f32.xlu1 %v8916_v43  ;;  %v5819_v23 = vcombine.low %v5763_v13, %v5795_v9  ;;  %v5820_v41 = vcombine.high %v5763_v13, %v5795_v9  ;;  %v8907_v46 = vsel %vm2529_vm5, %v8571_v51, 0.0  ;;  %v19810_v13 = vpop.xlane.xlu1 %8623 }
 0x4e8   : > { %23822 = vst [vmem:[#allocation189_spill] sm:$0xff] %v19786_v61  ;;  %23823 = vst [vmem:[#allocation146_spill] sm:$0xff] %v19789_v21  ;;  %v6499_v43 = vcombine.low %v23818_v45, %v23817_v19  ;;  %v8577_v28 = vadd.f32 %v8449_v32, %v23827_v22  ;;  %v8578_v61 = vadd.f32 %v8450_v57, %v7874_v53  ;;  %v23831_v22 = vld [vmem:[#allocation185_spill] sm:$0xff]  ;;  %v23832_v32 = vld [vmem:[#allocation95_spill] sm:$0xff]  ;;  %v19825_v45 = vpop.xlane.xlu0 %8770 }
 0x4e9   : > { %23825 = vst [vmem:[#allocation94_spill] sm:$0xff] %v19793_v15  ;;  %v8404_v56 = vmul.f32 %v23826_v35, %v5819_v23  ;;  %v8406_v50 = vmul.f32 %v23828_v10, %v5820_v41  ;;  %v19804_v9 = vadd.f32 %v19474_v42, %v23829_v30  ;;  %v7410_v17 = vcombine.high %v7408_v59, %v7408_v59  ;;  %v23836_v23 = vld [vmem:[#allocation194_spill] sm:$0xff]  ;;  %v23838_v35 = vld [vmem:[#allocation244_spill] sm:$0xff]  ;;  %v23858_v21 = vld [vmem:[#allocation267_spill] sm:$0xff] }
 0x4ea   : > { %v19808_v51 = vrot.slane %v19780_v55, %v22957_v38  ;;  %8908 = vadd.xlane.f32.xlu0 %v8907_v46  ;;  %v19813_v48 = vrot.slane %v7408_v59, %v22948_v52  ;;  %v7828_v57 = vmul.f32 %v23832_v32, %v23831_v22  ;;  %v23833_v41 = vcombine.high %v23812_v39, %v23813_v8  ;;  %v23837_v46 = vld [vmem:[#allocation175_spill] sm:$0xff] }
 0x4eb   : > { %23830 = vst [vmem:[#allocation237_spill] sm:$0xff] %v19804_v9  ;;  %8923 = vadd.xlane.f32.xlu1 %v8922_v62  ;;  %v23834_v53 = vcombine.high %v19382_v7, %v19419_v47  ;;  %23835 = vst [vmem:[#allocation75_spill] sm:$0xff] %v19825_v45  ;;  %v8575_v10 = vadd.f32 %v8447_v5, %v23836_v23  ;;  %v7877_v59 = vmul.f32 %v19634_v16, %v19467_v37  ;;  %v23839_v47 = vld [vmem:[#allocation257_spill] sm:$0xff]  ;;  %v23841_v5 = vld [vmem:[#allocation182_spill] sm:$0xff] }
 0x4ec   : > { %v5770_v30 = vrot.slane %v23833_v41, %v22760_v33  ;;  %v8453_v62 = vmul.f32 %v19544_v60, %v6500_v11  ;;  %v6502_v32 = vcombine.high %v23838_v35, %v23837_v46  ;;  %v8925_v39 = vsel %vm2529_vm5, %v8577_v28, 0.0  ;;  %v23842_v11 = vld [vmem:[#allocation251_spill] sm:$0xff]  ;;  %v23843_v23 = vld [vmem:[#allocation269_spill] sm:$0xff] }
 0x4ed   : > { %v5802_v19 = vrot.slane %v23834_v53, %v22760_v33  ;;  %v8928_v8 = vsel %vm2529_vm5, %v8578_v61, 0.0  ;;  %v8532_v41 = vadd.f32 %v8404_v56, %v7828_v57  ;;  %v7438_v7 = vrot.slane %v7410_v17, %v22948_v52  ;;  %v23857_v45 = vld [vmem:[#allocation227_spill] sm:$0xff] }
 0x4ee   : > { %v19838_v53 = vadd.f32 %v19474_v42, %v23839_v47  ;;  %8926 = vadd.xlane.f32.xlu0 %v8925_v39  ;;  %v19842_v60 = vrot.slane %v19547_v12, %v22948_v52  ;;  %v7830_v28 = vmul.f32 %v23842_v11, %v23841_v5  ;;  %v6501_v56 = vcombine.low %v23838_v35, %v23837_v46  ;;  %v19861_v46 = vpop.xlane.xlu0 %8764 }
 0x4ef   : > { %v5821_v22 = vcombine.low %v5770_v30, %v5802_v19  ;;  %8929 = vadd.xlane.f32.xlu1 %v8928_v8  ;;  %v5822_v16 = vcombine.high %v5770_v30, %v5802_v19  ;;  %v19851_v17 = vrot.slane %v19813_v48, %v22957_v38  ;;  %v8919_v57 = vsel %vm2529_vm5, %v8575_v10, 0.0  ;;  %v23844_v30 = vld [vmem:[#allocation268_spill] sm:$0xff]  ;;  %v19855_v8 = vpop.xlane.xlu1 %8629  ;;  %23846 = vst [vmem:[#allocation40_spill] sm:$0xff] %v19861_v46 }
 0x4f0   : > { %23840 = vst [vmem:[#allocation181_spill] sm:$0xff] %v19838_v53  ;;  %v8581_v39 = vadd.f32 %v8453_v62, %v7877_v59  ;;  %23845 = vst [vmem:[#allocation153_spill] sm:$0xff] %v19855_v8  ;;  %v8790_v52 = vsel %vm2529_vm5, %v8532_v41, 0.0  ;;  %v8534_v12 = vadd.f32 %v8406_v50, %v7830_v28  ;;  %v8451_v47 = vmul.f32 %v19539_v27, %v6499_v43  ;;  %v23848_v50 = vld [vmem:[#allocation129_spill] sm:$0xff]  ;;  %v23850_v27 = vld [vmem:[#allocation242_spill] sm:$0xff] }
 0x4f1   : > { %v8408_v61 = vmul.f32 %v23843_v23, %v5821_v22  ;;  %v8410_v19 = vmul.f32 %v23844_v30, %v5822_v16  ;;  %v7875_v22 = vmul.f32 %v19619_v4, %v19478_v0  ;;  %v19867_v10 = vmul.f32 %v19808_v51, %v19804_v9  ;;  %v23849_v62 = vld [vmem:[#allocation233_spill] sm:$0xff]  ;;  %v23851_v43 = vld [vmem:[#allocation291_spill] sm:$0xff] }
 0x4f2   : > { %v19870_v59 = vrot.slane %v7438_v7, %v22957_v38  ;;  %8920 = vadd.xlane.f32.xlu0 %v8919_v57  ;;  %v7832_v41 = vmul.f32 %v23849_v62, %v23848_v50  ;;  %v8457_v4 = vmul.f32 %v19739_v6, %v6502_v32  ;;  %v23852_v16 = vcombine.low %v23850_v27, %v23851_v43  ;;  %v23854_v6 = vld [vmem:[#allocation180_spill] sm:$0xff]  ;;  %v23855_v32 = vld [vmem:[#allocation55_spill] sm:$0xff] }
 0x4f3   : > { %8791 = vadd.xlane.f32.xlu1 %v8790_v52  ;;  %v23853_v23 = vcombine.low %v19402_v25, %v19422_v1  ;;  %v19885_v11 = vrot.slane %v19842_v60, %v22957_v38  ;;  %v8331_v57 = vadd.f32 %v19851_v17, %v19838_v53  ;;  %v8937_v52 = vsel %vm2529_vm5, %v8581_v39, 0.0  ;;  %v19895_v2 = vpop.xlane.xlu1 %8635 }
 0x4f4   : > { %v5779_v28 = vrot.slane %v23852_v16, %v22760_v33  ;;  %v6504_v62 = vcombine.high %v23855_v32, %v23854_v6  ;;  %v8796_v37 = vsel %vm2529_vm5, %v8534_v12, 0.0  ;;  %v8579_v16 = vadd.f32 %v8451_v47, %v7875_v22 }
 0x4f5   : > { %v5811_v30 = vrot.slane %v23853_v23, %v22760_v33  ;;  %v8536_v0 = vadd.f32 %v8408_v61, %v7832_v41  ;;  %v7442_v5 = vcombine.high %v7438_v7, %v7438_v7  ;;  %v23856_v23 = vld [vmem:[#allocation36_spill] sm:$0xff]  ;;  %v8333_v39 = vadd.f32 %v19870_v59, %v19804_v9  ;;  %v23860_v61 = vld [vmem:[#allocation274_spill] sm:$0xff]  ;;  %v19905_v7 = vpop.xlane.xlu0 %8782 }
 0x4f6   : > { %8938 = vadd.xlane.f32.xlu0 %v8937_v52  ;;  %v7834_v46 = vmul.f32 %v23857_v45, %v23856_v23  ;;  %v19901_v8 = vadd.f32 %v19474_v42, %v23858_v21  ;;  %v8585_v12 = vadd.f32 %v8457_v4, %v19718_v31  ;;  %v8455_v47 = vmul.f32 %v19749_v29, %v6501_v56  ;;  %v23861_v45 = vld [vmem:[#allocation273_spill] sm:$0xff]  ;;  %v23865_v4 = vld [vmem:[#allocation58_spill] sm:$0xff] }
 0x4f7   : > { %v5823_v50 = vcombine.low %v5779_v28, %v5811_v30  ;;  %8797 = vadd.xlane.f32.xlu1 %v8796_v37  ;;  %v5824_v35 = vcombine.high %v5779_v28, %v5811_v30  ;;  %v6503_v28 = vcombine.low %v23855_v32, %v23854_v6  ;;  %v8931_v30 = vsel %vm2529_vm5, %v8579_v16, 0.0 }
 0x4f8   : > { %23859 = vst [vmem:[#allocation287_spill] sm:$0xff] %v19901_v8  ;;  %v8538_v37 = vadd.f32 %v8410_v19, %v7834_v46  ;;  %v8802_v52 = vsel %vm2529_vm5, %v8536_v0, 0.0  ;;  %v23862_v21 = vcombine.high %v23850_v27, %v23851_v43  ;;  %v23863_v19 = vcombine.high %v19402_v25, %v19422_v1  ;;  %v23866_v25 = vld [vmem:[#allocation236_spill] sm:$0xff]  ;;  %v23867_v43 = vld [vmem:[#allocation289_spill] sm:$0xff] }
 0x4f9   : > { %v8412_v22 = vmul.f32 %v23860_v61, %v5823_v50  ;;  %v8414_v41 = vmul.f32 %v23861_v45, %v5824_v35  ;;  %v7042_v29 = vcombine.high %v19780_v55, %v19780_v55  ;;  %v19924_v56 = vrot.slane %v7442_v5, %v22957_v38  ;;  %v23868_v55 = vld [vmem:[#allocation191_spill] sm:$0xff]  ;;  %v19941_v61 = vpop.xlane.xlu1 %8641 }
 0x4fa   : > { %v5786_v31 = vrot.slane %v23862_v21, %v22760_v33  ;;  %v5818_v46 = vrot.slane %v23863_v19, %v22760_v33  ;;  %v7440_v35 = vcombine.high %v19813_v48, %v19813_v48  ;;  %8932 = vadd.xlane.f32.xlu0 %v8931_v30  ;;  %v23864_v0 = vcombine.low %v19408_v20, %v19431_v26  ;;  %v23869_v30 = vld [vmem:[#allocation78_spill] sm:$0xff] }
 0x4fb   : > { %8803 = vadd.xlane.f32.xlu1 %v8802_v52  ;;  %v7836_v1 = vmul.f32 %v23866_v25, %v23865_v4  ;;  %v6506_v6 = vcombine.high %v23868_v55, %v23867_v43  ;;  %v8949_v5 = vsel %vm2529_vm5, %v8585_v12, 0.0  ;;  %v8808_v32 = vsel %vm2529_vm5, %v8538_v37, 0.0  ;;  %v23870_v37 = vld [vmem:[#allocation271_spill] sm:$0xff] }
 0x4fc   : > { %v19932_v50 = vrot.slane %v23864_v0, %v22760_v33  ;;  %v5825_v27 = vcombine.low %v5786_v31, %v5818_v46  ;;  %v8583_v48 = vadd.f32 %v8455_v47, %v19743_v18  ;;  %v8461_v16 = vmul.f32 %v8333_v39, %v6504_v62  ;;  %v19946_v0 = vpop.xlane.xlu0 %8776  ;;  %v23873_v47 = vld [vmem:[#allocation265_spill] sm:$0xff] }
 0x4fd   : > { %v8540_v45 = vadd.f32 %v8412_v22, %v7836_v1  ;;  %v5826_v21 = vcombine.high %v5786_v31, %v5818_v46  ;;  %v6505_v19 = vcombine.low %v23868_v55, %v23867_v43  ;;  %v7883_v25 = vmul.f32 %v19885_v11, %v19838_v53  ;;  %v23872_v22 = vld [vmem:[#allocation199_spill] sm:$0xff]  ;;  %v23874_v46 = vld [vmem:[#allocation278_spill] sm:$0xff] }
 0x4fe   : > { %v8416_v52 = vmul.f32 %v23869_v30, %v5825_v27  ;;  %v19951_v12 = vrot.slane %v7042_v29, %v22957_v38  ;;  %v19955_v18 = vadd.f32 %v19474_v42, %v23870_v37  ;;  %8950 = vadd.xlane.f32.xlu0 %v8949_v5  ;;  %v7040_v62 = vcombine.high %v19842_v60, %v19842_v60  ;;  %v23876_v5 = vld [vmem:[#allocation46_spill] sm:$0xff] }
 0x4ff   : > { %8809 = vadd.xlane.f32.xlu1 %v8808_v32  ;;  %v19960_v39 = vrot.slane %v7440_v35, %v22957_v38  ;;  %v7838_v31 = vmul.f32 %v23873_v47, %v23872_v22  ;;  %v8418_v1 = vmul.f32 %v23874_v46, %v5826_v21  ;;  %v23875_v29 = vcombine.high %v19408_v20, %v19431_v26  ;;  %v19974_v32 = vpop.f32.mrb[128].mxu1  ;;  %v23877_v26 = vld [vmem:[#allocation260_spill] sm:$0xff]  ;;  %v23888_v22 = vld [vmem:[#allocation87_spill] sm:$0xff] }
 0x500   : > { %23871 = vst [vmem:[#allocation45_spill] sm:$0xff] %v19955_v18  ;;  %v8589_v43 = vadd.f32 %v8461_v16, %v19867_v10  ;;  %v8459_v55 = vmul.f32 %v8331_v57, %v6503_v28  ;;  %v6635_v60 = vcombine.low %v23876_v5, %v19932_v50  ;;  %v8337_v35 = vadd.f32 %v19924_v56, %v19901_v8  ;;  %v19980_v47 = vpop.f32.mrb[129].mxu1  ;;  %v19992_v28 = vpop.xlane.xlu1 %8743  ;;  %v23879_v16 = vld [vmem:[#allocation121_spill] sm:$0xff] }
 0x501   : > { %v19969_v27 = vrot.slane %v23875_v29, %v22760_v33  ;;  %v8943_v30 = vsel %vm2529_vm5, %v8583_v48, 0.0  ;;  %v8814_v21 = vsel %vm2529_vm5, %v8540_v45, 0.0  ;;  %v8542_v37 = vadd.f32 %v8414_v41, %v7838_v31  ;;  %v23880_v45 = vld [vmem:[#allocation167_spill] sm:$0xff]  ;;  %v8600_v46 = vpop.xlane.xlu0 %8599 }
 0x502   : > { %v19984_v20 = vmul.f32 %v19711_v54, %v19793_v15  ;;  %v19988_v10 = vadd.f32 %v19474_v42, %v23877_v26  ;;  %8944 = vadd.xlane.f32.xlu0 %v8943_v30  ;;  %v6636_v57 = vcombine.high %v23876_v5, %v19932_v50  ;;  %v7889_v41 = vmul.f32 %v19951_v12, %v19901_v8  ;;  %v20012_v26 = vpop.f32.mrb[130].mxu1 }
 0x503   : > { %8815 = vadd.xlane.f32.xlu1 %v8814_v21  ;;  %v19997_v48 = vrot.slane %v7040_v62, %v22957_v38  ;;  %v8335_v54 = vadd.f32 %v19960_v39, %v19955_v18  ;;  %v7840_v31 = vmul.f32 %v23880_v45, %v23879_v16  ;;  %v23881_v29 = vcombine.low %v19414_v44, %v19434_v63  ;;  %v23882_v21 = vld [vmem:[#allocation188_spill] sm:$0xff]  ;;  %v20017_v16 = vpop.f32.mrb[131].mxu1 }
 0x504   : > { %23878 = vst [vmem:[#allocation59_spill] sm:$0xff] %v19988_v10  ;;  %v8961_v5 = vsel %vm2529_vm5, %v8589_v43, 0.0  ;;  %v8587_v30 = vadd.f32 %v8459_v55, %v7883_v25  ;;  %v6637_v62 = vcombine.low %v23882_v21, %v19969_v27  ;;  %v8820_v8 = vsel %vm2529_vm5, %v8542_v37, 0.0  ;;  %v23883_v25 = vld [vmem:[#allocation195_spill] sm:$0xff]  ;;  %v20044_v45 = vpop.xlane.xlu1 %8749 }
 0x505   : > { %v20007_v50 = vrot.slane %v23881_v29, %v22760_v33  ;;  %v8544_v9 = vadd.f32 %v8416_v52, %v7840_v31  ;;  %v8465_v53 = vmul.f32 %v8337_v35, %v6506_v6  ;;  %v8328_v29 = vadd.f32 %v19725_v14, %v19793_v15  ;;  %v23884_v52 = vld [vmem:[#allocation262_spill] sm:$0xff] }
 0x506   : > { %v20025_v55 = vmul.f32 %v19808_v51, %v19988_v10  ;;  %8962 = vadd.xlane.f32.xlu0 %v8961_v5  ;;  %v20029_v6 = vadd.f32 %v19474_v42, %v23884_v52  ;;  %v7887_v35 = vmul.f32 %v19997_v48, %v19955_v18  ;;  %v23886_v14 = vcombine.high %v19414_v44, %v19434_v63  ;;  %v23887_v31 = vld [vmem:[#allocation130_spill] sm:$0xff]  ;;  %v20048_v44 = vpop.xlane.xlu0 %8890  ;;  %v23889_v63 = vld [vmem:[#allocation261_spill] sm:$0xff] }
 0x507   : > { %8821 = vadd.xlane.f32.xlu1 %v8820_v8  ;;  %v9089_v43 = vrot.slane %v8600_v46, %v23887_v31  ;;  %v9099_v51 = vrot.slane %v19668_v3, %v23887_v31  ;;  %v8955_v8 = vsel %vm2529_vm5, %v8587_v30, 0.0  ;;  %v8463_v5 = vmul.f32 %v8335_v54, %v6505_v19  ;;  %v23897_v30 = vld [vmem:[#allocation258_spill] sm:$0xff] }
 0x508   : > { %23885 = vst [vmem:[#allocation217_spill] sm:$0xff] %v20029_v6  ;;  %v20037_v37 = vrot.slane %v23886_v14, %v22760_v33  ;;  %v8452_v52 = vmul.f32 %v19684_v34, %v6635_v60  ;;  %v8826_v18 = vsel %vm2529_vm5, %v8544_v9, 0.0  ;;  %v8593_v15 = vadd.f32 %v8465_v53, %v7889_v41  ;;  %v23890_v53 = vld [vmem:[#allocation203_spill] sm:$0xff] }
 0x509   : > { %v8546_v4 = vadd.f32 %v8418_v1, %v23888_v22  ;;  %v20054_v3 = vadd.f32 %v19870_v59, %v19988_v10  ;;  %v20058_v19 = vmul.f32 %v19885_v11, %v20029_v6  ;;  %v20064_v9 = vadd.f32 %v19851_v17, %v20029_v6  ;;  %v23891_v22 = vld [vmem:[#allocation106_spill] sm:$0xff]  ;;  %v23893_v60 = vld [vmem:[#allocation51_spill] sm:$0xff]  ;;  %v23895_v11 = vld [vmem:[#allocation61_spill] sm:$0xff] }
 0x50a   : > { %8956 = vadd.xlane.f32.xlu0 %v8955_v8  ;;  %v23892_v1 = vcombine.low %v23890_v53, %v23891_v22  ;;  %v20072_v41 = vadd.f32 %v19474_v42, %v23893_v60  ;;  %v23896_v54 = vrot.slane %v23895_v11, %v19033_v24  ;;  %v23898_v14 = vrot.slane %v23897_v30, %v19033_v24  ;;  %v23899_v10 = vld [vmem:[#allocation235_spill] sm:$0xff] }
 0x50b   : > { %8827 = vadd.xlane.f32.xlu1 %v8826_v18  ;;  %v9108_v8 = vrot.slane %v19715_v36, %v23887_v31  ;;  %v8591_v34 = vadd.f32 %v8463_v5, %v7887_v35  ;;  %v8973_v46 = vsel %vm2529_vm5, %v8593_v15, 0.0  ;;  %v8832_v60 = vsel %vm2529_vm5, %v8546_v4, 0.0  ;;  %v23900_v11 = vld [vmem:[#allocation243_spill] sm:$0xff] }
 0x50c   : > { %v6067_v59 = vrot.slane %v23892_v1, %v22760_v33  ;;  %23894 = vst [vmem:[#allocation292_spill] sm:$0xff] %v20072_v41  ;;  %v9091_v18 = vsel %vm9090_vm7, %v9089_v43, %v23896_v54  ;;  %v9100_v17 = vsel %vm9090_vm7, %v9099_v51, %v23898_v14  ;;  %v8580_v1 = vadd.f32 %v8452_v52, %v19680_v40  ;;  %v20095_v40 = vpop.xlane.xlu1 %8755  ;;  %v23902_v4 = vld [vmem:[#allocation279_spill] sm:$0xff] }
 0x50d   : > { %v8454_v6 = vmul.f32 %v23899_v10, %v6636_v57  ;;  %v6641_v43 = vcombine.low %v23900_v11, %v20037_v37  ;;  %v23901_v54 = vcombine.high %v23890_v53, %v23891_v22  ;;  %v9372_v36 = vsel %vm9371_vm8, %v9100_v17, %v9091_v18  ;;  %v23903_v10 = vld [vmem:[#allocation48_spill] sm:$0xff]  ;;  %v20109_v22 = vpop.xlane.xlu0 %8788 }
 0x50e   : > { %8974 = vadd.xlane.f32.xlu0 %v8973_v46  ;;  %v6642_v15 = vcombine.high %v23900_v11, %v20037_v37  ;;  %v23904_v57 = vcombine.low %v23902_v4, %v23903_v10  ;;  %v23905_v5 = vcombine.high %v23902_v4, %v23903_v10  ;;  %v9117_v46 = vrot.slane %v19767_v49, %v23887_v31  ;;  %v23906_v18 = vld [vmem:[#allocation200_spill] sm:$0xff]  ;;  %v23945_v11 = vld [vmem:[#allocation150_spill] sm:$0xff] }
 0x50f   : > { %v6074_v51 = vrot.slane %v23901_v54, %v22760_v33  ;;  %8833 = vadd.xlane.f32.xlu1 %v8832_v60  ;;  %v8456_v53 = vmul.f32 %v8328_v29, %v6637_v62  ;;  %v23907_v30 = vrot.slane %v23906_v18, %v19033_v24  ;;  %v8967_v17 = vsel %vm2529_vm5, %v8591_v34, 0.0  ;;  %v23908_v4 = vld [vmem:[#allocation284_spill] sm:$0xff]  ;;  %v23909_v29 = vld [vmem:[#allocation153_spill] sm:$0xff] }
 0x510   : > { %v6083_v35 = vrot.slane %v23904_v57, %v22760_v33  ;;  %v6090_v52 = vrot.slane %v23905_v5, %v22760_v33  ;;  %v8934_v60 = vsel %vm2529_vm5, %v8580_v1, 0.0  ;;  %v8582_v54 = vadd.f32 %v8454_v6, %v19695_v58  ;;  %v23910_v34 = vld [vmem:[#allocation164_spill] sm:$0xff]  ;;  %v23911_v1 = vld [vmem:[#allocation222_spill] sm:$0xff] }
 0x511   : > { %v9109_v14 = vsel %vm9090_vm7, %v9108_v8, %v23907_v30  ;;  %v6091_v10 = vcombine.low %v23908_v4, %v6067_v59  ;;  %v6092_v49 = vcombine.high %v23908_v4, %v6067_v59  ;;  %v9126_v62 = vrot.slane %v19810_v13, %v23887_v31  ;;  %v23914_v5 = vld [vmem:[#allocation146_spill] sm:$0xff] }
 0x512   : > { %v9374_v33 = vsel %vm9373_vm9, %v9109_v14, %v9372_v36  ;;  %8968 = vadd.xlane.f32.xlu0 %v8967_v17  ;;  %v9135_v8 = vrot.slane %v23909_v29, %v23887_v31  ;;  %v6093_v57 = vcombine.low %v23910_v34, %v6074_v51  ;;  %v23912_v58 = vrot.slane %v23911_v1, %v19033_v24  ;;  %v23915_v13 = vld [vmem:[#allocation286_spill] sm:$0xff]  ;;  %v20139_v17 = vpop.xlane.xlu1 %8761  ;;  %v23917_v29 = vld [vmem:[#allocation151_spill] sm:$0xff] }
 0x513   : > { %8935 = vadd.xlane.f32.xlu1 %v8934_v60  ;;  %v8584_v36 = vadd.f32 %v8456_v53, %v19984_v20  ;;  %v23913_v59 = vcombine.high %v23882_v21, %v19969_v27  ;;  %v20136_v30 = vmul.f32 %v23915_v13, %v6091_v10  ;;  %v23916_v60 = vld [vmem:[#allocation37_spill] sm:$0xff]  ;;  %v6094_v20 = vcombine.high %v23910_v34, %v6074_v51  ;;  %v20149_v21 = vpop.xlane.xlu0 %8794  ;;  %v23924_v13 = vld [vmem:[#allocation71_spill] sm:$0xff] }
 0x514   : > { %v9118_v6 = vsel %vm9090_vm7, %v9117_v46, %v23912_v58  ;;  %v20142_v4 = vmul.f32 %v23916_v60, %v6092_v49  ;;  %v20145_v1 = vmul.f32 %v23917_v29, %v6093_v57  ;;  %v8940_v27 = vsel %vm2529_vm5, %v8582_v54, 0.0  ;;  %v23918_v46 = vld [vmem:[#allocation186_spill] sm:$0xff]  ;;  %v23923_v54 = vld [vmem:[#allocation64_spill] sm:$0xff]  ;;  %v23925_v29 = vld [vmem:[#allocation249_spill] sm:$0xff] }
 0x515   : > { %v8458_v18 = vmul.f32 %v23914_v5, %v23913_v59  ;;  %v9376_v14 = vsel %vm9375_vm10, %v9118_v6, %v9374_v33  ;;  %v6095_v53 = vcombine.low %v23918_v46, %v6083_v35  ;;  %v6096_v10 = vcombine.high %v23918_v46, %v6083_v35  ;;  %v23919_v33 = vld [vmem:[#allocation62_spill] sm:$0xff]  ;;  %v23921_v6 = vld [vmem:[#allocation35_spill] sm:$0xff] }
 0x516   : > { %v23920_v58 = vrot.slane %v23919_v33, %v19033_v24  ;;  %v23922_v57 = vrot.slane %v23921_v6, %v19033_v24  ;;  %v9144_v51 = vrot.slane %v19895_v2, %v23887_v31  ;;  %v8426_v34 = vmul.f32 %v23923_v54, %v6094_v20  ;;  %v23926_v33 = vld [vmem:[#allocation189_spill] sm:$0xff] }
 0x517   : > { %8941 = vadd.xlane.f32.xlu1 %v8940_v27  ;;  %v9153_v5 = vrot.slane %v19941_v61, %v23887_v31  ;;  %v8428_v60 = vmul.f32 %v23924_v13, %v6095_v53  ;;  %v8946_v46 = vsel %vm2529_vm5, %v8584_v36, 0.0  ;;  %v23928_v2 = vld [vmem:[#allocation105_spill] sm:$0xff]  ;;  %v23929_v20 = vcombine.low %v23889_v63, %v20007_v50  ;;  %v23931_v53 = vld [vmem:[#allocation232_spill] sm:$0xff]  ;;  %v23934_v13 = vld [vmem:[#allocation283_spill] sm:$0xff] }
 0x518   : > { %v9127_v49 = vsel %vm9090_vm7, %v9126_v62, %v23920_v58  ;;  %v9136_v59 = vsel %vm9090_vm7, %v9135_v8, %v23922_v57  ;;  %v8430_v62 = vmul.f32 %v23925_v29, %v6096_v10  ;;  %v8586_v58 = vadd.f32 %v8458_v18, %v23926_v33  ;;  %v23927_v8 = vld [vmem:[#allocation73_spill] sm:$0xff]  ;;  %v23930_v57 = vld [vmem:[#allocation176_spill] sm:$0xff]  ;;  %v23932_v10 = vld [vmem:[#allocation174_spill] sm:$0xff]  ;;  %v20200_v33 = vpop.xlane.xlu0 %8800 }
 0x519   : > { %v9378_v35 = vsel %vm9377_vm11, %v9127_v49, %v9376_v14  ;;  %v20172_v6 = vadd.f32 %v8426_v34, %v23927_v8  ;;  %v6097_v27 = vcombine.low %v23928_v2, %v6090_v52  ;;  %v8460_v61 = vmul.f32 %v20064_v9, %v23929_v20  ;;  %v20192_v34 = vpop.xlane.xlu1 %8767  ;;  %v23935_v29 = vld [vmem:[#allocation215_spill] sm:$0xff] }
 0x51a   : > { %v20180_v14 = vadd.f32 %v8428_v60, %v23930_v57  ;;  %v20183_v49 = vadd.f32 %v8430_v62, %v23931_v53  ;;  %v6098_v36 = vcombine.high %v23928_v2, %v6090_v52  ;;  %v20188_v18 = vadd.f32 %v19474_v42, %v23932_v10  ;;  %v23937_v42 = vld [vmem:[#allocation295_spill] sm:$0xff]  ;;  %v23941_v53 = vld [vmem:[#allocation294_spill] sm:$0xff] }
 0x51b   : > { %v8336_v54 = vadd.f32 %v19960_v39, %v20072_v41  ;;  %8947 = vadd.xlane.f32.xlu1 %v8946_v46  ;;  %v8432_v9 = vmul.f32 %v23934_v13, %v6097_v27  ;;  %v9380_v60 = vsel %vm9379_vm12, %v9136_v59, %v9378_v35  ;;  %v23936_v62 = vrot.slane %v23935_v29, %v19033_v24  ;;  %v23939_v27 = vld [vmem:[#allocation38_spill] sm:$0xff] }
 0x51c   : > { %23933 = vst [vmem:[#allocation213_spill] sm:$0xff] %v20188_v18  ;;  %v8434_v8 = vmul.f32 %v23937_v42, %v6098_v36  ;;  %v23938_v39 = vrot.slane %v23883_v25, %v19033_v24  ;;  %v8952_v2 = vsel %vm2529_vm5, %v8586_v58, 0.0  ;;  %v8588_v20 = vadd.f32 %v8460_v61, %v20058_v19  ;;  %v20235_v61 = vpop.xlane.xlu0 %8806 }
 0x51d   : > { %v9145_v52 = vsel %vm9090_vm7, %v9144_v51, %v23936_v62  ;;  %v20209_v59 = vadd.f32 %v8432_v9, %v23939_v27  ;;  %v23940_v51 = vcombine.high %v23889_v63, %v20007_v50  ;;  %v8338_v10 = vadd.f32 %v19924_v56, %v20188_v18  ;;  %v20226_v13 = vpop.xlane.xlu1 %8773  ;;  %v23943_v62 = vld [vmem:[#allocation192_spill] sm:$0xff] }
 0x51e   : > { %v9154_v46 = vsel %vm9090_vm7, %v9153_v5, %v23938_v39  ;;  %v9382_v35 = vsel %vm9381_vm13, %v9145_v52, %v9380_v60  ;;  %v20218_v36 = vadd.f32 %v8434_v8, %v23941_v53  ;;  %v23942_v5 = vld [vmem:[#allocation127_spill] sm:$0xff]  ;;  %v7888_v19 = vmul.f32 %v19997_v48, %v20072_v41  ;;  %v23944_v52 = vld [vmem:[#allocation160_spill] sm:$0xff] }
 0x51f   : > { %v8462_v57 = vmul.f32 %v20054_v3, %v23940_v51  ;;  %v9384_v25 = vsel %vm9383_vm14, %v9154_v46, %v9382_v35  ;;  %8953 = vadd.xlane.f32.xlu1 %v8952_v2  ;;  %v8958_v50 = vsel %vm2529_vm5, %v8588_v20, 0.0  ;;  %v8464_v3 = vmul.f32 %v8336_v54, %v6641_v43  ;;  %v23947_v20 = vld [vmem:[#allocation255_spill] sm:$0xff]  ;;  %v23948_v51 = vld [vmem:[#allocation206_spill] sm:$0xff]  ;;  %v23949_v53 = vld [vmem:[#allocation168_spill] sm:$0xff] }
 0x520   : > { %v20222_v58 = vadd.f32 %v23942_v5, %v9384_v25  ;;  %v7890_v9 = vmul.f32 %v19951_v12, %v20188_v18  ;;  %v8466_v48 = vmul.f32 %v8338_v10, %v6642_v15  ;;  %v7844_v42 = vmul.f32 %v23944_v52, %v23943_v62  ;;  %v23946_v15 = vld [vmem:[#allocation179_spill] sm:$0xff]  ;;  %v23950_v5 = vld [vmem:[#allocation148_spill] sm:$0xff] }
 0x521   : > { %v8590_v63 = vadd.f32 %v8462_v57, %v20025_v55  ;;  %v8592_v60 = vadd.f32 %v8464_v3, %v7888_v19  ;;  %v20243_v29 = vpop.xlane.xlu1 %8779  ;;  %v20245_v55 = vpop.xlane.xlu0 %8812  ;;  %v7846_v46 = vmul.f32 %v23946_v15, %v23945_v11  ;;  %v7848_v57 = vmul.f32 %v23948_v51, %v23947_v20  ;;  %v23951_v19 = vld [vmem:[#allocation29_spill] sm:$0xff] }
 0x522   : > { %v8594_v54 = vadd.f32 %v8466_v48, %v7890_v9  ;;  %v8548_v39 = vadd.f32 %v20136_v30, %v7844_v42  ;;  %v9243_v25 = vrot.slane %v23949_v53, %v23887_v31  ;;  %v9234_v10 = vrot.slane %v23950_v5, %v23887_v31  ;;  %v23953_v3 = vld [vmem:[#allocation161_spill] sm:$0xff]  ;;  %v23956_v42 = vld [vmem:[#allocation275_spill] sm:$0xff]  ;;  %v23959_v53 = vld [vmem:[#allocation82_spill] sm:$0xff] }
 0x523   : > { %8959 = vadd.xlane.f32.xlu1 %v8958_v50  ;;  %v8964_v56 = vsel %vm2529_vm5, %v8590_v63, 0.0  ;;  %v8970_v43 = vsel %vm2529_vm5, %v8592_v60, 0.0  ;;  %v8550_v27 = vadd.f32 %v20142_v4, %v7846_v46  ;;  %v9252_v50 = vrot.slane %v23951_v19, %v23887_v31  ;;  %v23952_v63 = vld [vmem:[#allocation172_spill] sm:$0xff]  ;;  %v23960_v5 = vld [vmem:[#allocation107_spill] sm:$0xff] }
 0x524   : > { %v8976_v8 = vsel %vm2529_vm5, %v8594_v54, 0.0  ;;  %v8838_v2 = vsel %vm2529_vm5, %v8548_v39, 0.0  ;;  %v9248_v4 = vrot.slane %v23952_v63, %v19033_v24  ;;  %v9239_v9 = vrot.slane %v23953_v3, %v19033_v24  ;;  %v23955_v54 = vld [vmem:[#allocation125_spill] sm:$0xff] }
 0x525   : > { %v20250_v12 = vpop.xlane.xlu1 %8785  ;;  %v20254_v37 = vpop.xlane.xlu0 %8818  ;;  %v8844_v48 = vsel %vm2529_vm5, %v8550_v27, 0.0  ;;  %v9230_v52 = vrot.slane %v23955_v54, %v19033_v24  ;;  %v23957_v39 = vld [vmem:[#allocation89_spill] sm:$0xff]  ;;  %v9279_v27 = vrot.slane %v23959_v53, %v23887_v31  ;;  %v9288_v19 = vrot.slane %v23960_v5, %v23887_v31 }
 0x526   : > { %v9266_v15 = vrot.slane %v23957_v39, %v19033_v24  ;;  %v9244_v46 = vsel %vm9090_vm7, %v9243_v25, %v9239_v9  ;;  %v23961_v63 = vld [vmem:[#allocation53_spill] sm:$0xff] }
 0x527   : > { %8965 = vadd.xlane.f32.xlu1 %v8964_v56  ;;  %v23954_v56 = vld [vmem:[#allocation270_spill] sm:$0xff]  ;;  %v9284_v3 = vrot.slane %v23961_v63, %v19033_v24  ;;  %v23962_v9 = vld [vmem:[#allocation245_spill] sm:$0xff] }
 0x528   : > { %v9261_v60 = vrot.slane %v23954_v56, %v23887_v31  ;;  %v23963_v54 = vld [vmem:[#allocation197_spill] sm:$0xff] }
 0x529   : > { %v20260_v35 = vpop.xlane.xlu1 %8647  ;;  %v20266_v30 = vpop.xlane.xlu0 %8824  ;;  %v9289_v5 = vsel %vm9090_vm7, %v9288_v19, %v9284_v3 }
 0x52b   : > { %8971 = vadd.xlane.f32.xlu1 %v8970_v43  ;;  %v8552_v43 = vadd.f32 %v20145_v1, %v7848_v57  ;;  %v9235_v1 = vsel %vm9090_vm7, %v9234_v10, %v9230_v52  ;;  %v9253_v57 = vsel %vm9090_vm7, %v9252_v50, %v9248_v4 }
 0x52c   : > { %v9392_v50 = vsel %vm9371_vm8, %v9244_v46, %v9235_v1  ;;  %v9315_v46 = vrot.slane %v20044_v45, %v23887_v31  ;;  %v9333_v45 = vrot.slane %v20139_v17, %v23887_v31  ;;  %v9351_v17 = vrot.slane %v20226_v13, %v23887_v31 }
 0x52d   : > { %v20297_v56 = vpop.xlane.xlu1 %8653  ;;  %v8850_v10 = vsel %vm2529_vm5, %v8552_v43, 0.0  ;;  %v20305_v52 = vpop.xlane.xlu0 %8830  ;;  %v9393_v39 = vsel %vm9373_vm9, %v9253_v57, %v9392_v50  ;;  %v23965_v57 = vld [vmem:[#allocation193_spill] sm:$0xff]  ;;  %v23968_v50 = vld [vmem:[#allocation247_spill] sm:$0xff]  ;;  %v9369_v13 = vrot.slane %v20250_v12, %v23887_v31  ;;  %v8868_v12 = vsel %vm2529_vm5, %v20183_v49, 0.0 }
 0x52e   : > { %v9311_v19 = vrot.slane %v23965_v57, %v19033_v24  ;;  %v9365_v57 = vrot.slane %v19905_v7, %v19033_v24  ;;  %v23972_v7 = vld [vmem:[#allocation277_spill] sm:$0xff] }
 0x52f   : > { %8977 = vadd.xlane.f32.xlu1 %v8976_v8  ;;  %v9270_v8 = vrot.slane %v23956_v42, %v23887_v31  ;;  %v9297_v42 = vrot.slane %v23963_v54, %v23887_v31  ;;  %v23967_v54 = vld [vmem:[#allocation30_spill] sm:$0xff]  ;;  %v23974_v49 = vld [vmem:[#allocation281_spill] sm:$0xff] }
 0x531   : > { %v9271_v4 = vsel %vm9090_vm7, %v9270_v8, %v9266_v15  ;;  %v8856_v8 = vsel %vm2529_vm5, %v20172_v6, 0.0  ;;  %v20324_v1 = vpop.xlane.xlu1 %8659  ;;  %v20333_v6 = vpop.xlane.xlu0 %8884 }
 0x533   : > { %8839 = vadd.xlane.f32.xlu1 %v8838_v2  ;;  %v23958_v2 = vld [vmem:[#allocation184_spill] sm:$0xff] }
 0x534   : > { %v9257_v51 = vrot.slane %v23958_v2, %v19033_v24 }
 0x536   : > { %v9262_v25 = vsel %vm9090_vm7, %v9261_v60, %v9257_v51  ;;  %v23964_v60 = vld [vmem:[#allocation201_spill] sm:$0xff] }
 0x537   : > { %8845 = vadd.xlane.f32.xlu1 %v8844_v48  ;;  %v9275_v48 = vrot.slane %v23962_v9, %v19033_v24  ;;  %v9293_v51 = vrot.slane %v23964_v60, %v19033_v24  ;;  %v9394_v53 = vsel %vm9375_vm10, %v9262_v25, %v9393_v39  ;;  %v9306_v25 = vrot.slane %v19992_v28, %v23887_v31  ;;  %v23966_v9 = vld [vmem:[#allocation52_spill] sm:$0xff] }
 0x538   : > { %v9395_v63 = vsel %vm9377_vm11, %v9271_v4, %v9394_v53  ;;  %v9329_v4 = vrot.slane %v23968_v50, %v19033_v24  ;;  %v9316_v28 = vsel %vm9090_vm7, %v9315_v46, %v9311_v19  ;;  %v8862_v39 = vsel %vm2529_vm5, %v20180_v14, 0.0  ;;  %v23971_v14 = vld [vmem:[#allocation293_spill] sm:$0xff] }
 0x539   : > { %v9280_v2 = vsel %vm9090_vm7, %v9279_v27, %v9275_v48  ;;  %v9298_v43 = vsel %vm9090_vm7, %v9297_v42, %v9293_v51  ;;  %v9324_v27 = vrot.slane %v20095_v40, %v23887_v31  ;;  %v9302_v48 = vrot.slane %v23966_v9, %v19033_v24 }
 0x53a   : > { %v9396_v15 = vsel %vm9379_vm12, %v9280_v2, %v9395_v63  ;;  %v9320_v42 = vrot.slane %v23967_v54, %v19033_v24  ;;  %v23969_v2 = vld [vmem:[#allocation40_spill] sm:$0xff]  ;;  %v9360_v53 = vrot.slane %v20243_v29, %v23887_v31  ;;  %v9334_v63 = vsel %vm9090_vm7, %v9333_v45, %v9329_v4  ;;  %v23973_v54 = vld [vmem:[#allocation77_spill] sm:$0xff] }
 0x53b   : > { %8851 = vadd.xlane.f32.xlu1 %v8850_v10  ;;  %v9397_v3 = vsel %vm9381_vm13, %v9289_v5, %v9396_v15  ;;  %v9342_v10 = vrot.slane %v20192_v34, %v23887_v31  ;;  %v9338_v60 = vrot.slane %v23969_v2, %v19033_v24  ;;  %v23970_v34 = vld [vmem:[#allocation75_spill] sm:$0xff] }
 0x53c   : > { %v9398_v40 = vsel %vm9383_vm14, %v9298_v43, %v9397_v3  ;;  %v9325_v51 = vsel %vm9090_vm7, %v9324_v27, %v9320_v42  ;;  %v9347_v5 = vrot.slane %v23970_v34, %v19033_v24  ;;  %v9307_v43 = vsel %vm9090_vm7, %v9306_v25, %v9302_v48  ;;  %v8666_v27 = vpop.xlane.xlu1 %8665  ;;  %v20371_v25 = vpop.xlane.xlu0 %8836  ;;  %v23975_v34 = vld [vmem:[#allocation81_spill] sm:$0xff] }
 0x53d   : > { %v9501_v46 = vadd.f32 %v23971_v14, %v9398_v40  ;;  %v9399_v15 = vsel %vm9371_vm8, %v9316_v28, %v9307_v43  ;;  %v9343_v29 = vsel %vm9090_vm7, %v9342_v10, %v9338_v60  ;;  %v9370_v48 = vsel %vm9090_vm7, %v9369_v13, %v9365_v57  ;;  %v23976_v43 = vld [vmem:[#allocation202_spill] sm:$0xff] }
 0x53e   : > { %v9400_v19 = vsel %vm9373_vm9, %v9325_v51, %v9399_v15  ;;  %v9352_v3 = vsel %vm9090_vm7, %v9351_v17, %v9347_v5  ;;  %v10011_v40 = vrot.slane %v23972_v7, %v19033_v24  ;;  %v10015_v42 = vrot.slane %v23973_v54, %v23887_v31 }
 0x53f   : > { %8857 = vadd.xlane.f32.xlu1 %v8856_v8  ;;  %v9356_v8 = vrot.slane %v19946_v0, %v19033_v24  ;;  %v9401_v45 = vsel %vm9375_vm10, %v9334_v63, %v9400_v19  ;;  %v9994_v50 = vmul.f32 %v9501_v46, %v23974_v49  ;;  %v8874_v28 = vsel %vm2529_vm5, %v20209_v59, 0.0 }
 0x540   : > { %v9402_v9 = vsel %vm9377_vm11, %v9343_v29, %v9401_v45  ;;  %v20387_v2 = vpop.xlane.xlu0 %8842  ;;  %v20390_v60 = vsel %vm9090_vm7, %v10015_v42, %v10011_v40  ;;  %v8880_v51 = vsel %vm2529_vm5, %v20218_v36, 0.0  ;;  %v9992_v5 = vmul.f32 %v20222_v58, %v23975_v34  ;;  %v23977_v36 = vld [vmem:[#allocation285_spill] sm:$0xff]  ;;  %v23978_v29 = vld [vmem:[#allocation296_spill] sm:$0xff] }
 0x541   : > { %v9361_v0 = vsel %vm9090_vm7, %v9360_v53, %v9356_v8  ;;  %v9403_v10 = vsel %vm9379_vm12, %v9352_v3, %v9402_v9  ;;  %v20395_v53 = vadd.f32 %v20390_v60, %v9994_v50  ;;  %v9171_v15 = vrot.slane %v20297_v56, %v23887_v31 }
 0x542   : > { %v9404_v4 = vsel %vm9381_vm13, %v9361_v0, %v9403_v10  ;;  %v20405_v46 = vadd.f32 %v20390_v60, %v9992_v5  ;;  %v9180_v58 = vrot.slane %v20324_v1, %v23887_v31  ;;  %v9167_v57 = vrot.slane %v23978_v29, %v19033_v24  ;;  %v23982_v10 = vld [vmem:[#allocation288_spill] sm:$0xff] }
 0x543   : > { %8863 = vadd.xlane.f32.xlu1 %v8862_v39  ;;  %v9405_v17 = vsel %vm9383_vm14, %v9370_v48, %v9404_v4  ;;  %v8672_v39 = vpop.xlane.xlu1 %8671  ;;  %v10047_v14 = vsel %vm10040_vm15, %v20395_v53, -inf  ;;  %v9162_v19 = vrot.slane %v20260_v35, %v23887_v31  ;;  %v9189_v3 = vrot.slane %v8666_v27, %v23887_v31  ;;  %v23980_v48 = vld [vmem:[#allocation246_spill] sm:$0xff]  ;;  %v23981_v35 = vld [vmem:[#allocation163_spill] sm:$0xff] }
 0x544   : > { %v9506_v59 = vadd.f32 %v23976_v43, %v9405_v17  ;;  %v9198_v0 = vrot.slane %v8672_v39, %v23887_v31  ;;  %v10041_v56 = vsel %vm10040_vm15, %v20405_v46, -inf  ;;  %v9158_v7 = vrot.slane %v23980_v48, %v19033_v24  ;;  %v23983_v17 = vld [vmem:[#allocation231_spill] sm:$0xff] }
 0x545   : > { %v9185_v40 = vrot.slane %v23981_v35, %v19033_v24  ;;  %v9172_v27 = vsel %vm9090_vm7, %v9171_v15, %v9167_v57  ;;  %v9194_v50 = vrot.slane %v23982_v10, %v19033_v24  ;;  %v9203_v39 = vrot.slane %v23983_v17, %v19033_v24  ;;  %v23984_v43 = vld [vmem:[#allocation239_spill] sm:$0xff] }
 0x546   : > { %v9995_v8 = vmul.f32 %v9506_v59, %v23977_v36  ;;  %v9212_v59 = vrot.slane %v23984_v43, %v19033_v24 }
 0x547   : > { %8869 = vadd.xlane.f32.xlu1 %v8868_v12  ;;  %v23979_v12 = vld [vmem:[#allocation209_spill] sm:$0xff]  ;;  %v9190_v5 = vsel %vm9090_vm7, %v9189_v3, %v9185_v40 }
 0x548   : > { %v9176_v45 = vrot.slane %v23979_v12, %v19033_v24  ;;  %v20425_v1 = vadd.f32 %v20390_v60, %v9995_v8  ;;  %v23985_v12 = vld [vmem:[#allocation104_spill] sm:$0xff] }
 0x54a   : > { %v9181_v4 = vsel %vm9090_vm7, %v9180_v58, %v9176_v45  ;;  %v10050_v8 = vsel %vm10040_vm15, %v20425_v1, -inf  ;;  %v9221_v45 = vrot.slane %v23985_v12, %v19033_v24 }
 0x54b   : > { %8875 = vadd.xlane.f32.xlu1 %v8874_v28  ;;  %v8678_v63 = vpop.xlane.xlu1 %8677 }
 0x54c   : > { %v9207_v54 = vrot.slane %v8678_v63, %v23887_v31 }
 0x54e   : > { %v9208_v58 = vsel %vm9090_vm7, %v9207_v54, %v9203_v39 }
 0x54f   : > { %8881 = vadd.xlane.f32.xlu1 %v8880_v51  ;;  %v9163_v51 = vsel %vm9090_vm7, %v9162_v19, %v9158_v7 }
 0x550   : > { %v9385_v63 = vsel %vm9371_vm8, %v9172_v27, %v9163_v51 }
 0x551   : > { %v20400_v13 = vpop.xlane.xlu0 %8848  ;;  %v9386_v15 = vsel %vm9373_vm9, %v9181_v4, %v9385_v63 }
 0x552   : > { %v9387_v29 = vsel %vm9375_vm10, %v9190_v5, %v9386_v15 }
 0x553   : > { %10048 = vmax.xlane.f32.xlu1 %v10047_v14  ;;  %v9199_v14 = vsel %vm9090_vm7, %v9198_v0, %v9194_v50  ;;  %v23987_v50 = vld [vmem:[#allocation266_spill] sm:$0xff] }
 0x554   : > { %v9388_v0 = vsel %vm9377_vm11, %v9199_v14, %v9387_v29 }
 0x555   : > { %v20420_v9 = vpop.xlane.xlu0 %8854  ;;  %v9389_v48 = vsel %vm9379_vm12, %v9208_v58, %v9388_v0  ;;  %v9720_v0 = vrot.slane %v20333_v6, %v19033_v24 }
 0x556   : > { %v8684_v42 = vpop.xlane.xlu1 %8683 }
 0x557   : > { %10042 = vmax.xlane.f32.xlu1 %v10041_v56  ;;  %v9216_v28 = vrot.slane %v8684_v42, %v23887_v31  ;;  %v23986_v42 = vld [vmem:[#allocation220_spill] sm:$0xff] }
 0x559   : > { %v9217_v57 = vsel %vm9090_vm7, %v9216_v28, %v9212_v59  ;;  %v20451_v3 = vpop.xlane.xlu0 %8860 }
 0x55a   : > { %v8690_v19 = vpop.xlane.xlu1 %8689  ;;  %v9390_v7 = vsel %vm9381_vm13, %v9217_v57, %v9389_v48 }
 0x55b   : > { %10051 = vmax.xlane.f32.xlu1 %v10050_v8  ;;  %v9225_v56 = vrot.slane %v8690_v19, %v23887_v31  ;;  %v9729_v19 = vrot.slane %v20048_v44, %v19033_v24 }
 0x55d   : > { %v9226_v35 = vsel %vm9090_vm7, %v9225_v56, %v9221_v45  ;;  %v20461_v27 = vpop.xlane.xlu0 %8866 }
 0x55e   : > { %v9391_v40 = vsel %vm9383_vm14, %v9226_v35, %v9390_v7 }
 0x55f   : > { %v9496_v10 = vadd.f32 %v23986_v42, %v9391_v40 }
 0x560   : > { %v8888_v54 = vpop.xlane.xlu1 %8887 }
 0x561   : > { %v9993_v4 = vmul.f32 %v9496_v10, %v23987_v50  ;;  %v20465_v28 = vpop.xlane.xlu0 %8872  ;;  %v9724_v12 = vrot.slane %v8888_v54, %v23887_v31 }
 0x563   : > { %v20468_v39 = vadd.f32 %v20390_v60, %v9993_v4  ;;  %v9725_v10 = vsel %vm9090_vm7, %v9724_v12, %v9720_v0 }
 0x564   : > { %v8894_v17 = vpop.xlane.xlu1 %8893 }
 0x565   : > { %v10044_v51 = vsel %vm10040_vm15, %v20468_v39, -inf  ;;  %v20472_v5 = vpop.xlane.xlu0 %8878  ;;  %v9733_v15 = vrot.slane %v8894_v17, %v23887_v31 }
 0x566   : > { %10045 = vmax.xlane.f32.xlu0 %v10044_v51 }
 0x567   : > { %v9734_v56 = vsel %vm9090_vm7, %v9733_v15, %v9729_v19 }
 0x568   : > { %v8900_v43 = vpop.xlane.xlu1 %8899  ;;  %v9875_v54 = vsel %vm9371_vm8, %v9734_v56, %v9725_v10 }
 0x569   : > { %v9742_v45 = vrot.slane %v8900_v43, %v23887_v31 }
 0x56a   : > { %v8903_v59 = vpop.xlane.xlu0 %8902 }
 0x56b   : > { %v9747_v44 = vrot.slane %v8903_v59, %v19033_v24 }
 0x56c   : > { %v8906_v63 = vpop.xlane.xlu1 %8905 }
 0x56d   : > { %v9751_v48 = vrot.slane %v8906_v63, %v23887_v31 }
 0x56e   : > { %v8897_v14 = vpop.xlane.xlu0 %8896 }
 0x56f   : > { %v9738_v57 = vrot.slane %v8897_v14, %v19033_v24  ;;  %v9752_v6 = vsel %vm9090_vm7, %v9751_v48, %v9747_v44 }
 0x570   : > { %v8912_v8 = vpop.xlane.xlu1 %8911 }
 0x571   : > { %v9743_v40 = vsel %vm9090_vm7, %v9742_v45, %v9738_v57  ;;  %v9760_v4 = vrot.slane %v8912_v8, %v23887_v31 }
 0x572   : > { %v8915_v58 = vpop.xlane.xlu0 %8914  ;;  %v9876_v17 = vsel %vm9373_vm9, %v9743_v40, %v9875_v54 }
 0x573   : > { %v9765_v15 = vrot.slane %v8915_v58, %v19033_v24  ;;  %v9877_v59 = vsel %vm9375_vm10, %v9752_v6, %v9876_v17 }
 0x574   : > { %v8918_v29 = vpop.xlane.xlu1 %8917 }
 0x575   : > { %v9769_v51 = vrot.slane %v8918_v29, %v23887_v31 }
 0x577   : > { %v8909_v7 = vpop.xlane.xlu0 %8908  ;;  %v9770_v19 = vsel %vm9090_vm7, %v9769_v51, %v9765_v15 }
 0x578   : > { %v8924_v35 = vpop.xlane.xlu1 %8923  ;;  %v9756_v42 = vrot.slane %v8909_v7, %v19033_v24 }
 0x579   : > { %v9778_v29 = vrot.slane %v8924_v35, %v23887_v31 }
 0x57a   : > { %v9761_v14 = vsel %vm9090_vm7, %v9760_v4, %v9756_v42 }
 0x57b   : > { %v8927_v43 = vpop.xlane.xlu0 %8926  ;;  %v9878_v0 = vsel %vm9377_vm11, %v9761_v14, %v9877_v59 }
 0x57c   : > { %v8930_v63 = vpop.xlane.xlu1 %8929  ;;  %v9783_v8 = vrot.slane %v8927_v43, %v19033_v24  ;;  %v9879_v7 = vsel %vm9379_vm12, %v9770_v19, %v9878_v0  ;;  %v9594_v19 = vrot.slane %v20200_v33, %v19033_v24  ;;  %v9603_v0 = vrot.slane %v20235_v61, %v19033_v24 }
 0x57d   : > { %v9787_v57 = vrot.slane %v8930_v63, %v23887_v31  ;;  %v9621_v33 = vrot.slane %v20254_v37, %v19033_v24 }
 0x57f   : > { %v8921_v12 = vpop.xlane.xlu0 %8920  ;;  %v9788_v48 = vsel %vm9090_vm7, %v9787_v57, %v9783_v8 }
 0x580   : > { %v8792_v45 = vpop.xlane.xlu1 %8791  ;;  %v9774_v56 = vrot.slane %v8921_v12, %v19033_v24  ;;  %v9576_v12 = vrot.slane %v20109_v22, %v19033_v24 }
 0x581   : > { %v9580_v57 = vrot.slane %v8792_v45, %v23887_v31 }
 0x582   : > { %v9779_v58 = vsel %vm9090_vm7, %v9778_v29, %v9774_v56 }
 0x583   : > { %v9880_v40 = vsel %vm9381_vm13, %v9779_v58, %v9879_v7  ;;  %v20514_v51 = vpop.xlane.xlu0 %8938  ;;  %v9581_v58 = vsel %vm9090_vm7, %v9580_v57, %v9576_v12 }
 0x584   : > { %v8798_v42 = vpop.xlane.xlu1 %8797  ;;  %v9881_v10 = vsel %vm9383_vm14, %v9788_v48, %v9880_v40  ;;  %v9630_v40 = vrot.slane %v20266_v30, %v19033_v24 }
 0x585   : > { %v9984_v44 = vadd.f32 %v20017_v16, %v9881_v10  ;;  %v9589_v63 = vrot.slane %v8798_v42, %v23887_v31 }
 0x587   : > { %v9998_v54 = vmul.f32 %v9984_v44, %v23974_v49  ;;  %v20517_v14 = vpop.xlane.xlu0 %8932  ;;  %v9585_v49 = vrot.slane %v20149_v21, %v19033_v24  ;;  %v9612_v21 = vrot.slane %v20245_v55, %v19033_v24 }
 0x588   : > { %v8804_v4 = vpop.xlane.xlu1 %8803 }
 0x589   : > { %v20510_v35 = vadd.f32 %v20390_v60, %v9998_v54  ;;  %v9598_v16 = vrot.slane %v8804_v4, %v23887_v31  ;;  %v9590_v29 = vsel %vm9090_vm7, %v9589_v63, %v9585_v49 }
 0x58a   : > { %v9861_v42 = vsel %vm9371_vm8, %v9590_v29, %v9581_v58 }
 0x58b   : > { %v10059_v6 = vsel %vm10040_vm15, %v20510_v35, -inf  ;;  %v9599_v45 = vsel %vm9090_vm7, %v9598_v16, %v9594_v19  ;;  %v8951_v7 = vpop.xlane.xlu0 %8950 }
 0x58c   : > { %v8810_v17 = vpop.xlane.xlu1 %8809  ;;  %10060 = vmax.xlane.f32.xlu1 %v10059_v6  ;;  %v9862_v10 = vsel %vm9373_vm9, %v9599_v45, %v9861_v42  ;;  %v9639_v6 = vrot.slane %v20305_v52, %v19033_v24 }
 0x58d   : > { %v9607_v59 = vrot.slane %v8810_v17, %v23887_v31 }
 0x58f   : > { %v9608_v22 = vsel %vm9090_vm7, %v9607_v59, %v9603_v0  ;;  %v8945_v63 = vpop.xlane.xlu0 %8944 }
 0x590   : > { %v8816_v43 = vpop.xlane.xlu1 %8815  ;;  %v9863_v37 = vsel %vm9375_vm10, %v9608_v22, %v9862_v10  ;;  %v9819_v10 = vrot.slane %v8951_v7, %v19033_v24 }
 0x591   : > { %v9616_v8 = vrot.slane %v8816_v43, %v23887_v31 }
 0x593   : > { %v9617_v55 = vsel %vm9090_vm7, %v9616_v8, %v9612_v21  ;;  %v8963_v52 = vpop.xlane.xlu0 %8962 }
 0x594   : > { %v8822_v15 = vpop.xlane.xlu1 %8821  ;;  %v9864_v17 = vsel %vm9377_vm11, %v9617_v55, %v9863_v37  ;;  %v9792_v55 = vrot.slane %v20517_v14, %v19033_v24 }
 0x595   : > { %v9625_v56 = vrot.slane %v8822_v15, %v23887_v31 }
 0x597   : > { %v9626_v44 = vsel %vm9090_vm7, %v9625_v56, %v9621_v33  ;;  %v8957_v56 = vpop.xlane.xlu0 %8956 }
 0x598   : > { %v8828_v48 = vpop.xlane.xlu1 %8827  ;;  %v9865_v43 = vsel %vm9379_vm12, %v9626_v44, %v9864_v17  ;;  %v9837_v17 = vrot.slane %v8963_v52, %v19033_v24 }
 0x599   : > { %v9634_v61 = vrot.slane %v8828_v48, %v23887_v31 }
 0x59b   : > { %v9635_v54 = vsel %vm9090_vm7, %v9634_v61, %v9630_v40  ;;  %v8975_v48 = vpop.xlane.xlu0 %8974  ;;  %v9810_v40 = vrot.slane %v8945_v63, %v19033_v24 }
 0x59c   : > { %v8834_v4 = vpop.xlane.xlu1 %8833  ;;  %v9866_v16 = vsel %vm9381_vm13, %v9635_v54, %v9865_v43 }
 0x59d   : > { %v9643_v30 = vrot.slane %v8834_v4, %v23887_v31 }
 0x59f   : > { %v9644_v15 = vsel %vm9090_vm7, %v9643_v30, %v9639_v6  ;;  %v8969_v44 = vpop.xlane.xlu0 %8968 }
 0x5a0   : > { %v9867_v49 = vsel %vm9383_vm14, %v9644_v15, %v9866_v16  ;;  %v8936_v57 = vpop.xlane.xlu1 %8935  ;;  %v9846_v7 = vrot.slane %v8969_v44, %v19033_v24 }
 0x5a1   : > { %v9974_v59 = vadd.f32 %v19980_v47, %v9867_v49  ;;  %v9796_v22 = vrot.slane %v8936_v57, %v23887_v31 }
 0x5a3   : > { %v9996_v19 = vmul.f32 %v9974_v59, %v23975_v34  ;;  %v9801_v34 = vrot.slane %v20514_v51, %v19033_v24  ;;  %v9828_v51 = vrot.slane %v8957_v56, %v19033_v24  ;;  %v9797_v30 = vsel %vm9090_vm7, %v9796_v22, %v9792_v55 }
 0x5a4   : > { %v8942_v8 = vpop.xlane.xlu1 %8941 }
 0x5a5   : > { %v20560_v12 = vadd.f32 %v20390_v60, %v9996_v19  ;;  %v9805_v33 = vrot.slane %v8942_v8, %v23887_v31  ;;  %v9855_v8 = vrot.slane %v8975_v48, %v19033_v24 }
 0x5a7   : > { %v10053_v0 = vsel %vm10040_vm15, %v20560_v12, -inf  ;;  %v9806_v37 = vsel %vm9090_vm7, %v9805_v33, %v9801_v34 }
 0x5a8   : > { %v8948_v29 = vpop.xlane.xlu1 %8947  ;;  %10054 = vmax.xlane.f32.xlu1 %v10053_v0  ;;  %v9882_v63 = vsel %vm9371_vm8, %v9806_v37, %v9797_v30 }
 0x5a9   : > { %v9814_v47 = vrot.slane %v8948_v29, %v23887_v31 }
 0x5ab   : > { %v9815_v4 = vsel %vm9090_vm7, %v9814_v47, %v9810_v40 }
 0x5ac   : > { %v8954_v21 = vpop.xlane.xlu1 %8953  ;;  %v9883_v15 = vsel %vm9373_vm9, %v9815_v4, %v9882_v63  ;;  %v9648_v4 = vrot.slane %v20371_v25, %v19033_v24 }
 0x5ad   : > { %v9823_v61 = vrot.slane %v8954_v21, %v23887_v31 }
 0x5af   : > { %v9824_v43 = vsel %vm9090_vm7, %v9823_v61, %v9819_v10 }
 0x5b0   : > { %v8960_v45 = vpop.xlane.xlu1 %8959  ;;  %v9884_v57 = vsel %vm9375_vm10, %v9824_v43, %v9883_v15 }
 0x5b1   : > { %v9832_v42 = vrot.slane %v8960_v45, %v23887_v31 }
 0x5b3   : > { %v9833_v16 = vsel %vm9090_vm7, %v9832_v42, %v9828_v51 }
 0x5b4   : > { %v8966_v58 = vpop.xlane.xlu1 %8965  ;;  %v9885_v52 = vsel %vm9377_vm11, %v9833_v16, %v9884_v57 }
 0x5b5   : > { %v9841_v54 = vrot.slane %v8966_v58, %v23887_v31 }
 0x5b7   : > { %v9842_v49 = vsel %vm9090_vm7, %v9841_v54, %v9837_v17  ;;  %v9666_v54 = vrot.slane %v20400_v13, %v19033_v24  ;;  %v9693_v13 = vrot.slane %v20461_v27, %v19033_v24 }
 0x5b8   : > { %v8972_v6 = vpop.xlane.xlu1 %8971  ;;  %v9886_v29 = vsel %vm9379_vm12, %v9842_v49, %v9885_v52 }
 0x5b9   : > { %v9850_v14 = vrot.slane %v8972_v6, %v23887_v31  ;;  %v9675_v6 = vrot.slane %v20420_v9, %v19033_v24  ;;  %v9702_v9 = vrot.slane %v20465_v28, %v19033_v24 }
 0x5bb   : > { %v9851_v59 = vsel %vm9090_vm7, %v9850_v14, %v9846_v7 }
 0x5bc   : > { %v8978_v19 = vpop.xlane.xlu1 %8977  ;;  %v9887_v56 = vsel %vm9381_vm13, %v9851_v59, %v9886_v29 }
 0x5bd   : > { %v9859_v0 = vrot.slane %v8978_v19, %v23887_v31  ;;  %v9711_v19 = vrot.slane %v20472_v5, %v19033_v24  ;;  %v20649_v5 = vld [vmem:[#allocation5] sm:$0xff] }
 0x5bf   : > { %v9860_v21 = vsel %vm9090_vm7, %v9859_v0, %v9855_v8  ;;  %v20640_v0 = vld [vmem:[#allocation5 + $0x10] sm:$0xff] }
 0x5c0   : > { %v9888_v45 = vsel %vm9383_vm14, %v9860_v21, %v9887_v56  ;;  %v8840_v33 = vpop.xlane.xlu1 %8839 }
 0x5c1   : > { %v9989_v47 = vadd.f32 %v20012_v26, %v9888_v45  ;;  %v9657_v26 = vrot.slane %v20387_v2, %v19033_v24  ;;  %v9684_v2 = vrot.slane %v20451_v3, %v19033_v24 }
 0x5c3   : > { %v9999_v58 = vmul.f32 %v9989_v47, %v23977_v36  ;;  %v9652_v36 = vrot.slane %v8840_v33, %v23887_v31 }
 0x5c4   : > { %v8846_v34 = vpop.xlane.xlu1 %8845 }
 0x5c5   : > { %v20600_v48 = vadd.f32 %v20390_v60, %v9999_v58  ;;  %v9661_v55 = vrot.slane %v8846_v34, %v23887_v31  ;;  %v9653_v7 = vsel %vm9090_vm7, %v9652_v36, %v9648_v4  ;;  %v2069_v36 = vld [vmem:[%s20692_s9] sm:$0xff] }
 0x5c7   : > { %v10062_v22 = vsel %vm10040_vm15, %v20600_v48, -inf  ;;  %v9662_v17 = vsel %vm9090_vm7, %v9661_v55, %v9657_v26  ;;  %v20678_v55 = vld [vmem:[#allocation5 + $0x8] sm:$0xff] }
 0x5c8   : > { %v8852_v61 = vpop.xlane.xlu1 %8851  ;;  %10063 = vmax.xlane.f32.xlu1 %v10062_v22  ;;  %v9868_v16 = vsel %vm9371_vm8, %v9662_v17, %v9653_v7 }
 0x5c9   : > { %v9670_v10 = vrot.slane %v8852_v61, %v23887_v31 }
 0x5cb   : > { %v9671_v43 = vsel %vm9090_vm7, %v9670_v10, %v9666_v54 }
 0x5cc   : > { %v8858_v40 = vpop.xlane.xlu1 %8857  ;;  %v9869_v3 = vsel %vm9373_vm9, %v9671_v43, %v9868_v16 }
 0x5cd   : > { %v9679_v37 = vrot.slane %v8858_v40, %v23887_v31 }
 0x5cf   : > { %v9680_v25 = vsel %vm9090_vm7, %v9679_v37, %v9675_v6  ;;  %v2070_v37 = vld [vmem:[%s20692_s9 + $0x8] sm:$0xff] }
 0x5d0   : > { %v8864_v42 = vpop.xlane.xlu1 %8863  ;;  %v9870_v57 = vsel %vm9375_vm10, %v9680_v25, %v9869_v3  ;;  %v13902_v54 = vpack.c.bf16 %v2070_v37, %v2069_v36 }
 0x5d1   : > { %v9688_v51 = vrot.slane %v8864_v42, %v23887_v31 }
 0x5d2   : > { %13903 = vmatprep.subr.bf16.mxu0 %v13902_v54 }
 0x5d3   : > { %v9689_v15 = vsel %vm9090_vm7, %v9688_v51, %v9684_v2  ;;  %13905 = vmatpush3.bf16.msra.mxu0 %v13902_v54  ;;  %v20696_v51 = vld [vmem:[#allocation5 + $0x30] sm:$0xff] }
 0x5d4   : > { %v8870_v44 = vpop.xlane.xlu1 %8869  ;;  %v9871_v8 = vsel %vm9377_vm11, %v9689_v15, %v9870_v57  ;;  %v23988_v57 = vld [vmem:[#allocation27_spill] sm:$0xff] }
 0x5d5   : > { %v9697_v30 = vrot.slane %v8870_v44, %v23887_v31  ;;  %v20764_v37 = vsub.s32 5, %v23988_v57 }
 0x5d7   : > { %v9698_v49 = vsel %vm9090_vm7, %v9697_v30, %v9693_v13  ;;  %v20706_v30 = vld [vmem:[#allocation5 + $0x20] sm:$0xff]  ;;  %v20716_v13 = vld [vmem:[#allocation5 + $0x38] sm:$0xff] }
 0x5d8   : > { %v8876_v14 = vpop.xlane.xlu1 %8875  ;;  %v9872_v52 = vsel %vm9379_vm12, %v9698_v49, %v9871_v8 }
 0x5d9   : > { %v9706_v63 = vrot.slane %v8876_v14, %v23887_v31 }
 0x5db   : > { %v9707_v27 = vsel %vm9090_vm7, %v9706_v63, %v9702_v9 }
 0x5dc   : > { %v8882_v59 = vpop.xlane.xlu1 %8881  ;;  %v9873_v29 = vsel %vm9381_vm13, %v9707_v27, %v9872_v52  ;;  %v20731_v27 = vsub.s32 1, %v23988_v57 }
 0x5dd   : > { %v9715_v28 = vrot.slane %v8882_v59, %v23887_v31  ;;  %v20733_v59 = vld [vmem:[#allocation5 + $0x28] sm:$0xff] }
 0x5de   : > { %23989 = vst [vmem:[#allocation210_spill] sm:$0xff] %v20733_v59 }
 0x5df   : > { %v9716_v56 = vsel %vm9090_vm7, %v9715_v28, %v9711_v19 }
 0x5e0   : > { %v9874_v21 = vsel %vm9383_vm14, %v9716_v56, %v9873_v29  ;;  %v10049_v45 = vpop.xlane.xlu1 %10048 }
 0x5e1   : > { %v20646_v33 = vmax.f32 %v20640_v0, %v10049_v45  ;;  %v9979_v24 = vadd.f32 %v19974_v32, %v9874_v21  ;;  %v20663_v32 = vld [vmem:[#allocation5 + $0x18] sm:$0xff]  ;;  %v20754_v45 = vsub.s32 3, %v23988_v57 }
 0x5e3   : > { %v10075_v31 = vsub.f32 %v20640_v0, %v20646_v33  ;;  %12046 = vst.msk [vmem:[#allocation5 + $0x10] sm:$0xff] %vm10209_vm0, %v20646_v33  ;;  %10109 = vperm.xlu0 %14045, %v20646_v33   ;;  %v9997_v47 = vmul.f32 %v9979_v24, %v23987_v50 }
 0x5e4   : > { %v10043_v58 = vpop.xlane.xlu1 %10042 }
 0x5e5   : > { %v20658_v34 = vmax.f32 %v20649_v5, %v10043_v58  ;;  %v20661_v22 = vadd.f32 %v20390_v60, %v9997_v47 }
 0x5e7   : > { %v10073_v61 = vsub.f32 %v20649_v5, %v20658_v34  ;;  %12044 = vst.msk [vmem:[#allocation5] sm:$0xff] %vm10209_vm0, %v20658_v34  ;;  %v10056_v40 = vsel %vm10040_vm15, %v20661_v22, -inf }
 0x5e8   : > { %10057 = vmax.xlane.f32.xlu1 %v10056_v40  ;;  %v10052_v50 = vpop.xlane.xlu1 %10051  ;;  %v20758_v40 = vsub.s32 4, %v23988_v57 }
 0x5e9   : > { %v20672_v42 = vmax.f32 %v20663_v32, %v10052_v50 }
 0x5eb   : > { %12047 = vst.msk [vmem:[#allocation5 + $0x18] sm:$0xff] %vm10209_vm0, %v20672_v42 }
 0x5f3   : > { %v10046_v10 = vpop.xlane.xlu0 %10045 }
 0x5f4   : > { %v20681_v44 = vmax.f32 %v20678_v55, %v10046_v10 }
 0x5f6   : > { %12045 = vst.msk [vmem:[#allocation5 + $0x8] sm:$0xff] %vm10209_vm0, %v20681_v44 }
 0x5f9   : > { %10099 = vperm.xlu1 %14044, %v20658_v34  }
 0x5fd   : > { %10114 = vperm.xlu1 %14044, %v20672_v42  }
 0x601   : > { %10104 = vperm.xlu1 %14044, %v20681_v44  }
 0x619   : > { %v10061_v4 = vpop.xlane.xlu1 %10060 }
 0x61a   : > { %v20699_v6 = vmax.f32 %v20696_v51, %v10061_v4  ;;  %v20767_v4 = vsub.s32 6, %v23988_v57 }
 0x61c   : > { %12050 = vst.msk [vmem:[#allocation5 + $0x30] sm:$0xff] %vm10209_vm0, %v20699_v6  ;;  %10129 = vperm.xlu1 %14044, %v20699_v6  }
 0x635   : > { %v10055_v2 = vpop.xlane.xlu1 %10054 }
 0x636   : > { %v20709_v43 = vmax.f32 %v20706_v30, %v10055_v2  ;;  %v2071_v2 = vld [vmem:[%s20692_s9 + $0x20] sm:$0xff] }
 0x638   : > { %12048 = vst.msk [vmem:[#allocation5 + $0x20] sm:$0xff] %vm10209_vm0, %v20709_v43  ;;  %10119 = vperm.xlu1 %14044, %v20709_v43  }
 0x655   : > { %v10064_v7 = vpop.xlane.xlu1 %10063 }
 0x656   : > { %v20719_v25 = vmax.f32 %v20716_v13, %v10064_v7  ;;  %v2072_v7 = vld [vmem:[%s20692_s9 + $0x28] sm:$0xff] }
 0x658   : > { %12051 = vst.msk [vmem:[#allocation5 + $0x38] sm:$0xff] %vm10209_vm0, %v20719_v25  ;;  %10134 = vperm.xlu1 %14044, %v20719_v25  }
 0x662   : > { %v10110_v9 = vpop.permute.xlu0 %10109 }
 0x663   : > { %v10139_v16 = vsub.f32 %v20395_v53, %v10110_v9  ;;  %v20743_v53 = vsub.s32 2, %v23988_v57 }
 0x665   : > { %v10149_v15 = vmul.f32 1.442695, %v10139_v16 }
 0x667   : > { %14190 = vpow2.f32 %v10149_v15  ;;  %v13906_v15 = vpack.c.bf16 %v2072_v7, %v2071_v2 }
 0x669   : > { %13907 = vmatprep.subr.bf16.mxu1 %v13906_v15 }
 0x66a   : > { %13909 = vmatpush3.bf16.msra.mxu1 %v13906_v15 }
 0x671   : > { %v14191_v3 = vpop.eup %14190 }
 0x672   : > { %v20728_v49 = vrot.slane %v14191_v3, %v22957_v38  ;;  %v20740_v28 = vrot.slane %v14191_v3, %v20731_v27  ;;  %v10613_v21 = vrot.slane %v14191_v3, %v20743_v53  ;;  %v10624_v58 = vrot.slane %v14191_v3, %v20754_v45 }
 0x673   : > { %v10635_v36 = vrot.slane %v14191_v3, %v20758_v40  ;;  %v10646_v16 = vrot.slane %v14191_v3, %v20764_v37 }
 0x674   : > { %10593 = vbcast.lane.b32.xlu0 %v20728_v49, 256 }
 0x675   : > { %v10058_v19 = vpop.xlane.xlu1 %10057 }
 0x676   : > { %v20737_v8 = vmax.f32 %v20733_v59, %v10058_v19  ;;  %v20778_v19 = vsub.s32 7, %v23988_v57 }
 0x678   : > { %23990 = vst [vmem:[#allocation238_spill] sm:$0xff] %v20737_v8  ;;  %12049 = vst.msk [vmem:[#allocation5 + $0x28] sm:$0xff] %vm10209_vm0, %v20737_v8  ;;  %10604 = vbcast.lane.b32.xlu0 %v20740_v28, 256  ;;  %10124 = vperm.xlu1 %14044, %v20737_v8  }
 0x679   : > { %v10100_v29 = vpop.permute.xlu1 %10099 }
 0x67a   : > { %v10137_v56 = vsub.f32 %v20405_v46, %v10100_v29  ;;  %v10668_v29 = vrot.slane %v14191_v3, %v20778_v19 }
 0x67c   : > { %v10145_v24 = vmul.f32 1.442695, %v10137_v56  ;;  %10615 = vbcast.lane.b32.xlu0 %v10613_v21, 256 }
 0x67d   : > { %v10115_v47 = vpop.permute.xlu1 %10114 }
 0x67e   : > { %14192 = vpow2.f32 %v10145_v24  ;;  %v10140_v46 = vsub.f32 %v20425_v1, %v10115_v47 }
 0x680   : > { %10626 = vbcast.lane.b32.xlu0 %v10624_v58, 256  ;;  %v10151_v9 = vmul.f32 1.442695, %v10140_v46  ;;  %v10183_v46 = vsel %vm10040_vm15, %v14191_v3, 0.0 }
 0x681   : > { %v10105_v50 = vpop.permute.xlu1 %10104 }
 0x682   : > { %v10138_v10 = vsub.f32 %v20468_v39, %v10105_v50  ;;  %v10657_v39 = vrot.slane %v14191_v3, %v20767_v4 }
 0x684   : > { %v10147_v54 = vmul.f32 1.442695, %v10138_v10  ;;  %10637 = vbcast.lane.b32.xlu0 %v10635_v36, 256 }
 0x686   : > { %14194 = vpow2.f32 %v10147_v54 }
 0x687   : > { %14196 = vpow2.f32 %v10151_v9 }
 0x688   : > { %v20772_v1 = vpop.eup %14192  ;;  %10648 = vbcast.lane.b32.xlu0 %v10646_v16, 256 }
 0x689   : > { %13856 = vmatprep.mubr.msk.f32.mxu0 %vm10040_vm15, %v20772_v1  ;;  %v20788_v24 = vrot.slane %v20772_v1, %v22957_v38  ;;  %v20794_v57 = vrot.slane %v20772_v1, %v20743_v53  ;;  %v20799_v50 = vrot.slane %v20772_v1, %v20754_v45  ;;  %v20805_v10 = vrot.slane %v20772_v1, %v20758_v40 }
 0x68a   : > { %v10177_v54 = vsel %vm10040_vm15, %v20772_v1, 0.0  ;;  %v20812_v2 = vrot.slane %v20772_v1, %v20764_v37  ;;  %v20822_v7 = vrot.slane %v20772_v1, %v20778_v19 }
 0x68c   : > { %10659 = vbcast.lane.b32.xlu0 %v10657_v39, 256 }
 0x690   : > { %v20781_v56 = vpop.eup %14194  ;;  %10670 = vbcast.lane.b32.xlu0 %v10668_v29, 256 }
 0x691   : > { %13857 = vmatmul.mubr.msk.f32.vlgmr.msra.gmra.mrb[132].mxu0 %vm10040_vm15, %v20781_v56  ;;  %v14197_v47 = vpop.eup %14196 }
 0x692   : > { %13859 = vmatprep.mubr.msk.f32.mxu0 %vm10040_vm15, %v14191_v3  ;;  %v20817_v3 = vrot.slane %v20772_v1, %v20767_v4  ;;  %v20867_v17 = vrot.slane %v14197_v47, %v20778_v19 }
 0x694   : > { %10421 = vbcast.lane.b32.xlu0 %v20788_v24, 264 }
 0x695   : > { %13860 = vmatmul.mubr.msk.f32.gmra.mrb[134].mxu0 %vm10040_vm15, %v14197_v47 }
 0x698   : > { %10439 = vbcast.lane.b32.xlu0 %v20794_v57, 256 }
 0x69b   : > { %v10130_v9 = vpop.permute.xlu1 %10129 }
 0x69c   : > { %10184 = vadd.xlane.f32.xlu1 %v10183_v46  ;;  %10450 = vbcast.lane.b32.xlu0 %v20799_v50, 256 }
 0x6a0   : > { %10461 = vbcast.lane.b32.xlu0 %v20805_v10, 256  ;;  %10178 = vadd.xlane.f32.xlu1 %v10177_v54 }
 0x6a4   : > { %10472 = vbcast.lane.b32.xlu0 %v20812_v2, 256 }
 0x6a8   : > { %10483 = vbcast.lane.b32.xlu0 %v20817_v3, 256 }
 0x6ac   : > { %10494 = vbcast.lane.b32.xlu0 %v20822_v7, 256 }
 0x6b1   : > { %10597 = vbcast.lane.b32.xlu1 %v20728_v49, 264  ;;  %v10180_v49 = vsel %vm10040_vm15, %v20781_v56, 0.0 }
 0x6b5   : > { %10608 = vbcast.lane.b32.xlu1 %v20740_v28, 264  ;;  %v20835_v28 = vrot.slane %v14197_v47, %v22957_v38 }
 0x6b7   : > { %v10120_v15 = vpop.permute.xlu1 %10119 }
 0x6b8   : > { %v10141_v46 = vsub.f32 %v20560_v12, %v10120_v15  ;;  %v20839_v12 = vrot.slane %v14197_v47, %v20731_v27  ;;  %v10143_v15 = vsub.f32 %v20510_v35, %v10130_v9  ;;  %v20872_v35 = vrot.slane %v20781_v56, %v22957_v38 }
 0x6b9   : > { %10619 = vbcast.lane.b32.xlu1 %v10613_v21, 264  ;;  %v20843_v21 = vrot.slane %v14197_v47, %v20743_v53  ;;  %v20906_v9 = vrot.slane %v20781_v56, %v20754_v45 }
 0x6ba   : > { %v10153_v54 = vmul.f32 1.442695, %v10141_v46  ;;  %v10157_v14 = vmul.f32 1.442695, %v10143_v15  ;;  %v20914_v15 = vrot.slane %v20781_v56, %v20758_v40 }
 0x6bc   : > { %14198 = vpow2.f32 %v10153_v54  ;;  %v20861_v54 = vrot.slane %v14197_v47, %v20767_v4 }
 0x6bd   : > { %10630 = vbcast.lane.b32.xlu1 %v10624_v58, 264  ;;  %v20847_v58 = vrot.slane %v14197_v47, %v20754_v45 }
 0x6c1   : > { %10641 = vbcast.lane.b32.xlu1 %v10635_v36, 264  ;;  %v20851_v36 = vrot.slane %v14197_v47, %v20758_v40 }
 0x6c5   : > { %10652 = vbcast.lane.b32.xlu1 %v10646_v16, 264  ;;  %v10186_v16 = vsel %vm10040_vm15, %v14197_v47, 0.0 }
 0x6c6   : > { %v20828_v52 = vpop.eup %14198 }
 0x6c7   : > { %13866 = vmatprep.mubr.msk.f32.mxu1 %vm10040_vm15, %v20828_v52 }
 0x6c9   : > { %10663 = vbcast.lane.b32.xlu1 %v10657_v39, 264 }
 0x6cb   : > { %10181 = vadd.xlane.f32.xlu0 %v10180_v49 }
 0x6cd   : > { %10674 = vbcast.lane.b32.xlu1 %v10668_v29, 264  ;;  %v20856_v29 = vrot.slane %v14197_v47, %v20764_v37 }
 0x6d7   : > { %v10135_v39 = vpop.permute.xlu1 %10134 }
 0x6d8   : > { %v10144_v49 = vsub.f32 %v20600_v48, %v10135_v39 }
 0x6da   : > { %v10159_v60 = vmul.f32 1.442695, %v10144_v49  ;;  %v20922_v49 = vrot.slane %v20781_v56, %v20764_v37 }
 0x6e1   : > { %10681 = vbcast.lane.b32.xlu0 %v20835_v28, 256 }
 0x6e5   : > { %10692 = vbcast.lane.b32.xlu0 %v20839_v12, 256 }
 0x6e6   : > { %v20874_v48 = vpop.permute.xlu0 %10593 }
 0x6e9   : > { %10703 = vbcast.lane.b32.xlu0 %v20843_v21, 256 }
 0x6ea   : > { %v20887_v47 = vpop.permute.xlu0 %10604 }
 0x6ed   : > { %10714 = vbcast.lane.b32.xlu0 %v20847_v58, 256 }
 0x6ee   : > { %v20908_v39 = vpop.permute.xlu0 %10615 }
 0x6f1   : > { %10187 = vadd.xlane.f32.xlu1 %v10186_v16  ;;  %10725 = vbcast.lane.b32.xlu0 %v20851_v36, 256 }
 0x6f5   : > { %10736 = vbcast.lane.b32.xlu0 %v20856_v29, 256 }
 0x6f7   : > { %v10125_v46 = vpop.permute.xlu1 %10124 }
 0x6f8   : > { %v10142_v63 = vsub.f32 %v20661_v22, %v10125_v46  ;;  %v20880_v22 = vrot.slane %v20781_v56, %v20731_v27  ;;  %v20917_v46 = vpop.permute.xlu0 %10626 }
 0x6f9   : > { %10747 = vbcast.lane.b32.xlu0 %v20861_v54, 256 }
 0x6fa   : > { %v10155_v16 = vmul.f32 1.442695, %v10142_v63 }
 0x6fc   : > { %14200 = vpow2.f32 %v10155_v16  ;;  %v20931_v16 = vrot.slane %v20781_v56, %v20767_v4 }
 0x6fd   : > { %14202 = vpow2.f32 %v10157_v14  ;;  %10758 = vbcast.lane.b32.xlu0 %v20867_v17, 256  ;;  %v10426_v14 = vrot.slane %v20772_v1, %v20731_v27 }
 0x6fe   : > { %14204 = vpow2.f32 %v10159_v60 }
 0x701   : > { %10505 = vbcast.lane.b32.xlu0 %v20872_v35, 256 }
 0x702   : > { %10417 = vbcast.lane.b32.xlu1 %v20788_v24, 256  ;;  %v20895_v24 = vrot.slane %v20781_v56, %v20743_v53 }
 0x705   : > { %10516 = vbcast.lane.b32.xlu0 %v20880_v22, 256 }
 0x706   : > { %v20885_v63 = vpop.eup %14200  ;;  %10428 = vbcast.lane.b32.xlu1 %v10426_v14, 256 }
 0x707   : > { %v20889_v60 = vpop.eup %14202  ;;  %13867 = vmatmul.mubr.msk.f32.vlgmr.msra.gmra.mrb[132].mxu1 %vm10040_vm15, %v20885_v63 }
 0x708   : > { %13869 = vmatprep.mubr.msk.f32.mxu1 %vm10040_vm15, %v20889_v60  ;;  %v20900_v1 = vpop.eup %14204  ;;  %v20950_v33 = vrot.slane %v20889_v60, %v22957_v38  ;;  %v20956_v5 = vrot.slane %v20889_v60, %v20731_v27  ;;  %v20985_v11 = vrot.slane %v20889_v60, %v20758_v40 }
 0x709   : > { %10527 = vbcast.lane.b32.xlu0 %v20895_v24, 256 }
 0x70a   : > { %10432 = vbcast.lane.b32.xlu1 %v10426_v14, 264  ;;  %v20933_v14 = vpop.permute.xlu0 %10637 }
 0x70b   : > { %13870 = vmatmul.mubr.msk.f32.gmra.mrb[134].mxu1 %vm10040_vm15, %v20900_v1 }
 0x70d   : > { %10538 = vbcast.lane.b32.xlu0 %v20906_v9, 256 }
 0x70e   : > { %10443 = vbcast.lane.b32.xlu1 %v20794_v57, 264  ;;  %v10085_v57 = vmul.f32 1.442695, %v10075_v31  ;;  %v20945_v0 = vpop.permute.xlu0 %10648 }
 0x710   : > { %14206 = vpow2.f32 %v10085_v57  ;;  %v10161_v57 = vld [vmem:[#allocation6] sm:$0xff] }
 0x711   : > { %10549 = vbcast.lane.b32.xlu0 %v20914_v15, 256 }
 0x712   : > { %10454 = vbcast.lane.b32.xlu1 %v20799_v50, 264  ;;  %v10081_v50 = vmul.f32 1.442695, %v10073_v61  ;;  %v20958_v31 = vpop.permute.xlu0 %10659  ;;  %v10163_v61 = vld [vmem:[#allocation6 + $0x10] sm:$0xff] }
 0x714   : > { %14208 = vpow2.f32 %v10081_v50 }
 0x715   : > { %10560 = vbcast.lane.b32.xlu0 %v20922_v49, 256 }
 0x716   : > { %10465 = vbcast.lane.b32.xlu1 %v20805_v10, 264  ;;  %v20942_v10 = vrot.slane %v20781_v56, %v20778_v19  ;;  %v20966_v56 = vrot.slane %v20889_v60, %v20743_v53  ;;  %v20972_v50 = vpop.permute.xlu0 %10670 }
 0x719   : > { %10571 = vbcast.lane.b32.xlu0 %v20931_v16, 256 }
 0x71a   : > { %10476 = vbcast.lane.b32.xlu1 %v20812_v2, 264  ;;  %v20960_v34 = vpop.eup %14206 }
 0x71b   : > { %23991 = vst [vmem:[#allocation34_spill] sm:$0xff] %v20960_v34  ;;  %v10171_v2 = vmul.f32 %v20960_v34, %v10163_v61  ;;  %v21143_v34 = vrot.slane %v20900_v1, %v22957_v38 }
 0x71d   : > { %10582 = vbcast.lane.b32.xlu0 %v20942_v10, 256  ;;  %24019 = vst [vmem:[#allocation68_spill] sm:$0xff] %v21143_v34 }
 0x71e   : > { %10487 = vbcast.lane.b32.xlu1 %v20817_v3, 264  ;;  %v20969_v3 = vpop.eup %14208 }
 0x71f   : > { %23992 = vst [vmem:[#allocation216_spill] sm:$0xff] %v20969_v3  ;;  %v10169_v18 = vmul.f32 %v20969_v3, %v10161_v57 }
 0x721   : > { %10945 = vbcast.lane.b32.xlu0 %v20950_v33, 256 }
 0x722   : > { %10498 = vbcast.lane.b32.xlu1 %v20822_v7, 264 }
 0x725   : > { %10956 = vbcast.lane.b32.xlu0 %v20956_v5, 256 }
 0x726   : > { %10685 = vbcast.lane.b32.xlu1 %v20835_v28, 264  ;;  %v20977_v28 = vrot.slane %v20889_v60, %v20754_v45 }
 0x729   : > { %10967 = vbcast.lane.b32.xlu0 %v20966_v56, 256  ;;  %v10185_v7 = vpop.xlane.xlu1 %10184 }
 0x72a   : > { %v10203_v26 = vadd.f32 %v10185_v7, %v10171_v2  ;;  %10696 = vbcast.lane.b32.xlu1 %v20839_v12, 264  ;;  %v20987_v2 = vpop.permute.xlu0 %10421  ;;  %v21002_v12 = vrot.slane %v20889_v60, %v20767_v4 }
 0x72c   : > { %10212 = vst.msk [vmem:[#allocation6 + $0x10] sm:$0xff] %vm10209_vm0, %v10203_v26  ;;  %v20994_v26 = vrot.slane %v20889_v60, %v20764_v37 }
 0x72d   : > { %10978 = vbcast.lane.b32.xlu0 %v20977_v28, 256  ;;  %v10179_v61 = vpop.xlane.xlu1 %10178 }
 0x72e   : > { %v10201_v20 = vadd.f32 %v10179_v61, %v10169_v18  ;;  %10707 = vbcast.lane.b32.xlu1 %v20843_v21, 264  ;;  %v20997_v18 = vpop.permute.xlu0 %10439 }
 0x730   : > { %10210 = vst.msk [vmem:[#allocation6] sm:$0xff] %vm10209_vm0, %v10201_v20  ;;  %v21008_v20 = vrot.slane %v20889_v60, %v20778_v19 }
 0x731   : > { %10989 = vbcast.lane.b32.xlu0 %v20985_v11, 256 }
 0x732   : > { %10718 = vbcast.lane.b32.xlu1 %v20847_v58, 264  ;;  %v21010_v21 = vpop.permute.xlu0 %10450 }
 0x735   : > { %11000 = vbcast.lane.b32.xlu0 %v20994_v26, 256 }
 0x736   : > { %10729 = vbcast.lane.b32.xlu1 %v20851_v36, 264  ;;  %v21014_v58 = vpop.permute.xlu0 %10461  ;;  %v23993_v36 = vsub.f32 %v20678_v55, %v20681_v44  ;;  %v10162_v55 = vld [vmem:[#allocation6 + $0x8] sm:$0xff] }
 0x738   : > { %v10083_v7 = vmul.f32 1.442695, %v23993_v36 }
 0x739   : > { %11011 = vbcast.lane.b32.xlu0 %v21002_v12, 256 }
 0x73a   : > { %10740 = vbcast.lane.b32.xlu1 %v20856_v29, 264  ;;  %v21021_v29 = vpop.permute.xlu0 %10472  ;;  %14210 = vpow2.f32 %v10083_v7 }
 0x73d   : > { %11022 = vbcast.lane.b32.xlu0 %v21008_v20, 256 }
 0x73e   : > { %10751 = vbcast.lane.b32.xlu1 %v20861_v54, 264  ;;  %v21024_v57 = vpop.permute.xlu0 %10483  ;;  %v21027_v54 = vpop.permute.xlu1 %10597 }
 0x73f   : > { %23994 = vst [vmem:[#allocation79_spill] sm:$0xff] %v21024_v57 }
 0x742   : > { %10762 = vbcast.lane.b32.xlu1 %v20867_v17, 264  ;;  %v21032_v61 = vpop.permute.xlu0 %10494  ;;  %v21034_v44 = vpop.permute.xlu1 %10608 }
 0x743   : > { %23996 = vst [vmem:[#allocation218_spill] sm:$0xff] %v21032_v61  ;;  %v24029_v61 = vld [vmem:[#allocation70_spill] sm:$0xff] }
 0x744   : > { %v21030_v17 = vpop.eup %14210 }
 0x745   : > { %23995 = vst [vmem:[#allocation276_spill] sm:$0xff] %v21030_v17 }
 0x746   : > { %10509 = vbcast.lane.b32.xlu1 %v20872_v35, 264  ;;  %v10170_v35 = vmul.f32 %v21030_v17, %v10162_v55 }
 0x74a   : > { %10520 = vbcast.lane.b32.xlu1 %v20880_v22, 264 }
 0x74e   : > { %10531 = vbcast.lane.b32.xlu1 %v20895_v24, 264  ;;  %v10198_v24 = vsel %vm10040_vm15, %v20900_v1, 0.0 }
 0x752   : > { %10542 = vbcast.lane.b32.xlu1 %v20906_v9, 264  ;;  %v21042_v9 = vpop.permute.xlu1 %10619 }
 0x756   : > { %10553 = vbcast.lane.b32.xlu1 %v20914_v15, 264  ;;  %v21049_v15 = vpop.permute.xlu1 %10630 }
 0x758   : > { %v10182_v22 = vpop.xlane.xlu0 %10181 }
 0x759   : > { %v10202_v36 = vadd.f32 %v10182_v22, %v10170_v35 }
 0x75a   : > { %10564 = vbcast.lane.b32.xlu1 %v20922_v49, 264  ;;  %v21058_v22 = vpop.permute.xlu1 %10641 }
 0x75b   : > { %10211 = vst.msk [vmem:[#allocation6 + $0x8] sm:$0xff] %vm10209_vm0, %v10202_v36 }
 0x75c   : > { %v21044_v7 = vpop.permute.xlu0 %10681  ;;  %10199 = vadd.xlane.f32.xlu0 %v10198_v24 }
 0x75d   : > { %23997 = vst [vmem:[#allocation66_spill] sm:$0xff] %v21044_v7  ;;  %v21114_v7 = vrot.slane %v20828_v52, %v20764_v37 }
 0x75e   : > { %10575 = vbcast.lane.b32.xlu1 %v20931_v16, 264  ;;  %v24004_v16 = vsub.f32 %v20663_v32, %v20672_v42  ;;  %v21069_v23 = vpop.permute.xlu1 %10652  ;;  %v21087_v32 = vrot.slane %v20828_v52, %v20743_v53 }
 0x75f   : > { %24014 = vst [vmem:[#allocation162_spill] sm:$0xff] %v21114_v7 }
 0x760   : > { %v21047_v62 = vpop.permute.xlu0 %10692  ;;  %v10087_v24 = vmul.f32 1.442695, %v24004_v16  ;;  %24008 = vst [vmem:[#allocation254_spill] sm:$0xff] %v21087_v32 }
 0x761   : > { %23998 = vst [vmem:[#allocation282_spill] sm:$0xff] %v21047_v62 }
 0x762   : > { %10586 = vbcast.lane.b32.xlu1 %v20942_v10, 264  ;;  %14212 = vpow2.f32 %v10087_v24  ;;  %v21073_v10 = vrot.slane %v20828_v52, %v22957_v38 }
 0x764   : > { %v21052_v55 = vpop.f32.mrb[132].mxu0  ;;  %v21056_v35 = vpop.permute.xlu0 %10703 }
 0x765   : > { %23999 = vst [vmem:[#allocation39_spill] sm:$0xff] %v21052_v55  ;;  %v21054_v49 = vpop.f32.mrb[133].mxu0  ;;  %24001 = vst [vmem:[#allocation240_spill] sm:$0xff] %v21056_v35 }
 0x766   : > { %24000 = vst [vmem:[#allocation214_spill] sm:$0xff] %v21054_v49  ;;  %v21082_v49 = vrot.slane %v20828_v52, %v20731_v27 }
 0x768   : > { %v21060_v36 = vpop.f32.mrb[134].mxu0  ;;  %v21067_v17 = vpop.permute.xlu0 %10714  ;;  %24007 = vst [vmem:[#allocation259_spill] sm:$0xff] %v21082_v49 }
 0x769   : > { %24002 = vst [vmem:[#allocation74_spill] sm:$0xff] %v21060_v36  ;;  %v21062_v41 = vpop.f32.mrb[135].mxu0  ;;  %24005 = vst [vmem:[#allocation187_spill] sm:$0xff] %v21067_v17  ;;  %v21078_v36 = vpop.permute.xlu1 %10663 }
 0x76a   : > { %24003 = vst [vmem:[#allocation226_spill] sm:$0xff] %v21062_v41  ;;  %v10164_v41 = vld [vmem:[#allocation6 + $0x18] sm:$0xff] }
 0x76c   : > { %v21076_v55 = vpop.permute.xlu0 %10725  ;;  %v21091_v16 = vpop.eup %14212 }
 0x76d   : > { %24006 = vst [vmem:[#allocation298_spill] sm:$0xff] %v21076_v55  ;;  %24010 = vst [vmem:[#allocation223_spill] sm:$0xff] %v21091_v16  ;;  %v21093_v24 = vpop.permute.xlu1 %10674  ;;  %v21098_v55 = vrot.slane %v20828_v52, %v20754_v45  ;;  %v10172_v17 = vmul.f32 %v21091_v16, %v10164_v41  ;;  %v10195_v16 = vsel %vm10040_vm15, %v20889_v60, 0.0  ;;  %v21136_v60 = vrot.slane %v20828_v52, %v20778_v19 }
 0x76f   : > { %24011 = vst [vmem:[#allocation60_spill] sm:$0xff] %v21098_v55  ;;  %24018 = vst [vmem:[#allocation297_spill] sm:$0xff] %v21136_v60 }
 0x770   : > { %v21089_v42 = vpop.permute.xlu0 %10736 }
 0x771   : > { %24009 = vst [vmem:[#allocation263_spill] sm:$0xff] %v21089_v42  ;;  %v21106_v42 = vrot.slane %v20828_v52, %v20758_v40 }
 0x772   : > { %10769 = vbcast.lane.b32.xlu0 %v21073_v10, 256 }
 0x773   : > { %24013 = vst [vmem:[#allocation103_spill] sm:$0xff] %v21106_v42 }
 0x774   : > { %v21102_v59 = vpop.permute.xlu0 %10747 }
 0x775   : > { %24012 = vst [vmem:[#allocation290_spill] sm:$0xff] %v21102_v59 }
 0x776   : > { %10780 = vbcast.lane.b32.xlu0 %v21082_v49, 256 }
 0x778   : > { %v21116_v41 = vpop.permute.xlu0 %10758 }
 0x779   : > { %24015 = vst [vmem:[#allocation156_spill] sm:$0xff] %v21116_v41 }
 0x77a   : > { %10791 = vbcast.lane.b32.xlu0 %v21087_v32, 256 }
 0x77c   : > { %v21132_v41 = vpop.permute.xlu0 %10505 }
 0x77d   : > { %24017 = vst [vmem:[#allocation158_spill] sm:$0xff] %v21132_v41  ;;  %v24028_v41 = vld [vmem:[#allocation137_spill] sm:$0xff] }
 0x77e   : > { %10802 = vbcast.lane.b32.xlu0 %v21098_v55, 256  ;;  %v10188_v8 = vpop.xlane.xlu1 %10187  ;;  %v11150_v32 = vmul.f32 %v20887_v47, %v24028_v41  ;;  %v24036_v41 = vld [vmem:[#allocation57_spill] sm:$0xff] }
 0x77f   : > { %v10204_v35 = vadd.f32 %v10188_v8, %v10172_v17  ;;  %v21125_v17 = vrot.slane %v20828_v52, %v20767_v4 }
 0x780   : > { %v21145_v3 = vpop.permute.xlu0 %10516 }
 0x781   : > { %10213 = vst.msk [vmem:[#allocation6 + $0x18] sm:$0xff] %vm10209_vm0, %v10204_v35  ;;  %24016 = vst [vmem:[#allocation256_spill] sm:$0xff] %v21125_v17  ;;  %v10189_v35 = vsel %vm10040_vm15, %v20828_v52, 0.0 }
 0x782   : > { %10813 = vbcast.lane.b32.xlu0 %v21106_v42, 256  ;;  %v21110_v62 = vpop.permute.xlu1 %10417  ;;  %24020 = vst [vmem:[#allocation96_spill] sm:$0xff] %v21145_v3  ;;  %v24026_v42 = vld [vmem:[#allocation128_spill] sm:$0xff] }
 0x783   : > { %v11151_v55 = vmul.f32 %v21034_v44, %v24026_v42  ;;  %v24032_v44 = vld [vmem:[#allocation170_spill] sm:$0xff] }
 0x786   : > { %10196 = vadd.xlane.f32.xlu1 %v10195_v16  ;;  %10824 = vbcast.lane.b32.xlu0 %v21114_v7, 256  ;;  %v21121_v8 = vpop.permute.xlu1 %10428  ;;  %v21161_v7 = vrot.slane %v20900_v1, %v20743_v53 }
 0x788   : > { %24025 = vst [vmem:[#allocation257_spill] sm:$0xff] %v21161_v7 }
 0x78a   : > { %10190 = vadd.xlane.f32.xlu1 %v10189_v35  ;;  %10835 = vbcast.lane.b32.xlu0 %v21125_v17, 256  ;;  %v21130_v59 = vpop.permute.xlu1 %10432  ;;  %v21152_v17 = vrot.slane %v20900_v1, %v20731_v27 }
 0x78c   : > { %24022 = vst [vmem:[#allocation194_spill] sm:$0xff] %v21152_v17 }
 0x78e   : > { %10846 = vbcast.lane.b32.xlu0 %v21136_v60, 256  ;;  %v21139_v16 = vpop.permute.xlu1 %10443  ;;  %v21157_v60 = vpop.permute.xlu0 %10527 }
 0x78f   : > { %24024 = vst [vmem:[#allocation244_spill] sm:$0xff] %v21157_v60  ;;  %v24030_v60 = vld [vmem:[#allocation133_spill] sm:$0xff] }
 0x790   : > { %v11149_v57 = vmul.f32 %v21027_v54, %v24030_v60  ;;  %v11156_v54 = vmul.f32 %v20933_v14, %v24036_v41  ;;  %v24040_v41 = vld [vmem:[#allocation155_spill] sm:$0xff] }
 0x792   : > { %11033 = vbcast.lane.b32.xlu0 %v21143_v34, 256  ;;  %v21148_v35 = vpop.permute.xlu1 %10454  ;;  %v24027_v34 = vld [vmem:[#allocation54_spill] sm:$0xff]  ;;  %v21193_v60 = vpop.permute.xlu0 %10538 }
 0x793   : > { %24021 = vst [vmem:[#allocation95_spill] sm:$0xff] %v21148_v35  ;;  %v11153_v3 = vmul.f32 %v21042_v9, %v24027_v34  ;;  %v11148_v34 = vmul.f32 %v20874_v48, %v24032_v44  ;;  %v24033_v9 = vld [vmem:[#allocation76_spill] sm:$0xff]  ;;  %24037 = vst [vmem:[#allocation269_spill] sm:$0xff] %v21193_v60  ;;  %v11397_v48 = vsel %vm9090_vm7, %v11150_v32, 0.0  ;;  %v21209_v32 = vrot.slane %v20900_v1, %v20758_v40 }
 0x794   : > { %v11157_v47 = vmul.f32 %v21058_v22, %v24033_v9 }
 0x796   : > { %11044 = vbcast.lane.b32.xlu0 %v21152_v17, 256  ;;  %v21155_v52 = vpop.permute.xlu1 %10465  ;;  %v11152_v17 = vmul.f32 %v20908_v39, %v24029_v61  ;;  %v21185_v39 = vrot.slane %v20900_v1, %v20754_v45  ;;  %v24035_v61 = vld [vmem:[#allocation141_spill] sm:$0xff] }
 0x797   : > { %24023 = vst [vmem:[#allocation175_spill] sm:$0xff] %v21155_v52  ;;  %v24031_v52 = vld [vmem:[#allocation116_spill] sm:$0xff]  ;;  %v11154_v42 = vmul.f32 %v20917_v46, %v24035_v61  ;;  %v24039_v46 = vld [vmem:[#allocation131_spill] sm:$0xff] }
 0x798   : > { %v11155_v35 = vmul.f32 %v21049_v15, %v24031_v52  ;;  %24034 = vst [vmem:[#allocation251_spill] sm:$0xff] %v21185_v39  ;;  %v11398_v15 = vsel %vm9090_vm7, %v11151_v55, 0.0  ;;  %v11406_v22 = vsel %vm9090_vm7, %v11152_v17, 0.0  ;;  %v24038_v52 = vld [vmem:[#allocation93_spill] sm:$0xff]  ;;  %v11158_v14 = vmul.f32 %v20945_v0, %v24039_v46 }
 0x799   : > { %v11159_v44 = vmul.f32 %v21069_v23, %v24038_v52  ;;  %v11389_v55 = vsel %vm9090_vm7, %v11149_v57, 0.0  ;;  %v11399_v17 = vadd.f32 %v11398_v15, %v11397_v48  ;;  %v11425_v23 = vsel %vm9090_vm7, %v11157_v47, 0.0  ;;  %v24042_v15 = vld [vmem:[#allocation83_spill] sm:$0xff] }
 0x79a   : > { %11055 = vbcast.lane.b32.xlu0 %v21161_v7, 256  ;;  %v21172_v49 = vpop.permute.xlu1 %10476  ;;  %v11161_v52 = vmul.f32 %v21078_v36, %v24040_v41  ;;  %v11415_v0 = vsel %vm9090_vm7, %v11154_v42, 0.0  ;;  %v11424_v57 = vsel %vm9090_vm7, %v11156_v54, 0.0  ;;  %v11433_v36 = vsel %vm9090_vm7, %v11158_v14, 0.0  ;;  %v21226_v42 = vpop.permute.xlu0 %10549 }
 0x79b   : > { %10949 = vbcast.lane.b32.xlu1 %v20950_v33, 264  ;;  %v11407_v33 = vsel %vm9090_vm7, %v11153_v3, 0.0  ;;  %v11416_v3 = vsel %vm9090_vm7, %v11155_v35, 0.0  ;;  %v24041_v35 = vld [vmem:[#allocation85_spill] sm:$0xff]  ;;  %v11434_v60 = vsel %vm9090_vm7, %v11159_v44, 0.0  ;;  %v11400_v48 = vrot.slane %v11399_v17, 4 }
 0x79c   : > { %v11408_v61 = vadd.f32 %v11407_v33, %v11406_v22  ;;  %v11417_v7 = vadd.f32 %v11416_v3, %v11415_v0  ;;  %v11163_v33 = vmul.f32 %v21093_v24, %v24042_v15  ;;  %v11443_v22 = vsel %vm9090_vm7, %v11161_v52, 0.0 }
 0x79d   : > { %v11435_v44 = vadd.f32 %v11434_v60, %v11433_v36  ;;  %v21245_v60 = vrot.slane %v20900_v1, %v20767_v4 }
 0x79e   : > { %11066 = vbcast.lane.b32.xlu0 %v21185_v39, 256  ;;  %v21200_v9 = vpop.permute.xlu1 %10487  ;;  %v11388_v39 = vsel %vm9090_vm7, %v11148_v34, 0.0  ;;  %v11426_v34 = vadd.f32 %v11425_v23, %v11424_v57  ;;  %v11409_v24 = vrot.slane %v11408_v61, 4  ;;  %v11418_v3 = vrot.slane %v11417_v7, 4  ;;  %v21247_v15 = vpop.permute.xlu0 %10560 }
 0x79f   : > { %10960 = vbcast.lane.b32.xlu1 %v20956_v5, 264  ;;  %v11160_v5 = vmul.f32 %v20958_v31, %v24041_v35  ;;  %v11390_v46 = vadd.f32 %v11389_v55, %v11388_v39  ;;  %v21231_v31 = vrot.slane %v20900_v1, %v20764_v37  ;;  %v24043_v39 = vld [vmem:[#allocation80_spill] sm:$0xff]  ;;  %v11452_v23 = vsel %vm9090_vm7, %v11163_v33, 0.0 }
 0x7a0   : > { %v11162_v54 = vmul.f32 %v20972_v50, %v24043_v39  ;;  %v11427_v41 = vrot.slane %v11426_v34, 4  ;;  %v11401_v57 = vadd.f32 %v11400_v48, %v11399_v17  ;;  %v11410_v35 = vadd.f32 %v11409_v24, %v11408_v61 }
 0x7a1   : > { %v11442_v55 = vsel %vm9090_vm7, %v11160_v5, 0.0  ;;  %v11391_v14 = vrot.slane %v11390_v46, 4  ;;  %v11436_v52 = vrot.slane %v11435_v44, 4  ;;  %v11419_v36 = vadd.f32 %v11418_v3, %v11417_v7 }
 0x7a2   : > { %11077 = vbcast.lane.b32.xlu0 %v21209_v32, 256  ;;  %v21223_v47 = vpop.permute.xlu1 %10498  ;;  %v11444_v0 = vadd.f32 %v11443_v22, %v11442_v55  ;;  %v11451_v50 = vsel %vm9090_vm7, %v11162_v54, 0.0  ;;  %v11428_v17 = vadd.f32 %v11427_v41, %v11426_v34  ;;  %v11402_v48 = vrot.slane %v11401_v57, 2  ;;  %v24047_v41 = vld [vmem:[#allocation91_spill] sm:$0xff] }
 0x7a3   : > { %10971 = vbcast.lane.b32.xlu1 %v20966_v56, 264  ;;  %v11453_v5 = vadd.f32 %v11452_v23, %v11451_v50  ;;  %v11392_v33 = vadd.f32 %v11391_v14, %v11390_v46  ;;  %v11411_v24 = vrot.slane %v11410_v35, 2  ;;  %v21258_v22 = vrot.slane %v20885_v63, %v22957_v38 }
 0x7a4   : > { %v11445_v61 = vrot.slane %v11444_v0, 4  ;;  %v24045_v7 = vsub.f32 %v20706_v30, %v20709_v43  ;;  %v11437_v55 = vadd.f32 %v11436_v52, %v11435_v44  ;;  %v11420_v3 = vrot.slane %v11419_v36, 2  ;;  %v21271_v30 = vpop.permute.xlu0 %10571  ;;  %v24048_v43 = vld [vmem:[#allocation86_spill] sm:$0xff] }
 0x7a5   : > { %v11454_v14 = vrot.slane %v11453_v5, 4  ;;  %v11393_v34 = vrot.slane %v11392_v33, 2  ;;  %v11429_v23 = vrot.slane %v11428_v17, 2  ;;  %v11116_v50 = vmul.f32 %v21110_v62, %v24047_v41 }
 0x7a6   : > { %11088 = vbcast.lane.b32.xlu0 %v21231_v31, 256  ;;  %v21239_v56 = vpop.permute.xlu1 %10685  ;;  %v10089_v46 = vmul.f32 1.442695, %v24045_v7  ;;  %v11446_v38 = vadd.f32 %v11445_v61, %v11444_v0  ;;  %v11412_v44 = vadd.f32 %v11411_v24, %v11410_v35  ;;  %v21278_v52 = vrot.slane %v20885_v63, %v20731_v27 }
 0x7a7   : > { %10982 = vbcast.lane.b32.xlu1 %v20977_v28, 264  ;;  %v24044_v28 = vsub.f32 %v20696_v51, %v20699_v6  ;;  %v24046_v51 = vsub.f32 %v20716_v13, %v20719_v25  ;;  %v11117_v13 = vmul.f32 %v20987_v2, %v24048_v43  ;;  %v11403_v25 = vadd.f32 %v11402_v48, %v11401_v57  ;;  %v24051_v48 = vld [vmem:[#allocation101_spill] sm:$0xff] }
 0x7a8   : > { %v11455_v61 = vadd.f32 %v11454_v14, %v11453_v5  ;;  %v11394_v62 = vadd.f32 %v11393_v34, %v11392_v33  ;;  %v11421_v7 = vadd.f32 %v11420_v3, %v11419_v36  ;;  %v21287_v2 = vrot.slane %v20900_v1, %v20778_v19  ;;  %v24052_v14 = vld [vmem:[#allocation90_spill] sm:$0xff] }
 0x7a9   : > { %v10093_v54 = vmul.f32 1.442695, %v24044_v28  ;;  %v10095_v6 = vmul.f32 1.442695, %v24046_v51  ;;  %v24049_v28 = vld [vmem:[#allocation99_spill] sm:$0xff]  ;;  %v11430_v57 = vadd.f32 %v11429_v23, %v11428_v17  ;;  %v11447_v27 = vrot.slane %v11446_v38, 2 }
 0x7aa   : > { %11099 = vbcast.lane.b32.xlu0 %v21245_v60, 256  ;;  %v21250_v39 = vpop.permute.xlu1 %10696  ;;  %v11120_v0 = vmul.f32 %v20997_v18, %v24049_v28  ;;  %24050 = vst [vmem:[#allocation268_spill] sm:$0xff] %v21287_v2  ;;  %v11244_v35 = vsel %vm9090_vm7, %v11116_v50, 0.0  ;;  %v11119_v18 = vmul.f32 %v21130_v59, %v24051_v48  ;;  %v11245_v5 = vsel %vm9090_vm7, %v11117_v13, 0.0  ;;  %v24053_v59 = vld [vmem:[#allocation98_spill] sm:$0xff] }
 0x7ab   : > { %10993 = vbcast.lane.b32.xlu1 %v20985_v11, 264  ;;  %14214 = vpow2.f32 %v10093_v54  ;;  %v11438_v54 = vrot.slane %v11437_v55, 2  ;;  %v11404_v33 = vrot.slane %v11403_v25, 1  ;;  %v11413_v36 = vrot.slane %v11412_v44, 1 }
 0x7ac   : > { %14216 = vpow2.f32 %v10089_v46  ;;  %v21296_v24 = vrot.slane %v20885_v63, %v20743_v53  ;;  %v11262_v1 = vsel %vm9090_vm7, %v11120_v0, 0.0  ;;  %v11456_v17 = vrot.slane %v11455_v61, 2  ;;  %v24054_v53 = vld [vmem:[#allocation110_spill] sm:$0xff] }
 0x7ad   : > { %14218 = vpow2.f32 %v10095_v6  ;;  %v11439_v46 = vadd.f32 %v11438_v54, %v11437_v55  ;;  %v11118_v51 = vmul.f32 %v21121_v8, %v24052_v14  ;;  %v21301_v6 = vpop.permute.xlu0 %10582  ;;  %v11395_v34 = vrot.slane %v11394_v62, 1  ;;  %v24055_v8 = vld [vmem:[#allocation108_spill] sm:$0xff] }
 0x7ae   : > { %10857 = vbcast.lane.b32.xlu0 %v21258_v22, 256  ;;  %v21267_v11 = vpop.permute.xlu1 %10707  ;;  %v11422_v3 = vrot.slane %v11421_v7, 1  ;;  %v11246_v23 = vadd.f32 %v11245_v5, %v11244_v35  ;;  %v11124_v50 = vmul.f32 %v21014_v58, %v24054_v53  ;;  %v11431_v55 = vrot.slane %v11430_v57, 1 }
 0x7af   : > { %11004 = vbcast.lane.b32.xlu1 %v20994_v26, 264  ;;  %v11448_v43 = vadd.f32 %v11447_v27, %v11446_v38  ;;  %v11254_v13 = vsel %vm9090_vm7, %v11119_v18, 0.0  ;;  %v11126_v28 = vmul.f32 %v21021_v29, %v24055_v8  ;;  %v11414_v0 = vadd.f32 %v11413_v36, %v11412_v44  ;;  %v24057_v38 = vld [vmem:[#allocation42_spill] sm:$0xff]  ;;  %v24062_v8 = vld [vmem:[#allocation175_spill] sm:$0xff] }
 0x7b0   : > { %v21316_v54 = vrot.slane %v20885_v63, %v20754_v45  ;;  %v11440_v48 = vrot.slane %v11439_v46, 1  ;;  %v11457_v5 = vadd.f32 %v11456_v17, %v11455_v61  ;;  %v11253_v58 = vsel %vm9090_vm7, %v11118_v51, 0.0  ;;  %v24058_v17 = vld [vmem:[#allocation159_spill] sm:$0xff] }
 0x7b1   : > { %v11121_v27 = vmul.f32 %v21139_v16, %v24057_v38  ;;  %v11396_v18 = vadd.f32 %v11395_v34, %v11394_v62  ;;  %v11247_v14 = vrot.slane %v11246_v23, 4  ;;  %v11280_v44 = vsel %vm9090_vm7, %v11124_v50, 0.0  ;;  %v21330_v36 = vpop.permute.xlu0 %10945  ;;  %v24059_v51 = vld [vmem:[#allocation95_spill] sm:$0xff]  ;;  %v24064_v38 = vld [vmem:[#allocation114_spill] sm:$0xff] }
 0x7b2   : > { %10868 = vbcast.lane.b32.xlu0 %v21278_v52, 256  ;;  %v21283_v26 = vpop.permute.xlu1 %10718  ;;  %24056 = vst [vmem:[#allocation233_spill] sm:$0xff] %v21316_v54  ;;  %v11432_v61 = vadd.f32 %v11431_v55, %v11430_v57  ;;  %v11289_v62 = vsel %vm9090_vm7, %v11126_v28, 0.0  ;;  %v11123_v34 = vmul.f32 %v24059_v51, %v24058_v17  ;;  %v11458_v53 = vrot.slane %v11457_v5, 1  ;;  %v24069_v51 = vld [vmem:[#allocation41_spill] sm:$0xff] }
 0x7b3   : > { %11015 = vbcast.lane.b32.xlu1 %v21002_v12, 264  ;;  %v11122_v12 = vmul.f32 %v21010_v21, %v24053_v59  ;;  %v11405_v21 = vadd.f32 %v11404_v33, %v11403_v25  ;;  %v11255_v59 = vadd.f32 %v11254_v13, %v11253_v58  ;;  %v11449_v33 = vrot.slane %v11448_v43, 1  ;;  %v24061_v13 = vld [vmem:[#allocation124_spill] sm:$0xff] }
 0x7b4   : > { %v11263_v57 = vsel %vm9090_vm7, %v11121_v27, 0.0  ;;  %v11125_v28 = vmul.f32 %v24062_v8, %v24061_v13  ;;  %v24071_v13 = vld [vmem:[#allocation218_spill] sm:$0xff] }
 0x7b5   : > { %v21318_v35 = vpop.eup %14214  ;;  %v11271_v45 = vsel %vm9090_vm7, %v11122_v12, 0.0  ;;  %v21341_v12 = vrot.slane %v20885_v63, %v20758_v40  ;;  %v11256_v55 = vrot.slane %v11255_v59, 4  ;;  %v24065_v40 = vld [vmem:[#allocation79_spill] sm:$0xff]  ;;  %v11264_v27 = vadd.f32 %v11263_v57, %v11262_v1 }
 0x7b6   : > { %10879 = vbcast.lane.b32.xlu0 %v21296_v24, 256  ;;  %v21306_v41 = vpop.permute.xlu1 %10729  ;;  %v21326_v25 = vpop.eup %14216 }
 0x7b7   : > { %11026 = vbcast.lane.b32.xlu1 %v21008_v20, 264  ;;  %v11423_v20 = vadd.f32 %v11422_v3, %v11421_v7  ;;  %v21333_v16 = vpop.eup %14218  ;;  %v11962_v7 = vsel %vm9371_vm8, %v11405_v21, %v11396_v18  ;;  %24060 = vst [vmem:[#allocation242_spill] sm:$0xff] %v21341_v12  ;;  %v11441_v3 = vadd.f32 %v11440_v48, %v11439_v46  ;;  %v24066_v46 = vld [vmem:[#allocation259_spill] sm:$0xff] }
 0x7b8   : > { %v11963_v50 = vsel %vm9373_vm9, %v11414_v0, %v11962_v7  ;;  %v11128_v18 = vmul.f32 %v24065_v40, %v24064_v38  ;;  %v21356_v48 = vrot.slane %v20885_v63, %v20764_v37  ;;  %v24068_v7 = vld [vmem:[#allocation44_spill] sm:$0xff]  ;;  %v21366_v38 = vpop.permute.xlu0 %10956  ;;  %v21370_v37 = vrot.slane %v20885_v63, %v20767_v4 }
 0x7b9   : > { %v11964_v58 = vsel %vm9375_vm10, %v11423_v20, %v11963_v50  ;;  %v11127_v17 = vmul.f32 %v21172_v49, %v24068_v7  ;;  %v11129_v20 = vmul.f32 %v21200_v9, %v24069_v51  ;;  %v24070_v50 = vld [vmem:[#allocation111_spill] sm:$0xff]  ;;  %v21383_v4 = vrot.slane %v20885_v63, %v20778_v19 }
 0x7ba   : > { %10890 = vbcast.lane.b32.xlu0 %v21316_v54, 256  ;;  %v21324_v29 = vpop.permute.xlu1 %10740  ;;  %24067 = vst [vmem:[#allocation180_spill] sm:$0xff] %v21356_v48  ;;  %v11965_v0 = vsel %vm9377_vm11, %v11432_v61, %v11964_v58  ;;  %v11130_v8 = vmul.f32 %v24071_v13, %v24070_v50  ;;  %24072 = vst [vmem:[#allocation55_spill] sm:$0xff] %v21370_v37  ;;  %v24073_v49 = vld [vmem:[#allocation63_spill] sm:$0xff]  ;;  %v11298_v58 = vsel %vm9090_vm7, %v11128_v18, 0.0  ;;  %v24079_v18 = vld [vmem:[#allocation117_spill] sm:$0xff] }
 0x7bb   : > { %10773 = vbcast.lane.b32.xlu1 %v21073_v10, 264  ;;  %v11248_v10 = vadd.f32 %v11247_v14, %v11246_v23  ;;  %v11450_v23 = vadd.f32 %v11449_v33, %v11448_v43  ;;  %v11272_v14 = vsel %vm9090_vm7, %v11123_v34, 0.0  ;;  %v11459_v43 = vadd.f32 %v11458_v53, %v11457_v5  ;;  %24076 = vst [vmem:[#allocation267_spill] sm:$0xff] %v21383_v4  ;;  %v24081_v50 = vld [vmem:[#allocation65_spill] sm:$0xff] }
 0x7bc   : > { %v11966_v1 = vsel %vm9379_vm12, %v11441_v3, %v11965_v0  ;;  %v11257_v33 = vadd.f32 %v11256_v55, %v11255_v59  ;;  %v11281_v34 = vsel %vm9090_vm7, %v11125_v28, 0.0  ;;  %v11131_v57 = vmul.f32 %v21223_v47, %v24073_v49  ;;  %v24077_v59 = vld [vmem:[#allocation134_spill] sm:$0xff] }
 0x7bd   : > { %v11249_v61 = vrot.slane %v11248_v10, 2  ;;  %v11273_v40 = vadd.f32 %v11272_v14, %v11271_v45  ;;  %v11967_v5 = vsel %vm9381_vm13, %v11450_v23, %v11966_v1  ;;  %v24078_v3 = vld [vmem:[#allocation158_spill] sm:$0xff]  ;;  %v11265_v55 = vrot.slane %v11264_v27, 4  ;;  %v24080_v45 = vld [vmem:[#allocation96_spill] sm:$0xff] }
 0x7be   : > { %10901 = vbcast.lane.b32.xlu0 %v21341_v12, 256  ;;  %v21348_v21 = vpop.permute.xlu1 %10751  ;;  %v11132_v53 = vmul.f32 %v24078_v3, %v24077_v59  ;;  %v11290_v47 = vsel %vm9090_vm7, %v11127_v17, 0.0  ;;  %v11299_v28 = vsel %vm9090_vm7, %v11129_v20, 0.0  ;;  %v11307_v0 = vsel %vm9090_vm7, %v11130_v8, 0.0  ;;  %v24082_v23 = vld [vmem:[#allocation244_spill] sm:$0xff]  ;;  %v21400_v59 = vpop.permute.xlu0 %10967  ;;  %v24083_v3 = vld [vmem:[#allocation43_spill] sm:$0xff] }
 0x7bf   : > { %24063 = vst [vmem:[#allocation291_spill] sm:$0xff] %v21348_v21  ;;  %10784 = vbcast.lane.b32.xlu1 %v24066_v46, 264  ;;  %v24075_v46 = vld [vmem:[#allocation254_spill] sm:$0xff]  ;;  %v11134_v14 = vmul.f32 %v24080_v45, %v24079_v18  ;;  %v11282_v7 = vadd.f32 %v11281_v34, %v11280_v44  ;;  %v21394_v51 = vsel %vm9383_vm14, %v11459_v43, %v11967_v5  ;;  %v11258_v1 = vrot.slane %v11257_v33, 2  ;;  %v24084_v34 = vld [vmem:[#allocation60_spill] sm:$0xff]  ;;  %v24085_v43 = vld [vmem:[#allocation143_spill] sm:$0xff] }
 0x7c0   : > { %v11250_v19 = vadd.f32 %v11249_v61, %v11248_v10  ;;  %v11136_v13 = vmul.f32 %v24082_v23, %v24081_v50  ;;  %v11308_v49 = vsel %vm9090_vm7, %v11131_v57, 0.0  ;;  %v11274_v20 = vrot.slane %v11273_v40, 4  ;;  %v24086_v61 = vld [vmem:[#allocation269_spill] sm:$0xff]  ;;  %v24087_v18 = vld [vmem:[#allocation166_spill] sm:$0xff] }
 0x7c1   : > { %v11300_v8 = vadd.f32 %v11299_v28, %v11298_v58  ;;  %v11316_v10 = vsel %vm9090_vm7, %v11132_v53, 0.0  ;;  %v11138_v5 = vmul.f32 %v24086_v61, %v24085_v43  ;;  %v11140_v57 = vmul.f32 %v21226_v42, %v24087_v18  ;;  %v24092_v12 = vld [vmem:[#allocation162_spill] sm:$0xff] }
 0x7c2   : > { %10912 = vbcast.lane.b32.xlu0 %v21356_v48, 256  ;;  %v21377_v9 = vpop.permute.xlu1 %10762  ;;  %v11266_v45 = vadd.f32 %v11265_v55, %v11264_v27  ;;  %v11325_v50 = vsel %vm9090_vm7, %v11134_v14, 0.0  ;;  %v11283_v23 = vrot.slane %v11282_v7, 4  ;;  %v11334_v28 = vsel %vm9090_vm7, %v11136_v13, 0.0  ;;  %v24089_v27 = vld [vmem:[#allocation103_spill] sm:$0xff]  ;;  %v24090_v13 = vld [vmem:[#allocation69_spill] sm:$0xff] }
 0x7c3   : > { %24074 = vst [vmem:[#allocation227_spill] sm:$0xff] %v21377_v9  ;;  %10795 = vbcast.lane.b32.xlu1 %v24075_v46, 264  ;;  %v11291_v46 = vadd.f32 %v11290_v47, %v11289_v62  ;;  %v11309_v62 = vadd.f32 %v11308_v49, %v11307_v0  ;;  %v11251_v47 = vrot.slane %v11250_v19, 1  ;;  %v11301_v61 = vrot.slane %v11300_v8, 4 }
 0x7c4   : > { %v11343_v55 = vsel %vm9090_vm7, %v11138_v5, 0.0  ;;  %v21417_v0 = vsel %vm9090_vm7, %v11140_v57, 0.0  ;;  %v11267_v14 = vrot.slane %v11266_v45, 2 }
 0x7c5   : > { %v11292_v43 = vrot.slane %v11291_v46, 4 }
 0x7c6   : > { %10923 = vbcast.lane.b32.xlu0 %v21370_v37, 256  ;;  %v10510_v17 = vpop.permute.xlu1 %10509  ;;  %v24088_v37 = vld [vmem:[#allocation157_spill] sm:$0xff] }
 0x7c7   : > { %v11133_v44 = vmul.f32 %v10510_v17, %v24083_v3  ;;  %10806 = vbcast.lane.b32.xlu1 %v24084_v34, 264  ;;  %v11259_v17 = vadd.f32 %v11258_v1, %v11257_v33  ;;  %v11275_v34 = vadd.f32 %v11274_v20, %v11273_v40  ;;  %v11142_v33 = vmul.f32 %v21247_v15, %v24090_v13 }
 0x7c8   : > { %v11284_v1 = vadd.f32 %v11283_v23, %v11282_v7  ;;  %v11252_v20 = vadd.f32 %v11251_v47, %v11250_v19  ;;  %v11268_v15 = vadd.f32 %v11267_v14, %v11266_v45  ;;  %v24093_v7 = vld [vmem:[#allocation122_spill] sm:$0xff] }
 0x7c9   : > { %v11317_v58 = vsel %vm9090_vm7, %v11133_v44, 0.0  ;;  %v11310_v44 = vrot.slane %v11309_v62, 4  ;;  %v11276_v57 = vrot.slane %v11275_v34, 2  ;;  %v11144_v23 = vmul.f32 %v21271_v30, %v24093_v7 }
 0x7ca   : > { %v11318_v3 = vadd.f32 %v11317_v58, %v11316_v10  ;;  %10934 = vbcast.lane.b32.xlu0 %v21383_v4, 256  ;;  %v10521_v53 = vpop.permute.xlu1 %10520  ;;  %v21421_v10 = vpop.permute.xlu0 %10978  ;;  %v24091_v4 = vld [vmem:[#allocation92_spill] sm:$0xff]  ;;  %v21430_v19 = vsel %vm9090_vm7, %v11142_v33, 0.0  ;;  %v11269_v7 = vrot.slane %v11268_v15, 1 }
 0x7cb   : > { %v11135_v42 = vmul.f32 %v10521_v53, %v24088_v37  ;;  %10817 = vbcast.lane.b32.xlu1 %v24089_v27, 264  ;;  %v11260_v37 = vrot.slane %v11259_v17, 1  ;;  %v11293_v53 = vadd.f32 %v11292_v43, %v11291_v46  ;;  %v11302_v27 = vadd.f32 %v11301_v61, %v11300_v8  ;;  %v24096_v33 = vld [vmem:[#allocation256_spill] sm:$0xff] }
 0x7cc   : > { %v11319_v49 = vrot.slane %v11318_v3, 4  ;;  %v11311_v47 = vadd.f32 %v11310_v44, %v11309_v62  ;;  %v11277_v45 = vadd.f32 %v11276_v57, %v11275_v34  ;;  %v21439_v62 = vsel %vm9090_vm7, %v11144_v23, 0.0  ;;  %v24098_v23 = vld [vmem:[#allocation112_spill] sm:$0xff] }
 0x7cd   : > { %v11326_v40 = vsel %vm9090_vm7, %v11135_v42, 0.0  ;;  %v11294_v61 = vrot.slane %v11293_v53, 2  ;;  %v11303_v14 = vrot.slane %v11302_v27, 2 }
 0x7ce   : > { %v11320_v18 = vadd.f32 %v11319_v49, %v11318_v3  ;;  %v11327_v58 = vadd.f32 %v11326_v40, %v11325_v50  ;;  %11110 = vbcast.lane.b32.xlu0 %v21287_v2, 256  ;;  %v10532_v5 = vpop.permute.xlu1 %10531  ;;  %v11285_v50 = vrot.slane %v11284_v1, 2  ;;  %v11261_v49 = vadd.f32 %v11260_v37, %v11259_v17  ;;  %v21434_v30 = vpop.permute.xlu0 %10989  ;;  %v24095_v40 = vld [vmem:[#allocation88_spill] sm:$0xff]  ;;  %v24099_v2 = vld [vmem:[#allocation297_spill] sm:$0xff] }
 0x7cf   : > { %v11137_v48 = vmul.f32 %v10532_v5, %v24091_v4  ;;  %10828 = vbcast.lane.b32.xlu1 %v24092_v12, 264  ;;  %v24094_v4 = vld [vmem:[#allocation216_spill] sm:$0xff] }
 0x7d0   : > { %v11321_v13 = vrot.slane %v11320_v18, 2  ;;  %v11328_v42 = vrot.slane %v11327_v58, 4  ;;  %v11286_v44 = vadd.f32 %v11285_v50, %v11284_v1  ;;  %v11948_v34 = vsel %vm9371_vm8, %v11261_v49, %v11252_v20 }
 0x7d1   : > { %v11335_v3 = vsel %vm9090_vm7, %v11137_v48, 0.0  ;;  %v11270_v1 = vadd.f32 %v11269_v7, %v11268_v15  ;;  %v24101_v7 = vld [vmem:[#allocation109_spill] sm:$0xff] }
 0x7d2   : > { %v11322_v46 = vadd.f32 %v11321_v13, %v11320_v18  ;;  %v11329_v8 = vadd.f32 %v11328_v42, %v11327_v58  ;;  %v11336_v43 = vadd.f32 %v11335_v3, %v11334_v28  ;;  %11830 = vperm.xlu0 %14045, %v24094_v4   ;;  %v10543_v12 = vpop.permute.xlu1 %10542  ;;  %v11312_v28 = vrot.slane %v11311_v47, 2  ;;  %v24097_v42 = vld [vmem:[#allocation34_spill] sm:$0xff]  ;;  %v21446_v20 = vpop.permute.xlu0 %11000 }
 0x7d3   : > { %v11139_v5 = vmul.f32 %v10543_v12, %v24095_v40  ;;  %10839 = vbcast.lane.b32.xlu1 %v24096_v33, 264  ;;  %v11278_v4 = vrot.slane %v11277_v45, 1  ;;  %v11295_v12 = vadd.f32 %v11294_v61, %v11293_v53  ;;  %v11304_v40 = vadd.f32 %v11303_v14, %v11302_v27 }
 0x7d4   : > { %v11330_v48 = vrot.slane %v11329_v8, 2  ;;  %v11337_v17 = vrot.slane %v11336_v43, 4  ;;  %v11323_v37 = vrot.slane %v11322_v46, 1  ;;  %v11313_v21 = vadd.f32 %v11312_v28, %v11311_v47 }
 0x7d5   : > { %v11344_v18 = vsel %vm9090_vm7, %v11139_v5, 0.0  ;;  %v11287_v5 = vrot.slane %v11286_v44, 1  ;;  %v11279_v15 = vadd.f32 %v11278_v4, %v11277_v45  ;;  %v11296_v61 = vrot.slane %v11295_v12, 1 }
 0x7d6   : > { %v11331_v58 = vadd.f32 %v11330_v48, %v11329_v8  ;;  %v11338_v57 = vadd.f32 %v11337_v17, %v11336_v43  ;;  %v11345_v13 = vadd.f32 %v11344_v18, %v11343_v55  ;;  %11840 = vperm.xlu0 %14045, %v24097_v42   ;;  %v10554_v3 = vpop.permute.xlu1 %10553  ;;  %v11324_v49 = vadd.f32 %v11323_v37, %v11322_v46 }
 0x7d7   : > { %v11141_v33 = vmul.f32 %v10554_v3, %v24098_v23  ;;  %10850 = vbcast.lane.b32.xlu1 %v24099_v2, 264  ;;  %v11305_v14 = vrot.slane %v11304_v40, 1  ;;  %v11314_v18 = vrot.slane %v11313_v21, 1  ;;  %v11297_v23 = vadd.f32 %v11296_v61, %v11295_v12 }
 0x7d8   : > { %v11332_v50 = vrot.slane %v11331_v58, 1  ;;  %v11339_v54 = vrot.slane %v11338_v57, 2  ;;  %v11346_v9 = vrot.slane %v11345_v13, 4 }
 0x7d9   : > { %v11353_v55 = vsel %vm9090_vm7, %v11141_v33, 0.0  ;;  %v21463_v33 = vpop.permute.xlu0 %11011  ;;  %v11315_v12 = vadd.f32 %v11314_v18, %v11313_v21 }
 0x7da   : > { %v11333_v8 = vadd.f32 %v11332_v50, %v11331_v58  ;;  %v11340_v43 = vadd.f32 %v11339_v54, %v11338_v57  ;;  %v11347_v48 = vadd.f32 %v11346_v9, %v11345_v13  ;;  %v11354_v53 = vadd.f32 %v11353_v55, %v21417_v0  ;;  %11850 = vperm.xlu0 %14045, %v21326_v25   ;;  %v21451_v27 = vpop.f32.mrb[132].mxu1  ;;  %v10565_v2 = vpop.permute.xlu1 %10564  ;;  %v24103_v50 = vld [vmem:[#allocation123_spill] sm:$0xff] }
 0x7db   : > { %24100 = vst [vmem:[#allocation274_spill] sm:$0xff] %v21451_v27  ;;  %v11143_v47 = vmul.f32 %v10565_v2, %v24101_v7  ;;  %v21454_v17 = vpop.f32.mrb[133].mxu1  ;;  %v11288_v9 = vadd.f32 %v11287_v5, %v11286_v44  ;;  %v11949_v58 = vsel %vm9373_vm9, %v11270_v1, %v11948_v34 }
 0x7dc   : > { %v11955_v46 = vsel %vm9371_vm8, %v11333_v8, %v11324_v49  ;;  %v11341_v28 = vrot.slane %v11340_v43, 1  ;;  %v11348_v37 = vrot.slane %v11347_v48, 2  ;;  %v11355_v54 = vrot.slane %v11354_v53, 4 }
 0x7dd   : > { %v11362_v0 = vsel %vm9090_vm7, %v11143_v47, 0.0  ;;  %v11306_v49 = vadd.f32 %v11305_v14, %v11304_v40  ;;  %v11950_v34 = vsel %vm9375_vm10, %v11279_v15, %v11949_v58  ;;  %v24105_v14 = vld [vmem:[#allocation120_spill] sm:$0xff]  ;;  %v21481_v18 = vpop.permute.xlu0 %11022 }
 0x7de   : > { %v11342_v57 = vadd.f32 %v11341_v28, %v11340_v43  ;;  %v11349_v13 = vadd.f32 %v11348_v37, %v11347_v48  ;;  %v11356_v45 = vadd.f32 %v11355_v54, %v11354_v53  ;;  %v11363_v42 = vadd.f32 %v11362_v0, %v21430_v19  ;;  %11860 = vperm.xlu0 %14045, %v21318_v35   ;;  %v21461_v3 = vpop.f32.mrb[134].mxu1  ;;  %v10576_v4 = vpop.permute.xlu1 %10575  ;;  %v24104_v43 = vld [vmem:[#allocation115_spill] sm:$0xff] }
 0x7df   : > { %24102 = vst [vmem:[#allocation273_spill] sm:$0xff] %v21461_v3  ;;  %v11145_v44 = vmul.f32 %v10576_v4, %v24103_v50  ;;  %v21466_v5 = vpop.f32.mrb[135].mxu1  ;;  %v11146_v48 = vmul.f32 %v21301_v6, %v24104_v43  ;;  %v11951_v2 = vsel %vm9377_vm11, %v11288_v9, %v11950_v34  ;;  %v10168_v9 = vld [vmem:[#allocation6 + $0x38] sm:$0xff] }
 0x7e0   : > { %v11956_v1 = vsel %vm9373_vm9, %v11342_v57, %v11955_v46  ;;  %v11350_v55 = vrot.slane %v11349_v13, 1  ;;  %v11357_v8 = vrot.slane %v11356_v45, 2  ;;  %v11364_v19 = vrot.slane %v11363_v42, 4 }
 0x7e1   : > { %v11371_v53 = vsel %vm9090_vm7, %v11145_v44, 0.0  ;;  %v11952_v28 = vsel %vm9379_vm12, %v11297_v23, %v11951_v2  ;;  %v11379_v0 = vsel %vm9090_vm7, %v11146_v48, 0.0  ;;  %v10176_v4 = vmul.f32 %v21333_v16, %v10168_v9 }
 0x7e2   : > { %v11351_v61 = vadd.f32 %v11350_v55, %v11349_v13  ;;  %v11358_v7 = vadd.f32 %v11357_v8, %v11356_v45  ;;  %v11365_v47 = vadd.f32 %v11364_v19, %v11363_v42  ;;  %v11372_v40 = vadd.f32 %v11371_v53, %v21439_v62  ;;  %12008 = vrot.lane.b32.xlu0 %v21394_v51, %s14398_s16  ;;  %v10587_v15 = vpop.permute.xlu1 %10586 }
 0x7e3   : > { %v11147_v46 = vmul.f32 %v10587_v15, %v24105_v14  ;;  %v11953_v21 = vsel %vm9381_vm13, %v11306_v49, %v11952_v28 }
 0x7e4   : > { %v11359_v6 = vrot.slane %v11358_v7, 1  ;;  %v11366_v37 = vrot.slane %v11365_v47, 2  ;;  %v11373_v54 = vrot.slane %v11372_v40, 4  ;;  %v11954_v58 = vsel %vm9383_vm14, %v11315_v12, %v11953_v21 }
 0x7e5   : > { %v11380_v62 = vsel %vm9090_vm7, %v11147_v46, 0.0  ;;  %v11957_v51 = vsel %vm9375_vm10, %v11351_v61, %v11956_v1 }
 0x7e6   : > { %v11360_v57 = vadd.f32 %v11359_v6, %v11358_v7  ;;  %v11367_v13 = vadd.f32 %v11366_v37, %v11365_v47  ;;  %v11374_v45 = vadd.f32 %v11373_v54, %v11372_v40  ;;  %v11381_v42 = vadd.f32 %v11380_v62, %v11379_v0  ;;  %12004 = vrot.lane.b32.xlu0 %v11954_v58, %s14398_s16  ;;  %v24106_v0 = vld [vmem:[#allocation169_spill] sm:$0xff]  ;;  %v24107_v58 = vld [vmem:[#allocation68_spill] sm:$0xff] }
 0x7e7   : > { %v10192_v6 = vsel %vm10040_vm15, %v20885_v63, 0.0  ;;  %v11165_v62 = vmul.f32 %v21239_v56, %v24106_v0 }
 0x7e8   : > { %v11368_v23 = vrot.slane %v11367_v13, 1  ;;  %v11375_v50 = vrot.slane %v11374_v45, 2  ;;  %v11382_v44 = vrot.slane %v11381_v42, 4  ;;  %v11958_v49 = vsel %vm9377_vm11, %v11360_v57, %v11957_v51  ;;  %v24108_v51 = vld [vmem:[#allocation67_spill] sm:$0xff]  ;;  %v24109_v57 = vld [vmem:[#allocation66_spill] sm:$0xff] }
 0x7e9   : > { %v10200_v34 = vpop.xlane.xlu0 %10199 }
 0x7ea   : > { %v11369_v55 = vadd.f32 %v11368_v23, %v11367_v13  ;;  %v11376_v8 = vadd.f32 %v11375_v50, %v11374_v45  ;;  %v11383_v19 = vadd.f32 %v11382_v44, %v11381_v42  ;;  %v10208_v43 = vadd.f32 %v10200_v34, %v10176_v4  ;;  %v24110_v45 = vld [vmem:[#allocation165_spill] sm:$0xff]  ;;  %v24111_v4 = vld [vmem:[#allocation31_spill] sm:$0xff]  ;;  %v24112_v23 = vld [vmem:[#allocation282_spill] sm:$0xff] }
 0x7eb   : > { %v11164_v13 = vmul.f32 %v24109_v57, %v24108_v51  ;;  %v11167_v63 = vmul.f32 %v21250_v39, %v24110_v45  ;;  %v11166_v50 = vmul.f32 %v24112_v23, %v24111_v4  ;;  %v11461_v44 = vsel %vm9090_vm7, %v11165_v62, 0.0  ;;  %v24113_v34 = vld [vmem:[#allocation194_spill] sm:$0xff]  ;;  %v24118_v45 = vld [vmem:[#allocation251_spill] sm:$0xff] }
 0x7ec   : > { %v11377_v48 = vrot.slane %v11376_v8, 1  ;;  %v11384_v1 = vrot.slane %v11383_v19, 2  ;;  %10217 = vst.msk [vmem:[#allocation6 + $0x38] sm:$0xff] %vm10209_vm0, %v10208_v43  ;;  %v11959_v53 = vsel %vm9379_vm12, %v11369_v55, %v11958_v49  ;;  %v10167_v49 = vld [vmem:[#allocation6 + $0x30] sm:$0xff]  ;;  %v24120_v4 = vld [vmem:[#allocation238_spill] sm:$0xff] }
 0x7ed   : > { %v21491_v12 = vpop.permute.xlu0 %10769  ;;  %v11460_v56 = vsel %vm9090_vm7, %v11164_v13, 0.0  ;;  %v11470_v55 = vsel %vm9090_vm7, %v11167_v63, 0.0  ;;  %v10175_v43 = vmul.f32 %v21318_v35, %v10167_v49  ;;  %v11469_v39 = vsel %vm9090_vm7, %v11166_v50, 0.0  ;;  %v24116_v35 = vld [vmem:[#allocation138_spill] sm:$0xff]  ;;  %v24122_v49 = vld [vmem:[#allocation205_spill] sm:$0xff] }
 0x7ee   : > { %v11378_v2 = vadd.f32 %v11377_v48, %v11376_v8  ;;  %v11385_v61 = vadd.f32 %v11384_v1, %v11383_v19  ;;  %v11462_v19 = vadd.f32 %v11461_v44, %v11460_v56  ;;  %v10165_v1 = vld [vmem:[#allocation6 + $0x20] sm:$0xff]  ;;  %v24119_v63 = vld [vmem:[#allocation210_spill] sm:$0xff] }
 0x7ef   : > { %v10173_v0 = vmul.f32 %v21326_v25, %v10165_v1  ;;  %v24121_v23 = vsub.f32 %v24119_v63, %v24120_v4  ;;  %v24123_v56 = vld [vmem:[#allocation118_spill] sm:$0xff]  ;;  %v24132_v63 = vld [vmem:[#allocation212_spill] sm:$0xff] }
 0x7f0   : > { %v11386_v7 = vrot.slane %v11385_v61, 1  ;;  %v11960_v47 = vsel %vm9381_vm13, %v11378_v2, %v11959_v53  ;;  %v11471_v53 = vadd.f32 %v11470_v55, %v11469_v39  ;;  %v24124_v55 = vld [vmem:[#allocation187_spill] sm:$0xff]  ;;  %v24125_v1 = vld [vmem:[#allocation142_spill] sm:$0xff]  ;;  %v11214_v4 = vmul.f32 %v21366_v38, %v24132_v63 }
 0x7f1   : > { %v21494_v40 = vpop.permute.xlu0 %10780  ;;  %v10091_v50 = vmul.f32 1.442695, %v24121_v23  ;;  %v24133_v23 = vld [vmem:[#allocation224_spill] sm:$0xff] }
 0x7f2   : > { %v11387_v15 = vadd.f32 %v11386_v7, %v11385_v61  ;;  %v24114_v61 = vld [vmem:[#allocation257_spill] sm:$0xff]  ;;  %v11472_v57 = vrot.slane %v11471_v53, 4 }
 0x7f3   : > { %14220 = vpow2.f32 %v10091_v50  ;;  %v24134_v50 = vld [vmem:[#allocation156_spill] sm:$0xff] }
 0x7f4   : > { %v21497_v14 = vsel %vm9383_vm14, %v11387_v15, %v11960_v47  ;;  %v11463_v47 = vrot.slane %v11462_v19, 4  ;;  %v24115_v15 = vld [vmem:[#allocation144_spill] sm:$0xff] }
 0x7f5   : > { %v21499_v46 = vpop.permute.xlu0 %10791 }
 0x7f9   : > { %v21501_v28 = vpop.permute.xlu0 %10802 }
 0x7fb   : > { %10193 = vadd.xlane.f32.xlu1 %v10192_v6  ;;  %v11169_v6 = vmul.f32 %v21267_v11, %v24115_v15  ;;  %v11212_v11 = vmul.f32 %v21330_v36, %v24122_v49  ;;  %v11473_v15 = vadd.f32 %v11472_v57, %v11471_v53  ;;  %v24128_v36 = vld [vmem:[#allocation135_spill] sm:$0xff]  ;;  %v11178_v49 = vmul.f32 %v24134_v50, %v24133_v23 }
 0x7fd   : > { %v21505_v37 = vpop.permute.xlu0 %10813  ;;  %v11479_v25 = vsel %vm9090_vm7, %v11169_v6, 0.0  ;;  %v24130_v6 = vld [vmem:[#allocation136_spill] sm:$0xff]  ;;  %v11474_v38 = vrot.slane %v11473_v15, 2 }
 0x7ff   : > { %v11475_v50 = vadd.f32 %v11474_v38, %v11473_v15  ;;  %v21607_v38 = vpop.eup %14220 }
 0x801   : > { %v21507_v54 = vpop.permute.xlu0 %10824 }
 0x805   : > { %v21509_v21 = vpop.permute.xlu0 %10835 }
 0x809   : > { %v21511_v9 = vpop.permute.xlu0 %10846 }
 0x80c   : > { %11037 = vbcast.lane.b32.xlu1 %v24107_v58, 264  ;;  %v24117_v58 = vld [vmem:[#allocation240_spill] sm:$0xff] }
 0x80d   : > { %v21520_v42 = vpop.permute.xlu0 %11033  ;;  %v11168_v51 = vmul.f32 %v24117_v58, %v24116_v35  ;;  %v24131_v35 = vld [vmem:[#allocation290_spill] sm:$0xff] }
 0x80e   : > { %v11176_v58 = vmul.f32 %v24131_v35, %v24130_v6  ;;  %v24138_v35 = vld [vmem:[#allocation280_spill] sm:$0xff] }
 0x810   : > { %11048 = vbcast.lane.b32.xlu1 %v24113_v34, 264  ;;  %v11464_v34 = vadd.f32 %v11463_v47, %v11462_v19  ;;  %v24129_v19 = vld [vmem:[#allocation263_spill] sm:$0xff] }
 0x811   : > { %v21528_v8 = vpop.permute.xlu0 %11044  ;;  %v11174_v47 = vmul.f32 %v24129_v19, %v24128_v36 }
 0x812   : > { %v11465_v53 = vrot.slane %v11464_v34, 2 }
 0x813   : > { %v10197_v48 = vpop.xlane.xlu1 %10196 }
 0x814   : > { %v10207_v2 = vadd.f32 %v10197_v48, %v10175_v43  ;;  %11059 = vbcast.lane.b32.xlu1 %v24114_v61, 264  ;;  %v11170_v43 = vmul.f32 %v24124_v55, %v24123_v56  ;;  %v11478_v48 = vsel %vm9090_vm7, %v11168_v51, 0.0  ;;  %v11676_v51 = vsel %vm9090_vm7, %v11212_v11, 0.0  ;;  %v24135_v56 = vld [vmem:[#allocation145_spill] sm:$0xff]  ;;  %v24136_v11 = vld [vmem:[#allocation272_spill] sm:$0xff] }
 0x815   : > { %v21533_v7 = vpop.permute.xlu0 %11055  ;;  %v11171_v55 = vmul.f32 %v21283_v26, %v24135_v56  ;;  %v11466_v6 = vadd.f32 %v11465_v53, %v11464_v34  ;;  %v24139_v56 = vld [vmem:[#allocation100_spill] sm:$0xff]  ;;  %v24140_v34 = vld [vmem:[#allocation97_spill] sm:$0xff] }
 0x816   : > { %10216 = vst.msk [vmem:[#allocation6 + $0x30] sm:$0xff] %vm10209_vm0, %v10207_v2  ;;  %v24126_v2 = vld [vmem:[#allocation298_spill] sm:$0xff] }
 0x817   : > { %v10191_v62 = vpop.xlane.xlu1 %10190  ;;  %v11172_v61 = vmul.f32 %v24126_v2, %v24125_v1  ;;  %v11216_v1 = vmul.f32 %v21400_v59, %v24136_v11  ;;  %v24137_v2 = vld [vmem:[#allocation207_spill] sm:$0xff]  ;;  %v11218_v59 = vmul.f32 %v21421_v10, %v24138_v35 }
 0x818   : > { %v10205_v13 = vadd.f32 %v10191_v62, %v10173_v0  ;;  %11070 = vbcast.lane.b32.xlu1 %v24118_v45, 264  ;;  %v24127_v0 = vld [vmem:[#allocation234_spill] sm:$0xff] }
 0x819   : > { %v21545_v44 = vpop.permute.xlu0 %11066  ;;  %v11694_v23 = vsel %vm9090_vm7, %v11216_v1, 0.0 }
 0x81a   : > { %10214 = vst.msk [vmem:[#allocation6 + $0x20] sm:$0xff] %vm10209_vm0, %v10205_v13  ;;  %v11480_v13 = vadd.f32 %v11479_v25, %v11478_v48  ;;  %v21574_v48 = vsel %vm9090_vm7, %v11172_v61, 0.0  ;;  %v11685_v61 = vsel %vm9090_vm7, %v11214_v4, 0.0  ;;  %v11220_v4 = vmul.f32 %v21434_v30, %v24139_v56  ;;  %v24142_v30 = vld [vmem:[#allocation241_spill] sm:$0xff]  ;;  %v24144_v56 = vld [vmem:[#allocation183_spill] sm:$0xff] }
 0x81b   : > { %v10950_v39 = vpop.permute.xlu1 %10949 }
 0x81c   : > { %v11213_v62 = vmul.f32 %v10950_v39, %v24127_v0  ;;  %11081 = vbcast.lane.b32.xlu1 %v21209_v32, 264  ;;  %v11487_v32 = vsel %vm9090_vm7, %v11170_v43, 0.0  ;;  %v21581_v43 = vsel %vm9090_vm7, %v11174_v47, 0.0  ;;  %v11481_v26 = vrot.slane %v11480_v13, 4 }
 0x81d   : > { %v21562_v45 = vpop.permute.xlu0 %11077  ;;  %v11488_v47 = vsel %vm9090_vm7, %v11171_v55, 0.0  ;;  %v11712_v35 = vsel %vm9090_vm7, %v11220_v4, 0.0 }
 0x81e   : > { %v11677_v57 = vsel %vm9090_vm7, %v11213_v62, 0.0  ;;  %v21584_v62 = vsel %vm9090_vm7, %v11176_v58, 0.0  ;;  %v11482_v10 = vadd.f32 %v11481_v26, %v11480_v13  ;;  %v11489_v1 = vadd.f32 %v11488_v47, %v11487_v32 }
 0x81f   : > { %v11678_v39 = vadd.f32 %v11677_v57, %v11676_v51  ;;  %v10961_v25 = vpop.permute.xlu1 %10960 }
 0x820   : > { %v11215_v0 = vmul.f32 %v10961_v25, %v24137_v2  ;;  %11092 = vbcast.lane.b32.xlu1 %v21231_v31, 264  ;;  %v21593_v31 = vsel %vm9090_vm7, %v11178_v49, 0.0  ;;  %v24141_v25 = vld [vmem:[#allocation219_spill] sm:$0xff]  ;;  %v11483_v32 = vrot.slane %v11482_v10, 2 }
 0x821   : > { %v11679_v36 = vrot.slane %v11678_v39, 4  ;;  %v21586_v19 = vpop.permute.xlu0 %11088  ;;  %v11222_v49 = vmul.f32 %v21446_v20, %v24141_v25  ;;  %v11476_v20 = vrot.slane %v11475_v50, 1 }
 0x822   : > { %v11686_v51 = vsel %vm9090_vm7, %v11215_v0, 0.0  ;;  %v11703_v0 = vsel %vm9090_vm7, %v11218_v59, 0.0 }
 0x823   : > { %v11680_v63 = vadd.f32 %v11679_v36, %v11678_v39  ;;  %v11687_v58 = vadd.f32 %v11686_v51, %v11685_v61  ;;  %v10972_v57 = vpop.permute.xlu1 %10971  ;;  %v11467_v39 = vrot.slane %v11466_v6, 1  ;;  %v11224_v36 = vmul.f32 %v21463_v33, %v24142_v30  ;;  %v24143_v51 = vld [vmem:[#allocation140_spill] sm:$0xff] }
 0x824   : > { %v11217_v53 = vmul.f32 %v10972_v57, %v24140_v34  ;;  %11103 = vbcast.lane.b32.xlu1 %v21245_v60, 264  ;;  %v11173_v57 = vmul.f32 %v21306_v41, %v24143_v51  ;;  %v11721_v47 = vsel %vm9090_vm7, %v11222_v49, 0.0  ;;  %v11477_v30 = vadd.f32 %v11476_v20, %v11475_v50  ;;  %v24146_v51 = vld [vmem:[#allocation229_spill] sm:$0xff] }
 0x825   : > { %v11681_v11 = vrot.slane %v11680_v63, 2  ;;  %v11688_v2 = vrot.slane %v11687_v58, 4  ;;  %v21603_v55 = vpop.permute.xlu0 %11099  ;;  %v11730_v4 = vsel %vm9090_vm7, %v11224_v36, 0.0 }
 0x826   : > { %v11695_v15 = vsel %vm9090_vm7, %v11217_v53, 0.0 }
 0x827   : > { %v11682_v60 = vadd.f32 %v11681_v11, %v11680_v63  ;;  %v11689_v13 = vadd.f32 %v11688_v2, %v11687_v58  ;;  %v11696_v26 = vadd.f32 %v11695_v15, %v11694_v23  ;;  %v10983_v61 = vpop.permute.xlu1 %10982  ;;  %v11468_v63 = vadd.f32 %v11467_v39, %v11466_v6 }
 0x828   : > { %v11219_v59 = vmul.f32 %v10983_v61, %v24144_v56  ;;  %10861 = vbcast.lane.b32.xlu1 %v21258_v22, 264  ;;  %v11490_v58 = vrot.slane %v11489_v1, 4  ;;  %v11497_v22 = vsel %vm9090_vm7, %v11173_v57, 0.0  ;;  %v24145_v61 = vld [vmem:[#allocation47_spill] sm:$0xff]  ;;  %v11484_v6 = vadd.f32 %v11483_v32, %v11482_v10 }
 0x829   : > { %v11690_v34 = vrot.slane %v11689_v13, 2  ;;  %v11697_v53 = vrot.slane %v11696_v26, 4  ;;  %v21617_v33 = vpop.permute.xlu0 %10857  ;;  %v11683_v23 = vrot.slane %v11682_v60, 1  ;;  %v11226_v49 = vmul.f32 %v21481_v18, %v24145_v61 }
 0x82a   : > { %v11704_v25 = vsel %vm9090_vm7, %v11219_v59, 0.0  ;;  %v11491_v36 = vadd.f32 %v11490_v58, %v11489_v1  ;;  %v11498_v10 = vadd.f32 %v11497_v22, %v21574_v48 }
 0x82b   : > { %v11691_v11 = vadd.f32 %v11690_v34, %v11689_v13  ;;  %v11698_v41 = vadd.f32 %v11697_v53, %v11696_v26  ;;  %v11705_v2 = vadd.f32 %v11704_v25, %v11703_v0  ;;  %v10994_v15 = vpop.permute.xlu1 %10993  ;;  %v24147_v13 = vld [vmem:[#allocation84_spill] sm:$0xff]  ;;  %v11684_v50 = vadd.f32 %v11683_v23, %v11682_v60  ;;  %v24148_v25 = vld [vmem:[#allocation211_spill] sm:$0xff] }
 0x82c   : > { %v11221_v56 = vmul.f32 %v10994_v15, %v24146_v51  ;;  %10872 = vbcast.lane.b32.xlu1 %v21278_v52, 264  ;;  %v11175_v0 = vmul.f32 %v21324_v29, %v24147_v13  ;;  %v21632_v52 = vsel %vm9371_vm8, %v11477_v30, %v11468_v63  ;;  %v11739_v32 = vsel %vm9090_vm7, %v11226_v49, 0.0  ;;  %v24150_v49 = vld [vmem:[#allocation291_spill] sm:$0xff]  ;;  %v24153_v13 = vld [vmem:[#allocation49_spill] sm:$0xff] }
 0x82d   : > { %v11692_v39 = vrot.slane %v11691_v11, 1  ;;  %v11699_v3 = vrot.slane %v11698_v41, 2  ;;  %v11706_v59 = vrot.slane %v11705_v2, 4  ;;  %v21626_v27 = vpop.permute.xlu0 %10868  ;;  %v11499_v61 = vrot.slane %v11498_v10, 4 }
 0x82e   : > { %v11713_v26 = vsel %vm9090_vm7, %v11221_v56, 0.0  ;;  %v11506_v63 = vsel %vm9090_vm7, %v11175_v0, 0.0  ;;  %v24151_v56 = vld [vmem:[#allocation132_spill] sm:$0xff] }
 0x82f   : > { %v11693_v20 = vadd.f32 %v11692_v39, %v11691_v11  ;;  %v11700_v57 = vadd.f32 %v11699_v3, %v11698_v41  ;;  %v11707_v18 = vadd.f32 %v11706_v59, %v11705_v2  ;;  %v11714_v34 = vadd.f32 %v11713_v26, %v11712_v35  ;;  %v11005_v53 = vpop.permute.xlu1 %11004  ;;  %v24152_v39 = vld [vmem:[#allocation227_spill] sm:$0xff]  ;;  %v24154_v26 = vld [vmem:[#allocation233_spill] sm:$0xff] }
 0x830   : > { %v11223_v1 = vmul.f32 %v11005_v53, %v24148_v25  ;;  %10883 = vbcast.lane.b32.xlu1 %v21296_v24, 264  ;;  %v11485_v35 = vrot.slane %v11484_v6, 1  ;;  %v11492_v11 = vrot.slane %v11491_v36, 2  ;;  %v24149_v24 = vld [vmem:[#allocation230_spill] sm:$0xff]  ;;  %v11179_v59 = vmul.f32 %v24152_v39, %v24151_v56 }
 0x831   : > { %v11990_v29 = vsel %vm9371_vm8, %v11693_v20, %v11684_v50  ;;  %v11701_v60 = vrot.slane %v11700_v57, 1  ;;  %v11708_v58 = vrot.slane %v11707_v18, 2  ;;  %v11715_v23 = vrot.slane %v11714_v34, 4  ;;  %v21639_v3 = vpop.permute.xlu0 %10879 }
 0x832   : > { %v11722_v41 = vsel %vm9090_vm7, %v11223_v1, 0.0  ;;  %v11177_v51 = vmul.f32 %v24150_v49, %v24149_v24  ;;  %v11507_v25 = vadd.f32 %v11506_v63, %v21581_v43  ;;  %v11500_v24 = vadd.f32 %v11499_v61, %v11498_v10  ;;  %v24155_v49 = vld [vmem:[#allocation264_spill] sm:$0xff] }
 0x833   : > { %v11702_v48 = vadd.f32 %v11701_v60, %v11700_v57  ;;  %v11709_v2 = vadd.f32 %v11708_v58, %v11707_v18  ;;  %v11716_v15 = vadd.f32 %v11715_v23, %v11714_v34  ;;  %v11723_v30 = vadd.f32 %v11722_v41, %v11721_v47  ;;  %v11016_v22 = vpop.permute.xlu1 %11015 }
 0x834   : > { %v11225_v50 = vmul.f32 %v11016_v22, %v24153_v13  ;;  %10894 = vbcast.lane.b32.xlu1 %v24154_v26, 264  ;;  %v21652_v47 = vadd.f32 %v11485_v35, %v11484_v6  ;;  %v21654_v34 = vadd.f32 %v11492_v11, %v11491_v36  ;;  %v24156_v6 = vld [vmem:[#allocation242_spill] sm:$0xff] }
 0x835   : > { %v11991_v0 = vsel %vm9373_vm9, %v11702_v48, %v11990_v29  ;;  %v11710_v20 = vrot.slane %v11709_v2, 1  ;;  %v11717_v53 = vrot.slane %v11716_v15, 2  ;;  %v11724_v57 = vrot.slane %v11723_v30, 4  ;;  %v21650_v18 = vpop.permute.xlu0 %10890 }
 0x836   : > { %v11731_v1 = vsel %vm9090_vm7, %v11225_v50, 0.0  ;;  %v11515_v29 = vsel %vm9090_vm7, %v11177_v51, 0.0  ;;  %v11524_v48 = vsel %vm9090_vm7, %v11179_v59, 0.0  ;;  %v11501_v50 = vrot.slane %v11500_v24, 2 }
 0x837   : > { %v11711_v60 = vadd.f32 %v11710_v20, %v11709_v2  ;;  %v11718_v58 = vadd.f32 %v11717_v53, %v11716_v15  ;;  %v11725_v23 = vadd.f32 %v11724_v57, %v11723_v30  ;;  %v11732_v41 = vadd.f32 %v11731_v1, %v11730_v4  ;;  %v11027_v22 = vpop.permute.xlu1 %11026  ;;  %v24157_v15 = vld [vmem:[#allocation178_spill] sm:$0xff]  ;;  %v24158_v53 = vld [vmem:[#allocation185_spill] sm:$0xff]  ;;  %v24159_v57 = vld [vmem:[#allocation180_spill] sm:$0xff] }
 0x838   : > { %v11227_v56 = vmul.f32 %v11027_v22, %v24155_v49  ;;  %10905 = vbcast.lane.b32.xlu1 %v24156_v6, 264  ;;  %v11494_v2 = vrot.slane %v21654_v34, 1  ;;  %v11508_v4 = vrot.slane %v11507_v25, 4  ;;  %v11180_v10 = vmul.f32 %v21491_v12, %v24157_v15  ;;  %v24161_v15 = vld [vmem:[#allocation182_spill] sm:$0xff] }
 0x839   : > { %v11719_v36 = vrot.slane %v11718_v58, 1  ;;  %v11726_v35 = vrot.slane %v11725_v23, 2  ;;  %v11733_v11 = vrot.slane %v11732_v41, 4  ;;  %v21662_v43 = vpop.permute.xlu0 %10901  ;;  %v11992_v63 = vsel %vm9375_vm10, %v11711_v60, %v11991_v0 }
 0x83a   : > { %v11740_v30 = vsel %vm9090_vm7, %v11227_v56, 0.0  ;;  %v11516_v26 = vadd.f32 %v11515_v29, %v21584_v62  ;;  %v11525_v20 = vadd.f32 %v11524_v48, %v21593_v31 }
 0x83b   : > { %v11720_v61 = vadd.f32 %v11719_v36, %v11718_v58  ;;  %v11727_v51 = vadd.f32 %v11726_v35, %v11725_v23  ;;  %v11734_v39 = vadd.f32 %v11733_v11, %v11732_v41  ;;  %v11741_v59 = vadd.f32 %v11740_v30, %v11739_v32  ;;  %v10774_v13 = vpop.permute.xlu1 %10773  ;;  %v24160_v41 = vld [vmem:[#allocation177_spill] sm:$0xff] }
 0x83c   : > { %v11181_v0 = vmul.f32 %v10774_v13, %v24158_v53  ;;  %10916 = vbcast.lane.b32.xlu1 %v24159_v57, 264  ;;  %v11509_v23 = vadd.f32 %v11508_v4, %v11507_v25  ;;  %v11532_v32 = vsel %vm9090_vm7, %v11180_v10, 0.0  ;;  %v11182_v49 = vmul.f32 %v21494_v40, %v24160_v41  ;;  %v24162_v13 = vld [vmem:[#allocation55_spill] sm:$0xff]  ;;  %v24164_v41 = vld [vmem:[#allocation129_spill] sm:$0xff] }
 0x83d   : > { %v11728_v1 = vrot.slane %v11727_v51, 1  ;;  %v11735_v60 = vrot.slane %v11734_v39, 2  ;;  %v11742_v22 = vrot.slane %v11741_v59, 4  ;;  %v21673_v12 = vpop.permute.xlu0 %10912  ;;  %v11993_v58 = vsel %vm9377_vm11, %v11720_v61, %v11992_v63 }
 0x83e   : > { %v11533_v62 = vsel %vm9090_vm7, %v11181_v0, 0.0  ;;  %v11502_v36 = vadd.f32 %v11501_v50, %v11500_v24  ;;  %v11517_v35 = vrot.slane %v11516_v26, 4  ;;  %v11526_v11 = vrot.slane %v11525_v20, 4 }
 0x83f   : > { %v11729_v31 = vadd.f32 %v11728_v1, %v11727_v51  ;;  %v11736_v29 = vadd.f32 %v11735_v60, %v11734_v39  ;;  %v11743_v48 = vadd.f32 %v11742_v22, %v11741_v59  ;;  %v11534_v56 = vadd.f32 %v11533_v62, %v11532_v32  ;;  %v10785_v6 = vpop.permute.xlu1 %10784  ;;  %v24163_v39 = vld [vmem:[#allocation102_spill] sm:$0xff] }
 0x840   : > { %v11183_v30 = vmul.f32 %v10785_v6, %v24161_v15  ;;  %10927 = vbcast.lane.b32.xlu1 %v24162_v13, 264  ;;  %v11510_v61 = vrot.slane %v11509_v23, 2  ;;  %v11541_v51 = vsel %vm9090_vm7, %v11182_v49, 0.0  ;;  %v11184_v59 = vmul.f32 %v21499_v46, %v24163_v39  ;;  %v24165_v6 = vld [vmem:[#allocation267_spill] sm:$0xff] }
 0x841   : > { %v11737_v25 = vrot.slane %v11736_v29, 1  ;;  %v11744_v63 = vrot.slane %v11743_v48, 2  ;;  %v11535_v4 = vrot.slane %v11534_v56, 4  ;;  %v21682_v10 = vpop.permute.xlu0 %10923  ;;  %v11994_v40 = vsel %vm9379_vm12, %v11729_v31, %v11993_v58 }
 0x842   : > { %v11542_v24 = vsel %vm9090_vm7, %v11183_v30, 0.0  ;;  %v11503_v60 = vrot.slane %v11502_v36, 1  ;;  %v11518_v22 = vadd.f32 %v11517_v35, %v11516_v26  ;;  %v11527_v32 = vadd.f32 %v11526_v11, %v11525_v20 }
 0x843   : > { %v11738_v50 = vadd.f32 %v11737_v25, %v11736_v29  ;;  %v11745_v53 = vadd.f32 %v11744_v63, %v11743_v48  ;;  %v11536_v0 = vadd.f32 %v11535_v4, %v11534_v56  ;;  %v11543_v57 = vadd.f32 %v11542_v24, %v11541_v51  ;;  %v10796_v1 = vpop.permute.xlu1 %10795  ;;  %v24166_v29 = vld [vmem:[#allocation173_spill] sm:$0xff]  ;;  %v24168_v51 = vld [vmem:[#allocation268_spill] sm:$0xff] }
 0x844   : > { %v11185_v62 = vmul.f32 %v10796_v1, %v24164_v41  ;;  %10938 = vbcast.lane.b32.xlu1 %v24165_v6, 264  ;;  %v11511_v46 = vadd.f32 %v11510_v61, %v11509_v23  ;;  %v11550_v30 = vsel %vm9090_vm7, %v11184_v59, 0.0  ;;  %v11186_v48 = vmul.f32 %v21501_v28, %v24166_v29 }
 0x845   : > { %v11746_v58 = vrot.slane %v11745_v53, 1  ;;  %v11537_v31 = vrot.slane %v11536_v0, 2  ;;  %v11544_v49 = vrot.slane %v11543_v57, 4  ;;  %v11995_v15 = vsel %vm9381_vm13, %v11738_v50, %v11994_v40  ;;  %v21696_v35 = vpop.permute.xlu0 %10934  ;;  %v24167_v40 = vld [vmem:[#allocation36_spill] sm:$0xff] }
 0x846   : > { %v11551_v56 = vsel %vm9090_vm7, %v11185_v62, 0.0  ;;  %v11495_v63 = vadd.f32 %v11494_v2, %v21654_v34  ;;  %v11519_v4 = vrot.slane %v11518_v22, 2  ;;  %v11528_v23 = vrot.slane %v11527_v32, 2 }
 0x847   : > { %v11538_v13 = vadd.f32 %v11537_v31, %v11536_v0  ;;  %v11545_v26 = vadd.f32 %v11544_v49, %v11543_v57  ;;  %v11552_v20 = vadd.f32 %v11551_v56, %v11550_v30  ;;  %v10807_v11 = vpop.permute.xlu1 %10806  ;;  %v11747_v25 = vadd.f32 %v11746_v58, %v11745_v53  ;;  %v24169_v0 = vld [vmem:[#allocation126_spill] sm:$0xff]  ;;  %v24171_v49 = vld [vmem:[#allocation276_spill] sm:$0xff] }
 0x848   : > { %v11187_v61 = vmul.f32 %v10807_v11, %v24167_v40  ;;  %11114 = vbcast.lane.b32.xlu1 %v24168_v51, 264  ;;  %v11504_v28 = vadd.f32 %v11503_v60, %v11502_v36  ;;  %v11559_v50 = vsel %vm9090_vm7, %v11186_v48, 0.0  ;;  %v11188_v53 = vmul.f32 %v21505_v37, %v24169_v0  ;;  %v24170_v60 = vld [vmem:[#allocation58_spill] sm:$0xff]  ;;  %v24173_v51 = vld [vmem:[#allocation199_spill] sm:$0xff] }
 0x849   : > { %v11546_v39 = vrot.slane %v11545_v26, 2  ;;  %v11553_v59 = vrot.slane %v11552_v20, 4  ;;  %v21704_v24 = vsel %vm9383_vm14, %v11747_v25, %v11995_v15  ;;  %v11539_v57 = vrot.slane %v11538_v13, 1  ;;  %v21715_v48 = vpop.permute.xlu0 %11110 }
 0x84a   : > { %v11560_v34 = vsel %vm9090_vm7, %v11187_v61, 0.0  ;;  %v11512_v2 = vrot.slane %v11511_v46, 1  ;;  %v11520_v58 = vadd.f32 %v11519_v4, %v11518_v22  ;;  %v11529_v36 = vadd.f32 %v11528_v23, %v11527_v32 }
 0x84b   : > { %v11547_v1 = vadd.f32 %v11546_v39, %v11545_v26  ;;  %v11554_v41 = vadd.f32 %v11553_v59, %v11552_v20  ;;  %v11561_v62 = vadd.f32 %v11560_v34, %v11559_v50  ;;  %v10818_v6 = vpop.permute.xlu1 %10817  ;;  %v11970_v15 = vsel %vm9373_vm9, %v21652_v47, %v21632_v52  ;;  %v24172_v20 = vld [vmem:[#allocation119_spill] sm:$0xff] }
 0x84c   : > { %v11189_v31 = vmul.f32 %v10818_v6, %v24170_v60  ;;  %11835 = vperm.xlu1 %14044, %v24171_v49   ;;  %v11971_v56 = vsel %vm9375_vm10, %v11495_v63, %v11970_v15  ;;  %v11568_v26 = vsel %vm9090_vm7, %v11188_v53, 0.0  ;;  %v11190_v22 = vmul.f32 %v21507_v54, %v24172_v20  ;;  %v24174_v59 = vld [vmem:[#allocation223_spill] sm:$0xff] }
 0x84d   : > { %v11548_v30 = vrot.slane %v11547_v1, 1  ;;  %v11555_v37 = vrot.slane %v11554_v41, 2  ;;  %v11562_v29 = vrot.slane %v11561_v62, 4  ;;  %v11540_v32 = vadd.f32 %v11539_v57, %v11538_v13  ;;  %v24175_v34 = vld [vmem:[#allocation139_spill] sm:$0xff] }
 0x84e   : > { %v11569_v11 = vsel %vm9090_vm7, %v11189_v31, 0.0  ;;  %v11513_v47 = vadd.f32 %v11512_v2, %v11511_v46  ;;  %v11521_v61 = vrot.slane %v11520_v58, 1  ;;  %v11972_v63 = vsel %vm9377_vm11, %v11504_v28, %v11971_v56  ;;  %v24176_v28 = vld [vmem:[#allocation121_spill] sm:$0xff] }
 0x84f   : > { %v11549_v25 = vadd.f32 %v11548_v30, %v11547_v1  ;;  %v11556_v4 = vadd.f32 %v11555_v37, %v11554_v41  ;;  %v11563_v23 = vadd.f32 %v11562_v29, %v11561_v62  ;;  %v11570_v40 = vadd.f32 %v11569_v11, %v11568_v26  ;;  %v10829_v52 = vpop.permute.xlu1 %10828 }
 0x850   : > { %v11191_v39 = vmul.f32 %v10829_v52, %v24173_v51  ;;  %11845 = vperm.xlu1 %14044, %v24174_v59   ;;  %v11577_v57 = vsel %vm9090_vm7, %v11190_v22, 0.0  ;;  %v11192_v1 = vmul.f32 %v21509_v21, %v24175_v34  ;;  %v11530_v2 = vrot.slane %v11529_v36, 1  ;;  %v24177_v22 = vld [vmem:[#allocation147_spill] sm:$0xff] }
 0x851   : > { %v11976_v50 = vsel %vm9371_vm8, %v11549_v25, %v11540_v32  ;;  %v11557_v0 = vrot.slane %v11556_v4, 1  ;;  %v11564_v54 = vrot.slane %v11563_v23, 2  ;;  %v11571_v13 = vrot.slane %v11570_v40, 4  ;;  %v11831_v53 = vpop.permute.xlu0 %11830 }
 0x852   : > { %v11578_v46 = vsel %vm9090_vm7, %v11191_v39, 0.0  ;;  %v11522_v15 = vadd.f32 %v11521_v61, %v11520_v58  ;;  %v11973_v30 = vsel %vm9379_vm12, %v11513_v47, %v11972_v63  ;;  %v11586_v20 = vsel %vm9090_vm7, %v11192_v1, 0.0  ;;  %v11824_v47 = vld [vmem:[#allocation7 + $0x20] sm:$0xff]  ;;  %v24178_v61 = vld [vmem:[#allocation56_spill] sm:$0xff] }
 0x853   : > { %v11558_v41 = vadd.f32 %v11557_v0, %v11556_v4  ;;  %v11565_v62 = vadd.f32 %v11564_v54, %v11563_v23  ;;  %v11572_v6 = vadd.f32 %v11571_v13, %v11570_v40  ;;  %v11579_v60 = vadd.f32 %v11578_v46, %v11577_v57  ;;  %v10840_v31 = vpop.permute.xlu1 %10839  ;;  %v11822_v0 = vld [vmem:[#allocation7 + $0x10] sm:$0xff] }
 0x854   : > { %v11193_v49 = vmul.f32 %v10840_v31, %v24176_v28  ;;  %11855 = vperm.xlu1 %14044, %v21607_v38   ;;  %v11194_v32 = vmul.f32 %v21511_v9, %v24177_v22  ;;  %v11531_v25 = vadd.f32 %v11530_v2, %v11529_v36  ;;  %v11974_v39 = vsel %vm9381_vm13, %v11522_v15, %v11973_v30  ;;  %v11820_v31 = vld [vmem:[#allocation7] sm:$0xff] }
 0x855   : > { %v11977_v37 = vsel %vm9373_vm9, %v11558_v41, %v11976_v50  ;;  %v11566_v29 = vrot.slane %v11565_v62, 1  ;;  %v11573_v56 = vrot.slane %v11572_v6, 2  ;;  %v11580_v21 = vrot.slane %v11579_v60, 4  ;;  %v11841_v26 = vpop.permute.xlu0 %11840  ;;  %v11826_v41 = vld [vmem:[#allocation7 + $0x30] sm:$0xff] }
 0x856   : > { %v11587_v11 = vsel %vm9090_vm7, %v11193_v49, 0.0  ;;  %v11595_v36 = vsel %vm9090_vm7, %v11194_v32, 0.0  ;;  %v11975_v34 = vsel %vm9383_vm14, %v11531_v25, %v11974_v39 }
 0x857   : > { %v11567_v4 = vadd.f32 %v11566_v29, %v11565_v62  ;;  %v11574_v23 = vadd.f32 %v11573_v56, %v11572_v6  ;;  %v11581_v40 = vadd.f32 %v11580_v21, %v11579_v60  ;;  %v11588_v58 = vadd.f32 %v11587_v11, %v11586_v20  ;;  %v10851_v52 = vpop.permute.xlu1 %10850 }
 0x858   : > { %v11195_v51 = vmul.f32 %v10851_v52, %v24178_v61  ;;  %11865 = vperm.xlu1 %14044, %v21333_v16   ;;  %v11870_v62 = vmul.f32 %v11841_v26, %v11822_v0  ;;  %v11868_v20 = vmul.f32 %v11831_v53, %v11820_v31  ;;  %v24179_v26 = vld [vmem:[#allocation226_spill] sm:$0xff] }
 0x859   : > { %v11575_v59 = vrot.slane %v11574_v23, 1  ;;  %v11582_v63 = vrot.slane %v11581_v40, 2  ;;  %v11589_v50 = vrot.slane %v11588_v58, 4  ;;  %v11851_v9 = vpop.permute.xlu0 %11850  ;;  %v11978_v54 = vsel %vm9375_vm10, %v11567_v4, %v11977_v37  ;;  %v24180_v52 = vld [vmem:[#allocation214_spill] sm:$0xff] }
 0x85a   : > { %v11596_v13 = vsel %vm9090_vm7, %v11195_v51, 0.0  ;;  %v11872_v57 = vmul.f32 %v11851_v9, %v11824_v47  ;;  %v11878_v22 = vadd.f32 %v11870_v62, %v24179_v26  ;;  %v11876_v53 = vadd.f32 %v11868_v20, %v24180_v52  ;;  %v24181_v9 = vld [vmem:[#allocation253_spill] sm:$0xff] }
 0x85b   : > { %v11576_v1 = vadd.f32 %v11575_v59, %v11574_v23  ;;  %v11583_v46 = vadd.f32 %v11582_v63, %v11581_v40  ;;  %v11590_v2 = vadd.f32 %v11589_v50, %v11588_v58  ;;  %v11597_v16 = vadd.f32 %v11596_v13, %v11595_v36  ;;  %v10166_v59 = vld [vmem:[#allocation6 + $0x28] sm:$0xff]  ;;  %v24187_v20 = vld [vmem:[#allocation113_spill] sm:$0xff] }
 0x85c   : > { %12010 = vrot.lane.b32.xlu1 %v11975_v34, %s14398_s16  ;;  %v21747_v6 = vadd.f32 %v11872_v57, %v21454_v17  ;;  %v10174_v63 = vmul.f32 %v21607_v38, %v10166_v59  ;;  %v24182_v13 = vld [vmem:[#allocation248_spill] sm:$0xff]  ;;  %v11234_v26 = vmul.f32 %v21545_v44, %v24187_v20  ;;  %v24190_v59 = vld [vmem:[#allocation217_spill] sm:$0xff] }
 0x85d   : > { %v11584_v60 = vrot.slane %v11583_v46, 1  ;;  %v11591_v28 = vrot.slane %v11590_v2, 2  ;;  %v11598_v49 = vrot.slane %v11597_v16, 4  ;;  %v11861_v15 = vpop.permute.xlu0 %11860  ;;  %v11979_v30 = vsel %vm9377_vm11, %v11576_v1, %v11978_v54  ;;  %v24183_v1 = vld [vmem:[#allocation252_spill] sm:$0xff] }
 0x85e   : > { %v11874_v37 = vmul.f32 %v11861_v15, %v11826_v41  ;;  %v11228_v54 = vmul.f32 %v21520_v42, %v24181_v9  ;;  %v24184_v38 = vld [vmem:[#allocation72_spill] sm:$0xff]  ;;  %v11775_v52 = vsel %vm9090_vm7, %v11234_v26, 0.0 }
 0x85f   : > { %v11585_v29 = vadd.f32 %v11584_v60, %v11583_v46  ;;  %v11592_v56 = vadd.f32 %v11591_v28, %v11590_v2  ;;  %v11599_v21 = vadd.f32 %v11598_v49, %v11597_v16  ;;  %v11230_v46 = vmul.f32 %v21528_v8, %v24183_v1  ;;  %v24185_v42 = vld [vmem:[#allocation152_spill] sm:$0xff] }
 0x860   : > { %12006 = vrot.lane.b32.xlu1 %v21497_v14, %s14398_s16  ;;  %v21754_v17 = vadd.f32 %v11874_v37, %v21466_v5  ;;  %v11748_v34 = vsel %vm9090_vm7, %v11228_v54, 0.0  ;;  %v11232_v31 = vmul.f32 %v21533_v7, %v24185_v42  ;;  %v24186_v37 = vld [vmem:[#allocation94_spill] sm:$0xff] }
 0x861   : > { %v11593_v32 = vrot.slane %v11592_v56, 1  ;;  %v11600_v11 = vrot.slane %v11599_v21, 2  ;;  %v12009_v25 = vpop.permute.xlu0 %12008  ;;  %v11980_v4 = vsel %vm9379_vm12, %v11585_v29, %v11979_v30  ;;  %v11757_v60 = vsel %vm9090_vm7, %v11230_v46, 0.0 }
 0x862   : > { %v12030_v23 = vadd.f32 %v12009_v25, %v11878_v22 }
 0x863   : > { %v11594_v40 = vadd.f32 %v11593_v32, %v11592_v56  ;;  %v11601_v58 = vadd.f32 %v11600_v11, %v11599_v21  ;;  %v11766_v21 = vsel %vm9090_vm7, %v11232_v31, 0.0 }
 0x864   : > { %12038 = vst.msk [vmem:[#allocation7 + $0x10] sm:$0xff] %vm2529_vm5, %v12030_v23 }
 0x865   : > { %v11602_v47 = vrot.slane %v11601_v58, 1  ;;  %v12005_v61 = vpop.permute.xlu0 %12004  ;;  %v11981_v14 = vsel %vm9381_vm13, %v11594_v40, %v11980_v4  ;;  %v24188_v4 = vld [vmem:[#allocation228_spill] sm:$0xff] }
 0x866   : > { %v12028_v51 = vadd.f32 %v12005_v61, %v11876_v53  ;;  %v24189_v53 = vld [vmem:[#allocation181_spill] sm:$0xff] }
 0x867   : > { %v11603_v39 = vadd.f32 %v11602_v47, %v11601_v58  ;;  %v11236_v47 = vmul.f32 %v21562_v45, %v24189_v53  ;;  %v24196_v53 = vld [vmem:[#allocation192_spill] sm:$0xff] }
 0x868   : > { %12036 = vst.msk [vmem:[#allocation7] sm:$0xff] %vm2529_vm5, %v12028_v51 }
 0x869   : > { %v11982_v5 = vsel %vm9383_vm14, %v11603_v39, %v11981_v14  ;;  %v11784_v54 = vsel %vm9090_vm7, %v11236_v47, 0.0 }
 0x86a   : > { %12012 = vrot.lane.b32.xlu0 %v11982_v5, %s14398_s16 }
 0x86e   : > { %12016 = vrot.lane.b32.xlu0 %v21704_v24, %s14398_s16 }
 0x888   : > { %v10194_v50 = vpop.xlane.xlu1 %10193 }
 0x889   : > { %v10206_v0 = vadd.f32 %v10194_v50, %v10174_v63 }
 0x88b   : > { %10215 = vst.msk [vmem:[#allocation6 + $0x28] sm:$0xff] %vm10209_vm0, %v10206_v0 }
 0x88c   : > { %v11038_v36 = vpop.permute.xlu1 %11037 }
 0x88d   : > { %v11229_v57 = vmul.f32 %v11038_v36, %v24182_v13  ;;  %v24191_v36 = vld [vmem:[#allocation237_spill] sm:$0xff] }
 0x88e   : > { %v11238_v13 = vmul.f32 %v21586_v19, %v24191_v36  ;;  %v24198_v36 = vld [vmem:[#allocation150_spill] sm:$0xff] }
 0x88f   : > { %v11749_v24 = vsel %vm9090_vm7, %v11229_v57, 0.0 }
 0x890   : > { %v11750_v2 = vadd.f32 %v11749_v24, %v11748_v34  ;;  %v11049_v16 = vpop.permute.xlu1 %11048  ;;  %v11793_v31 = vsel %vm9090_vm7, %v11238_v13, 0.0 }
 0x891   : > { %v11231_v41 = vmul.f32 %v11049_v16, %v24184_v38  ;;  %v24192_v16 = vld [vmem:[#allocation59_spill] sm:$0xff] }
 0x892   : > { %v11751_v62 = vrot.slane %v11750_v2, 4 }
 0x893   : > { %v11758_v28 = vsel %vm9090_vm7, %v11231_v41, 0.0 }
 0x894   : > { %v11752_v49 = vadd.f32 %v11751_v62, %v11750_v2  ;;  %v11759_v15 = vadd.f32 %v11758_v28, %v11757_v60  ;;  %v11060_v30 = vpop.permute.xlu1 %11059  ;;  %v24193_v28 = vld [vmem:[#allocation45_spill] sm:$0xff] }
 0x895   : > { %v11233_v29 = vmul.f32 %v11060_v30, %v24186_v37  ;;  %v11240_v19 = vmul.f32 %v21603_v55, %v24193_v28 }
 0x896   : > { %v11753_v8 = vrot.slane %v11752_v49, 2  ;;  %v11760_v56 = vrot.slane %v11759_v15, 4 }
 0x897   : > { %v11767_v22 = vsel %vm9090_vm7, %v11233_v29, 0.0 }
 0x898   : > { %v11754_v32 = vadd.f32 %v11753_v8, %v11752_v49  ;;  %v11761_v11 = vadd.f32 %v11760_v56, %v11759_v15  ;;  %v11768_v25 = vadd.f32 %v11767_v22, %v11766_v21  ;;  %v11071_v7 = vpop.permute.xlu1 %11070  ;;  %v24194_v56 = vld [vmem:[#allocation292_spill] sm:$0xff] }
 0x899   : > { %v11235_v23 = vmul.f32 %v11071_v7, %v24188_v4 }
 0x89a   : > { %v11762_v40 = vrot.slane %v11761_v11, 2  ;;  %v11769_v58 = vrot.slane %v11768_v25, 4  ;;  %v11755_v61 = vrot.slane %v11754_v32, 1 }
 0x89b   : > { %v11776_v14 = vsel %vm9090_vm7, %v11235_v23, 0.0 }
 0x89c   : > { %v11763_v51 = vadd.f32 %v11762_v40, %v11761_v11  ;;  %v11770_v44 = vadd.f32 %v11769_v58, %v11768_v25  ;;  %v11777_v39 = vadd.f32 %v11776_v14, %v11775_v52  ;;  %v11082_v5 = vpop.permute.xlu1 %11081  ;;  %v11756_v57 = vadd.f32 %v11755_v61, %v11754_v32  ;;  %v24195_v25 = vld [vmem:[#allocation149_spill] sm:$0xff] }
 0x89d   : > { %v11237_v63 = vmul.f32 %v11082_v5, %v24190_v59  ;;  %v11802_v11 = vsel %vm9090_vm7, %v11240_v19, 0.0  ;;  %v11196_v7 = vmul.f32 %v21617_v33, %v24195_v25  ;;  %v24197_v5 = vld [vmem:[#allocation171_spill] sm:$0xff] }
 0x89e   : > { %v11764_v50 = vrot.slane %v11763_v51, 1  ;;  %v11771_v0 = vrot.slane %v11770_v44, 2  ;;  %v11778_v9 = vrot.slane %v11777_v39, 4  ;;  %v11198_v59 = vmul.f32 %v21626_v27, %v24197_v5 }
 0x89f   : > { %v11785_v45 = vsel %vm9090_vm7, %v11237_v63, 0.0 }
 0x8a0   : > { %v11765_v34 = vadd.f32 %v11764_v50, %v11763_v51  ;;  %v11772_v1 = vadd.f32 %v11771_v0, %v11770_v44  ;;  %v11779_v46 = vadd.f32 %v11778_v9, %v11777_v39  ;;  %v11786_v24 = vadd.f32 %v11785_v45, %v11784_v54  ;;  %v11093_v2 = vpop.permute.xlu1 %11092 }
 0x8a1   : > { %v11239_v38 = vmul.f32 %v11093_v2, %v24192_v16  ;;  %v11604_v39 = vsel %vm9090_vm7, %v11196_v7, 0.0 }
 0x8a2   : > { %v11997_v41 = vsel %vm9371_vm8, %v11765_v34, %v11756_v57  ;;  %v11773_v62 = vrot.slane %v11772_v1, 1  ;;  %v11780_v60 = vrot.slane %v11779_v46, 2  ;;  %v11787_v42 = vrot.slane %v11786_v24, 4 }
 0x8a3   : > { %v11794_v49 = vsel %vm9090_vm7, %v11239_v38, 0.0 }
 0x8a4   : > { %v11774_v15 = vadd.f32 %v11773_v62, %v11772_v1  ;;  %v11781_v30 = vadd.f32 %v11780_v60, %v11779_v46  ;;  %v11788_v37 = vadd.f32 %v11787_v42, %v11786_v24  ;;  %v11795_v29 = vadd.f32 %v11794_v49, %v11793_v31  ;;  %v11104_v8 = vpop.permute.xlu1 %11103  ;;  %v24199_v24 = vld [vmem:[#allocation198_spill] sm:$0xff]  ;;  %v24200_v42 = vld [vmem:[#allocation255_spill] sm:$0xff] }
 0x8a5   : > { %v11241_v21 = vmul.f32 %v11104_v8, %v24194_v56  ;;  %v11613_v46 = vsel %vm9090_vm7, %v11198_v59, 0.0  ;;  %v11200_v2 = vmul.f32 %v21639_v3, %v24199_v24  ;;  %v24205_v59 = vld [vmem:[#allocation225_spill] sm:$0xff] }
 0x8a6   : > { %v11998_v20 = vsel %vm9373_vm9, %v11774_v15, %v11997_v41  ;;  %v11782_v26 = vrot.slane %v11781_v30, 1  ;;  %v11789_v22 = vrot.slane %v11788_v37, 2  ;;  %v11796_v32 = vrot.slane %v11795_v29, 4 }
 0x8a7   : > { %v11803_v55 = vsel %vm9090_vm7, %v11241_v21, 0.0 }
 0x8a8   : > { %v11783_v4 = vadd.f32 %v11782_v26, %v11781_v30  ;;  %v11790_v23 = vadd.f32 %v11789_v22, %v11788_v37  ;;  %v11797_v40 = vadd.f32 %v11796_v32, %v11795_v29  ;;  %v11804_v58 = vadd.f32 %v11803_v55, %v11802_v11  ;;  %v10862_v52 = vpop.permute.xlu1 %10861  ;;  %v24201_v37 = vld [vmem:[#allocation196_spill] sm:$0xff]  ;;  %v24202_v22 = vld [vmem:[#allocation250_spill] sm:$0xff] }
 0x8a9   : > { %v11197_v47 = vmul.f32 %v10862_v52, %v24196_v53  ;;  %v11622_v30 = vsel %vm9090_vm7, %v11200_v2, 0.0  ;;  %v11202_v29 = vmul.f32 %v21650_v18, %v24201_v37  ;;  %v24207_v2 = vld [vmem:[#allocation190_spill] sm:$0xff] }
 0x8aa   : > { %v11791_v61 = vrot.slane %v11790_v23, 1  ;;  %v11798_v14 = vrot.slane %v11797_v40, 2  ;;  %v11805_v51 = vrot.slane %v11804_v58, 4  ;;  %v11999_v44 = vsel %vm9375_vm10, %v11783_v4, %v11998_v20  ;;  %v24203_v4 = vld [vmem:[#allocation50_spill] sm:$0xff] }
 0x8ab   : > { %v11605_v33 = vsel %vm9090_vm7, %v11197_v47, 0.0  ;;  %v11631_v55 = vsel %vm9090_vm7, %v11202_v29, 0.0  ;;  %v24209_v37 = vld [vmem:[#allocation154_spill] sm:$0xff] }
 0x8ac   : > { %v11792_v63 = vadd.f32 %v11791_v61, %v11790_v23  ;;  %v11799_v50 = vadd.f32 %v11798_v14, %v11797_v40  ;;  %v11806_v0 = vadd.f32 %v11805_v51, %v11804_v58  ;;  %v11606_v9 = vadd.f32 %v11605_v33, %v11604_v39  ;;  %v10873_v54 = vpop.permute.xlu1 %10872  ;;  %v24204_v61 = vld [vmem:[#allocation221_spill] sm:$0xff] }
 0x8ad   : > { %v11199_v13 = vmul.f32 %v10873_v54, %v24198_v36  ;;  %v11204_v23 = vmul.f32 %v21662_v43, %v24203_v4  ;;  %v11206_v33 = vmul.f32 %v21673_v12, %v24205_v59  ;;  %v11208_v12 = vmul.f32 %v21682_v10, %v24207_v2  ;;  %v11825_v2 = vld [vmem:[#allocation7 + $0x28] sm:$0xff] }
 0x8ae   : > { %v11800_v57 = vrot.slane %v11799_v50, 1  ;;  %v11807_v45 = vrot.slane %v11806_v0, 2  ;;  %v11607_v34 = vrot.slane %v11606_v9, 4  ;;  %v12000_v1 = vsel %vm9377_vm11, %v11792_v63, %v11999_v44 }
 0x8af   : > { %v11614_v27 = vsel %vm9090_vm7, %v11199_v13, 0.0  ;;  %v11640_v5 = vsel %vm9090_vm7, %v11204_v23, 0.0  ;;  %v24206_v13 = vld [vmem:[#allocation208_spill] sm:$0xff]  ;;  %v11649_v24 = vsel %vm9090_vm7, %v11206_v33, 0.0  ;;  %v11210_v29 = vmul.f32 %v21696_v35, %v24209_v37  ;;  %v24211_v23 = vld [vmem:[#allocation287_spill] sm:$0xff] }
 0x8b0   : > { %v11801_v16 = vadd.f32 %v11800_v57, %v11799_v50  ;;  %v11808_v38 = vadd.f32 %v11807_v45, %v11806_v0  ;;  %v11608_v41 = vadd.f32 %v11607_v34, %v11606_v9  ;;  %v11615_v62 = vadd.f32 %v11614_v27, %v11613_v46  ;;  %v10884_v60 = vpop.permute.xlu1 %10883 }
 0x8b1   : > { %v11201_v31 = vmul.f32 %v10884_v60, %v24200_v42  ;;  %v24208_v42 = vld [vmem:[#allocation204_spill] sm:$0xff]  ;;  %v11667_v4 = vsel %vm9090_vm7, %v11210_v29, 0.0 }
 0x8b2   : > { %v11809_v28 = vrot.slane %v11808_v38, 1  ;;  %v11609_v19 = vrot.slane %v11608_v41, 2  ;;  %v11616_v49 = vrot.slane %v11615_v62, 4  ;;  %v12001_v15 = vsel %vm9379_vm12, %v11801_v16, %v12000_v1 }
 0x8b3   : > { %v11623_v3 = vsel %vm9090_vm7, %v11201_v31, 0.0 }
 0x8b4   : > { %v11810_v8 = vadd.f32 %v11809_v28, %v11808_v38  ;;  %v11610_v56 = vadd.f32 %v11609_v19, %v11608_v41  ;;  %v11617_v21 = vadd.f32 %v11616_v49, %v11615_v62  ;;  %v11624_v20 = vadd.f32 %v11623_v3, %v11622_v30  ;;  %v10895_v26 = vpop.permute.xlu1 %10894 }
 0x8b5   : > { %v11203_v32 = vmul.f32 %v10895_v26, %v24202_v22  ;;  %v11658_v30 = vsel %vm9090_vm7, %v11208_v12, 0.0  ;;  %v24210_v26 = vld [vmem:[#allocation28_spill] sm:$0xff] }
 0x8b6   : > { %v11618_v11 = vrot.slane %v11617_v21, 2  ;;  %v11625_v25 = vrot.slane %v11624_v20, 4  ;;  %v21826_v7 = vsel %vm9381_vm13, %v11810_v8, %v12001_v15  ;;  %v11611_v18 = vrot.slane %v11610_v56, 1 }
 0x8b7   : > { %v11632_v40 = vsel %vm9090_vm7, %v11203_v32, 0.0 }
 0x8b8   : > { %v11619_v58 = vadd.f32 %v11618_v11, %v11617_v21  ;;  %v11626_v52 = vadd.f32 %v11625_v25, %v11624_v20  ;;  %v11633_v53 = vadd.f32 %v11632_v40, %v11631_v55  ;;  %v10906_v47 = vpop.permute.xlu1 %10905  ;;  %v11612_v63 = vadd.f32 %v11611_v18, %v11610_v56 }
 0x8b9   : > { %v11205_v14 = vmul.f32 %v10906_v47, %v24204_v61  ;;  %v11242_v18 = vmul.f32 %v21715_v48, %v24211_v23  ;;  %v24212_v61 = vld [vmem:[#allocation213_spill] sm:$0xff] }
 0x8ba   : > { %v11620_v51 = vrot.slane %v11619_v58, 1  ;;  %v11627_v44 = vrot.slane %v11626_v52, 2  ;;  %v11634_v39 = vrot.slane %v11633_v53, 4 }
 0x8bb   : > { %v11641_v43 = vsel %vm9090_vm7, %v11205_v14, 0.0  ;;  %v11811_v59 = vsel %vm9090_vm7, %v11242_v18, 0.0 }
 0x8bc   : > { %v11621_v50 = vadd.f32 %v11620_v51, %v11619_v58  ;;  %v11628_v0 = vadd.f32 %v11627_v44, %v11626_v52  ;;  %v11635_v9 = vadd.f32 %v11634_v39, %v11633_v53  ;;  %v11642_v54 = vadd.f32 %v11641_v43, %v11640_v5  ;;  %v10917_v36 = vpop.permute.xlu1 %10916 }
 0x8bd   : > { %v11207_v57 = vmul.f32 %v10917_v36, %v24206_v13 }
 0x8be   : > { %v11983_v45 = vsel %vm9371_vm8, %v11621_v50, %v11612_v63  ;;  %v11629_v34 = vrot.slane %v11628_v0, 1  ;;  %v11636_v1 = vrot.slane %v11635_v9, 2  ;;  %v11643_v46 = vrot.slane %v11642_v54, 4 }
 0x8bf   : > { %v11650_v27 = vsel %vm9090_vm7, %v11207_v57, 0.0 }
 0x8c0   : > { %v11630_v16 = vadd.f32 %v11629_v34, %v11628_v0  ;;  %v11637_v38 = vadd.f32 %v11636_v1, %v11635_v9  ;;  %v11644_v41 = vadd.f32 %v11643_v46, %v11642_v54  ;;  %v11651_v62 = vadd.f32 %v11650_v27, %v11649_v24  ;;  %v10928_v60 = vpop.permute.xlu1 %10927 }
 0x8c1   : > { %v11209_v31 = vmul.f32 %v10928_v60, %v24208_v42 }
 0x8c2   : > { %v11984_v28 = vsel %vm9373_vm9, %v11630_v16, %v11983_v45  ;;  %v11638_v19 = vrot.slane %v11637_v38, 1  ;;  %v11645_v49 = vrot.slane %v11644_v41, 2  ;;  %v11652_v15 = vrot.slane %v11651_v62, 4  ;;  %v11823_v16 = vld [vmem:[#allocation7 + $0x18] sm:$0xff] }
 0x8c3   : > { %v11659_v10 = vsel %vm9090_vm7, %v11209_v31, 0.0  ;;  %v11827_v31 = vld [vmem:[#allocation7 + $0x38] sm:$0xff] }
 0x8c4   : > { %v11639_v3 = vadd.f32 %v11638_v19, %v11637_v38  ;;  %v11646_v8 = vadd.f32 %v11645_v49, %v11644_v41  ;;  %v11653_v56 = vadd.f32 %v11652_v15, %v11651_v62  ;;  %v11660_v21 = vadd.f32 %v11659_v10, %v11658_v30  ;;  %v10939_v20 = vpop.permute.xlu1 %10938  ;;  %v24213_v19 = vld [vmem:[#allocation274_spill] sm:$0xff]  ;;  %v11821_v15 = vld [vmem:[#allocation7 + $0x8] sm:$0xff] }
 0x8c5   : > { %v11211_v22 = vmul.f32 %v10939_v20, %v24210_v26 }
 0x8c6   : > { %v11647_v32 = vrot.slane %v11646_v8, 1  ;;  %v11654_v11 = vrot.slane %v11653_v56, 2  ;;  %v11661_v25 = vrot.slane %v11660_v21, 4  ;;  %v11985_v55 = vsel %vm9375_vm10, %v11639_v3, %v11984_v28 }
 0x8c7   : > { %v11668_v35 = vsel %vm9090_vm7, %v11211_v22, 0.0 }
 0x8c8   : > { %v11648_v40 = vadd.f32 %v11647_v32, %v11646_v8  ;;  %v11655_v58 = vadd.f32 %v11654_v11, %v11653_v56  ;;  %v11662_v52 = vadd.f32 %v11661_v25, %v11660_v21  ;;  %v11669_v53 = vadd.f32 %v11668_v35, %v11667_v4  ;;  %v11115_v47 = vpop.permute.xlu1 %11114  ;;  %v24214_v8 = vld [vmem:[#allocation74_spill] sm:$0xff]  ;;  %v24215_v21 = vld [vmem:[#allocation273_spill] sm:$0xff]  ;;  %v24216_v25 = vld [vmem:[#allocation39_spill] sm:$0xff] }
 0x8c9   : > { %v11243_v14 = vmul.f32 %v11115_v47, %v24212_v61  ;;  %v14399_v47 = vmov (!%p13362_p0), 0   ;;  %v12066_v61 = vld [vmem:[#allocation6 + $0x10] sm:$0xff] (!%p13362_p0) }
 0x8ca   : > { %v11656_v51 = vrot.slane %v11655_v58, 1  ;;  %v11663_v44 = vrot.slane %v11662_v52, 2  ;;  %v11670_v39 = vrot.slane %v11669_v53, 4  ;;  %v11986_v5 = vsel %vm9377_vm11, %v11648_v40, %v11985_v55  ;;  %14233 = vset.pattern.permute.xlu1 (!%p13362_p0), %v14399_v47  ;;  %14232 = vset.pattern.permute.xlu0 (!%p13362_p0), %v14399_v47 }
 0x8cb   : > { %v11812_v33 = vsel %vm9090_vm7, %v11243_v14, 0.0  ;;  %v12067_v14 = vld [vmem:[#allocation6 + $0x18] sm:$0xff] (!%p13362_p0) }
 0x8cc   : > { %v11657_v48 = vadd.f32 %v11656_v51, %v11655_v58  ;;  %v11664_v63 = vadd.f32 %v11663_v44, %v11662_v52  ;;  %v11671_v43 = vadd.f32 %v11670_v39, %v11669_v53  ;;  %v11813_v50 = vadd.f32 %v11812_v33, %v11811_v59  ;;  %v11836_v0 = vpop.permute.xlu1 %11835  ;;  %v12068_v52 = vld [vmem:[#allocation6 + $0x20] sm:$0xff] (!%p13362_p0)  ;;  %v12065_v51 = vld [vmem:[#allocation6 + $0x8] sm:$0xff] (!%p13362_p0)  ;;  %v12071_v44 = vld [vmem:[#allocation6 + $0x38] sm:$0xff] (!%p13362_p0) }
 0x8cd   : > { %v11869_v3 = vmul.f32 %v11836_v0, %v11821_v15  ;;  %v12064_v53 = vld [vmem:[#allocation6] sm:$0xff] (!%p13362_p0)  ;;  %v12069_v39 = vld [vmem:[#allocation6 + $0x28] sm:$0xff] (!%p13362_p0) }
 0x8ce   : > { %v11665_v9 = vrot.slane %v11664_v63, 1  ;;  %v11672_v54 = vrot.slane %v11671_v43, 2  ;;  %v11814_v36 = vrot.slane %v11813_v50, 4  ;;  %v11987_v13 = vsel %vm9379_vm12, %v11657_v48, %v11986_v5  ;;  %12074 = vperm.xlu0 (!%p13362_p0), %14232, %v12064_v53   ;;  %v12056_v0 = vld [vmem:[#allocation7] sm:$0xff] (!%p13362_p0) }
 0x8cf   : > { %v11877_v55 = vadd.f32 %v24216_v25, %v11869_v3  ;;  %v24218_v3 = vld [vmem:[#allocation33_spill] sm:$0xff] (!%p13362_p0) }
 0x8d0   : > { %v11666_v57 = vadd.f32 %v11665_v9, %v11664_v63  ;;  %v11673_v45 = vadd.f32 %v11672_v54, %v11671_v43  ;;  %v11815_v34 = vadd.f32 %v11814_v36, %v11813_v50  ;;  %v11846_v1 = vpop.permute.xlu1 %11845 }
 0x8d1   : > { %v11871_v28 = vmul.f32 %v11846_v1, %v11823_v16  ;;  %v14400_v1 = vmov (!%p13362_p0), 0.0  }
 0x8d2   : > { %v11674_v46 = vrot.slane %v11673_v45, 1  ;;  %v11816_v24 = vrot.slane %v11815_v34, 2  ;;  %v11988_v12 = vsel %vm9381_vm13, %v11666_v57, %v11987_v13  ;;  %12084 = vperm.xlu0 (!%p13362_p0), %14232, %v12066_v61  }
 0x8d3   : > { %v11879_v56 = vadd.f32 %v24214_v8, %v11871_v28 }
 0x8d4   : > { %v11817_v27 = vadd.f32 %v11816_v24, %v11815_v34  ;;  %v11856_v38 = vpop.permute.xlu1 %11855  ;;  %v11675_v41 = vadd.f32 %v11674_v46, %v11673_v45  ;;  %v12058_v24 = vld [vmem:[#allocation7 + $0x10] sm:$0xff] (!%p13362_p0) }
 0x8d5   : > { %v11873_v62 = vmul.f32 %v11856_v38, %v11825_v2  ;;  %v24217_v2 = vld [vmem:[#allocation32_spill] sm:$0xff] (!%p13362_p0) }
 0x8d6   : > { %v11818_v60 = vrot.slane %v11817_v27, 1  ;;  %v11989_v42 = vsel %vm9383_vm14, %v11675_v41, %v11988_v12  ;;  %12079 = vperm.xlu0 (!%p13362_p0), %14232, %v12065_v51  }
 0x8d7   : > { %12014 = vrot.lane.b32.xlu1 %v11989_v42, %s14398_s16  ;;  %v11881_v49 = vadd.f32 %v24213_v19, %v11873_v62 }
 0x8d8   : > { %v11866_v30 = vpop.permute.xlu1 %11865  ;;  %v11819_v37 = vadd.f32 %v11818_v60, %v11817_v27 }
 0x8d9   : > { %v11875_v29 = vmul.f32 %v11866_v30, %v11827_v31 }
 0x8da   : > { %v12003_v10 = vsel %vm9383_vm14, %v11819_v37, %v21826_v7  ;;  %12099 = vperm.xlu0 (!%p13362_p0), %14232, %v12069_v39  }
 0x8db   : > { %12018 = vrot.lane.b32.xlu1 %v12003_v10, %s14398_s16  ;;  %v11883_v20 = vadd.f32 %v24215_v21, %v11875_v29 }
 0x8dc   : > { %v12013_v26 = vpop.permute.xlu0 %12012  ;;  %v12011_v22 = vpop.permute.xlu1 %12010 }
 0x8dd   : > { %v12032_v32 = vadd.f32 %v12013_v26, %v21747_v6  ;;  %v12031_v11 = vadd.f32 %v12011_v22, %v11879_v56 }
 0x8df   : > { %12040 = vst.msk [vmem:[#allocation7 + $0x20] sm:$0xff] %vm2529_vm5, %v12032_v32  ;;  %12039 = vst.msk [vmem:[#allocation7 + $0x18] sm:$0xff] %vm2529_vm5, %v12031_v11  ;;  %12094 = vperm.xlu1 (!%p13362_p0), %14233, %v12068_v52  }
 0x8e0   : > { %v12017_v4 = vpop.permute.xlu0 %12016  ;;  %v12007_v7 = vpop.permute.xlu1 %12006 }
 0x8e1   : > { %v12034_v23 = vadd.f32 %v12017_v4, %v21754_v17  ;;  %v12029_v18 = vadd.f32 %v12007_v7, %v11877_v55  ;;  %v12070_v17 = vld [vmem:[#allocation6 + $0x30] sm:$0xff] (!%p13362_p0) }
 0x8e3   : > { %12042 = vst.msk [vmem:[#allocation7 + $0x30] sm:$0xff] %vm2529_vm5, %v12034_v23  ;;  %12037 = vst.msk [vmem:[#allocation7 + $0x8] sm:$0xff] %vm2529_vm5, %v12029_v18  ;;  %12104 = vperm.xlu1 (!%p13362_p0), %14233, %v12070_v17  }
 0x8e6   : > { %v12060_v50 = vld [vmem:[#allocation7 + $0x20] sm:$0xff] (!%p13362_p0)  ;;  %v12059_v31 = vld [vmem:[#allocation7 + $0x18] sm:$0xff] (!%p13362_p0) }
 0x8e7   : > { %12089 = vperm.xlu1 (!%p13362_p0), %14233, %v12067_v14  }
 0x8ea   : > { %v12062_v34 = vld [vmem:[#allocation7 + $0x30] sm:$0xff] (!%p13362_p0)  ;;  %v12057_v30 = vld [vmem:[#allocation7 + $0x8] sm:$0xff] (!%p13362_p0) }
 0x8eb   : > { %12109 = vperm.xlu1 (!%p13362_p0), %14233, %v12071_v44  }
 0x949   : > { %v12015_v35 = vpop.permute.xlu1 %12014 }
 0x94a   : > { %v12033_v40 = vadd.f32 %v12015_v35, %v11881_v49  ;;  %12055 = sbr.rel (%p13362_p0) target bundleno = 2783 (0xadf), region = 174 }
 0x94c   : > { %12041 = vst.msk [vmem:[#allocation7 + $0x28] sm:$0xff] %vm2529_vm5, %v12033_v40 }
 0x94d   : > { %v12019_v6 = vpop.permute.xlu1 %12018  ;;  %v12075_v59 = vpop.permute.xlu0 (!%p13362_p0), %12074 }
 0x94e   : > { %v12035_v58 = vadd.f32 %v12019_v6, %v11883_v20 }
 0x950   : > { %12043 = vst.msk [vmem:[#allocation7 + $0x38] sm:$0xff] %vm2529_vm5, %v12035_v58 }
 0x951   : > { %v12085_v48 = vpop.permute.xlu0 %12084 }
 0x953   : > { %v12061_v35 = vld [vmem:[#allocation7 + $0x28] sm:$0xff] }
 0x955   : > { %v12080_v43 = vpop.permute.xlu0 %12079 }
 0x957   : > { %v12063_v55 = vld [vmem:[#allocation7 + $0x38] sm:$0xff] }
 0x959   : > { %v12100_v57 = vpop.permute.xlu0 %12099 }
 0x95e   : > { %v12095_v5 = vpop.permute.xlu1 %12094 }
 0x95f   : > { %14234 = vrcp.f32 %v12095_v5 }
 0x960   : > { %14236 = vrcp.f32 %v12075_v59 }
 0x962   : > { %v12105_v33 = vpop.permute.xlu1 %12104 }
 0x963   : > { %14238 = vrcp.f32 %v12105_v33 }
 0x964   : > { %14240 = vrcp.f32 %v12085_v48 }
 0x966   : > { %v12090_v63 = vpop.permute.xlu1 %12089 }
 0x967   : > { %14242 = vrcp.f32 %v12090_v63 }
 0x968   : > { %14244 = vrcp.f32 %v12080_v43 }
 0x969   : > { %v14235_v9 = vpop.eup %14234 }
 0x96a   : > { %v14237_v54 = vpop.eup %14236  ;;  %v12121_v36 = vmul.f32 %v14235_v9, %v12060_v50  ;;  %v12110_v13 = vpop.permute.xlu1 %12109 }
 0x96b   : > { %v12113_v45 = vmul.f32 %v14237_v54, %v12056_v0  ;;  %14246 = vrcp.f32 %v12110_v13 }
 0x96c   : > { %v12143_v46 = vcombine.high %v12121_v36, %v14400_v1  ;;  %14248 = vrcp.f32 %v12100_v57  ;;  %v12150_v12 = vrot.slane %v12121_v36, %v24217_v2 }
 0x96d   : > { %v14239_v27 = vpop.eup %14238  ;;  %v12128_v16 = vcombine.high %v12113_v45, %v14400_v1  ;;  %v12135_v38 = vrot.slane %v12113_v45, %v24217_v2 }
 0x96e   : > { %v14241_v41 = vpop.eup %14240  ;;  %v12125_v62 = vmul.f32 %v14239_v27, %v12062_v34  ;;  %v12157_v60 = vrot.slane %v12143_v46, %v24217_v2 }
 0x96f   : > { %v12117_v42 = vmul.f32 %v14241_v41, %v12058_v24  ;;  %v12142_v28 = vrot.slane %v12128_v16, %v24217_v2  ;;  %v12158_v19 = vcombine.low %v12135_v38, %v12150_v12  ;;  %v12159_v49 = vcombine.high %v12135_v38, %v12150_v12 }
 0x970   : > { %v12275_v15 = vcombine.high %v12125_v62, %v14400_v1  ;;  %v12282_v37 = vrot.slane %v12125_v62, %v24217_v2 }
 0x971   : > { %v14243_v29 = vpop.eup %14242  ;;  %v12260_v10 = vcombine.high %v12117_v42, %v14400_v1  ;;  %v12166_v8 = vrot.slane %v12158_v19, %v24218_v3  ;;  %v12173_v56 = vrot.slane %v12159_v49, %v24218_v3  ;;  %v12174_v21 = vcombine.low %v12142_v28, %v12157_v60 }
 0x972   : > { %v14245_v20 = vpop.eup %14244  ;;  %v12119_v26 = vmul.f32 %v14243_v29, %v12059_v31  ;;  %v12175_v22 = vcombine.high %v12142_v28, %v12157_v60  ;;  %v12267_v32 = vrot.slane %v12117_v42, %v24217_v2  ;;  %v12289_v11 = vrot.slane %v12275_v15, %v24217_v2 }
 0x973   : > { %v12115_v25 = vmul.f32 %v14245_v20, %v12057_v30  ;;  %v12182_v4 = vrot.slane %v12174_v21, %v24218_v3  ;;  %v12392_v7 = vcombine.low %v12166_v8, %v12173_v56  ;;  %v13363_v23 = vcombine.high %v12166_v8, %v12173_v56 }
 0x974   : > { %v12326_v18 = vcombine.high %v12119_v26, %v14400_v1  ;;  %v12189_v40 = vrot.slane %v12175_v22, %v24218_v3  ;;  %v12274_v6 = vrot.slane %v12260_v10, %v24217_v2  ;;  %v12290_v58 = vcombine.low %v12267_v32, %v12282_v37 }
 0x975   : > { %v14247_v52 = vpop.eup %14246  ;;  %v12194_v53 = vcombine.high %v12115_v25, %v14400_v1  ;;  %v12399_v47 = vrot.slane %v12392_v7, %v24217_v2  ;;  %v12407_v17 = vrot.slane %v13363_v23, %v24217_v2  ;;  %v12291_v61 = vcombine.high %v12267_v32, %v12282_v37 }
 0x976   : > { %v14249_v14 = vpop.eup %14248  ;;  %v12127_v51 = vmul.f32 %v14247_v52, %v12063_v55  ;;  %v12408_v44 = vcombine.low %v12182_v4, %v12189_v40  ;;  %v13364_v39 = vcombine.high %v12182_v4, %v12189_v40  ;;  %v12298_v5 = vrot.slane %v12290_v58, %v24218_v3  ;;  %v12616_v52 = vld [vmem:[%s14904_s29] sm:$0xff] }
 0x977   : > { %v12123_v59 = vmul.f32 %v14249_v14, %v12061_v35  ;;  %v12424_v33 = vcombine.low %v12399_v47, %v12407_v17  ;;  %v12305_v48 = vrot.slane %v12291_v61, %v24218_v3  ;;  %v12306_v63 = vcombine.low %v12274_v6, %v12289_v11 }
 0x978   : > { %v12341_v43 = vcombine.high %v12127_v51, %v14400_v1  ;;  %v12415_v50 = vrot.slane %v12408_v44, %v24217_v2  ;;  %v12423_v0 = vrot.slane %v13364_v39, %v24217_v2  ;;  %v12307_v9 = vcombine.high %v12274_v6, %v12289_v11 }
 0x979   : > { %v12209_v54 = vcombine.high %v12123_v59, %v14400_v1  ;;  %v21899_v36 = vrot.slane %v12424_v33, %v24218_v3  ;;  %v12314_v13 = vrot.slane %v12306_v63, %v24218_v3  ;;  %v12492_v57 = vcombine.low %v12298_v5, %v12305_v48 }
 0x97a   : > { %v12432_v45 = vcombine.low %v12415_v50, %v12423_v0  ;;  %v12321_v34 = vrot.slane %v12307_v9, %v24218_v3  ;;  %v13367_v46 = vcombine.high %v12298_v5, %v12305_v48  ;;  %v12333_v24 = vrot.slane %v12119_v26, %v24217_v2 }
 0x97b   : > { %v12499_v12 = vrot.slane %v12492_v57, %v24217_v2  ;;  %v12340_v27 = vrot.slane %v12326_v18, %v24217_v2  ;;  %v12348_v16 = vrot.slane %v12127_v51, %v24217_v2  ;;  %v12355_v1 = vrot.slane %v12341_v43, %v24217_v2 }
 0x97c   : > { %v21909_v38 = vrot.slane %v12432_v45, %v24218_v3  ;;  %v12507_v41 = vrot.slane %v13367_v46, %v24217_v2  ;;  %v12508_v62 = vcombine.low %v12314_v13, %v12321_v34  ;;  %v13368_v60 = vcombine.high %v12314_v13, %v12321_v34 }
 0x97d   : > { %v12356_v42 = vcombine.low %v12333_v24, %v12348_v16  ;;  %v12357_v31 = vcombine.high %v12333_v24, %v12348_v16  ;;  %v12372_v28 = vcombine.low %v12340_v27, %v12355_v1  ;;  %v12373_v19 = vcombine.high %v12340_v27, %v12355_v1 }
 0x97e   : > { %v12441_v49 = vcombine.high %v21899_v36, %v21909_v38  ;;  %v12515_v15 = vrot.slane %v12508_v62, %v24217_v2  ;;  %v12523_v30 = vrot.slane %v13368_v60, %v24217_v2  ;;  %v12524_v37 = vcombine.low %v12499_v12, %v12507_v41 }
 0x97f   : > { %v12364_v29 = vrot.slane %v12356_v42, %v24218_v3  ;;  %v12371_v10 = vrot.slane %v12357_v31, %v24218_v3  ;;  %v12380_v8 = vrot.slane %v12372_v28, %v24218_v3  ;;  %v12387_v56 = vrot.slane %v12373_v19, %v24218_v3 }
 0x980   : > { %12596 = vrot.lane.b32.xlu0 %v12441_v49, %s14401_s11  ;;  %v12531_v21 = vrot.slane %v12524_v37, %v24218_v3  ;;  %v12532_v20 = vcombine.low %v12515_v15, %v12523_v30  ;;  %v12201_v26 = vrot.slane %v12115_v25, %v24217_v2  ;;  %v12208_v22 = vrot.slane %v12194_v53, %v24217_v2  ;;  %v12617_v53 = vld [vmem:[%s14904_s29 + $0x8] sm:$0xff]  ;;  %v12615_v15 = vld [vmem:[#allocation8 + $0x18] sm:$0xff]  ;;  %v12614_v30 = vld [vmem:[#allocation8 + $0x10] sm:$0xff] }
 0x981   : > { %v12542_v32 = vcombine.low %v12364_v29, %v12371_v10  ;;  %v13369_v11 = vcombine.high %v12364_v29, %v12371_v10  ;;  %v12558_v55 = vcombine.low %v12380_v8, %v12387_v56  ;;  %v13370_v4 = vcombine.high %v12380_v8, %v12387_v56  ;;  %v12613_v56 = vld [vmem:[#allocation8 + $0x8] sm:$0xff] }
 0x982   : > { %v12539_v7 = vrot.slane %v12532_v20, %v24218_v3  ;;  %v12216_v23 = vrot.slane %v12123_v59, %v24217_v2  ;;  %v12223_v18 = vrot.slane %v12209_v54, %v24217_v2  ;;  %v12440_v35 = vcombine.low %v21899_v36, %v21909_v38 }
 0x983   : > { %v12549_v40 = vrot.slane %v12542_v32, %v24217_v2  ;;  %v12557_v6 = vrot.slane %v13369_v11, %v24217_v2  ;;  %v12565_v25 = vrot.slane %v12558_v55, %v24217_v2  ;;  %v12573_v58 = vrot.slane %v13370_v4, %v24217_v2 }
 0x984   : > { %v12541_v47 = vcombine.high %v12531_v21, %v12539_v7  ;;  %v12224_v17 = vcombine.low %v12201_v26, %v12216_v23  ;;  %v12225_v61 = vcombine.high %v12201_v26, %v12216_v23  ;;  %v12240_v14 = vcombine.low %v12208_v22, %v12223_v18 }
 0x985   : > { %v12574_v51 = vcombine.low %v12549_v40, %v12557_v6  ;;  %v12582_v44 = vcombine.low %v12565_v25, %v12573_v58  ;;  %v12241_v39 = vcombine.high %v12208_v22, %v12223_v18  ;;  %v12540_v5 = vcombine.low %v12531_v21, %v12539_v7  ;;  %v12612_v21 = vld [vmem:[#allocation8] sm:$0xff] }
 0x986   : > { %12600 = vrot.lane.b32.xlu1 %v12541_v47, %s14401_s11  ;;  %v12232_v59 = vrot.slane %v12224_v17, %v24218_v3  ;;  %v12239_v33 = vrot.slane %v12225_v61, %v24218_v3  ;;  %v12248_v48 = vrot.slane %v12240_v14, %v24218_v3  ;;  %v13910_v63 = vpack.c.bf16 %v12617_v53, %v12616_v52 }
 0x987   : > { %v12581_v43 = vrot.slane %v12574_v51, %v24218_v3  ;;  %v12589_v50 = vrot.slane %v12582_v44, %v24218_v3  ;;  %v12255_v0 = vrot.slane %v12241_v39, %v24218_v3 }
 0x988   : > { %v12442_v9 = vcombine.low %v12232_v59, %v12239_v33  ;;  %v13365_v54 = vcombine.high %v12232_v59, %v12239_v33  ;;  %13911 = vmatprep.subr.bf16.mxu0 %v13910_v63  ;;  %13918 = vmatprep.subr.bf16.mxu1 %v13910_v63 }
 0x989   : > { %v12591_v36 = vcombine.high %v12581_v43, %v12589_v50  ;;  %v12458_v13 = vcombine.low %v12248_v48, %v12255_v0  ;;  %v13366_v57 = vcombine.high %v12248_v48, %v12255_v0  ;;  %13913 = vmatpush3.bf16.msra.mxu0 %v13910_v63  ;;  %13919 = vmatpush3.bf16.msra.mxu1 %v13910_v63 }
 0x98a   : > { %v12449_v45 = vrot.slane %v12442_v9, %v24217_v2  ;;  %v12457_v34 = vrot.slane %v13365_v54, %v24217_v2  ;;  %v12590_v46 = vcombine.low %v12581_v43, %v12589_v50 }
 0x98b   : > { %12602 = vrot.lane.b32.xlu1 %v12591_v36, %s14401_s11  ;;  %v12465_v24 = vrot.slane %v12458_v13, %v24217_v2  ;;  %v12473_v12 = vrot.slane %v13366_v57, %v24217_v2 }
 0x98c   : > { %v12474_v27 = vcombine.low %v12449_v45, %v12457_v34 }
 0x98d   : > { %v12482_v16 = vcombine.low %v12465_v24, %v12473_v12 }
 0x98e   : > { %v12481_v1 = vrot.slane %v12474_v27, %v24218_v3 }
 0x98f   : > { %v12489_v38 = vrot.slane %v12482_v16, %v24218_v3 }
 0x991   : > { %v12491_v41 = vcombine.high %v12481_v1, %v12489_v38  ;;  %v12490_v62 = vcombine.low %v12481_v1, %v12489_v38 }
 0x993   : > { %12598 = vrot.lane.b32.xlu0 %v12491_v41, %s14401_s11 }
 0x9f2   : > { %v12597_v60 = vpop.permute.xlu0 %12596 }
 0x9f3   : > { %v12608_v42 = vsel %vm2529_vm5, %v12440_v35, %v12597_v60 }
 0x9f4   : > { %13876 = vmatprep.mubr.msk.f32.mxu0 %vm10040_vm15, %v12608_v42 }
 0x9f8   : > { %v12601_v31 = vpop.permute.xlu1 %12600 }
 0x9f9   : > { %v12610_v28 = vsel %vm2529_vm5, %v12540_v5, %v12601_v31 }
 0x9fa   : > { %13879 = vmatprep.mubr.msk.f32.mxu1 %vm10040_vm15, %v12610_v28 }
 0x9fd   : > { %v12603_v2 = vpop.permute.xlu1 %12602 }
 0x9fe   : > { %v12611_v19 = vsel %vm2529_vm5, %v12590_v46, %v12603_v2 }
 0x9ff   : > { %13880 = vmatmul.mubr.msk.f32.vlgmr.msra.gmra.mrb[0].mxu1 %vm10040_vm15, %v12611_v19 }
 0xa05   : > { %v12599_v3 = vpop.permute.xlu0 %12598 }
 0xa06   : > { %v12609_v49 = vsel %vm2529_vm5, %v12490_v62, %v12599_v3 }
 0xa07   : > { %13877 = vmatmul.mubr.msk.f32.vlgmr.msra.gmra.mrb[0].mxu0 %vm10040_vm15, %v12609_v49 }
 0xad2   : > { %v13881_v37 = vpop.f32.mrb[0].mxu1 }
 0xad3   : > { %v12718_v29 = vadd.f32 %v13881_v37, %v12615_v15  ;;  %v12706_v10 = vpop.f32.mrb[1].mxu1 }
 0xad4   : > { %v12717_v8 = vadd.f32 %v12706_v10, %v12614_v30 }
 0xad5   : > { %12723 = vst.msk [vmem:[#allocation8 + $0x18] sm:$0xff] %vm12719_vm1, %v12718_v29 }
 0xad6   : > { %12722 = vst.msk [vmem:[#allocation8 + $0x10] sm:$0xff] %vm12719_vm1, %v12717_v8 }
 0xada   : > { %v13878_v20 = vpop.f32.mrb[0].mxu0 }
 0xadb   : > { %v12716_v26 = vadd.f32 %v13878_v20, %v12613_v56  ;;  %v12696_v22 = vpop.f32.mrb[1].mxu0 }
 0xadc   : > { %v12715_v32 = vadd.f32 %v12696_v22, %v12612_v21 }
 0xadd   : > { %12721 = vst.msk [vmem:[#allocation8 + $0x8] sm:$0xff] %vm12719_vm1, %v12716_v26 }
 0xade   : > { %12720 = vst.msk [vmem:[#allocation8] sm:$0xff] %vm12719_vm1, %v12715_v32 }
 0xadf PF: > { %p12724_p1 = scmp.eq.s32.totalorder %s14364_s24, 1 }
 0xae1   : > { %p12725_p2 = pnand %p12724_p1, %p12052_p13 }
 0xae2   : > { %s24219_s15 = sld [smem:[#allocation309_spill]] (!%p12725_p2)  ;;  %v12744_v4 = vld [vmem:[%s14890_s21] sm:$0xff] (!%p12725_p2)  ;;  %v12731_v23 = vld [vmem:[#allocation8 + $0x10] sm:$0xff] (!%p12725_p2)  ;;  %vm12752_vm2 = vcmask (!%p12725_p2), 261120   ;;  %v12745_v25 = vld [vmem:[%s14890_s21 + $0x8] sm:$0xff] (!%p12725_p2)  ;;  %s24221_s5 = sld [smem:[#allocation311_spill]] (!%p12725_p2) }
 0xae3   : > { %12728 = sbr.rel (%p12725_p2) target bundleno = 3119 (0xc2f), region = 178  ;;  %v12746_v18 = vld [vmem:[%s14890_s21 + $0x10] sm:$0xff] (!%p12725_p2)  ;;  %v12732_v58 = vld [vmem:[#allocation8 + $0x18] sm:$0xff] (!%p12725_p2) }
 0xae4   : > { %v12730_v35 = vld [vmem:[#allocation8 + $0x8] sm:$0xff] (!%p12725_p2)  ;;  %v12747_v52 = vld [vmem:[%s14890_s21 + $0x18] sm:$0xff] (!%p12725_p2)  ;;  %s24220_s21 = sld [smem:[#allocation310_spill]] (!%p12725_p2) }
 0xae5   : > { %v12729_v11 = vld [vmem:[#allocation8] sm:$0xff] (!%p12725_p2) }
 0xae8   : > { %v13375_v55 = vld [vmem:[%s24219_s15] ss:$0 sm:$0xff] (!%p12725_p2) }
 0xae9   : > { %v12740_v7 = vadd.f32 (!%p12725_p2), %v13375_v55, %v12729_v11  ;;  %v12742_v40 = vadd.f32 (!%p12725_p2), %v13375_v55, %v12731_v23  ;;  %v12741_v6 = vadd.f32 (!%p12725_p2), %v13375_v55, %v12730_v35  ;;  %v12743_v47 = vadd.f32 (!%p12725_p2), %v13375_v55, %v12732_v58  ;;  %v13377_v10 = vld [vmem:[%s24221_s5] ss:$0 sm:$0xff] (!%p12725_p2) }
 0xaea   : > { %v13376_v37 = vld [vmem:[%s24220_s21] ss:$0 sm:$0xff] }
 0xaeb   : > { %v12748_v53 = vadd.f32 %v12744_v4, %v12740_v7  ;;  %v12750_v17 = vadd.f32 %v12746_v18, %v12742_v40  ;;  %v12749_v61 = vadd.f32 %v12745_v25, %v12741_v6  ;;  %v12751_v51 = vadd.f32 %v12747_v52, %v12743_v47 }
 0xaed   : > { %v12753_v14 = vsel %vm12752_vm2, %v12748_v53, 0.0  ;;  %v12759_v44 = vsel %vm12752_vm2, %v12750_v17, 0.0  ;;  %v12756_v39 = vsel %vm12752_vm2, %v12749_v61, 0.0  ;;  %v12762_v5 = vsel %vm12752_vm2, %v12751_v51, 0.0 }
 0xaee   : > { %12754 = vadd.xlane.f32.xlu0 %v12753_v14  ;;  %12760 = vadd.xlane.f32.xlu1 %v12759_v44 }
 0xaf2   : > { %12757 = vadd.xlane.f32.xlu0 %v12756_v39  ;;  %12763 = vadd.xlane.f32.xlu1 %v12762_v5 }
 0xb7b   : > { %v12755_v59 = vpop.xlane.xlu0 %12754  ;;  %v12761_v48 = vpop.xlane.xlu1 %12760 }
 0xb7c   : > { %v12766_v33 = vmul.f32 0.03125, %v12755_v59  ;;  %v12768_v63 = vmul.f32 0.03125, %v12761_v48 }
 0xb7e   : > { %v12770_v43 = vsub.f32 %v12748_v53, %v12766_v33  ;;  %v12772_v50 = vsub.f32 %v12750_v17, %v12768_v63 }
 0xb7f   : > { %v12758_v0 = vpop.xlane.xlu0 %12757  ;;  %v12764_v54 = vpop.xlane.xlu1 %12763 }
 0xb80   : > { %v12767_v9 = vmul.f32 0.03125, %v12758_v0  ;;  %v12774_v36 = vmul.f32 %v12770_v43, %v12770_v43  ;;  %v12769_v13 = vmul.f32 0.03125, %v12764_v54  ;;  %v12776_v57 = vmul.f32 %v12772_v50, %v12772_v50 }
 0xb82   : > { %v12771_v45 = vsub.f32 %v12749_v61, %v12767_v9  ;;  %v12778_v34 = vsel %vm12752_vm2, %v12774_v36, 0.0  ;;  %v12773_v46 = vsub.f32 %v12751_v51, %v12769_v13  ;;  %v12784_v24 = vsel %vm12752_vm2, %v12776_v57, 0.0 }
 0xb83   : > { %12779 = vadd.xlane.f32.xlu0 %v12778_v34 }
 0xb84   : > { %v12775_v12 = vmul.f32 %v12771_v45, %v12771_v45  ;;  %v12777_v27 = vmul.f32 %v12773_v46, %v12773_v46 }
 0xb86   : > { %v12781_v16 = vsel %vm12752_vm2, %v12775_v12, 0.0  ;;  %v12787_v1 = vsel %vm12752_vm2, %v12777_v27, 0.0 }
 0xb87   : > { %12785 = vadd.xlane.f32.xlu0 %v12784_v24  ;;  %12782 = vadd.xlane.f32.xlu1 %v12781_v16 }
 0xb8b   : > { %12788 = vadd.xlane.f32.xlu1 %v12787_v1 }
 0xc10   : > { %v12780_v38 = vpop.xlane.xlu0 %12779 }
 0xc11   : > { %v12790_v41 = vmul.f32 0.03125, %v12780_v38 }
 0xc13   : > { %v12794_v62 = vadd.f32 1e-12, %v12790_v41 }
 0xc14   : > { %v12783_v60 = vpop.xlane.xlu1 %12782  ;;  %v12786_v42 = vpop.xlane.xlu0 %12785 }
 0xc15   : > { %14250 = vrsqrt.f32 %v12794_v62  ;;  %v12791_v31 = vmul.f32 0.03125, %v12783_v60  ;;  %v12792_v28 = vmul.f32 0.03125, %v12786_v42 }
 0xc17   : > { %v12795_v2 = vadd.f32 1e-12, %v12791_v31  ;;  %v12796_v19 = vadd.f32 1e-12, %v12792_v28 }
 0xc18   : > { %v12789_v3 = vpop.xlane.xlu1 %12788 }
 0xc19   : > { %14252 = vrsqrt.f32 %v12795_v2  ;;  %v12793_v49 = vmul.f32 0.03125, %v12789_v3 }
 0xc1a   : > { %14254 = vrsqrt.f32 %v12796_v19 }
 0xc1b   : > { %v12797_v15 = vadd.f32 1e-12, %v12793_v49 }
 0xc1d   : > { %14256 = vrsqrt.f32 %v12797_v15 }
 0xc1f   : > { %v14251_v30 = vpop.eup %14250 }
 0xc20   : > { %v12802_v29 = vmul.f32 %v14251_v30, %v12770_v43 }
 0xc22   : > { %v12813_v8 = vmul.f32 %v13376_v37, %v12802_v29 }
 0xc23   : > { %v14253_v56 = vpop.eup %14252 }
 0xc24   : > { %v14255_v21 = vpop.eup %14254  ;;  %v12824_v20 = vadd.f32 %v13377_v10, %v12813_v8  ;;  %v12803_v26 = vmul.f32 %v14253_v56, %v12771_v45 }
 0xc25   : > { %v12804_v22 = vmul.f32 %v14255_v21, %v12772_v50 }
 0xc26   : > { %12828 = vst.msk [vmem:[%s14921_s12] sm:$0xff] %vm12752_vm2, %v12824_v20  ;;  %v12814_v32 = vmul.f32 %v13376_v37, %v12803_v26 }
 0xc27   : > { %v14257_v11 = vpop.eup %14256  ;;  %v12815_v55 = vmul.f32 %v13376_v37, %v12804_v22 }
 0xc28   : > { %v12825_v4 = vadd.f32 %v13377_v10, %v12814_v32  ;;  %v12805_v7 = vmul.f32 %v14257_v11, %v12773_v46 }
 0xc29   : > { %v12826_v23 = vadd.f32 %v13377_v10, %v12815_v55 }
 0xc2a   : > { %12829 = vst.msk [vmem:[%s14921_s12 + $0x8] sm:$0xff] %vm12752_vm2, %v12825_v4  ;;  %v12816_v18 = vmul.f32 %v13376_v37, %v12805_v7 }
 0xc2b   : > { %12830 = vst.msk [vmem:[%s14921_s12 + $0x10] sm:$0xff] %vm12752_vm2, %v12826_v23 }
 0xc2c   : > { %v12827_v35 = vadd.f32 %v13377_v10, %v12816_v18 }
 0xc2e   : > { %12831 = vst.msk [vmem:[%s14921_s12 + $0x18] sm:$0xff] %vm12752_vm2, %v12827_v35 }
 0xc2f PF: > { %s13389_s18 = sshll.u32 %s14368_s25, 9  ;;  %s24222_s26 = sld [smem:[#allocation312_spill]] }
 0xc30   : > { %s12846_s30 = sshll.u32 %s14921_s12, 4  ;;  %s24224_s6 = sand.u32 1, %s14344_s19   ;;  %s21997_s30 = int_to_ptr.vmem [resolvable:$true] %s12846_s30 }
 0xc31   : > { %s22001_s3 = scalar_lea.sflag [#allocation12], %s24224_s6  ;;  %s14258_s10 = scalar_lea.vmem %s21997_s30, 512 }
 0xc32   : > { %p14259_p3 = scmp.ne.s32.totalorder %s21997_s30, %s14258_s10  ;;  %s14402_s25 = smov [#allocation11]  }
 0xc33   : > { %s14262_s17 = sshll.u32 %s14402_s25, 4  ;;  %s14263_s17 = int_to_ptr.vmem [resolvable:$false] %s14262_s17 }
 0xc34   : > { %p14260_p4 = pnand %p14259_p3, %p14569_p9  ;;  %s14264_s9 = scalar_lea.vmem %s14263_s17, 1024 }
 0xc35   : > { %s24223_s14 = smov %s24222_s26  ;;  %s21994_s28 = scalar_lea.hbm %s24222_s26, %s13389_s18 }
 0xc36   : > { %p14261_p5 = pneg %p14260_p4  ;;  %p14265_p6 = scmp.lt.s32.totalorder %s21997_s30, %s14263_s17 }
 0xc37   : > { %p14266_p7 = scmp.lt.s32.totalorder %s14264_s9, %s14258_s10 }
 0xc39   : > { %p14267_p8 = por %p14266_p7, %p14265_p6 }
 0xc3b   : > { %p14268_p10 = pnand %p14267_p8, %p14261_p5 }
 0xc3d   : > { %14271 = shalt.err (!%p14268_p10)
}
 0xc3e   : > { %s14272_s12 = scalar_lea.hbm %s21994_s28, 512  ;;  %s14276_s29 = scalar_lea.hbm %s24223_s14, 1024 }
 0xc3f   : > { %p14273_p12 = scmp.ne.s32.totalorder %s21994_s28, %s14272_s12  ;;  %p14277_p1 = scmp.lt.u32.totalorder %s21994_s28, %s24223_s14 }
 0xc40   : > { %p14278_p2 = scmp.lt.u32.totalorder %s14276_s29, %s14272_s12  ;;  %p14280_p4 = scmp.lt.u32.totalorder %s14272_s12, %s21994_s28 }
 0xc41   : > { %p14274_p13 = pnand %p14273_p12, %p14569_p9 }
 0xc42   : > { %p14279_p3 = por %p14278_p2, %p14277_p1 }
 0xc43   : > { %p14275_p0 = pneg %p14274_p13 }
 0xc44   : > { %p14281_p5 = por %p14280_p4, %p14279_p3 }
 0xc46   : > { %p14282_p6 = pnand %p14281_p5, %p14275_p0 }
 0xc48   : > { %14285 = shalt.err (!%p14282_p6)
}
 0xc49   : > { %s14403_s23 = smov 128   ;;  %s14404_s24 = smov 8  }
 0xc4a   : > { %13922 = dma.vmem_to_hbm [thread:$0]  (%p14569_p9), %s21997_s30, 512, %s21994_s28, %s22001_s3, %s14403_s23, %s14403_s23, %s14404_s24  }
 0xc4b PF: > { %s24225_s21 = sld [smem:[#allocation20_spill]]  ;;  %s24226_s7 = sld [smem:[#allocation14_spill]] }
 0xc51   : > { %p13928_p7 = scmp.ge.s32.totalorder %s24225_s21, 2  ;;  %s12861_s5 = sand.u32 1, %s24226_s7  }
 0xc52   : > { %s12862_s18 = scalar_lea.sflag [#allocation12], %s12861_s5 }
 0xc53   : > { %p13925_p8 = pnand %p13928_p7, %p14577_p11 }
 0xc55   : > { %14335 = dma.done.wait (!%p13925_p8), %s12862_s18, 512  }
 0xc56   : > { %14337 = vsyncadd (!%p13925_p8), %s12862_s18, 4294966784  ;;  %s28_s29 = sadd.s32 1, %s24225_s21   ;;  %s24228_s20 = sld [smem:[#allocation15_spill]] }
 0xc57   : > { %p25_p10 = scmp.ge.s32.totalorder %s28_s29, 10   ;;  %s24229_s22 = sld [smem:[#allocation25_spill]] }
 0xc58   : > { %s24230_s21 = sld [smem:[#allocation16_spill]]  ;;  %s24232_s23 = sld [smem:[#allocation17_spill]] }
 0xc59   : > { %s24231_s8 = sld [smem:[#allocation26_spill]]  ;;  %s24233_s24 = sld [smem:[#allocation18_spill]] }
 0xc5a   : > { %s24234_s25 = sld [smem:[#allocation19_spill]]  ;;  %s24235_s26 = sld [smem:[#allocation21_spill]] }
 0xc5b   : > { %s24236_s27 = sld [smem:[#allocation22_spill]]  ;;  %s24237_s28 = sld [smem:[#allocation23_spill]] }
 0xc5c   : > { %s24238_s18 = smov %s14344_s19  ;;  %s24239_s19 = smov %s24228_s20 }
 0xc5d   : > { %s24240_s20 = smov %s24229_s22  ;;  %27 = sbr.rel (!%p25_p10) target bundleno = 22 (0x16), region = 249 }
 0xc5f   : > { %s24241_s22 = smov %s24231_s8 }
 0xc64   :  { %12867 = vsyncpa [#allocation12], 1 }
 0xc65   :  { %12869 = vsyncpa [#allocation12 + $0x1], 1 }

</bundles_post_ra>
